<compile_context>
chip_gen: v5e
topology: v5e:2x2
jax: 0.10.0
libtpu: 0.0.40
codegen_flags: <defaults>
</compile_context>

<pallas_src>
import math
import numpy as np
import jax
import jax.numpy as jnp
from jax.experimental import pallas as pl
from jax.experimental.pallas import tpu as pltpu

# ----------------------------------------------------------------------------
# Model / layout constants
# ----------------------------------------------------------------------------
NODE_FEATURE_DIM = 2
HIDDEN_DIM = 64
HP = 128                      # hidden width padded to one full lane tile
POOL_DIM = 512
MLP_DIM = 1024
PRED_SIZE = 11
OUT_DIM = PRED_SIZE * PRED_SIZE * 2   # 242
OUT_PAD = 256                 # lane-dense output slab (2 x 128)
N_PAD = 384                   # fixed node bucket (>= 360 rays), multiple of 128

# Per-graph slab (bf16): adjacency in lanes 0:384, node features in lanes 384:386.
GSLAB_LANES = 512

# Weight slab A (bf16, 256 lanes): GCN weights (zero-padded 128x128 blocks) + wm2.
WA_LANES = 256
W1_OFF = 0        # rows 0:16   (real 2 x 64 in the top-left)
W2_OFF = 16       # rows 16:144 (real 64 x 64 in the top-left of a 128x128 block)
W3_OFF = 144      # rows 144:272
WM2_OFF = 272     # rows 272:1296 (1024 x 242 real, lanes 242:256 zero)
WA_ROWS = 1296

# Weight slab B (bf16, 1024 lanes): wp (zero-padded to 128 rows) + wm1.
WB_LANES = 1024
WP_OFF = 0        # rows 0:128   (real 64 x 512, rows 64:128 zero)
WM1_OFF = 128     # rows 128:640 (512 x 1024)
WB_ROWS = 640

# Bias slab (f32, tiny): one row per bias vector.
B_LANES = 1024
B1_ROW, B2_ROW, B3_ROW, BP_ROW, BM1_ROW, BM2_ROW = 0, 1, 2, 3, 4, 5
B_ROWS = 8


# ----------------------------------------------------------------------------
# Host-side graph construction (mirrors LidarGraphConverter.create_graph_from_lidar)
# ----------------------------------------------------------------------------
def build_graph_from_lidar(lidar_scan_row):
    """lidar_scan_row: np.ndarray of shape (360,). Returns (node_feats, edge_index)."""
    n_rays = lidar_scan_row.shape[0]
    angles = np.linspace(0.0, 2.0 * math.pi, n_rays)   # torch.linspace incl. endpoints
    connect = False
    nodes = []
    edges = []
    for i in range(n_rays):
        d = lidar_scan_row[i]
        if d != 1:
            px = d * math.cos(angles[i])
            py = d * math.sin(angles[i])
            nodes.append([px, py])
            if connect:
                s = len(nodes) - 1
                e = s - 1
                edges.append([s, e])
                edges.append([e, s])
            else:
                connect = True
        elif connect:
            connect = False
    node_feats = np.asarray(nodes, dtype=np.float32)               # [num_nodes, 2]
    if len(edges) == 0:
        edge_index = np.zeros((2, 0), dtype=np.int64)
    else:
        edge_index = np.asarray(edges, dtype=np.int64).T           # [2, num_edges]
    # TODO(synk): edge_attr (segment lengths) from the converter is unused by G2GCore
    # and therefore not materialized.
    return node_feats, edge_index


def gcn_norm_dense_adj(edge_index, num_nodes):
    """Dense D^{-1/2}(A+I)D^{-1/2}, matching torch_geometric GCNConv defaults."""
    self_loops = np.arange(num_nodes, dtype=np.int64)
    src = np.concatenate([edge_index[0], self_loops])
    dst = np.concatenate([edge_index[1], self_loops])
    deg = np.zeros(num_nodes, dtype=np.float32)
    np.add.at(deg, dst, 1.0)
    dinv = 1.0 / np.sqrt(np.maximum(deg, 1e-12))
    norm = dinv[src] * dinv[dst]
    adj = np.zeros((num_nodes, num_nodes), dtype=np.float32)
    adj[dst, src] = norm                                           # out[i] = sum_j adj[i,j]*h[j]
    return adj


def build_graph_slab(node_feats_list, adj_list):
    """Pack B graphs into one dense bf16 slab (B, N_PAD, 512): adj | features | zero."""
    bsz = len(node_feats_list)
    slab = np.zeros((bsz, N_PAD, GSLAB_LANES), dtype=np.float32)
    nn = np.zeros((bsz,), dtype=np.int32)
    for i, (feats, adj) in enumerate(zip(node_feats_list, adj_list)):
        n = feats.shape[0]
        nn[i] = n
        slab[i, :n, :n] = adj
        slab[i, :n, N_PAD:N_PAD + NODE_FEATURE_DIM] = feats
    return jnp.asarray(slab, dtype=jnp.bfloat16), jnp.asarray(nn)


# ----------------------------------------------------------------------------
# Pallas kernel: per grid step (one graph):
#   3x GCNConv(+ReLU) -> masked mean pool -> Linear -> Linear+ReLU -> Linear
# ----------------------------------------------------------------------------
def _g2g_kernel(nn_ref, g_ref, wa_ref, wb_ref, bias_ref, out_ref):
    b = pl.program_id(0)
    nn = nn_ref[b]                                     # true node count (int32, SMEM)
    bf = jnp.bfloat16

    adj = g_ref[0, :, 0:N_PAD]                         # bf16 [N_PAD, N_PAD]
    xf = g_ref[0, :, N_PAD:N_PAD + HP].astype(jnp.float32)   # aligned 128-lane tile
    x0 = xf[:, 0:1]                                    # [N_PAD, 1]
    x1 = xf[:, 1:2]

    # ---- layer 1: K=2 feature transform as f32 VPU broadcast FMAs (MXU stays free) ----
    w1r0 = wa_ref[W1_OFF:W1_OFF + 1, 0:HP].astype(jnp.float32)
    w1r1 = wa_ref[W1_OFF + 1:W1_OFF + 2, 0:HP].astype(jnp.float32)
    hw = x0 * w1r0 + x1 * w1r1                         # f32 [N_PAD, 128]
    h = jnp.maximum(
        jnp.dot(adj, hw.astype(bf), preferred_element_type=jnp.float32)
        + bias_ref[B1_ROW:B1_ROW + 1, 0:HP], 0.0)

    # ---- layers 2/3: standard GCN (feature matmul + normalized-adjacency matmul) ----
    def gcn(h, w_off, b_row):
        hw = jnp.dot(h.astype(bf), wa_ref[w_off:w_off + HP, 0:HP],
                     preferred_element_type=jnp.float32)
        agg = (jnp.dot(adj, hw.astype(bf), preferred_element_type=jnp.float32)
               + bias_ref[b_row:b_row + 1, 0:HP])
        return jnp.maximum(agg, 0.0)

    h = gcn(h, W2_OFF, B2_ROW)        # [N_PAD, 128] (lanes 64:128 stay zero)
    h = gcn(h, W3_OFF, B3_ROW)

    # ---- masked mean pool as a [1,N_PAD] @ [N_PAD,128] MXU matvec ----
    # Padded rows of h hold relu(bias) garbage (adj pad rows are zero), so mask them.
    node_ids = jax.lax.broadcasted_iota(jnp.int32, (1, N_PAD), 1)
    mask = (node_ids < nn).astype(bf)                  # [1, N_PAD], exact 0/1 in bf16
    inv_n = 1.0 / jnp.maximum(nn, 1).astype(jnp.float32)
    g = jnp.dot(mask, h.astype(bf), preferred_element_type=jnp.float32) * inv_n   # [1,128]

    # ---- dense head: Linear(64,512) -> Linear(512,1024)+ReLU -> Linear(1024,242) ----
    c = (jnp.dot(g.astype(bf), wb_ref[WP_OFF:WP_OFF + HP, 0:POOL_DIM],
                 preferred_element_type=jnp.float32)
         + bias_ref[BP_ROW:BP_ROW + 1, 0:POOL_DIM])                  # [1, 512]
    m = (jnp.dot(c.astype(bf), wb_ref[WM1_OFF:WM1_OFF + POOL_DIM, 0:MLP_DIM],
                 preferred_element_type=jnp.float32)
         + bias_ref[BM1_ROW:BM1_ROW + 1, 0:MLP_DIM])
    m = jnp.maximum(m, 0.0)                                          # [1, 1024]
    out = (jnp.dot(m.astype(bf), wa_ref[WM2_OFF:WM2_OFF + MLP_DIM, 0:OUT_PAD],
                   preferred_element_type=jnp.float32)
           + bias_ref[BM2_ROW:BM2_ROW + 1, 0:OUT_PAD])               # [1, 256]
    out_ref[0] = out


def g2g_core_pallas_batched(nn_arr, graph_slab, wa, wb, bias):
    """Run B graphs through G2GCore in one batched pallas_call."""
    bsz = graph_slab.shape[0]
    flops_per = (2 * (3 * N_PAD * N_PAD * HP          # adjacency matmuls
                      + 2 * N_PAD * HP * HP           # feature matmuls (layers 2, 3)
                      + N_PAD * HP                    # pooling matvec
                      + HP * POOL_DIM + POOL_DIM * MLP_DIM + MLP_DIM * OUT_PAD)
                 + 2 * N_PAD * NODE_FEATURE_DIM * HP) # layer-1 VPU FMA
    bytes_accessed = (bsz * (N_PAD * GSLAB_LANES * 2 + OUT_PAD * 4 + 4)
                      + WA_ROWS * WA_LANES * 2 + WB_ROWS * WB_LANES * 2
                      + B_ROWS * B_LANES * 4)
    grid_spec = pltpu.PrefetchScalarGridSpec(
        num_scalar_prefetch=1,                       # per-graph node counts in SMEM
        grid=(bsz,),
        in_specs=[
            # per-graph adj+features slab, streamed (double-buffered) along the grid
            pl.BlockSpec((1, N_PAD, GSLAB_LANES), lambda b, nn: (b, 0, 0)),
            # weight / bias slabs: constant block index -> DMA'd once, VMEM resident
            pl.BlockSpec((WA_ROWS, WA_LANES), lambda b, nn: (0, 0)),
            pl.BlockSpec((WB_ROWS, WB_LANES), lambda b, nn: (0, 0)),
            pl.BlockSpec((B_ROWS, B_LANES), lambda b, nn: (0, 0)),
        ],
        out_specs=pl.BlockSpec((1, 1, OUT_PAD), lambda b, nn: (b, 0, 0)),
    )
    out = pl.pallas_call(
        _g2g_kernel,
        out_shape=jax.ShapeDtypeStruct((bsz, 1, OUT_PAD), jnp.float32),
        grid_spec=grid_spec,
        compiler_params=pltpu.CompilerParams(
            dimension_semantics=("parallel",)),      # both TCs on v7x; no-op on v5e/v6e
        cost_estimate=pl.CostEstimate(flops=bsz * flops_per, transcendentals=0,
                                      bytes_accessed=bytes_accessed),
    )(nn_arr, graph_slab, wa, wb, bias)
    # matches: output.view(pred_size, pred_size, 2) per graph
    return out[:, 0, :OUT_DIM].reshape(bsz, PRED_SIZE, PRED_SIZE, 2)


def graph2graph_forward(x_in, wa, wb, bias):
    """Mirrors Graph2GraphModel.forward.

    The PyTorch module builds ONE graph from lidar row 0 and returns (1, 11, 11, 2).
    Here every row of the batch is converted and processed in a single batched
    pallas_call; row 0 of the result is the module-equivalent output.
    Returns (module_output, all_outputs, feats_list, adj_list).
    """
    lidar_scan = np.asarray(x_in[:, :360])
    # wind_features = x_in[:, 360:]  # unused by the reference graph builder
    feats_list, adj_list = [], []
    for i in range(lidar_scan.shape[0]):
        nf, ei = build_graph_from_lidar(lidar_scan[i])
        assert nf.shape[0] >= 1          # degenerate (empty) scans handled host-side
        feats_list.append(nf)
        adj_list.append(gcn_norm_dense_adj(ei, nf.shape[0]))
    graph_slab, nn_arr = build_graph_slab(feats_list, adj_list)
    y_all = g2g_core_pallas_batched(nn_arr, graph_slab, wa, wb, bias)
    return y_all[0:1], y_all, feats_list, adj_list


# ----------------------------------------------------------------------------
# Deterministic parameter init (synthetic; shapes follow G2GCore.__init__) + packing
# ----------------------------------------------------------------------------
def init_params(key):
    shapes = [
        (NODE_FEATURE_DIM, HIDDEN_DIM),  # conv1 weight (stored [in, out])
        (HIDDEN_DIM,),                   # conv1 bias
        (HIDDEN_DIM, HIDDEN_DIM),        # conv2
        (HIDDEN_DIM,),
        (HIDDEN_DIM, HIDDEN_DIM),        # conv3
        (HIDDEN_DIM,),
        (HIDDEN_DIM, POOL_DIM),          # global_pooling
        (POOL_DIM,),
        (POOL_DIM, MLP_DIM),             # mlp[0]
        (MLP_DIM,),
        (MLP_DIM, OUT_DIM),              # mlp[2]
        (OUT_DIM,),
    ]
    keys = jax.random.split(key, len(shapes))
    params = []
    for k, shp in zip(keys, shapes):
        fan_in = shp[0]
        scale = 1.0 / np.sqrt(float(fan_in))
        p = jax.random.uniform(k, shp, jnp.float32, -scale, scale)
        if len(shp) == 1:
            p = p.reshape(1, -1)         # biases kept 2-D
        params.append(p)
    return tuple(params)


def pack_params(params):
    """Pack the 12 weight/bias arrays: two bf16 matmul-weight slabs + one f32 bias slab."""
    (w1, b1, w2, b2, w3, b3, wp, bp, wm1, bm1, wm2, bm2) = [np.asarray(p) for p in params]

    wa = np.zeros((WA_ROWS, WA_LANES), dtype=np.float32)
    wa[W1_OFF:W1_OFF + NODE_FEATURE_DIM, :HIDDEN_DIM] = w1
    wa[W2_OFF:W2_OFF + HIDDEN_DIM, :HIDDEN_DIM] = w2
    wa[W3_OFF:W3_OFF + HIDDEN_DIM, :HIDDEN_DIM] = w3
    wa[WM2_OFF:WM2_OFF + MLP_DIM, :OUT_DIM] = wm2

    wb = np.zeros((WB_ROWS, WB_LANES), dtype=np.float32)
    wb[WP_OFF:WP_OFF + HIDDEN_DIM, :POOL_DIM] = wp
    wb[WM1_OFF:WM1_OFF + POOL_DIM, :MLP_DIM] = wm1

    bias = np.zeros((B_ROWS, B_LANES), dtype=np.float32)
    bias[B1_ROW, :HIDDEN_DIM] = b1[0]
    bias[B2_ROW, :HIDDEN_DIM] = b2[0]
    bias[B3_ROW, :HIDDEN_DIM] = b3[0]
    bias[BP_ROW, :POOL_DIM] = bp[0]
    bias[BM1_ROW, :MLP_DIM] = bm1[0]
    bias[BM2_ROW, :OUT_DIM] = bm2[0]
    return (jnp.asarray(wa, dtype=jnp.bfloat16),
            jnp.asarray(wb, dtype=jnp.bfloat16),
            jnp.asarray(bias, dtype=jnp.float32))


# ----------------------------------------------------------------------------
# References (unpadded): full-f32 sanity check + kernel-matched bf16-operand check
# ----------------------------------------------------------------------------
def g2g_core_ref(adj, x, params):
    (w1, b1, w2, b2, w3, b3, wp, bp, wm1, bm1, wm2, bm2) = params
    h = jnp.maximum(adj @ (x @ w1) + b1, 0.0)
    h = jnp.maximum(adj @ (h @ w2) + b2, 0.0)
    h = jnp.maximum(adj @ (h @ w3) + b3, 0.0)
    g = jnp.mean(h, axis=0, keepdims=True)
    c = g @ wp + bp
    m = jnp.maximum(c @ wm1 + bm1, 0.0)
    out = m @ wm2 + bm2
    return out.reshape(1, PRED_SIZE, PRED_SIZE, 2)


def g2g_core_quant_ref(adj, x, params):
    """Mirrors the kernel's bf16-operand / f32-accumulate math exactly."""
    bf = jnp.bfloat16
    f32 = jnp.float32
    (w1, b1, w2, b2, w3, b3, wp, bp, wm1, bm1, wm2, bm2) = params
    adj_b = adj.astype(bf)
    xq = x.astype(bf).astype(f32)
    w1q = w1.astype(bf).astype(f32)
    hw = xq[:, 0:1] * w1q[0:1, :] + xq[:, 1:2] * w1q[1:2, :]
    h = jnp.maximum(jnp.dot(adj_b, hw.astype(bf), preferred_element_type=f32) + b1, 0.0)

    def gcn(h, w, b):
        hw = jnp.dot(h.astype(bf), w.astype(bf), preferred_element_type=f32)
        return jnp.maximum(
            jnp.dot(adj_b, hw.astype(bf), preferred_element_type=f32) + b, 0.0)

    h = gcn(h, w2, b2)
    h = gcn(h, w3, b3)
    n = h.shape[0]
    mask = jnp.ones((1, n), dtype=bf)
    g = jnp.dot(mask, h.astype(bf), preferred_element_type=f32) * (1.0 / np.float32(n))
    c = jnp.dot(g.astype(bf), wp.astype(bf), preferred_element_type=f32) + bp
    m = jnp.maximum(jnp.dot(c.astype(bf), wm1.astype(bf), preferred_element_type=f32) + bm1, 0.0)
    out = jnp.dot(m.astype(bf), wm2.astype(bf), preferred_element_type=f32) + bm2
    return out.reshape(1, PRED_SIZE, PRED_SIZE, 2)


if __name__ == "__main__":
    root = jax.random.PRNGKey(0)
    k_in, k_par = jax.random.split(root)

    # Input tensor of shape (N, 362): 360 lidar distances + 2 wind features.
    N = 2
    x_in = jax.random.uniform(k_in, (N, 362), jnp.float32, 0.1, 0.9)

    params = init_params(k_par)
    wa, wb, bias = pack_params(params)

    # Host-side (data-dependent) graph construction + ONE batched Pallas call.
    y_module, y_all, feats_list, adj_list = graph2graph_forward(x_in, wa, wb, bias)
    y_all = jax.block_until_ready(y_all)

    assert y_module.shape == (1, PRED_SIZE, PRED_SIZE, 2)   # module-equivalent output
    assert y_all.shape == (N, PRED_SIZE, PRED_SIZE, 2)

    for i in range(N):
        adj_i = jnp.asarray(adj_list[i])
        x_i = jnp.asarray(feats_list[i])
        # Tight check vs a reference that uses the same bf16-operand / f32-accum math.
        y_q = jax.block_until_ready(g2g_core_quant_ref(adj_i, x_i, params))
        np.testing.assert_allclose(np.asarray(y_all[i]), np.asarray(y_q[0]),
                                   rtol=5e-3, atol=1e-3)
        # Loose sanity check vs the full-f32 reference (bf16 operand rounding).
        y_f = jax.block_until_ready(g2g_core_ref(adj_i, x_i, params))
        np.testing.assert_allclose(np.asarray(y_all[i]), np.asarray(y_f[0]),
                                   rtol=1e-1, atol=2e-2)

    print("KERNEL_OK")
</pallas_src>

<mosaic_0001>
module attributes {stable_mosaic.version = 11 : i64} {
  func.func @_g2g_kernel(%arg0: i32, %arg1: memref<2xi32, #tpu.memory_space<smem>>, %arg2: memref<1x384x512xbf16, #tpu.memory_space<vmem>>, %arg3: memref<1296x256xbf16, #tpu.memory_space<vmem>>, %arg4: memref<640x1024xbf16, #tpu.memory_space<vmem>>, %arg5: memref<8x1024xf32, #tpu.memory_space<vmem>>, %arg6: memref<1x1x256xf32, #tpu.memory_space<vmem>>) attributes {dimension_semantics = [#tpu.dimension_semantics<parallel>], iteration_bounds = array<i64: 2>, scalar_prefetch = 1 : i64, scratch_operands = 0 : i64, tpu.core_type = #tpu.core_type<tc>, window_params = [{transform_indices = @transform_0, window_bounds = array<i64: 1, 384, 512>}, {pipeline_mode = #tpu.pipeline_mode<synchronous>, transform_indices = @transform_1, window_bounds = array<i64: 1296, 256>}, {pipeline_mode = #tpu.pipeline_mode<synchronous>, transform_indices = @transform_2, window_bounds = array<i64: 640, 1024>}, {pipeline_mode = #tpu.pipeline_mode<synchronous>, transform_indices = @transform_3, window_bounds = array<i64: 8, 1024>}, {transform_indices = @transform_4, window_bounds = array<i64: 1, 1, 256>}]} {
    %0 = arith.index_cast %arg0 : i32 to index
    %1 = memref.load %arg1[%0] : memref<2xi32, #tpu.memory_space<smem>>
    %c0 = arith.constant 0 : index
    %c0_0 = arith.constant 0 : index
    %c0_1 = arith.constant 0 : index
    %2 = vector.load %arg2[%c0, %c0_0, %c0_1] : memref<1x384x512xbf16, #tpu.memory_space<vmem>>, vector<1x384x384xbf16>
    %3 = vector.shape_cast %2 : vector<1x384x384xbf16> to vector<384x384xbf16>
    %c0_2 = arith.constant 0 : index
    %c0_3 = arith.constant 0 : index
    %c384 = arith.constant 384 : index
    %4 = vector.load %arg2[%c0_2, %c0_3, %c384] : memref<1x384x512xbf16, #tpu.memory_space<vmem>>, vector<1x384x128xbf16>
    %5 = vector.shape_cast %4 : vector<1x384x128xbf16> to vector<384x128xbf16>
    %6 = arith.extf %5 : vector<384x128xbf16> to vector<384x128xf32>
    %7 = vector.extract_strided_slice %6 {offsets = [0, 0], sizes = [384, 1], strides = [1, 1]} : vector<384x128xf32> to vector<384x1xf32>
    %8 = vector.extract_strided_slice %6 {offsets = [0, 1], sizes = [384, 1], strides = [1, 1]} : vector<384x128xf32> to vector<384x1xf32>
    %c0_4 = arith.constant 0 : index
    %c0_5 = arith.constant 0 : index
    %9 = vector.load %arg3[%c0_4, %c0_5] : memref<1296x256xbf16, #tpu.memory_space<vmem>>, vector<1x128xbf16>
    %10 = arith.extf %9 : vector<1x128xbf16> to vector<1x128xf32>
    %c1 = arith.constant 1 : index
    %c0_6 = arith.constant 0 : index
    %11 = vector.load %arg3[%c1, %c0_6] : memref<1296x256xbf16, #tpu.memory_space<vmem>>, vector<1x128xbf16>
    %12 = arith.extf %11 : vector<1x128xbf16> to vector<1x128xf32>
    %13 = vector.broadcast %7 : vector<384x1xf32> to vector<384x128xf32>
    %14 = vector.broadcast %10 : vector<1x128xf32> to vector<384x128xf32>
    %15 = arith.mulf %13, %14 : vector<384x128xf32>
    %16 = vector.broadcast %8 : vector<384x1xf32> to vector<384x128xf32>
    %17 = vector.broadcast %12 : vector<1x128xf32> to vector<384x128xf32>
    %18 = arith.mulf %16, %17 : vector<384x128xf32>
    %19 = arith.addf %15, %18 : vector<384x128xf32>
    %20 = arith.truncf %19 : vector<384x128xf32> to vector<384x128xbf16>
    %cst = arith.constant dense<0.000000e+00> : vector<384x128xf32>
    %21 = tpu.matmul %3, %20, %cst {dimension_numbers = #tpu.dot_dimension_numbers<[1], [0], [0], [1], [0, 0, 1, 1], [], []>} : vector<384x384xbf16>, vector<384x128xbf16>, vector<384x128xf32> -> vector<384x128xf32>
    %c0_7 = arith.constant 0 : index
    %c0_8 = arith.constant 0 : index
    %22 = vector.load %arg5[%c0_7, %c0_8] : memref<8x1024xf32, #tpu.memory_space<vmem>>, vector<1x128xf32>
    %23 = vector.broadcast %22 : vector<1x128xf32> to vector<384x128xf32>
    %24 = arith.addf %21, %23 : vector<384x128xf32>
    %cst_9 = arith.constant 0.000000e+00 : f32
    %25 = vector.broadcast %cst_9 : f32 to vector<384x128xf32>
    %26 = arith.maximumf %24, %25 : vector<384x128xf32>
    %27 = arith.truncf %26 : vector<384x128xf32> to vector<384x128xbf16>
    %c16 = arith.constant 16 : index
    %c0_10 = arith.constant 0 : index
    %28 = vector.load %arg3[%c16, %c0_10] : memref<1296x256xbf16, #tpu.memory_space<vmem>>, vector<128x128xbf16>
    %cst_11 = arith.constant dense<0.000000e+00> : vector<384x128xf32>
    %29 = tpu.matmul %27, %28, %cst_11 {dimension_numbers = #tpu.dot_dimension_numbers<[1], [0], [0], [1], [0, 0, 1, 1], [], []>} : vector<384x128xbf16>, vector<128x128xbf16>, vector<384x128xf32> -> vector<384x128xf32>
    %30 = arith.truncf %29 : vector<384x128xf32> to vector<384x128xbf16>
    %cst_12 = arith.constant dense<0.000000e+00> : vector<384x128xf32>
    %31 = tpu.matmul %3, %30, %cst_12 {dimension_numbers = #tpu.dot_dimension_numbers<[1], [0], [0], [1], [0, 0, 1, 1], [], []>} : vector<384x384xbf16>, vector<384x128xbf16>, vector<384x128xf32> -> vector<384x128xf32>
    %c1_13 = arith.constant 1 : index
    %c0_14 = arith.constant 0 : index
    %32 = vector.load %arg5[%c1_13, %c0_14] : memref<8x1024xf32, #tpu.memory_space<vmem>>, vector<1x128xf32>
    %33 = vector.broadcast %32 : vector<1x128xf32> to vector<384x128xf32>
    %34 = arith.addf %31, %33 : vector<384x128xf32>
    %cst_15 = arith.constant 0.000000e+00 : f32
    %35 = vector.broadcast %cst_15 : f32 to vector<384x128xf32>
    %36 = arith.maximumf %34, %35 : vector<384x128xf32>
    %37 = arith.truncf %36 : vector<384x128xf32> to vector<384x128xbf16>
    %c144 = arith.constant 144 : index
    %c0_16 = arith.constant 0 : index
    %38 = vector.load %arg3[%c144, %c0_16] : memref<1296x256xbf16, #tpu.memory_space<vmem>>, vector<128x128xbf16>
    %cst_17 = arith.constant dense<0.000000e+00> : vector<384x128xf32>
    %39 = tpu.matmul %37, %38, %cst_17 {dimension_numbers = #tpu.dot_dimension_numbers<[1], [0], [0], [1], [0, 0, 1, 1], [], []>} : vector<384x128xbf16>, vector<128x128xbf16>, vector<384x128xf32> -> vector<384x128xf32>
    %40 = arith.truncf %39 : vector<384x128xf32> to vector<384x128xbf16>
    %cst_18 = arith.constant dense<0.000000e+00> : vector<384x128xf32>
    %41 = tpu.matmul %3, %40, %cst_18 {dimension_numbers = #tpu.dot_dimension_numbers<[1], [0], [0], [1], [0, 0, 1, 1], [], []>} : vector<384x384xbf16>, vector<384x128xbf16>, vector<384x128xf32> -> vector<384x128xf32>
    %c2 = arith.constant 2 : index
    %c0_19 = arith.constant 0 : index
    %42 = vector.load %arg5[%c2, %c0_19] : memref<8x1024xf32, #tpu.memory_space<vmem>>, vector<1x128xf32>
    %43 = vector.broadcast %42 : vector<1x128xf32> to vector<384x128xf32>
    %44 = arith.addf %41, %43 : vector<384x128xf32>
    %cst_20 = arith.constant 0.000000e+00 : f32
    %45 = vector.broadcast %cst_20 : f32 to vector<384x128xf32>
    %46 = arith.maximumf %44, %45 : vector<384x128xf32>
    %47 = tpu.iota {dimensions = array<i32: 1>} : vector<1x384xi32>
    %48 = vector.broadcast %1 : i32 to vector<1x384xi32>
    %49 = arith.cmpi slt, %47, %48 : vector<1x384xi32>
    %50 = arith.extui %49 : vector<1x384xi1> to vector<1x384xi32>
    %51 = arith.sitofp %50 : vector<1x384xi32> to vector<1x384xf32>
    %52 = arith.truncf %51 : vector<1x384xf32> to vector<1x384xbf16>
    %c1_i32 = arith.constant 1 : i32
    %53 = arith.maxsi %1, %c1_i32 : i32
    %54 = arith.sitofp %53 : i32 to f32
    %cst_21 = arith.constant 1.000000e+00 : f32
    %55 = arith.divf %cst_21, %54 : f32
    %56 = arith.truncf %46 : vector<384x128xf32> to vector<384x128xbf16>
    %cst_22 = arith.constant dense<0.000000e+00> : vector<1x128xf32>
    %57 = tpu.matmul %52, %56, %cst_22 {dimension_numbers = #tpu.dot_dimension_numbers<[1], [0], [0], [1], [0, 0, 1, 1], [], []>} : vector<1x384xbf16>, vector<384x128xbf16>, vector<1x128xf32> -> vector<1x128xf32>
    %58 = vector.broadcast %55 : f32 to vector<1x128xf32>
    %59 = arith.mulf %57, %58 : vector<1x128xf32>
    %60 = arith.truncf %59 : vector<1x128xf32> to vector<1x128xbf16>
    %c0_23 = arith.constant 0 : index
    %c0_24 = arith.constant 0 : index
    %61 = vector.load %arg4[%c0_23, %c0_24] : memref<640x1024xbf16, #tpu.memory_space<vmem>>, vector<128x512xbf16>
    %cst_25 = arith.constant dense<0.000000e+00> : vector<1x512xf32>
    %62 = tpu.matmul %60, %61, %cst_25 {dimension_numbers = #tpu.dot_dimension_numbers<[1], [0], [0], [1], [0, 0, 1, 1], [], []>} : vector<1x128xbf16>, vector<128x512xbf16>, vector<1x512xf32> -> vector<1x512xf32>
    %c3 = arith.constant 3 : index
    %c0_26 = arith.constant 0 : index
    %63 = vector.load %arg5[%c3, %c0_26] : memref<8x1024xf32, #tpu.memory_space<vmem>>, vector<1x512xf32>
    %64 = arith.addf %62, %63 : vector<1x512xf32>
    %65 = arith.truncf %64 : vector<1x512xf32> to vector<1x512xbf16>
    %c128 = arith.constant 128 : index
    %c0_27 = arith.constant 0 : index
    %66 = vector.load %arg4[%c128, %c0_27] : memref<640x1024xbf16, #tpu.memory_space<vmem>>, vector<512x1024xbf16>
    %cst_28 = arith.constant dense<0.000000e+00> : vector<1x1024xf32>
    %67 = tpu.matmul %65, %66, %cst_28 {dimension_numbers = #tpu.dot_dimension_numbers<[1], [0], [0], [1], [0, 0, 1, 1], [], []>} : vector<1x512xbf16>, vector<512x1024xbf16>, vector<1x1024xf32> -> vector<1x1024xf32>
    %c4 = arith.constant 4 : index
    %c0_29 = arith.constant 0 : index
    %68 = vector.load %arg5[%c4, %c0_29] : memref<8x1024xf32, #tpu.memory_space<vmem>>, vector<1x1024xf32>
    %69 = arith.addf %67, %68 : vector<1x1024xf32>
    %cst_30 = arith.constant 0.000000e+00 : f32
    %70 = vector.broadcast %cst_30 : f32 to vector<1x1024xf32>
    %71 = arith.maximumf %69, %70 : vector<1x1024xf32>
    %72 = arith.truncf %71 : vector<1x1024xf32> to vector<1x1024xbf16>
    %c272 = arith.constant 272 : index
    %c0_31 = arith.constant 0 : index
    %73 = vector.load %arg3[%c272, %c0_31] : memref<1296x256xbf16, #tpu.memory_space<vmem>>, vector<1024x256xbf16>
    %cst_32 = arith.constant dense<0.000000e+00> : vector<1x256xf32>
    %74 = tpu.matmul %72, %73, %cst_32 {dimension_numbers = #tpu.dot_dimension_numbers<[1], [0], [0], [1], [0, 0, 1, 1], [], []>} : vector<1x1024xbf16>, vector<1024x256xbf16>, vector<1x256xf32> -> vector<1x256xf32>
    %c5 = arith.constant 5 : index
    %c0_33 = arith.constant 0 : index
    %75 = vector.load %arg5[%c5, %c0_33] : memref<8x1024xf32, #tpu.memory_space<vmem>>, vector<1x256xf32>
    %76 = arith.addf %74, %75 : vector<1x256xf32>
    %c0_34 = arith.constant 0 : index
    %c0_35 = arith.constant 0 : index
    %c0_36 = arith.constant 0 : index
    %77 = vector.load %arg6[%c0_34, %c0_35, %c0_36] : memref<1x1x256xf32, #tpu.memory_space<vmem>>, vector<1x1x256xf32>
    %78 = vector.shape_cast %77 : vector<1x1x256xf32> to vector<1x256xf32>
    %79 = vector.shape_cast %76 : vector<1x256xf32> to vector<1x1x256xf32>
    tpu.vector_store %arg6[%c0_34, %c0_35, %c0_36], %79 {strides = array<i32>} : memref<1x1x256xf32, #tpu.memory_space<vmem>>, vector<1x1x256xf32>,
    return
  }
  func.func @transform_0(%arg0: i32, %arg1: memref<2xi32, #tpu.memory_space<smem>>) -> (i32, i32, i32) {
    %c0_i32 = arith.constant 0 : i32
    %c0_i32_0 = arith.constant 0 : i32
    %c0_i32_1 = arith.constant 0 : i32
    return %arg0, %c0_i32, %c0_i32_0 : i32, i32, i32
  }
  func.func @transform_1(%arg0: i32, %arg1: memref<2xi32, #tpu.memory_space<smem>>) -> (i32, i32) {
    %c0_i32 = arith.constant 0 : i32
    %c0_i32_0 = arith.constant 0 : i32
    %c0_i32_1 = arith.constant 0 : i32
    return %c0_i32, %c0_i32_0 : i32, i32
  }
  func.func @transform_2(%arg0: i32, %arg1: memref<2xi32, #tpu.memory_space<smem>>) -> (i32, i32) {
    %c0_i32 = arith.constant 0 : i32
    %c0_i32_0 = arith.constant 0 : i32
    %c0_i32_1 = arith.constant 0 : i32
    return %c0_i32, %c0_i32_0 : i32, i32
  }
  func.func @transform_3(%arg0: i32, %arg1: memref<2xi32, #tpu.memory_space<smem>>) -> (i32, i32) {
    %c0_i32 = arith.constant 0 : i32
    %c0_i32_0 = arith.constant 0 : i32
    %c0_i32_1 = arith.constant 0 : i32
    return %c0_i32, %c0_i32_0 : i32, i32
  }
  func.func @transform_4(%arg0: i32, %arg1: memref<2xi32, #tpu.memory_space<smem>>) -> (i32, i32, i32) {
    %c0_i32 = arith.constant 0 : i32
    %c0_i32_0 = arith.constant 0 : i32
    %c0_i32_1 = arith.constant 0 : i32
    return %arg0, %c0_i32, %c0_i32_0 : i32, i32, i32
  }
}

</mosaic_0001>

<bundles_post_ra>
// kernel: tpu_custom_call.1
= control target key start
LH: loop header
LB: loop body
LE: loop exit
PB: predicated region body
PF: predicated region fallthrough
CT: control target
= control target key end

     0   :  { %s9816_s21 = smov [#allocation3]   ;;  %s11373_s0 = inlined_call_operand.hbm [shape: s32[2], index: 0, kind: input, shape index: {}]   ;;  %s11374_s1 = inlined_call_operand.hbm [shape: bf16[2,384,512], index: 1, kind: input, shape index: {}]   ;;  %s11375_s2 = inlined_call_operand.hbm [shape: bf16[1296,256], index: 2, kind: input, shape index: {}]   ;;  %s11376_s3 = inlined_call_operand.hbm [shape: bf16[640,1024], index: 3, kind: input, shape index: {}]   ;;  %s11377_s4 = inlined_call_operand.hbm [shape: f32[8,1024], index: 4, kind: input, shape index: {}]   ;;  %s11378_s5 = inlined_call_operand.hbm [shape: f32[2,1,256], index: 5, kind: output, shape index: {}]  }
   0x1   :  { %s11_s20 = sshll.u32 %s11373_s0, 4  ;;  %s12_s20 = int_to_ptr.hbm [resolvable:$true] %s11_s20 }
   0x2   :  { %14 = dma.hbm_to_smem %s12_s20, 16, %s9816_s21, [#allocation2] }
   0x3   :  { %9782 = dma.done.wait [#allocation2], 16 }
   0x4   :  { %9783 = vsyncadd [#allocation2], 4294967280 }
   0x5   :  { %17 = sfence }
   0x6   :  { %18 = vsyncpa [#allocation5], 0 }
   0x7   :  { %20 = vsyncpa [#allocation5 + $0x1], 0 }
   0x8   :  { %21 = vsyncpa [#allocation8], 0 }
   0x9   :  { %22 = vsyncpa [#allocation11], 0 }
   0xa   :  { %23 = vsyncpa [#allocation6], 0 }
   0xb   :  { %25 = vsyncpa [#allocation6 + $0x1], 0  ;;  %s9862_s22 = smov 0   ;;  %s9864_s23 = smov 0  }
   0xc   :  { %s9866_s24 = smov 0   ;;  %s9868_s25 = smov 0  }
   0xd LB: > { %s9883_s0 = sadd.s32 4294967295, %s9814_s25   ;;  %s6705_s26 = sadd.s32 4294967294, %s9814_s25   ;;  %s9814_s25 = sphi %s9868_s25, %s11641_s25   ;;  %s9810_s24 = sphi %s9866_s24, %s11640_s24   ;;  %s9806_s23 = sphi %s9864_s23, %s11639_s23   ;;  %s9802_s22 = sphi %s9862_s22, %s11638_s22  }
   0xe   : > { %p51_p0 = scmp.ne.s32.totalorder %s9806_s23, %s9802_s22  ;;  %p52_p1 = scmp.eq.s32.totalorder %s9883_s0, 0 }
   0xf   : > { %p138_p2 = scmp.eq.s32.totalorder %s9883_s0, 1  ;;  %p144_p3 = scmp.eq.s32.totalorder %s6705_s26, 1 }
  0x10   : > { %p9892_p4 = por %p52_p1, %p51_p0  ;;  %p6706_p5 = scmp.ge.s32.totalorder %s9814_s25, 1 }
  0x11   : > { %p9897_p6 = por %p144_p3, %p51_p0  ;;  %p151_p7 = scmp.lt.s32.totalorder %s9814_s25, 3 }
  0x12   : > { %s162_s6 = sshll.u32 %s11375_s2, 4  ;;  %s9817_s8 = smov [#allocation7]   ;;  %s163_s6 = int_to_ptr.hbm [resolvable:$true] %s162_s6 }
  0x13   : > { %p9905_p8 = pnand %p6706_p5, %p151_p7  ;;  %s164_s9 = sshll.u32 %s9817_s8, 4  ;;  %s165_s9 = int_to_ptr.vmem [resolvable:$true] %s164_s9 }
  0x14   : > { %s176_s13 = sshll.u32 %s11376_s3, 4  ;;  %s9818_s14 = smov 128   ;;  %s177_s13 = int_to_ptr.hbm [resolvable:$true] %s176_s13 }
  0x15   : > { %p9271_p9 = pneg %p9905_p8  ;;  %s9819_s15 = smov 8  }
  0x16   : > { %s9820_s16 = smov [#allocation9]   ;;  %s9821_s18 = smov 512  }
  0x17   : > { %p9913_p10 = pnand %p9271_p9, %p52_p1  ;;  %s178_s17 = sshll.u32 %s9820_s16, 4  ;;  %s179_s17 = int_to_ptr.vmem [resolvable:$true] %s178_s17 }
  0x18   : > { %s9822_s19 = smov 32   ;;  %s191_s26 = sshll.u32 %s11377_s4, 4  ;;  %s192_s26 = int_to_ptr.hbm [resolvable:$true] %s191_s26 }
  0x19   : > { %9274 = dma.hbm_to_vmem [thread:$0]  (!%p9913_p10), %s163_s6, 20736, %s165_s9, [#allocation8], %s9818_s14, %s9818_s14, %s9819_s15  }
  0x1a   : > { %9277 = dma.hbm_to_vmem [thread:$0]  (!%p9913_p10), %s177_s13, 40960, %s179_s17, [#allocation8], %s9821_s18, %s9821_s18, %s9822_s19  }
  0x1b   : > { %s9823_s29 = smov [#allocation10]   ;;  %s9931_s6 = sadd.s32 1, %s9814_s25  }
  0x1c   : > { %s193_s30 = sshll.u32 %s9823_s29, 4  ;;  %s35_s8 = ssub.s32 %s9814_s25, %s9931_s6  ;;  %s194_s30 = int_to_ptr.vmem [resolvable:$true] %s193_s30 }
  0x1d   : > { %9280 = dma.hbm_to_vmem [thread:$0]  (!%p9913_p10), %s192_s26, 1024, %s194_s30, [#allocation11]  }
  0x1e   : > { %s38_s9 = sadd.s32 1, %s9810_s24  ;;  %p36_p12 = scmp.eq.s32.totalorder %s35_s8, 0 }
  0x1f   : > { %p45_p13 = scmp.ne.s32.totalorder %s9810_s24, %s9806_s23  ;;  %p46_p0 = scmp.eq.s32.totalorder %s9814_s25, 0 }
  0x20   : > { %p9292_p3 = scmp.lt.s32.totalorder %s9814_s25, 2  ;;  %s204_s13 = sand.u32 1, %s9810_s24  }
  0x21   : > { %s9941_s11 = scalar_select %p36_p12, %s9810_s24, %s38_s9  }
  0x22   : > { %p47_p5 = por %p46_p0, %p45_p13  ;;  %p9945_p7 = por %p138_p2, %p45_p13 }
  0x23   : > { %s9251_s10 = smul.u32 768, %s9814_s25  ;;  %s205_s26 = scalar_lea.sflag [#allocation5], %s204_s13 }
  0x24   : > { %s9250_s14 = smul.u32 768, %s204_s13  ;;  %p9954_p9 = pnand %p9292_p3, %p47_p5 }
  0x25   : > { %s213_s17 = scalar_lea.hbm %s11374_s1, %s9251_s10  ;;  %s9715_s10 = scalar_lea.hbm %s11374_s1, 1536 }
  0x26   : > { %s214_s19 = sshll.u32 %s213_s17, 4  ;;  %s208_s20 = scalar_lea.vmem [#allocation4], %s9250_s14  ;;  %s215_s19 = int_to_ptr.hbm [resolvable:$true] %s214_s19 }
  0x27   : > { %s216_s21 = sshll.u32 %s208_s20, 4  ;;  %s9708_s29 = sshra.s32 %s215_s19, 4  ;;  %s217_s21 = int_to_ptr.vmem [resolvable:$true] %s216_s21  ;;  %s9709_s29 = int_to_ptr.hbm [resolvable:$true] %s9708_s29 }
  0x28   : > { %s9710_s30 = scalar_lea.hbm %s9709_s29, 768  ;;  %p9712_p10 = pneg %p9954_p9 }
  0x29   : > { %p9711_p2 = scmp.ne.s32.totalorder %s9709_s29, %s9710_s30  ;;  %p9716_p0 = scmp.lt.s32.totalorder %s9709_s29, %s11374_s1 }
  0x2a   : > { %p9717_p3 = scmp.lt.s32.totalorder %s9715_s10, %s9710_s30 }
  0x2b   : > { %p9713_p12 = pnand %p9712_p10, %p9711_p2 }
  0x2c   : > { %p9718_p5 = por %p9717_p3, %p9716_p0 }
  0x2d   : > { %p9714_p13 = pneg %p9713_p12 }
  0x2f   : > { %p9719_p11 = pnand %p9718_p5, %p9714_p13 }
  0x31   : > { %9722 = shalt.err (!%p9719_p11)
}
  0x32   : > { %s9824_s13 = smov 256   ;;  %s9825_s14 = smov 16  }
  0x33   : > { %9284 = dma.hbm_to_vmem [thread:$0]  (!%p9954_p9), %s215_s19, 12288, %s217_s21, %s205_s26, %s9824_s13, %s9824_s13, %s9825_s14  }
  0x34   : > { %228 = sbr.rel (%p9905_p8) target bundleno = 3133 (0xc3d), region = 36 }
  0x39   : > { %s9971_s17 = sand.u32 1, %s9806_s23  }
  0x3a   : > { %s9252_s20 = smul.u32 768, %s9971_s17  ;;  %s231_s29 = scalar_lea.sflag [#allocation5], %s9971_s17 }
  0x3c   : > { %s9975_s30 = scalar_lea.vmem [#allocation4], %s9252_s20 }
  0x3d   : > { %9785 = dma.done.wait (%p9892_p4), %s231_s29, 12288  }
  0x3e   : > { %9787 = vsyncadd (%p9892_p4), %s231_s29, 4294955008 }
  0x3f   : > { %9789 = dma.done.wait (%p52_p1), [#allocation8], 61696  }
  0x40   : > { %9791 = vsyncadd (%p52_p1), [#allocation8], 4294905600 }
  0x41   : > { %9793 = dma.done.wait (%p52_p1), [#allocation11], 1024  }
  0x42   : > { %9795 = vsyncadd (%p52_p1), [#allocation11], 4294966272  ;;  %v9826_v0 = vmov 0   ;;  %v418_v1 = vld [vmem:[%s9975_s30 + $0x2ec] sm:$0xf]  ;;  %v9827_v26 = vmov 1  }
  0x43   : > { %9360 = vset.pattern.permute.xlu2 %v9826_v0  ;;  %9348 = vset.pattern.permute.xlu1 %v9826_v0  ;;  %v419_v2 = vld [vmem:[%s9975_s30 + $0x2fc] sm:$0xf]  ;;  %v402_v3 = vld [vmem:[%s9975_s30 + $0x1ec] sm:$0xf]  ;;  %v466_v4 = vunpack.c.l.bf16 %v418_v1  ;;  %s11121_s27 = sld [smem:[#allocation3 + %s9883_s0]]  ;;  %s6716_s19 = sshll.u32 %s9971_s17, 1 }
  0x44   : > { %9342 = vset.pattern.permute.xlu0 %v9826_v0  ;;  %v467_v5 = vunpack.c.l.bf16 %v419_v2  ;;  %v403_v6 = vld [vmem:[%s9975_s30 + $0x1fc] sm:$0xf]  ;;  %v450_v7 = vunpack.c.l.bf16 %v402_v3  ;;  %v386_v8 = vld [vmem:[%s9975_s30 + $0xec] sm:$0xf]  ;;  %s8743_s21 = sshll.u32 %s9883_s0, 1  ;;  %s274_s10 = scalar_lea.vmem [#allocation12], %s6716_s19 }
  0x45   : > { %v387_v9 = vld [vmem:[%s9975_s30 + $0xfc] sm:$0xf]  ;;  %v451_v10 = vunpack.c.l.bf16 %v403_v6  ;;  %v434_v11 = vunpack.c.l.bf16 %v386_v8  ;;  %v384_v13 = vld [vmem:[%s9975_s30 + $0xcc] sm:$0xf]  ;;  %s6601_s9 = scalar_lea.hbm %s11378_s5, %s8743_s21  ;;  %s6603_s15 = sshll.u32 %s274_s10, 4  ;;  %vm6582_vm10 = vcmask 1040384   ;;  %s6604_s15 = int_to_ptr.vmem [resolvable:$true] %s6603_s15 }
  0x46   : > { %v435_v12 = vunpack.c.l.bf16 %v387_v9  ;;  %v9343_v14 = vpack.i.bf16 %v467_v5, %v466_v4  ;;  %v416_v15 = vld [vmem:[%s9975_s30 + $0x2cc] sm:$0xf]  ;;  %v417_v16 = vld [vmem:[%s9975_s30 + $0x2dc] sm:$0xf]  ;;  %v432_v20 = vunpack.c.l.bf16 %v384_v13  ;;  %s6605_s16 = sshll.u32 %s6601_s9, 4  ;;  %s6591_s0 = scalar_lea.sflag [#allocation6], %s9971_s17  ;;  %s6606_s16 = int_to_ptr.hbm [resolvable:$true] %s6605_s16 }
  0x47   : > { %v385_v17 = vld [vmem:[%s9975_s30 + $0xdc] sm:$0xf]  ;;  %v9361_v18 = vpack.i.bf16 %v451_v10, %v450_v7  ;;  %v464_v22 = vunpack.c.l.bf16 %v416_v15  ;;  %v465_v23 = vunpack.c.l.bf16 %v417_v16  ;;  %v414_v27 = vld [vmem:[%s9975_s30 + $0x2ac] sm:$0xf]  ;;  %s9752_s13 = sshra.s32 %s6606_s16, 4  ;;  %s9753_s13 = int_to_ptr.hbm [resolvable:$true] %s9752_s13 }
  0x48   : > { %v9349_v19 = vpack.i.bf16 %v435_v12, %v434_v11  ;;  %9344 = vperm.xlu0 %9342, %v9343_v14   ;;  %v433_v21 = vunpack.c.l.bf16 %v385_v17  ;;  %v415_v28 = vld [vmem:[%s9975_s30 + $0x2bc] sm:$0xf]  ;;  %v400_v29 = vld [vmem:[%s9975_s30 + $0x1cc] sm:$0xf]  ;;  %v462_v31 = vunpack.c.l.bf16 %v414_v27  ;;  %s9754_s14 = scalar_lea.hbm %s9753_s13, 2  ;;  %p9759_p9 = scmp.lt.s32.totalorder %s9753_s13, %s11378_s5 }
  0x49   : > { %9362 = vperm.xlu2 %9360, %v9361_v18   ;;  %v9366_v25 = vpack.i.bf16 %v465_v23, %v464_v22  ;;  %v401_v30 = vld [vmem:[%s9975_s30 + $0x1dc] sm:$0xf]  ;;  %v463_v32 = vunpack.c.l.bf16 %v415_v28  ;;  %v448_v33 = vunpack.c.l.bf16 %v400_v29  ;;  %v398_v36 = vld [vmem:[%s9975_s30 + $0x1ac] sm:$0xf]  ;;  %p3263_p1 = scmp.gt.s32.totalorder %s11121_s27, 1  ;;  %p9755_p4 = scmp.ne.s32.totalorder %s9753_s13, %s9754_s14 }
  0x4a   : > { %9350 = vperm.xlu1 %9348, %v9349_v19   ;;  %v9382_v24 = vpack.i.bf16 %v433_v21, %v432_v20  ;;  %v449_v34 = vunpack.c.l.bf16 %v401_v30  ;;  %v399_v37 = vld [vmem:[%s9975_s30 + $0x1bc] sm:$0xf]  ;;  %v446_v39 = vunpack.c.l.bf16 %v398_v36  ;;  %v380_v42 = vld [vmem:[%s9975_s30 + $0x8c] sm:$0xf] }
  0x4b   : > { %v9416_v35 = vpack.i.bf16 %v463_v32, %v462_v31  ;;  %v447_v40 = vunpack.c.l.bf16 %v399_v37  ;;  %v381_v43 = vld [vmem:[%s9975_s30 + $0x9c] sm:$0xf]  ;;  %v382_v44 = vld [vmem:[%s9975_s30 + $0xac] sm:$0xf]  ;;  %v428_v46 = vunpack.c.l.bf16 %v380_v42  ;;  %p9756_p8 = pnand %p9755_p4, %p9945_p7 }
  0x4c   : > { %v9399_v38 = vpack.i.bf16 %v449_v34, %v448_v33  ;;  %v383_v45 = vld [vmem:[%s9975_s30 + $0xbc] sm:$0xf]  ;;  %v429_v47 = vunpack.c.l.bf16 %v381_v43  ;;  %v430_v48 = vunpack.c.l.bf16 %v382_v44  ;;  %v396_v51 = vld [vmem:[%s9975_s30 + $0x18c] sm:$0xf] }
  0x4d   : > { %v9442_v41 = vpack.i.bf16 %v447_v40, %v446_v39  ;;  %v431_v49 = vunpack.c.l.bf16 %v383_v45  ;;  %v397_v52 = vld [vmem:[%s9975_s30 + $0x19c] sm:$0xf]  ;;  %v444_v54 = vunpack.c.l.bf16 %v396_v51  ;;  %v412_v56 = vld [vmem:[%s9975_s30 + $0x28c] sm:$0xf]  ;;  %p9757_p11 = pneg %p9756_p8 }
  0x4e   : > { %v9458_v50 = vpack.i.bf16 %v429_v47, %v428_v46  ;;  %v445_v55 = vunpack.c.l.bf16 %v397_v52  ;;  %v413_v57 = vld [vmem:[%s9975_s30 + $0x29c] sm:$0xf]  ;;  %v460_v59 = vunpack.c.l.bf16 %v412_v56  ;;  %v378_v61 = vld [vmem:[%s9975_s30 + $0x6c] sm:$0xf] }
  0x4f   : > { %v9421_v53 = vpack.i.bf16 %v431_v49, %v430_v48  ;;  %v461_v60 = vunpack.c.l.bf16 %v413_v57  ;;  %v379_v62 = vld [vmem:[%s9975_s30 + $0x7c] sm:$0xf]  ;;  %v426_v1 = vunpack.c.l.bf16 %v378_v61  ;;  %v394_v4 = vld [vmem:[%s9975_s30 + $0x16c] sm:$0xf] }
  0x50   : > { %9383 = vperm.xlu0 %9342, %v9382_v24   ;;  %v9474_v58 = vpack.i.bf16 %v445_v55, %v444_v54  ;;  %v427_v2 = vunpack.c.l.bf16 %v379_v62  ;;  %v395_v5 = vld [vmem:[%s9975_s30 + $0x17c] sm:$0xf]  ;;  %v442_v6 = vunpack.c.l.bf16 %v394_v4  ;;  %v410_v8 = vld [vmem:[%s9975_s30 + $0x26c] sm:$0xf] }
  0x51   : > { %9367 = vperm.xlu2 %9360, %v9366_v25   ;;  %v9437_v63 = vpack.i.bf16 %v461_v60, %v460_v59  ;;  %v443_v7 = vunpack.c.l.bf16 %v395_v5  ;;  %v411_v9 = vld [vmem:[%s9975_s30 + $0x27c] sm:$0xf]  ;;  %v458_v11 = vunpack.c.l.bf16 %v410_v8  ;;  %v376_v13 = vld [vmem:[%s9975_s30 + $0x4c] sm:$0xf]  ;;  %v468_v60 = vld [vmem:[#allocation7] sm:$0x1] }
  0x52   : > { %9354 = vset.pattern.permute.xlu1 %v9827_v26  ;;  %v9490_v3 = vpack.i.bf16 %v427_v2, %v426_v1  ;;  %v459_v12 = vunpack.c.l.bf16 %v411_v9  ;;  %v424_v16 = vunpack.c.l.bf16 %v376_v13  ;;  %v393_v20 = vld [vmem:[%s9975_s30 + $0x15c] sm:$0xf]  ;;  %v408_v23 = vld [vmem:[%s9975_s30 + $0x24c] sm:$0xf]  ;;  %v469_v62 = vunpack.c.l.bf16 %v468_v60 }
  0x53   : > { %9356 = vperm.xlu1 %9354, %v9349_v19   ;;  %v9506_v10 = vpack.i.bf16 %v443_v7, %v442_v6  ;;  %v392_v19 = vld [vmem:[%s9975_s30 + $0x14c] sm:$0xf]  ;;  %v441_v22 = vunpack.c.l.bf16 %v393_v20  ;;  %v456_v27 = vunpack.c.l.bf16 %v408_v23  ;;  %v375_v30 = vld [vmem:[%s9975_s30 + $0x3c] sm:$0xf] }
  0x54   : > { %v9469_v15 = vpack.i.bf16 %v459_v12, %v458_v11  ;;  %v440_v21 = vunpack.c.l.bf16 %v392_v19  ;;  %v374_v29 = vld [vmem:[%s9975_s30 + $0x2c] sm:$0xf]  ;;  %v423_v33 = vunpack.c.l.bf16 %v375_v30  ;;  %v391_v36 = vld [vmem:[%s9975_s30 + $0x13c] sm:$0xf]  ;;  %v10060_v2 = vperm.slane %v469_v62, 0 }
  0x55   : > { %v422_v32 = vunpack.c.l.bf16 %v374_v29  ;;  %v406_v39 = vld [vmem:[%s9975_s30 + $0x22c] sm:$0xf]  ;;  %v407_v40 = vld [vmem:[%s9975_s30 + $0x23c] sm:$0xf]  ;;  %v10063_v6 = vperm.slane %v469_v62, 1 }
  0x56   : > { %v454_v43 = vunpack.c.l.bf16 %v406_v39  ;;  %v455_v44 = vunpack.c.l.bf16 %v407_v40  ;;  %v372_v45 = vld [vmem:[%s9975_s30 + $0xc] sm:$0xf]  ;;  %v373_v46 = vld [vmem:[%s9975_s30 + $0x1c] sm:$0xf] }
  0x57   : > { %v9554_v34 = vpack.i.bf16 %v423_v33, %v422_v32  ;;  %v420_v48 = vunpack.c.l.bf16 %v372_v45  ;;  %v421_v49 = vunpack.c.l.bf16 %v373_v46  ;;  %v404_v52 = vld [vmem:[%s9975_s30 + $0x20c] sm:$0xf]  ;;  %v389_v12 = vld [vmem:[%s9975_s30 + $0x11c] sm:$0xf] }
  0x58   : > { %9387 = vset.pattern.permute.xlu0 %v9827_v26  ;;  %v9533_v47 = vpack.i.bf16 %v455_v44, %v454_v43  ;;  %v452_v55 = vunpack.c.l.bf16 %v404_v52  ;;  %v388_v11 = vld [vmem:[%s9975_s30 + $0x10c] sm:$0xf] }
  0x59   : > { %9376 = vset.pattern.permute.xlu2 %v9827_v26  ;;  %9389 = vperm.xlu0 %9387, %v9343_v14   ;;  %v377_v14 = vld [vmem:[%s9975_s30 + $0x5c] sm:$0xf]  ;;  %v9586_v51 = vpack.i.bf16 %v421_v49, %v420_v48 }
  0x5a   : > { %9378 = vperm.xlu2 %9376, %v9366_v25   ;;  %v425_v17 = vunpack.c.l.bf16 %v377_v14  ;;  %v9538_v25 = vpack.i.bf16 %v441_v22, %v440_v21 }
  0x5b   : > { %9372 = vperm.xlu1 %9354, %v9361_v18  }
  0x5c   : > { %v9522_v18 = vpack.i.bf16 %v425_v17, %v424_v16 }
  0x61   : > { %9417 = vperm.xlu0 %9387, %v9416_v35  }
  0x62   : > { %9398 = vset.pattern.permute.xlu2 %v9826_v0 }
  0x63   : > { %9394 = vperm.xlu1 %9354, %v9382_v24   ;;  %9400 = vperm.xlu2 %9398, %v9399_v38   ;;  %v409_v24 = vld [vmem:[%s9975_s30 + $0x25c] sm:$0xf] }
  0x64   : > { %v457_v28 = vunpack.c.l.bf16 %v409_v24  ;;  %v436_v24 = vunpack.c.l.bf16 %v388_v11 }
  0x66   : > { %v9501_v31 = vpack.i.bf16 %v457_v28, %v456_v27 }
  0x69   : > { %9443 = vperm.xlu0 %9387, %v9442_v41  }
  0x6b   : > { %9404 = vset.pattern.permute.xlu1 %v9826_v0  ;;  %9410 = vset.pattern.permute.xlu2 %v9827_v26 }
  0x6c   : > { %9406 = vperm.xlu1 %9404, %v9416_v35   ;;  %9412 = vperm.xlu2 %9410, %v9399_v38   ;;  %v390_v35 = vld [vmem:[%s9975_s30 + $0x12c] sm:$0xf]  ;;  %v439_v38 = vunpack.c.l.bf16 %v391_v36 }
  0x6d   : > { %v438_v37 = vunpack.c.l.bf16 %v390_v35 }
  0x6f   : > { %v9570_v42 = vpack.i.bf16 %v439_v38, %v438_v37 }
  0x71   : > { %9459 = vperm.xlu0 %9387, %v9458_v50  }
  0x74   : > { %9422 = vperm.xlu1 %9404, %v9421_v53   ;;  %9427 = vperm.xlu2 %9410, %v9421_v53   ;;  %v405_v53 = vld [vmem:[%s9975_s30 + $0x21c] sm:$0xf] }
  0x75   : > { %v453_v56 = vunpack.c.l.bf16 %v405_v53 }
  0x77   : > { %v9565_v57 = vpack.i.bf16 %v453_v56, %v452_v55 }
  0x79   : > { %9475 = vperm.xlu0 %9387, %v9474_v58  }
  0x7c   : > { %9432 = vperm.xlu1 %9404, %v9442_v41   ;;  %9436 = vset.pattern.permute.xlu2 %v9826_v0 }
  0x7d   : > { %9438 = vperm.xlu2 %9436, %v9437_v63  }
  0x81   : > { %9491 = vperm.xlu0 %9387, %v9490_v3  }
  0x84   : > { %9447 = vset.pattern.permute.xlu1 %v9827_v26 }
  0x85   : > { %9449 = vperm.xlu1 %9447, %v9437_v63   ;;  %9454 = vperm.xlu2 %9436, %v9458_v50  }
  0x89   : > { %9507 = vperm.xlu0 %9387, %v9506_v10  }
  0x8d   : > { %9463 = vset.pattern.permute.xlu1 %v9826_v0  ;;  %9470 = vperm.xlu2 %9436, %v9469_v15  }
  0x8e   : > { %9465 = vperm.xlu1 %9463, %v9474_v58  }
  0x91   : > { %9523 = vperm.xlu0 %9387, %v9522_v18  }
  0x95   : > { %9486 = vperm.xlu2 %9436, %v9490_v3  }
  0x96   : > { %9479 = vset.pattern.permute.xlu1 %v9827_v26 }
  0x97   : > { %9481 = vperm.xlu1 %9479, %v9469_v15  }
  0x99   : > { %9539 = vperm.xlu0 %9387, %v9538_v25  }
  0x9d   : > { %9502 = vperm.xlu2 %9436, %v9501_v31  }
  0x9f   : > { %9495 = vset.pattern.permute.xlu1 %v9826_v0 }
  0xa0   : > { %9497 = vperm.xlu1 %9495, %v9506_v10  }
  0xa1   : > { %9555 = vperm.xlu0 %9387, %v9554_v34  }
  0xa3   : > { %v10045_v41 = vpop.permute.xlu2 %9362 }
  0xa4   : > { %v9365_v63 = vunpack.i.h.bf16 %v10045_v41  ;;  %v9364_v5 = vunpack.i.l.bf16 %v10045_v41 }
  0xa5   : > { %9518 = vperm.xlu2 %9436, %v9522_v18  }
  0xa6   : > { %v742_v8 = vmul.f32 %v9365_v63, %v10060_v2 }
  0xa8   : > { %9511 = vset.pattern.permute.xlu1 %v9827_v26 }
  0xa9   : > { %9513 = vperm.xlu1 %9511, %v9501_v31   ;;  %9571 = vperm.xlu0 %9387, %v9570_v42  }
  0xab   : > { %v9368_v50 = vpop.permute.xlu2 %9367 }
  0xac   : > { %v9370_v13 = vunpack.i.h.bf16 %v9368_v50  ;;  %v9369_v14 = vunpack.i.l.bf16 %v9368_v50 }
  0xad   : > { %9534 = vperm.xlu2 %9436, %v9533_v47  }
  0xae   : > { %v756_v31 = vmul.f32 %v9370_v13, %v10060_v2  ;;  %v755_v32 = vmul.f32 %v9369_v14, %v10060_v2 }
  0xb1   : > { %9527 = vset.pattern.permute.xlu1 %v9826_v0  ;;  %9587 = vperm.xlu0 %9387, %v9586_v51  }
  0xb2   : > { %9529 = vperm.xlu1 %9527, %v9538_v25   ;;  %v437_v25 = vunpack.c.l.bf16 %v389_v12 }
  0xb4   : > { %v10053_v54 = vpop.permute.xlu2 %9378  ;;  %v9598_v39 = vpack.i.bf16 %v437_v25, %v436_v24 }
  0xb5   : > { %9550 = vperm.xlu2 %9436, %v9554_v34   ;;  %v9381_v33 = vunpack.i.h.bf16 %v10053_v54  ;;  %v9380_v34 = vunpack.i.l.bf16 %v10053_v54  ;;  %v741_v54 = vmul.f32 %v9364_v5, %v10060_v2 }
  0xb7   : > { %v997_v49 = vmul.f32 %v9381_v33, %v10063_v6  ;;  %v996_v50 = vmul.f32 %v9380_v34, %v10063_v6 }
  0xba   : > { %9543 = vset.pattern.permute.xlu1 %v9827_v26  ;;  %v9345_v58 = vpop.permute.xlu0 %9344 }
  0xbb   : > { %9545 = vperm.xlu1 %9543, %v9533_v47   ;;  %v9347_v15 = vunpack.i.h.bf16 %v9345_v58  ;;  %v9346_v16 = vunpack.i.l.bf16 %v9345_v58 }
  0xbc   : > { %v9351_v59 = vpop.permute.xlu1 %9350 }
  0xbd   : > { %9566 = vperm.xlu2 %9436, %v9565_v57   ;;  %v9401_v61 = vpop.permute.xlu2 %9400  ;;  %v9353_v3 = vunpack.i.h.bf16 %v9351_v59  ;;  %v9352_v4 = vunpack.i.l.bf16 %v9351_v59  ;;  %v758_v35 = vmul.f32 %v9347_v15, %v10060_v2  ;;  %v757_v36 = vmul.f32 %v9346_v16, %v10060_v2 }
  0xbe   : > { %v9403_v22 = vunpack.i.h.bf16 %v9401_v61  ;;  %v9402_v23 = vunpack.i.l.bf16 %v9401_v61 }
  0xbf   : > { %v726_v18 = vmul.f32 %v9353_v3, %v10060_v2  ;;  %v725_v19 = vmul.f32 %v9352_v4, %v10060_v2  ;;  %v1044_v4 = vadd.f32 %v996_v50, %v755_v32 }
  0xc0   : > { %v740_v40 = vmul.f32 %v9403_v22, %v10060_v2  ;;  %v739_v41 = vmul.f32 %v9402_v23, %v10060_v2 }
  0xc2   : > { %v10058_v1 = vpop.permute.xlu0 %9383 }
  0xc3   : > { %9559 = vset.pattern.permute.xlu1 %v9826_v0 }
  0xc4   : > { %9561 = vperm.xlu1 %9559, %v9570_v42  }
  0xc5   : > { %v9357_v7 = vpop.permute.xlu1 %9356  ;;  %9582 = vperm.xlu2 %9436, %v9586_v51  }
  0xc6   : > { %v9359_v9 = vunpack.i.h.bf16 %v9357_v7  ;;  %v9358_v10 = vunpack.i.l.bf16 %v9357_v7  ;;  %v9413_v17 = vpop.permute.xlu2 %9412  ;;  %v1045_v7 = vadd.f32 %v997_v49, %v756_v31 }
  0xc7   : > { %v9415_v27 = vunpack.i.h.bf16 %v9413_v17  ;;  %v9414_v28 = vunpack.i.l.bf16 %v9413_v17 }
  0xc8   : > { %v967_v20 = vmul.f32 %v9359_v9, %v10063_v6  ;;  %v966_v21 = vmul.f32 %v9358_v10, %v10063_v6  ;;  %v1070_v14 = vpack.c.bf16 %v1045_v7, %v1044_v4 }
  0xc9   : > { %v981_v45 = vmul.f32 %v9415_v27, %v10063_v6  ;;  %v980_v46 = vmul.f32 %v9414_v28, %v10063_v6 }
  0xca   : > { %v1014_v29 = vadd.f32 %v966_v21, %v725_v19  ;;  %v1015_v30 = vadd.f32 %v967_v20, %v726_v18 }
  0xcb   : > { %v9390_v37 = vpop.permute.xlu0 %9389  ;;  %v1028_v62 = vadd.f32 %v980_v46, %v739_v41  ;;  %v1029_v63 = vadd.f32 %v981_v45, %v740_v40 }
  0xcc   : > { %9575 = vset.pattern.permute.xlu1 %v9827_v26  ;;  %v1055_v38 = vpack.c.bf16 %v1015_v30, %v1014_v29  ;;  %v9392_v43 = vunpack.i.h.bf16 %v9390_v37  ;;  %v9391_v44 = vunpack.i.l.bf16 %v9390_v37 }
  0xcd   : > { %v9373_v42 = vpop.permute.xlu1 %9372  ;;  %9577 = vperm.xlu1 %9575, %v9565_v57   ;;  %9597 = vset.pattern.permute.xlu2 %v9827_v26  ;;  %v9386_v57 = vunpack.i.h.bf16 %v10058_v1  ;;  %v9385_v26 = vunpack.i.l.bf16 %v10058_v1 }
  0xce   : > { %v9375_v47 = vunpack.i.h.bf16 %v9373_v42  ;;  %v9374_v48 = vunpack.i.l.bf16 %v9373_v42  ;;  %1457 = vmatpush.bf16.msra.mxu0 %v1055_v38  ;;  %v999_v51 = vmul.f32 %v9392_v43, %v10063_v6  ;;  %v998_v52 = vmul.f32 %v9391_v44, %v10063_v6  ;;  %v9428_v53 = vpop.permute.xlu2 %9427  ;;  %9599 = vperm.xlu2 %9597, %v9598_v39  }
  0xcf   : > { %v724_v5 = vmul.f32 %v9386_v57, %v10060_v2  ;;  %v723_v12 = vmul.f32 %v9385_v26, %v10060_v2  ;;  %v9430_v32 = vunpack.i.h.bf16 %v9428_v53  ;;  %v9429_v33 = vunpack.i.l.bf16 %v9428_v53 }
  0xd0   : > { %v983_v55 = vmul.f32 %v9375_v47, %v10063_v6  ;;  %v982_v56 = vmul.f32 %v9374_v48, %v10063_v6  ;;  %v1046_v58 = vadd.f32 %v998_v52, %v757_v36  ;;  %v1047_v59 = vadd.f32 %v999_v51, %v758_v35 }
  0xd1   : > { %v963_v42 = vmul.f32 %v9430_v32, %v10063_v6  ;;  %v962_v43 = vmul.f32 %v9429_v33, %v10063_v6 }
  0xd2   : > { %v1030_v60 = vadd.f32 %v982_v56, %v741_v54  ;;  %v1031_v61 = vadd.f32 %v983_v55, %v742_v8  ;;  %v1071_v3 = vpack.c.bf16 %v1047_v59, %v1046_v58  ;;  %v1062_v8 = vpack.c.bf16 %v1029_v63, %v1028_v62 }
  0xd3   : > { %v9418_v9 = vpop.permute.xlu0 %9417 }
  0xd4   : > { %v1063_v10 = vpack.c.bf16 %v1031_v61, %v1030_v60  ;;  %1715 = vmatpush.bf16.msra.mxu2 %v1071_v3  ;;  %v9419_v20 = vunpack.i.l.bf16 %v9418_v9 }
  0xd5   : > { %v9395_v11 = vpop.permute.xlu1 %9394  ;;  %9591 = vset.pattern.permute.xlu1 %v9826_v0  ;;  %v9420_v0 = vunpack.i.h.bf16 %v9418_v9 }
  0xd6   : > { %v9397_v1 = vunpack.i.h.bf16 %v9395_v11  ;;  %v9396_v13 = vunpack.i.l.bf16 %v9395_v11  ;;  %1586 = vmatpush.bf16.msra.mxu1 %v1063_v10  ;;  %9593 = vperm.xlu1 %9591, %v9598_v39   ;;  %v994_v25 = vmul.f32 %v9419_v20, %v10063_v6 }
  0xd7   : > { %v10098_v17 = vpop.permute.xlu2 %9438  ;;  %v995_v24 = vmul.f32 %v9420_v0, %v10063_v6 }
  0xd8   : > { %v965_v15 = vmul.f32 %v9397_v1, %v10063_v6  ;;  %v964_v16 = vmul.f32 %v9396_v13, %v10063_v6  ;;  %1716 = vmatpush.bf16.msra.mxu2 %v1070_v14  ;;  %v9440_v14 = vunpack.i.l.bf16 %v10098_v17 }
  0xda   : > { %v1012_v18 = vadd.f32 %v964_v16, %v723_v12  ;;  %v1013_v19 = vadd.f32 %v965_v15, %v724_v5  ;;  %1587 = vmatpush.bf16.msra.mxu1 %v1062_v8  ;;  %v9441_v8 = vunpack.i.h.bf16 %v10098_v17 }
  0xdb   : > { %v9444_v21 = vpop.permute.xlu0 %9443 }
  0xdc   : > { %v1054_v22 = vpack.c.bf16 %v1013_v19, %v1012_v18  ;;  %v9446_v54 = vunpack.i.h.bf16 %v9444_v21  ;;  %v9445_v55 = vunpack.i.l.bf16 %v9444_v21 }
  0xde   : > { %v9407_v23 = vpop.permute.xlu1 %9406  ;;  %1458 = vmatpush.bf16.msra.mxu0 %v1054_v22  ;;  %v979_v61 = vmul.f32 %v9446_v54, %v10063_v6  ;;  %v978_v63 = vmul.f32 %v9445_v55, %v10063_v6 }
  0xdf   : > { %v9409_v27 = vunpack.i.h.bf16 %v9407_v23  ;;  %v9408_v28 = vunpack.i.l.bf16 %v9407_v23  ;;  %v9455_v29 = vpop.permute.xlu2 %9454 }
  0xe0   : > { %v9457_v34 = vunpack.i.h.bf16 %v9455_v29  ;;  %v9456_v35 = vunpack.i.l.bf16 %v9455_v29 }
  0xe1   : > { %v754_v30 = vmul.f32 %v9409_v27, %v10060_v2  ;;  %v753_v31 = vmul.f32 %v9408_v28, %v10060_v2 }
  0xe2   : > { %v720_v44 = vmul.f32 %v9457_v34, %v10060_v2  ;;  %v719_v45 = vmul.f32 %v9456_v35, %v10060_v2 }
  0xe3   : > { %v1042_v36 = vadd.f32 %v994_v25, %v753_v31  ;;  %v1043_v37 = vadd.f32 %v995_v24, %v754_v30  ;;  %v9460_v38 = vpop.permute.xlu0 %9459  ;;  %v752_v24 = vmul.f32 %v9441_v8, %v10060_v2  ;;  %v751_v25 = vmul.f32 %v9440_v14, %v10060_v2 }
  0xe4   : > { %v9462_v39 = vunpack.i.h.bf16 %v9460_v38  ;;  %v9461_v40 = vunpack.i.l.bf16 %v9460_v38 }
  0xe5   : > { %v1069_v41 = vpack.c.bf16 %v1043_v37, %v1042_v36 }
  0xe6   : > { %v9423_v46 = vpop.permute.xlu1 %9422  ;;  %v961_v47 = vmul.f32 %v9462_v39, %v10063_v6  ;;  %v960_v48 = vmul.f32 %v9461_v40, %v10063_v6 }
  0xe7   : > { %v9425_v49 = vunpack.i.h.bf16 %v9423_v46  ;;  %v9424_v50 = vunpack.i.l.bf16 %v9423_v46  ;;  %1717 = vmatpush.bf16.msra.mxu2 %v1069_v41  ;;  %v10110_v51 = vpop.permute.xlu2 %9470 }
  0xe8   : > { %v1008_v26 = vadd.f32 %v960_v48, %v719_v45  ;;  %v1009_v58 = vadd.f32 %v961_v47, %v720_v44 }
  0xe9   : > { %v722_v52 = vmul.f32 %v9425_v49, %v10060_v2  ;;  %v721_v53 = vmul.f32 %v9424_v50, %v10060_v2 }
  0xea   : > { %v1052_v7 = vpack.c.bf16 %v1009_v58, %v1008_v26 }
  0xeb   : > { %v1010_v56 = vadd.f32 %v962_v43, %v721_v53  ;;  %v1011_v57 = vadd.f32 %v963_v42, %v722_v52  ;;  %v9476_v59 = vpop.permute.xlu0 %9475 }
  0xec   : > { %v9478_v37 = vunpack.i.h.bf16 %v9476_v59  ;;  %v9477_v39 = vunpack.i.l.bf16 %v9476_v59 }
  0xed   : > { %v1053_v60 = vpack.c.bf16 %v1011_v57, %v1010_v56 }
  0xee   : > { %v9433_v62 = vpop.permute.xlu1 %9432  ;;  %v977_v44 = vmul.f32 %v9478_v37, %v10063_v6  ;;  %v976_v46 = vmul.f32 %v9477_v39, %v10063_v6 }
  0xef   : > { %v9435_v3 = vunpack.i.h.bf16 %v9433_v62  ;;  %v9434_v4 = vunpack.i.l.bf16 %v9433_v62  ;;  %1459 = vmatpush.bf16.msra.mxu0 %v1053_v60  ;;  %v9487_v9 = vpop.permute.xlu2 %9486  ;;  %v9473_v60 = vunpack.i.h.bf16 %v10110_v51 }
  0xf0   : > { %v9489_v11 = vunpack.i.h.bf16 %v9487_v9  ;;  %v9488_v12 = vunpack.i.l.bf16 %v9487_v9 }
  0xf1   : > { %v738_v10 = vmul.f32 %v9435_v3, %v10060_v2  ;;  %v737_v5 = vmul.f32 %v9434_v4, %v10060_v2 }
  0xf2   : > { %v718_v15 = vmul.f32 %v9489_v11, %v10060_v2  ;;  %v717_v18 = vmul.f32 %v9488_v12, %v10060_v2 }
  0xf3   : > { %1460 = vmatpush.bf16.msra.mxu0 %v1052_v7  ;;  %v1026_v1 = vadd.f32 %v978_v63, %v737_v5  ;;  %v1027_v13 = vadd.f32 %v979_v61, %v738_v10  ;;  %v9492_v16 = vpop.permute.xlu0 %9491  ;;  %v9472_v61 = vunpack.i.l.bf16 %v10110_v51  ;;  %v750_v5 = vmul.f32 %v9473_v60, %v10060_v2 }
  0xf4   : > { %v9494_v19 = vunpack.i.h.bf16 %v9492_v16  ;;  %v9493_v0 = vunpack.i.l.bf16 %v9492_v16 }
  0xf5   : > { %v1061_v20 = vpack.c.bf16 %v1027_v13, %v1026_v1  ;;  %v749_v11 = vmul.f32 %v9472_v61, %v10060_v2 }
  0xf6   : > { %v959_v21 = vmul.f32 %v9494_v19, %v10063_v6  ;;  %v958_v22 = vmul.f32 %v9493_v0, %v10063_v6 }
  0xf7   : > { %v9450_v23 = vpop.permute.xlu1 %9449  ;;  %1588 = vmatpush.bf16.msra.mxu1 %v1061_v20  ;;  %v10126_v28 = vpop.permute.xlu2 %9502 }
  0xf8   : > { %v9452_v27 = vunpack.i.h.bf16 %v9450_v23  ;;  %v9451_v17 = vunpack.i.l.bf16 %v9450_v23  ;;  %v1006_v29 = vadd.f32 %v958_v22, %v717_v18  ;;  %v1007_v30 = vadd.f32 %v959_v21, %v718_v15 }
  0xfa   : > { %v993_v31 = vmul.f32 %v9452_v27, %v10063_v6  ;;  %v992_v32 = vmul.f32 %v9451_v17, %v10063_v6  ;;  %v1051_v33 = vpack.c.bf16 %v1007_v30, %v1006_v29 }
  0xfb   : > { %v9508_v34 = vpop.permute.xlu0 %9507 }
  0xfc   : > { %v1040_v35 = vadd.f32 %v992_v32, %v751_v25  ;;  %v1041_v36 = vadd.f32 %v993_v31, %v752_v24  ;;  %1461 = vmatpush.bf16.msra.mxu0 %v1051_v33  ;;  %v9510_v14 = vunpack.i.h.bf16 %v9508_v34  ;;  %v9509_v15 = vunpack.i.l.bf16 %v9508_v34 }
  0xfe   : > { %v1068_v38 = vpack.c.bf16 %v1041_v36, %v1040_v35  ;;  %v975_v22 = vmul.f32 %v9510_v14, %v10063_v6  ;;  %v974_v23 = vmul.f32 %v9509_v15, %v10063_v6 }
  0xff   : > { %v9519_v41 = vpop.permute.xlu2 %9518 }
 0x100   : > { %v9466_v40 = vpop.permute.xlu1 %9465  ;;  %1718 = vmatpush.bf16.msra.mxu2 %v1068_v38  ;;  %v9521_v45 = vunpack.i.h.bf16 %v9519_v41  ;;  %v9520_v49 = vunpack.i.l.bf16 %v9519_v41  ;;  %v9504_v41 = vunpack.i.l.bf16 %v10126_v28 }
 0x101   : > { %v9468_v42 = vunpack.i.h.bf16 %v9466_v40  ;;  %v9467_v43 = vunpack.i.l.bf16 %v9466_v40  ;;  %v9505_v40 = vunpack.i.h.bf16 %v10126_v28 }
 0x102   : > { %v716_v56 = vmul.f32 %v9521_v45, %v10060_v2  ;;  %v715_v57 = vmul.f32 %v9520_v49, %v10060_v2  ;;  %v747_v49 = vmul.f32 %v9504_v41, %v10060_v2 }
 0x103   : > { %v736_v47 = vmul.f32 %v9468_v42, %v10060_v2  ;;  %v735_v48 = vmul.f32 %v9467_v43, %v10060_v2  ;;  %v9524_v50 = vpop.permute.xlu0 %9523 }
 0x104   : > { %v9526_v52 = vunpack.i.h.bf16 %v9524_v50  ;;  %v9525_v53 = vunpack.i.l.bf16 %v9524_v50 }
 0x105   : > { %v1024_v54 = vadd.f32 %v976_v46, %v735_v48  ;;  %v1025_v55 = vadd.f32 %v977_v44, %v736_v47  ;;  %v748_v48 = vmul.f32 %v9505_v40, %v10060_v2 }
 0x106   : > { %v957_v26 = vmul.f32 %v9526_v52, %v10063_v6  ;;  %v956_v58 = vmul.f32 %v9525_v53, %v10063_v6 }
 0x107   : > { %v1060_v59 = vpack.c.bf16 %v1025_v55, %v1024_v54  ;;  %v10140_v62 = vpop.permute.xlu2 %9534 }
 0x108   : > { %v1004_v3 = vadd.f32 %v956_v58, %v715_v57  ;;  %v1005_v4 = vadd.f32 %v957_v26, %v716_v56 }
 0x109   : > { %v9482_v63 = vpop.permute.xlu1 %9481  ;;  %1589 = vmatpush.bf16.msra.mxu1 %v1060_v59 }
 0x10a   : > { %v9484_v7 = vunpack.i.h.bf16 %v9482_v63  ;;  %v9483_v9 = vunpack.i.l.bf16 %v9482_v63  ;;  %v1050_v10 = vpack.c.bf16 %v1005_v4, %v1004_v3 }
 0x10b   : > { %v9540_v13 = vpop.permute.xlu0 %9539 }
 0x10c   : > { %v991_v12 = vmul.f32 %v9484_v7, %v10063_v6  ;;  %v990_v1 = vmul.f32 %v9483_v9, %v10063_v6  ;;  %1462 = vmatpush.bf16.msra.mxu0 %v1050_v10  ;;  %v9542_v28 = vunpack.i.h.bf16 %v9540_v13  ;;  %v9541_v56 = vunpack.i.l.bf16 %v9540_v13 }
 0x10e   : > { %v1038_v51 = vadd.f32 %v990_v1, %v749_v11  ;;  %v1039_v8 = vadd.f32 %v991_v12, %v750_v5  ;;  %v973_v7 = vmul.f32 %v9542_v28, %v10063_v6  ;;  %v972_v9 = vmul.f32 %v9541_v56, %v10063_v6 }
 0x10f   : > { %v9551_v16 = vpop.permute.xlu2 %9550 }
 0x110   : > { %v1067_v18 = vpack.c.bf16 %v1039_v8, %v1038_v51  ;;  %v9552_v19 = vunpack.i.l.bf16 %v9551_v16  ;;  %v9553_v24 = vunpack.i.h.bf16 %v9551_v16  ;;  %v6719_v16 = vld [vmem:[%s9975_s30] sm:$0xf] }
 0x112   : > { %v9498_v0 = vpop.permute.xlu1 %9497  ;;  %1719 = vmatpush.bf16.msra.mxu2 %v1067_v18  ;;  %v713_v31 = vmul.f32 %v9552_v19, %v10060_v2  ;;  %v714_v36 = vmul.f32 %v9553_v24, %v10060_v2  ;;  %v8747_v18 = vld [vmem:[%s9975_s30 + $0xc] sm:$0xf0] }
 0x113   : > { %v9500_v20 = vunpack.i.h.bf16 %v9498_v0  ;;  %v9499_v21 = vunpack.i.l.bf16 %v9498_v0  ;;  %v9556_v25 = vpop.permute.xlu0 %9555 }
 0x114   : > { %v9558_v29 = vunpack.i.h.bf16 %v9556_v25  ;;  %v9557_v30 = vunpack.i.l.bf16 %v9556_v25 }
 0x115   : > { %v734_v27 = vmul.f32 %v9500_v20, %v10060_v2  ;;  %v733_v17 = vmul.f32 %v9499_v21, %v10060_v2  ;;  %v9537_v20 = vunpack.i.h.bf16 %v10140_v62  ;;  %v9536_v21 = vunpack.i.l.bf16 %v10140_v62 }
 0x116   : > { %v955_v32 = vmul.f32 %v9558_v29, %v10063_v6  ;;  %v954_v33 = vmul.f32 %v9557_v30, %v10063_v6 }
 0x117   : > { %v1022_v34 = vadd.f32 %v974_v23, %v733_v17  ;;  %v1023_v35 = vadd.f32 %v975_v22, %v734_v27  ;;  %v10154_v37 = vpop.permute.xlu2 %9566  ;;  %v10174_v22 = vor.u32 %v8747_v18, %v6719_v16  ;;  %v746_v27 = vmul.f32 %v9537_v20, %v10060_v2  ;;  %v8746_v16 = vld [vmem:[%s9975_s30 + $0x4] sm:$0xf] }
 0x118   : > { %v1002_v39 = vadd.f32 %v954_v33, %v713_v31  ;;  %v1003_v42 = vadd.f32 %v955_v32, %v714_v36  ;;  %v745_v17 = vmul.f32 %v9536_v21, %v10060_v2  ;;  %v6755_v21 = vld [vmem:[%s9975_s30 + $0x60] sm:$0xf] }
 0x119   : > { %v1059_v38 = vpack.c.bf16 %v1023_v35, %v1022_v34 }
 0x11a   : > { %v1049_v47 = vpack.c.bf16 %v1003_v42, %v1002_v39 }
 0x11b   : > { %v9514_v43 = vpop.permute.xlu1 %9513  ;;  %1590 = vmatpush.bf16.msra.mxu1 %v1059_v38  ;;  %v9572_v46 = vpop.permute.xlu0 %9571 }
 0x11c   : > { %v9516_v44 = vunpack.i.h.bf16 %v9514_v43  ;;  %v9515_v45 = vunpack.i.l.bf16 %v9514_v43  ;;  %1463 = vmatpush.bf16.msra.mxu0 %v1049_v47  ;;  %v9574_v33 = vunpack.i.h.bf16 %v9572_v46  ;;  %v9573_v34 = vunpack.i.l.bf16 %v9572_v46  ;;  %v6731_v43 = vld [vmem:[%s9975_s30 + $0x20] sm:$0xf] }
 0x11e   : > { %v989_v50 = vmul.f32 %v9516_v44, %v10063_v6  ;;  %v988_v52 = vmul.f32 %v9515_v45, %v10063_v6  ;;  %v971_v39 = vmul.f32 %v9574_v33, %v10063_v6  ;;  %v970_v40 = vmul.f32 %v9573_v34, %v10063_v6  ;;  %v8750_v44 = vld [vmem:[%s9975_s30 + $0x2c] sm:$0xf0]  ;;  %v8752_v34 = vld [vmem:[%s9975_s30 + $0x44] sm:$0xf] }
 0x11f   : > { %v9583_v53 = vpop.permute.xlu2 %9582 }
 0x120   : > { %v1036_v54 = vadd.f32 %v988_v52, %v747_v49  ;;  %v1037_v55 = vadd.f32 %v989_v50, %v748_v48  ;;  %v9585_v57 = vunpack.i.h.bf16 %v9583_v53  ;;  %v9584_v26 = vunpack.i.l.bf16 %v9583_v53 }
 0x121   : > { %v10187_v48 = vor.u32 %v8750_v44, %v6731_v43  ;;  %v9569_v49 = vunpack.i.h.bf16 %v10154_v37  ;;  %v9568_v50 = vunpack.i.l.bf16 %v10154_v37  ;;  %v6727_v37 = vld [vmem:[%s9975_s30 + $0x8] sm:$0xf]  ;;  %v8755_v44 = vld [vmem:[%s9975_s30 + $0x64] sm:$0xf] }
 0x122   : > { %v1066_v58 = vpack.c.bf16 %v1037_v55, %v1036_v54  ;;  %v712_v10 = vmul.f32 %v9585_v57, %v10060_v2  ;;  %v711_v5 = vmul.f32 %v9584_v26, %v10060_v2 }
 0x123   : > { %v9588_v60 = vpop.permute.xlu0 %9587  ;;  %v744_v55 = vmul.f32 %v9569_v49, %v10060_v2  ;;  %v743_v28 = vmul.f32 %v9568_v50, %v10060_v2  ;;  %v8760_v49 = vld [vmem:[%s9975_s30 + $0x94] sm:$0xf0] }
 0x124   : > { %v9530_v59 = vpop.permute.xlu1 %9529  ;;  %1720 = vmatpush.bf16.msra.mxu2 %v1066_v58  ;;  %v9590_v3 = vunpack.i.h.bf16 %v9588_v60  ;;  %v9589_v4 = vunpack.i.l.bf16 %v9588_v60  ;;  %v8748_v60 = vld [vmem:[%s9975_s30 + $0x14] sm:$0xf0] }
 0x125   : > { %v9532_v61 = vunpack.i.h.bf16 %v9530_v59  ;;  %v9531_v63 = vunpack.i.l.bf16 %v9530_v59 }
 0x126   : > { %v953_v1 = vmul.f32 %v9590_v3, %v10063_v6  ;;  %v952_v13 = vmul.f32 %v9589_v4, %v10063_v6  ;;  %v10198_v4 = vor.u32 %v8748_v60, %v6727_v37  ;;  %v8768_v37 = vld [vmem:[%s9975_s30 + $0xec] sm:$0xf0]  ;;  %v7035_v60 = vld [vmem:[#allocation7 + $0x80] sm:$0xf] }
 0x127   : > { %v732_v11 = vmul.f32 %v9532_v61, %v10060_v2  ;;  %v731_v12 = vmul.f32 %v9531_v63, %v10060_v2 }
 0x128   : > { %v1000_v14 = vadd.f32 %v952_v13, %v711_v5  ;;  %v1001_v15 = vadd.f32 %v953_v1, %v712_v10  ;;  %v9600_v26 = vpop.permute.xlu2 %9599  ;;  %v8753_v1 = vld [vmem:[%s9975_s30 + $0x4c] sm:$0xf0] }
 0x129   : > { %v1020_v51 = vadd.f32 %v972_v9, %v731_v12  ;;  %v1021_v8 = vadd.f32 %v973_v7, %v732_v11  ;;  %v9602_v61 = vunpack.i.h.bf16 %v9600_v26  ;;  %v9601_v63 = vunpack.i.l.bf16 %v9600_v26  ;;  %v6743_v12 = vld [vmem:[%s9975_s30 + $0x40] sm:$0xf]  ;;  %v8763_v26 = vld [vmem:[%s9975_s30 + $0xb4] sm:$0xf0] }
 0x12a   : > { %v1048_v0 = vpack.c.bf16 %v1001_v15, %v1000_v14 }
 0x12b   : > { %v1058_v19 = vpack.c.bf16 %v1021_v8, %v1020_v51  ;;  %v969_v5 = vmul.f32 %v9602_v61, %v10063_v6  ;;  %v968_v11 = vmul.f32 %v9601_v63, %v10063_v6  ;;  %v10207_v8 = vor.u32 %v8753_v1, %v6743_v12  ;;  %v8825_v61 = vld [vmem:[#allocation7 + $0x84] sm:$0xf0]  ;;  %v7031_v12 = vld [vmem:[#allocation7 + $0x70] sm:$0xf]  ;;  %v8824_v1 = vld [vmem:[#allocation7 + $0x74] sm:$0xf0] }
 0x12c   : > { %1464 = vmatpush.bf16.msra.mxu0 %v1048_v0  ;;  %v8751_v0 = vld [vmem:[%s9975_s30 + $0x34] sm:$0xf0] }
 0x12d   : > { %v9546_v23 = vpop.permute.xlu1 %9545  ;;  %1591 = vmatpush.bf16.msra.mxu1 %v1058_v19 }
 0x12e   : > { %v9548_v24 = vunpack.i.h.bf16 %v9546_v23  ;;  %v9547_v25 = vunpack.i.l.bf16 %v9546_v23  ;;  %v8756_v23 = vld [vmem:[%s9975_s30 + $0x6c] sm:$0xf0] }
 0x12f   : > { %1465 = vmatmul.bf16.vlgmr.msra.gmra.mxu0 %v10174_v22 }
 0x130   : > { %v987_v29 = vmul.f32 %v9548_v24, %v10063_v6  ;;  %v986_v30 = vmul.f32 %v9547_v25, %v10063_v6  ;;  %v10222_v24 = vor.u32 %v8756_v23, %v6755_v21  ;;  %v8749_v25 = vld [vmem:[%s9975_s30 + $0x24] sm:$0xf]  ;;  %v8822_v21 = vld [vmem:[#allocation7 + $0x54] sm:$0xf0] }
 0x131   : > { %v8764_v23 = vld [vmem:[%s9975_s30 + $0xc4] sm:$0xf] }
 0x132   : > { %v1034_v62 = vadd.f32 %v986_v30, %v745_v17  ;;  %v1035_v31 = vadd.f32 %v987_v29, %v746_v27  ;;  %v6733_v27 = vld [vmem:[%s9975_s30 + $0x30] sm:$0xf0]  ;;  %v6751_v29 = vld [vmem:[%s9975_s30 + $0x48] sm:$0xf]  ;;  %v8754_v30 = vld [vmem:[%s9975_s30 + $0x54] sm:$0xf0] }
 0x133   : > { %v10226_v17 = vor.u32 %v8749_v25, %v6733_v27  ;;  %v6793_v25 = vld [vmem:[%s9975_s30 + $0xd0] sm:$0xf0] }
 0x134   : > { %v1065_v32 = vpack.c.bf16 %v1035_v31, %v1034_v62  ;;  %v10232_v62 = vor.u32 %v8754_v30, %v6751_v29  ;;  %v6767_v31 = vld [vmem:[%s9975_s30 + $0x80] sm:$0xf]  ;;  %v10301_v30 = vor.u32 %v8764_v23, %v6793_v25  ;;  %v6835_v25 = vld [vmem:[%s9975_s30 + $0x128] sm:$0xf] }
 0x136   : > { %v9562_v35 = vpop.permute.xlu1 %9561  ;;  %1721 = vmatpush.bf16.msra.mxu2 %v1065_v32  ;;  %11483 = vst [vmem:[#allocation19_spill] sm:$0xff] %v10232_v62  ;;  %v8759_v32 = vld [vmem:[%s9975_s30 + $0x8c] sm:$0xf0] }
 0x137   : > { %v9564_v36 = vunpack.i.h.bf16 %v9562_v35  ;;  %v9563_v38 = vunpack.i.l.bf16 %v9562_v35  ;;  %v10237_v33 = vor.u32 %v8759_v32, %v6767_v31  ;;  %v6745_v35 = vld [vmem:[%s9975_s30 + $0x50] sm:$0xf0]  ;;  %v7019_v31 = vld [vmem:[#allocation7 + $0x40] sm:$0xf]  ;;  %v8821_v32 = vld [vmem:[#allocation7 + $0x44] sm:$0xf0] }
 0x139   : > { %v730_v41 = vmul.f32 %v9564_v36, %v10060_v2  ;;  %v729_v42 = vmul.f32 %v9563_v38, %v10060_v2  ;;  %v10241_v36 = vor.u32 %v8752_v34, %v6745_v35  ;;  %v6763_v38 = vld [vmem:[%s9975_s30 + $0x68] sm:$0xf]  ;;  %v7020_v34 = vor.u32 %v8821_v32, %v7019_v31 }
 0x13a   : > { %v6811_v35 = vld [vmem:[%s9975_s30 + $0xe8] sm:$0xf] }
 0x13b   : > { %v1018_v45 = vadd.f32 %v970_v40, %v729_v42  ;;  %v1019_v47 = vadd.f32 %v971_v39, %v730_v41  ;;  %v8757_v39 = vld [vmem:[%s9975_s30 + $0x74] sm:$0xf0]  ;;  %v6779_v41 = vld [vmem:[%s9975_s30 + $0xa0] sm:$0xf]  ;;  %v8762_v42 = vld [vmem:[%s9975_s30 + $0xac] sm:$0xf0] }
 0x13c   : > { %v10247_v40 = vor.u32 %v8757_v39, %v6763_v38  ;;  %v10252_v43 = vor.u32 %v8762_v42, %v6779_v41  ;;  %v8769_v38 = vld [vmem:[%s9975_s30 + $0xf4] sm:$0xf0]  ;;  %v7015_v39 = vld [vmem:[#allocation7 + $0x30] sm:$0xf] }
 0x13d   : > { %v1057_v46 = vpack.c.bf16 %v1019_v47, %v1018_v45  ;;  %v6757_v45 = vld [vmem:[%s9975_s30 + $0x70] sm:$0xf0]  ;;  %v8820_v41 = vld [vmem:[#allocation7 + $0x34] sm:$0xf0] }
 0x13e   : > { %11484 = vst [vmem:[#allocation20_spill] sm:$0xff] %v10247_v40  ;;  %v10256_v47 = vor.u32 %v8755_v44, %v6757_v45  ;;  %v7016_v44 = vor.u32 %v8820_v41, %v7015_v39  ;;  %v10307_v45 = vor.u32 %v8769_v38, %v6811_v35  ;;  %v6851_v41 = vld [vmem:[%s9975_s30 + $0x160] sm:$0xf] }
 0x13f   : > { %v9578_v52 = vpop.permute.xlu1 %9577  ;;  %1592 = vmatpush.bf16.msra.mxu1 %v1057_v46  ;;  %1470 = vmatmul.bf16.gmra.mxu0 %v10187_v48  ;;  %v6775_v46 = vld [vmem:[%s9975_s30 + $0x88] sm:$0xf] }
 0x140   : > { %v9580_v53 = vunpack.i.h.bf16 %v9578_v52  ;;  %v9579_v54 = vunpack.i.l.bf16 %v9578_v52  ;;  %v10262_v50 = vor.u32 %v8760_v49, %v6775_v46  ;;  %v6791_v52 = vld [vmem:[%s9975_s30 + $0xc0] sm:$0xf]  ;;  %11488 = vst [vmem:[#allocation24_spill] sm:$0xff] %v10307_v45 }
 0x141   : > { %v7011_v46 = vld [vmem:[#allocation7 + $0x20] sm:$0xf] }
 0x142   : > { %v985_v56 = vmul.f32 %v9580_v53, %v10063_v6  ;;  %v984_v57 = vmul.f32 %v9579_v54, %v10063_v6  ;;  %v6721_v6 = vld [vmem:[%s9975_s30 + $0x10] sm:$0xf0]  ;;  %11485 = vst [vmem:[#allocation21_spill] sm:$0xff] %v10262_v50  ;;  %v8765_v53 = vld [vmem:[%s9975_s30 + $0xcc] sm:$0xf0] }
 0x143   : > { %v10211_v19 = vor.u32 %v8746_v16, %v6721_v6  ;;  %v10267_v54 = vor.u32 %v8765_v53, %v6791_v52  ;;  %v6815_v16 = vld [vmem:[%s9975_s30 + $0x100] sm:$0xf]  ;;  %v8771_v6 = vld [vmem:[%s9975_s30 + $0x10c] sm:$0xf0]  ;;  %v8819_v53 = vld [vmem:[#allocation7 + $0x24] sm:$0xf0] }
 0x144   : > { %v1032_v58 = vadd.f32 %v984_v57, %v743_v28  ;;  %v1033_v59 = vadd.f32 %v985_v56, %v744_v55  ;;  %v8758_v55 = vld [vmem:[%s9975_s30 + $0x84] sm:$0xf]  ;;  %v6769_v28 = vld [vmem:[%s9975_s30 + $0x90] sm:$0xf0]  ;;  %v6787_v57 = vld [vmem:[%s9975_s30 + $0xa8] sm:$0xf] }
 0x145   : > { %v10271_v56 = vor.u32 %v8758_v55, %v6769_v28  ;;  %v6827_v49 = vld [vmem:[%s9975_s30 + $0x120] sm:$0xf]  ;;  %v8774_v52 = vld [vmem:[%s9975_s30 + $0x12c] sm:$0xf0]  ;;  %v7012_v55 = vor.u32 %v8819_v53, %v7011_v46  ;;  %v8773_v53 = vld [vmem:[%s9975_s30 + $0x124] sm:$0xf] }
 0x146   : > { %v1064_v3 = vpack.c.bf16 %v1033_v59, %v1032_v58  ;;  %v10277_v58 = vor.u32 %v8763_v26, %v6787_v57  ;;  %v6803_v59 = vld [vmem:[%s9975_s30 + $0xe0] sm:$0xf]  ;;  %v10312_v28 = vor.u32 %v8774_v52, %v6827_v49  ;;  %v7007_v57 = vld [vmem:[#allocation7 + $0x10] sm:$0xf]  ;;  %v8818_v26 = vld [vmem:[#allocation7 + $0x14] sm:$0xf0] }
 0x147   : > { %v10282_v63 = vor.u32 %v8768_v37, %v6803_v59  ;;  %v8767_v59 = vld [vmem:[%s9975_s30 + $0xe4] sm:$0xf]  ;;  %v6805_v37 = vld [vmem:[%s9975_s30 + $0xf0] sm:$0xf0] }
 0x148   : > { %v9594_v7 = vpop.permute.xlu1 %9593  ;;  %1722 = vmatpush.bf16.msra.mxu2 %v1064_v3  ;;  %11486 = vst [vmem:[#allocation22_spill] sm:$0xff] %v10277_v58  ;;  %v7036_v3 = vor.u32 %v8825_v61, %v7035_v60  ;;  %v7008_v61 = vor.u32 %v8818_v26, %v7007_v57 }
 0x149   : > { %v9596_v9 = vunpack.i.h.bf16 %v9594_v7  ;;  %v9595_v10 = vunpack.i.l.bf16 %v9594_v7  ;;  %v8761_v7 = vld [vmem:[%s9975_s30 + $0xa4] sm:$0xf] }
 0x14a   : > { %1980 = vmatpush.bf16.msra.mxu3 %v7036_v3  ;;  %v10316_v3 = vor.u32 %v8767_v59, %v6805_v37 }
 0x14b   : > { %v728_v13 = vmul.f32 %v9596_v9, %v10060_v2  ;;  %v727_v51 = vmul.f32 %v9595_v10, %v10060_v2  ;;  %1723 = vmatmul.bf16.vlgmr.msra.gmra.mxu2 %v10198_v4  ;;  %v6739_v2 = vld [vmem:[%s9975_s30 + $0x28] sm:$0xf]  ;;  %v6781_v9 = vld [vmem:[%s9975_s30 + $0xb0] sm:$0xf0] }
 0x14c   : > { %v10217_v20 = vor.u32 %v8751_v0, %v6739_v2  ;;  %v10286_v10 = vor.u32 %v8761_v7, %v6781_v9  ;;  %v10297_v2 = vor.u32 %v8771_v6, %v6815_v16  ;;  %v7023_v0 = vld [vmem:[#allocation7 + $0x50] sm:$0xf]  ;;  %v6823_v7 = vld [vmem:[%s9975_s30 + $0x108] sm:$0xf]  ;;  %v8772_v9 = vld [vmem:[%s9975_s30 + $0x114] sm:$0xf0] }
 0x14d   : > { %v1016_v14 = vadd.f32 %v968_v11, %v727_v51  ;;  %v1017_v15 = vadd.f32 %v969_v5, %v728_v13  ;;  %v6799_v5 = vld [vmem:[%s9975_s30 + $0xc8] sm:$0xf]  ;;  %v8766_v11 = vld [vmem:[%s9975_s30 + $0xd4] sm:$0xf0]  ;;  %v7032_v13 = vor.u32 %v8824_v1, %v7031_v12  ;;  %v7024_v29 = vor.u32 %v8822_v21, %v7023_v0  ;;  %v6839_v12 = vld [vmem:[%s9975_s30 + $0x140] sm:$0xf] }
 0x14e   : > { %11482 = vst [vmem:[#allocation18_spill] sm:$0xff] %v10217_v20  ;;  %v10292_v51 = vor.u32 %v8766_v11, %v6799_v5  ;;  %v10322_v11 = vor.u32 %v8772_v9, %v6823_v7  ;;  %v8777_v1 = vld [vmem:[%s9975_s30 + $0x14c] sm:$0xf0] }
 0x14f   : > { %v1056_v18 = vpack.c.bf16 %v1017_v15, %v1016_v14  ;;  %1475 = vmatmul.bf16.gmra.mxu0 %v10207_v8  ;;  %1981 = vmatpush.bf16.msra.mxu3 %v7032_v13  ;;  %v7027_v14 = vld [vmem:[#allocation7 + $0x60] sm:$0xf]  ;;  %v8823_v15 = vld [vmem:[#allocation7 + $0x64] sm:$0xf0]  ;;  %v10327_v13 = vor.u32 %v8777_v1, %v6839_v12  ;;  %v8778_v1 = vld [vmem:[%s9975_s30 + $0x154] sm:$0xf0] }
 0x150   : > { %11487 = vst [vmem:[#allocation23_spill] sm:$0xff] %v10292_v51  ;;  %v6847_v12 = vld [vmem:[%s9975_s30 + $0x148] sm:$0xf] }
 0x151   : > { %1593 = vmatpush.bf16.msra.mxu1 %v1056_v18  ;;  %v7028_v18 = vor.u32 %v8823_v15, %v7027_v14  ;;  %11489 = vst [vmem:[#allocation25_spill] sm:$0xff] %v10322_v11  ;;  %v8770_v14 = vld [vmem:[%s9975_s30 + $0x104] sm:$0xf]  ;;  %v6817_v15 = vld [vmem:[%s9975_s30 + $0x110] sm:$0xf0] }
 0x152   : > { %v10333_v0 = vor.u32 %v8770_v14, %v6817_v15 }
 0x153   : > { %1982 = vmatpush.bf16.msra.mxu3 %v7028_v18  ;;  %v10331_v18 = vld [vmem:[#allocation10] ss:$0 sm:$0xff] }
 0x154   : > { %1594 = vmatmul.bf16.vlgmr.msra.gmra.mxu1 %v10211_v19 }
 0x157   : > { %1983 = vmatpush.bf16.msra.mxu3 %v7024_v29  ;;  %v8775_v29 = vld [vmem:[%s9975_s30 + $0x134] sm:$0xf0] }
 0x158   : > { %v10340_v35 = vor.u32 %v8775_v29, %v6835_v25  ;;  %v6863_v29 = vld [vmem:[%s9975_s30 + $0x180] sm:$0xf] }
 0x15a   : > { %11490 = vst [vmem:[#allocation26_spill] sm:$0xff] %v10340_v35 }
 0x15b   : > { %1728 = vmatmul.bf16.gmra.mxu2 %v10217_v20  ;;  %1984 = vmatpush.bf16.msra.mxu3 %v7020_v34 }
 0x15f   : > { %1480 = vmatmul.bf16.gmra.mxu0 %v10222_v24  ;;  %1985 = vmatpush.bf16.msra.mxu3 %v7016_v44  ;;  %v8780_v44 = vld [vmem:[%s9975_s30 + $0x16c] sm:$0xf0] }
 0x160   : > { %v10346_v52 = vor.u32 %v8780_v44, %v6851_v41  ;;  %v8776_v41 = vld [vmem:[%s9975_s30 + $0x144] sm:$0xf]  ;;  %v6841_v44 = vld [vmem:[%s9975_s30 + $0x150] sm:$0xf0] }
 0x163   : > { %1986 = vmatpush.bf16.msra.mxu3 %v7012_v55  ;;  %v6829_v55 = vld [vmem:[%s9975_s30 + $0x130] sm:$0xf0] }
 0x164   : > { %1599 = vmatmul.bf16.gmra.mxu1 %v10226_v17 }
 0x167   : > { %1987 = vmatpush.bf16.msra.mxu3 %v7008_v61  ;;  %v10352_v61 = vor.u32 %v8773_v53, %v6829_v55  ;;  %v10371_v55 = vor.u32 %v8776_v41, %v6841_v44 }
 0x169   : > { %11491 = vst [vmem:[#allocation27_spill] sm:$0xff] %v10352_v61 }
 0x16a   : > { %11494 = vst [vmem:[#allocation30_spill] sm:$0xff] %v10371_v55 }
 0x16b   : > { %1733 = vmatmul.bf16.gmra.mxu2 %v10232_v62 }
 0x16f   : > { %1485 = vmatmul.bf16.gmra.mxu0 %v10237_v33 }
 0x174   : > { %1604 = vmatmul.bf16.gmra.mxu1 %v10241_v36 }
 0x17b   : > { %1738 = vmatmul.bf16.gmra.mxu2 %v10247_v40 }
 0x17f   : > { %1490 = vmatmul.bf16.gmra.mxu0 %v10252_v43 }
 0x184   : > { %1609 = vmatmul.bf16.gmra.mxu1 %v10256_v47 }
 0x18b   : > { %1743 = vmatmul.bf16.gmra.mxu2 %v10262_v50 }
 0x18f   : > { %1495 = vmatmul.bf16.gmra.mxu0 %v10267_v54 }
 0x194   : > { %1614 = vmatmul.bf16.gmra.mxu1 %v10271_v56 }
 0x19b   : > { %1748 = vmatmul.bf16.gmra.mxu2 %v10277_v58 }
 0x19f   : > { %1500 = vmatmul.bf16.gmra.mxu0 %v10282_v63 }
 0x1a4   : > { %1619 = vmatmul.bf16.gmra.mxu1 %v10286_v10 }
 0x1ab   : > { %1753 = vmatmul.bf16.gmra.mxu2 %v10292_v51 }
 0x1ac   : > { %v1466_v27 = vpop.f32.mrf.mxu0 }
 0x1ad   : > { %v1467_v23 = vadd.f32 %v1466_v27, %v10331_v18 }
 0x1af   : > { %1505 = vmatmul.bf16.gmra.mxu0 %v10297_v2 }
 0x1b4   : > { %1624 = vmatmul.bf16.gmra.mxu1 %v10301_v30  ;;  %v1468_v42 = vpop.f32.mrf.mxu0 }
 0x1b5   : > { %v1469_v38 = vadd.f32 %v1468_v42, %v10331_v18 }
 0x1bb   : > { %1758 = vmatmul.bf16.gmra.mxu2 %v10307_v45 }
 0x1bc   : > { %v1471_v60 = vpop.f32.mrf.mxu0 }
 0x1bd   : > { %v1472_v9 = vadd.f32 %v1471_v60, %v10331_v18 }
 0x1bf   : > { %1510 = vmatmul.bf16.gmra.mxu0 %v10312_v28 }
 0x1c4   : > { %1629 = vmatmul.bf16.gmra.mxu1 %v10316_v3  ;;  %v1473_v5 = vpop.f32.mrf.mxu0 }
 0x1cb   : > { %1763 = vmatmul.bf16.gmra.mxu2 %v10322_v11 }
 0x1cc   : > { %v1476_v16 = vpop.f32.mrf.mxu0 }
 0x1ce   : > { %v1724_v6 = vpop.f32.mrf.mxu2 }
 0x1cf   : > { %1515 = vmatmul.bf16.gmra.mxu0 %v10327_v13 }
 0x1d1   : > { %v1595_v21 = vpop.f32.mrf.mxu1 }
 0x1d2   : > { %v1596_v32 = vadd.f32 %v1595_v21, %v1467_v23  ;;  %v10359_v21 = vor.u32 %v8778_v1, %v6847_v12  ;;  %v1474_v23 = vadd.f32 %v1473_v5, %v10331_v18 }
 0x1d4   : > { %1634 = vmatmul.bf16.gmra.mxu1 %v10333_v0  ;;  %v1478_v31 = vpop.f32.mrf.mxu0  ;;  %v1725_v46 = vadd.f32 %v1724_v6, %v1596_v32  ;;  %11492 = vst [vmem:[#allocation28_spill] sm:$0xff] %v10359_v21  ;;  %v8783_v32 = vld [vmem:[%s9975_s30 + $0x18c] sm:$0xf0] }
 0x1d6   : > { %v1726_v34 = vpop.f32.mrf.mxu2  ;;  %v1844_v26 = vmax.f32 %v1725_v46, 0.0 }
 0x1d9   : > { %v1597_v39 = vpop.f32.mrf.mxu1 }
 0x1da   : > { %v1598_v49 = vadd.f32 %v1597_v39, %v1469_v38  ;;  %v10365_v39 = vor.u32 %v8783_v32, %v6863_v29 }
 0x1db   : > { %1768 = vmatmul.bf16.gmra.mxu2 %v10340_v35 }
 0x1dc   : > { %v1727_v27 = vadd.f32 %v1726_v34, %v1598_v49  ;;  %v10350_v57 = vpop.f32.mrf.mxu0  ;;  %11493 = vst [vmem:[#allocation29_spill] sm:$0xff] %v10365_v39 }
 0x1de   : > { %v1729_v59 = vpop.f32.mrf.mxu2  ;;  %v1845_v37 = vmax.f32 %v1727_v27, 0.0 }
 0x1df   : > { %1520 = vmatmul.bf16.gmra.mxu0 %v10346_v52 }
 0x1e0   : > { %v1892_v42 = vpack.c.bf16 %v1845_v37, %v1844_v26  ;;  %v6859_v37 = vld [vmem:[%s9975_s30 + $0x168] sm:$0xf] }
 0x1e1   : > { %v1600_v7 = vpop.f32.mrf.mxu1 }
 0x1e2   : > { %1988 = vmatmul.bf16.vlgmr.msra.gmra.mxu3 %v1892_v42  ;;  %v1601_v15 = vadd.f32 %v1600_v7, %v1472_v9  ;;  %v8781_v42 = vld [vmem:[%s9975_s30 + $0x174] sm:$0xf0] }
 0x1e3   : > { %v10378_v1 = vor.u32 %v8781_v42, %v6859_v37  ;;  %v8784_v37 = vld [vmem:[%s9975_s30 + $0x194] sm:$0xf0] }
 0x1e4   : > { %1639 = vmatmul.bf16.gmra.mxu1 %v10352_v61  ;;  %v1483_v14 = vpop.f32.mrf.mxu0  ;;  %v1730_v34 = vadd.f32 %v1729_v59, %v1601_v15  ;;  %v1477_v59 = vadd.f32 %v1476_v16, %v10331_v18  ;;  %v1479_v15 = vadd.f32 %v1478_v31, %v10331_v18 }
 0x1e5   : > { %11495 = vst [vmem:[#allocation31_spill] sm:$0xff] %v10378_v1 }
 0x1e6   : > { %v1731_v6 = vpop.f32.mrf.mxu2  ;;  %v1846_v49 = vmax.f32 %v1730_v34, 0.0 }
 0x1e9   : > { %v1602_v25 = vpop.f32.mrf.mxu1 }
 0x1ea   : > { %v1603_v38 = vadd.f32 %v1602_v25, %v1474_v23  ;;  %v6875_v23 = vld [vmem:[%s9975_s30 + $0x1a0] sm:$0xf]  ;;  %v8786_v25 = vld [vmem:[%s9975_s30 + $0x1ac] sm:$0xf0] }
 0x1eb   : > { %1773 = vmatmul.bf16.gmra.mxu2 %v10359_v21  ;;  %v10384_v34 = vor.u32 %v8786_v25, %v6875_v23  ;;  %v6887_v25 = vld [vmem:[%s9975_s30 + $0x1c0] sm:$0xf]  ;;  %v6889_v21 = vld [vmem:[%s9975_s30 + $0x1d0] sm:$0xf0] }
 0x1ec   : > { %v1732_v60 = vadd.f32 %v1731_v6, %v1603_v38  ;;  %v10369_v46 = vpop.f32.mrf.mxu0  ;;  %v8779_v38 = vld [vmem:[%s9975_s30 + $0x164] sm:$0xf] }
 0x1ed   : > { %11496 = vst [vmem:[#allocation32_spill] sm:$0xff] %v10384_v34 }
 0x1ee   : > { %v1734_v27 = vpop.f32.mrf.mxu2  ;;  %v1847_v53 = vmax.f32 %v1732_v60, 0.0  ;;  %v6853_v60 = vld [vmem:[%s9975_s30 + $0x170] sm:$0xf0] }
 0x1ef   : > { %1525 = vmatmul.bf16.gmra.mxu0 %v10365_v39 }
 0x1f0   : > { %v1893_v5 = vpack.c.bf16 %v1847_v53, %v1846_v49 }
 0x1f1   : > { %v1605_v26 = vpop.f32.mrf.mxu1 }
 0x1f2   : > { %1993 = vmatmul.bf16.gmra.mxu3 %v1893_v5  ;;  %v1606_v9 = vadd.f32 %v1605_v26, %v1477_v59  ;;  %v10390_v5 = vor.u32 %v8779_v38, %v6853_v60  ;;  %v1482_v26 = vadd.f32 %v10350_v57, %v10331_v18  ;;  %v6871_v59 = vld [vmem:[%s9975_s30 + $0x188] sm:$0xf]  ;;  %v8782_v60 = vld [vmem:[%s9975_s30 + $0x184] sm:$0xf] }
 0x1f4   : > { %1644 = vmatmul.bf16.gmra.mxu1 %v10371_v55  ;;  %v1488_v7 = vpop.f32.mrf.mxu0  ;;  %v1735_v29 = vadd.f32 %v1734_v27, %v1606_v9  ;;  %11497 = vst [vmem:[#allocation33_spill] sm:$0xff] %v10390_v5 }
 0x1f6   : > { %v1736_v12 = vpop.f32.mrf.mxu2  ;;  %v1848_v44 = vmax.f32 %v1735_v29, 0.0  ;;  %v8789_v29 = vld [vmem:[%s9975_s30 + $0x1cc] sm:$0xf0] }
 0x1f7   : > { %v10404_v38 = vor.u32 %v8789_v29, %v6887_v25 }
 0x1f9   : > { %v1607_v6 = vpop.f32.mrf.mxu1  ;;  %11499 = vst [vmem:[#allocation35_spill] sm:$0xff] %v10404_v38 }
 0x1fa   : > { %v1608_v32 = vadd.f32 %v1607_v6, %v1479_v15  ;;  %v10398_v15 = vor.u32 %v8784_v37, %v6871_v59  ;;  %v1484_v6 = vadd.f32 %v1483_v14, %v10331_v18  ;;  %v1487_v37 = vadd.f32 %v10369_v46, %v10331_v18 }
 0x1fb   : > { %1778 = vmatmul.bf16.gmra.mxu2 %v10378_v1 }
 0x1fc   : > { %v1737_v16 = vadd.f32 %v1736_v12, %v1608_v32  ;;  %v10388_v41 = vpop.f32.mrf.mxu0  ;;  %11498 = vst [vmem:[#allocation34_spill] sm:$0xff] %v10398_v15 }
 0x1fe   : > { %v1739_v49 = vpop.f32.mrf.mxu2  ;;  %v1849_v53 = vmax.f32 %v1737_v16, 0.0 }
 0x1ff   : > { %1530 = vmatmul.bf16.gmra.mxu0 %v10384_v34 }
 0x200   : > { %v1894_v31 = vpack.c.bf16 %v1849_v53, %v1848_v44  ;;  %v6865_v44 = vld [vmem:[%s9975_s30 + $0x190] sm:$0xf0] }
 0x201   : > { %v1610_v27 = vpop.f32.mrf.mxu1  ;;  %v10410_v59 = vor.u32 %v8782_v60, %v6865_v44  ;;  %v8792_v60 = vld [vmem:[%s9975_s30 + $0x1ec] sm:$0xf0] }
 0x202   : > { %1998 = vmatmul.bf16.gmra.mxu3 %v1894_v31  ;;  %v1611_v9 = vadd.f32 %v1610_v27, %v1482_v26 }
 0x203   : > { %11500 = vst [vmem:[#allocation36_spill] sm:$0xff] %v10410_v59 }
 0x204   : > { %1649 = vmatmul.bf16.gmra.mxu1 %v10390_v5  ;;  %v1493_v42 = vpop.f32.mrf.mxu0  ;;  %v1740_v32 = vadd.f32 %v1739_v49, %v1611_v9  ;;  %v6883_v9 = vld [vmem:[%s9975_s30 + $0x1a8] sm:$0xf] }
 0x206   : > { %v1741_v12 = vpop.f32.mrf.mxu2  ;;  %v1850_v31 = vmax.f32 %v1740_v32, 0.0  ;;  %v1489_v32 = vadd.f32 %v1488_v7, %v10331_v18 }
 0x209   : > { %v1612_v23 = vpop.f32.mrf.mxu1 }
 0x20a   : > { %v1613_v16 = vadd.f32 %v1612_v23, %v1484_v6 }
 0x20b   : > { %1783 = vmatmul.bf16.gmra.mxu2 %v10398_v15  ;;  %v6877_v15 = vld [vmem:[%s9975_s30 + $0x1b0] sm:$0xf0] }
 0x20c   : > { %v1742_v57 = vadd.f32 %v1741_v12, %v1613_v16  ;;  %v10408_v53 = vpop.f32.mrf.mxu0  ;;  %v8787_v12 = vld [vmem:[%s9975_s30 + $0x1b4] sm:$0xf0] }
 0x20d   : > { %v10418_v29 = vor.u32 %v8787_v12, %v6883_v9 }
 0x20e   : > { %v1744_v27 = vpop.f32.mrf.mxu2  ;;  %v1851_v26 = vmax.f32 %v1742_v57, 0.0  ;;  %v6899_v57 = vld [vmem:[%s9975_s30 + $0x1e0] sm:$0xf] }
 0x20f   : > { %1535 = vmatmul.bf16.gmra.mxu0 %v10404_v38  ;;  %11501 = vst [vmem:[#allocation37_spill] sm:$0xff] %v10418_v29 }
 0x210   : > { %v1895_v14 = vpack.c.bf16 %v1851_v26, %v1850_v31  ;;  %v10424_v26 = vor.u32 %v8792_v60, %v6899_v57 }
 0x211   : > { %v1615_v49 = vpop.f32.mrf.mxu1 }
 0x212   : > { %2003 = vmatmul.bf16.gmra.mxu3 %v1895_v14  ;;  %v1616_v23 = vadd.f32 %v1615_v49, %v1487_v37  ;;  %11502 = vst [vmem:[#allocation38_spill] sm:$0xff] %v10424_v26  ;;  %v8785_v14 = vld [vmem:[%s9975_s30 + $0x1a4] sm:$0xf] }
 0x213   : > { %v10430_v1 = vor.u32 %v8785_v14, %v6877_v15  ;;  %v1494_v15 = vadd.f32 %v1493_v42, %v10331_v18  ;;  %v8795_v14 = vld [vmem:[%s9975_s30 + $0x20c] sm:$0xf0] }
 0x214   : > { %1654 = vmatmul.bf16.gmra.mxu1 %v10410_v59  ;;  %v1498_v6 = vpop.f32.mrf.mxu0  ;;  %v1745_v44 = vadd.f32 %v1744_v27, %v1616_v23  ;;  %v1492_v23 = vadd.f32 %v10388_v41, %v10331_v18 }
 0x215   : > { %11503 = vst [vmem:[#allocation39_spill] sm:$0xff] %v10430_v1 }
 0x216   : > { %v1746_v25 = vpop.f32.mrf.mxu2  ;;  %v1852_v37 = vmax.f32 %v1745_v44, 0.0 }
 0x219   : > { %v1617_v16 = vpop.f32.mrf.mxu1 }
 0x21a   : > { %v1618_v31 = vadd.f32 %v1617_v16, %v1489_v32  ;;  %v8790_v32 = vld [vmem:[%s9975_s30 + $0x1d4] sm:$0xf0] }
 0x21b   : > { %1788 = vmatmul.bf16.gmra.mxu2 %v10418_v29  ;;  %v8788_v29 = vld [vmem:[%s9975_s30 + $0x1c4] sm:$0xf] }
 0x21c   : > { %v1747_v46 = vadd.f32 %v1746_v25, %v1618_v31  ;;  %v10428_v49 = vpop.f32.mrf.mxu0  ;;  %v6895_v25 = vld [vmem:[%s9975_s30 + $0x1c8] sm:$0xf]  ;;  %v10450_v35 = vor.u32 %v8788_v29, %v6889_v21  ;;  %v1499_v21 = vadd.f32 %v1498_v6, %v10331_v18 }
 0x21d   : > { %v10438_v44 = vor.u32 %v8790_v32, %v6895_v25 }
 0x21e   : > { %v1749_v9 = vpop.f32.mrf.mxu2  ;;  %v1853_v12 = vmax.f32 %v1747_v46, 0.0  ;;  %v6911_v46 = vld [vmem:[%s9975_s30 + $0x200] sm:$0xf]  ;;  %11506 = vst [vmem:[#allocation42_spill] sm:$0xff] %v10450_v35 }
 0x21f   : > { %1540 = vmatmul.bf16.gmra.mxu0 %v10424_v26  ;;  %11504 = vst [vmem:[#allocation40_spill] sm:$0xff] %v10438_v44 }
 0x220   : > { %v1896_v7 = vpack.c.bf16 %v1853_v12, %v1852_v37 }
 0x221   : > { %v1620_v27 = vpop.f32.mrf.mxu1 }
 0x222   : > { %2008 = vmatmul.bf16.gmra.mxu3 %v1896_v7  ;;  %v1621_v57 = vadd.f32 %v1620_v27, %v1492_v23  ;;  %v10444_v7 = vor.u32 %v8795_v14, %v6911_v46 }
 0x224   : > { %1659 = vmatmul.bf16.gmra.mxu1 %v10430_v1  ;;  %v1503_v16 = vpop.f32.mrf.mxu0  ;;  %v1750_v37 = vadd.f32 %v1749_v9, %v1621_v57  ;;  %11505 = vst [vmem:[#allocation41_spill] sm:$0xff] %v10444_v7  ;;  %v1497_v57 = vadd.f32 %v10408_v53, %v10331_v18 }
 0x226   : > { %v1751_v60 = vpop.f32.mrf.mxu2  ;;  %v1854_v23 = vmax.f32 %v1750_v37, 0.0 }
 0x229   : > { %v1622_v31 = vpop.f32.mrf.mxu1 }
 0x22a   : > { %v1623_v12 = vadd.f32 %v1622_v31, %v1494_v15  ;;  %v8793_v15 = vld [vmem:[%s9975_s30 + $0x1f4] sm:$0xf0] }
 0x22b   : > { %1793 = vmatmul.bf16.gmra.mxu2 %v10438_v44  ;;  %v8791_v44 = vld [vmem:[%s9975_s30 + $0x1e4] sm:$0xf] }
 0x22c   : > { %v1752_v41 = vadd.f32 %v1751_v60, %v1623_v12  ;;  %v10448_v27 = vpop.f32.mrf.mxu0  ;;  %v6907_v60 = vld [vmem:[%s9975_s30 + $0x1e8] sm:$0xf]  ;;  %v6923_v12 = vld [vmem:[%s9975_s30 + $0x220] sm:$0xf] }
 0x22d   : > { %v10458_v37 = vor.u32 %v8793_v15, %v6907_v60 }
 0x22e   : > { %v1754_v25 = vpop.f32.mrf.mxu2  ;;  %v1855_v32 = vmax.f32 %v1752_v41, 0.0  ;;  %v8798_v41 = vld [vmem:[%s9975_s30 + $0x22c] sm:$0xf0] }
 0x22f   : > { %1545 = vmatmul.bf16.gmra.mxu0 %v10444_v7  ;;  %11507 = vst [vmem:[#allocation43_spill] sm:$0xff] %v10458_v37  ;;  %v6901_v7 = vld [vmem:[%s9975_s30 + $0x1f0] sm:$0xf0] }
 0x230   : > { %v1897_v42 = vpack.c.bf16 %v1855_v32, %v1854_v23  ;;  %v10470_v26 = vor.u32 %v8791_v44, %v6901_v7  ;;  %v1504_v44 = vadd.f32 %v1503_v16, %v10331_v18 }
 0x231   : > { %v1625_v9 = vpop.f32.mrf.mxu1 }
 0x232   : > { %2013 = vmatmul.bf16.gmra.mxu3 %v1897_v42  ;;  %v1626_v46 = vadd.f32 %v1625_v9, %v1497_v57  ;;  %v10464_v42 = vor.u32 %v8798_v41, %v6923_v12  ;;  %11509 = vst [vmem:[#allocation45_spill] sm:$0xff] %v10470_v26 }
 0x234   : > { %1664 = vmatmul.bf16.gmra.mxu1 %v10450_v35  ;;  %v1508_v31 = vpop.f32.mrf.mxu0  ;;  %v1755_v23 = vadd.f32 %v1754_v25, %v1626_v46  ;;  %11508 = vst [vmem:[#allocation44_spill] sm:$0xff] %v10464_v42  ;;  %v1502_v46 = vadd.f32 %v10428_v49, %v10331_v18 }
 0x236   : > { %v1756_v14 = vpop.f32.mrf.mxu2  ;;  %v1856_v57 = vmax.f32 %v1755_v23, 0.0 }
 0x239   : > { %v1627_v29 = vpop.f32.mrf.mxu1 }
 0x23a   : > { %v1628_v32 = vadd.f32 %v1627_v29, %v1499_v21  ;;  %v8796_v21 = vld [vmem:[%s9975_s30 + $0x214] sm:$0xf0] }
 0x23b   : > { %1798 = vmatmul.bf16.gmra.mxu2 %v10458_v37  ;;  %v8794_v37 = vld [vmem:[%s9975_s30 + $0x204] sm:$0xf] }
 0x23c   : > { %v1757_v53 = vadd.f32 %v1756_v14, %v1628_v32  ;;  %v10468_v9 = vpop.f32.mrf.mxu0  ;;  %v6919_v14 = vld [vmem:[%s9975_s30 + $0x208] sm:$0xf]  ;;  %v6935_v32 = vld [vmem:[%s9975_s30 + $0x240] sm:$0xf] }
 0x23d   : > { %v10478_v23 = vor.u32 %v8796_v21, %v6919_v14 }
 0x23e   : > { %v1759_v60 = vpop.f32.mrf.mxu2  ;;  %v1857_v15 = vmax.f32 %v1757_v53, 0.0  ;;  %v8801_v53 = vld [vmem:[%s9975_s30 + $0x24c] sm:$0xf0] }
 0x23f   : > { %1550 = vmatmul.bf16.gmra.mxu0 %v10464_v42  ;;  %11510 = vst [vmem:[#allocation46_spill] sm:$0xff] %v10478_v23  ;;  %v6913_v42 = vld [vmem:[%s9975_s30 + $0x210] sm:$0xf0] }
 0x240   : > { %v1898_v6 = vpack.c.bf16 %v1857_v15, %v1856_v57 }
 0x241   : > { %v1630_v25 = vpop.f32.mrf.mxu1 }
 0x242   : > { %2018 = vmatmul.bf16.gmra.mxu3 %v1898_v6  ;;  %v1631_v12 = vadd.f32 %v1630_v25, %v1502_v46  ;;  %v10484_v6 = vor.u32 %v8801_v53, %v6935_v32 }
 0x244   : > { %1669 = vmatmul.bf16.gmra.mxu1 %v10470_v26  ;;  %v1513_v29 = vpop.f32.mrf.mxu0  ;;  %v1760_v57 = vadd.f32 %v1759_v60, %v1631_v12  ;;  %11511 = vst [vmem:[#allocation47_spill] sm:$0xff] %v10484_v6  ;;  %v10490_v26 = vor.u32 %v8794_v37, %v6913_v42  ;;  %v1507_v12 = vadd.f32 %v10448_v27, %v10331_v18 }
 0x245   : > { %v1509_v37 = vadd.f32 %v1508_v31, %v10331_v18 }
 0x246   : > { %v1761_v41 = vpop.f32.mrf.mxu2  ;;  %v1858_v46 = vmax.f32 %v1760_v57, 0.0  ;;  %11512 = vst [vmem:[#allocation48_spill] sm:$0xff] %v10490_v26 }
 0x249   : > { %v1632_v7 = vpop.f32.mrf.mxu1 }
 0x24a   : > { %v1633_v15 = vadd.f32 %v1632_v7, %v1504_v44  ;;  %v8799_v44 = vld [vmem:[%s9975_s30 + $0x234] sm:$0xf0] }
 0x24b   : > { %1803 = vmatmul.bf16.gmra.mxu2 %v10478_v23  ;;  %v8797_v23 = vld [vmem:[%s9975_s30 + $0x224] sm:$0xf] }
 0x24c   : > { %v1762_v49 = vadd.f32 %v1761_v41, %v1633_v15  ;;  %v10488_v25 = vpop.f32.mrf.mxu0  ;;  %v6931_v41 = vld [vmem:[%s9975_s30 + $0x228] sm:$0xf]  ;;  %v6947_v15 = vld [vmem:[%s9975_s30 + $0x260] sm:$0xf] }
 0x24d   : > { %v10500_v57 = vor.u32 %v8799_v44, %v6931_v41 }
 0x24e   : > { %v1764_v14 = vpop.f32.mrf.mxu2  ;;  %v1859_v21 = vmax.f32 %v1762_v49, 0.0  ;;  %v8804_v49 = vld [vmem:[%s9975_s30 + $0x26c] sm:$0xf0] }
 0x24f   : > { %1555 = vmatmul.bf16.gmra.mxu0 %v10484_v6  ;;  %11513 = vst [vmem:[#allocation49_spill] sm:$0xff] %v10500_v57  ;;  %v6925_v6 = vld [vmem:[%s9975_s30 + $0x230] sm:$0xf0] }
 0x250   : > { %v1899_v16 = vpack.c.bf16 %v1859_v21, %v1858_v46 }
 0x251   : > { %v1635_v60 = vpop.f32.mrf.mxu1 }
 0x252   : > { %2023 = vmatmul.bf16.gmra.mxu3 %v1899_v16  ;;  %v1636_v32 = vadd.f32 %v1635_v60, %v1507_v12  ;;  %v10506_v16 = vor.u32 %v8804_v49, %v6947_v15 }
 0x254   : > { %1674 = vmatmul.bf16.gmra.mxu1 %v10490_v26  ;;  %v10498_v7 = vpop.f32.mrf.mxu0  ;;  %v1765_v46 = vadd.f32 %v1764_v14, %v1636_v32  ;;  %11514 = vst [vmem:[#allocation50_spill] sm:$0xff] %v10506_v16  ;;  %v10512_v26 = vor.u32 %v8797_v23, %v6925_v6  ;;  %v1512_v32 = vadd.f32 %v10468_v9, %v10331_v18  ;;  %v8807_v9 = vld [vmem:[%s9975_s30 + $0x28c] sm:$0xf0] }
 0x256   : > { %v1766_v53 = vpop.f32.mrf.mxu2  ;;  %v1860_v12 = vmax.f32 %v1765_v46, 0.0  ;;  %11515 = vst [vmem:[#allocation51_spill] sm:$0xff] %v10512_v26  ;;  %v1514_v46 = vadd.f32 %v1513_v29, %v10331_v18 }
 0x259   : > { %v1637_v42 = vpop.f32.mrf.mxu1 }
 0x25a   : > { %v1638_v27 = vadd.f32 %v1637_v42, %v1509_v37  ;;  %v8802_v37 = vld [vmem:[%s9975_s30 + $0x254] sm:$0xf0] }
 0x25b   : > { %1808 = vmatmul.bf16.gmra.mxu2 %v10500_v57 }
 0x25c   : > { %v1767_v21 = vadd.f32 %v1766_v53, %v1638_v27  ;;  %v10510_v60 = vpop.f32.mrf.mxu0  ;;  %v6943_v53 = vld [vmem:[%s9975_s30 + $0x248] sm:$0xf] }
 0x25d   : > { %v10524_v49 = vor.u32 %v8802_v37, %v6943_v53 }
 0x25e   : > { %v1769_v41 = vpop.f32.mrf.mxu2  ;;  %v1861_v44 = vmax.f32 %v1767_v21, 0.0  ;;  %v6959_v21 = vld [vmem:[%s9975_s30 + $0x280] sm:$0xf] }
 0x25f   : > { %1560 = vmatmul.bf16.gmra.mxu0 %v10506_v16  ;;  %11516 = vst [vmem:[#allocation52_spill] sm:$0xff] %v10524_v49  ;;  %v10530_v57 = vor.u32 %v8807_v9, %v6959_v21  ;;  %v6955_v21 = vld [vmem:[%s9975_s30 + $0x268] sm:$0xf]  ;;  %v8805_v9 = vld [vmem:[%s9975_s30 + $0x274] sm:$0xf0] }
 0x260   : > { %v1900_v31 = vpack.c.bf16 %v1861_v44, %v1860_v12 }
 0x261   : > { %v1640_v14 = vpop.f32.mrf.mxu1  ;;  %11517 = vst [vmem:[#allocation53_spill] sm:$0xff] %v10530_v57 }
 0x262   : > { %2028 = vmatmul.bf16.gmra.mxu3 %v1900_v31  ;;  %v1641_v23 = vadd.f32 %v1640_v14, %v1512_v32  ;;  %v8800_v14 = vld [vmem:[%s9975_s30 + $0x244] sm:$0xf]  ;;  %v6937_v32 = vld [vmem:[%s9975_s30 + $0x250] sm:$0xf0] }
 0x264   : > { %1679 = vmatmul.bf16.gmra.mxu1 %v10512_v26  ;;  %v10522_v15 = vpop.f32.mrf.mxu0  ;;  %v1770_v12 = vadd.f32 %v1769_v41, %v1641_v23 }
 0x265   : > { %v10520_v42 = vpop.f32.mrf.mxu3 }
 0x266   : > { %v1771_v6 = vpop.f32.mrf.mxu2  ;;  %v1862_v37 = vmax.f32 %v1770_v12, 0.0 }
 0x269   : > { %v1642_v27 = vpop.f32.mrf.mxu1 }
 0x26a   : > { %v1643_v44 = vadd.f32 %v1642_v27, %v1514_v46  ;;  %v10540_v46 = vor.u32 %v8800_v14, %v6937_v32  ;;  %v1517_v27 = vadd.f32 %v10488_v25, %v10331_v18  ;;  %v10552_v14 = vor.u32 %v8805_v9, %v6955_v21  ;;  %v6971_v25 = vld [vmem:[%s9975_s30 + $0x2a0] sm:$0xf] }
 0x26b   : > { %1813 = vmatmul.bf16.gmra.mxu2 %v10524_v49  ;;  %v1519_v32 = vadd.f32 %v10498_v7, %v10331_v18 }
 0x26c   : > { %v1772_v31 = vadd.f32 %v1771_v6, %v1643_v44  ;;  %v10536_v53 = vpop.f32.mrf.mxu0  ;;  %11518 = vst [vmem:[#allocation54_spill] sm:$0xff] %v10540_v46 }
 0x26d   : > { %v10532_v16 = vpop.f32.mrf.mxu3  ;;  %11519 = vst [vmem:[#allocation55_spill] sm:$0xff] %v10552_v14 }
 0x26e   : > { %v1774_v29 = vpop.f32.mrf.mxu2  ;;  %v1863_v26 = vmax.f32 %v1772_v31, 0.0 }
 0x26f   : > { %1565 = vmatmul.bf16.gmra.mxu0 %v10530_v57 }
 0x270   : > { %v1901_v23 = vpack.c.bf16 %v1863_v26, %v1862_v37 }
 0x271   : > { %v1645_v6 = vpop.f32.mrf.mxu1 }
 0x272   : > { %2033 = vmatmul.bf16.gmra.mxu3 %v1901_v23  ;;  %v1646_v44 = vadd.f32 %v1645_v6, %v1517_v27  ;;  %v8810_v23 = vld [vmem:[%s9975_s30 + $0x2ac] sm:$0xf0]  ;;  %v8803_v6 = vld [vmem:[%s9975_s30 + $0x264] sm:$0xf]  ;;  %v6949_v27 = vld [vmem:[%s9975_s30 + $0x270] sm:$0xf0] }
 0x274   : > { %1684 = vmatmul.bf16.gmra.mxu1 %v10540_v46  ;;  %v10550_v26 = vpop.f32.mrf.mxu0  ;;  %v1775_v41 = vadd.f32 %v1774_v29, %v1646_v44  ;;  %v10559_v46 = vor.u32 %v8810_v23, %v6971_v25 }
 0x275   : > { %v10548_v12 = vpop.f32.mrf.mxu3 }
 0x276   : > { %v1776_v31 = vpop.f32.mrf.mxu2  ;;  %11520 = vst [vmem:[#allocation56_spill] sm:$0xff] %v10559_v46  ;;  %v1864_v9 = vmax.f32 %v1775_v41, 0.0  ;;  %v6967_v41 = vld [vmem:[%s9975_s30 + $0x288] sm:$0xf] }
 0x279   : > { %v1647_v37 = vpop.f32.mrf.mxu1 }
 0x27a   : > { %v1648_v49 = vadd.f32 %v1647_v37, %v1519_v32  ;;  %v10569_v32 = vor.u32 %v8803_v6, %v6949_v27  ;;  %v8808_v37 = vld [vmem:[%s9975_s30 + $0x294] sm:$0xf0]  ;;  %v1524_v27 = vadd.f32 %v10522_v15, %v10331_v18 }
 0x27b   : > { %1818 = vmatmul.bf16.gmra.mxu2 %v10552_v14  ;;  %v10581_v6 = vor.u32 %v8808_v37, %v6967_v41 }
 0x27c   : > { %v1777_v57 = vadd.f32 %v1776_v31, %v1648_v49  ;;  %v10565_v21 = vpop.f32.mrf.mxu0  ;;  %11521 = vst [vmem:[#allocation57_spill] sm:$0xff] %v10569_v32  ;;  %v1522_v31 = vadd.f32 %v10510_v60, %v10331_v18  ;;  %v6983_v60 = vld [vmem:[%s9975_s30 + $0x2c0] sm:$0xf] }
 0x27d   : > { %v10561_v35 = vpop.f32.mrf.mxu3  ;;  %11522 = vst [vmem:[#allocation58_spill] sm:$0xff] %v10581_v6 }
 0x27e   : > { %v1779_v7 = vpop.f32.mrf.mxu2  ;;  %v1865_v11 = vmax.f32 %v1777_v57, 0.0 }
 0x27f   : > { %1570 = vmatmul.bf16.gmra.mxu0 %v10559_v46 }
 0x280   : > { %v1902_v44 = vpack.c.bf16 %v1865_v11, %v1864_v9 }
 0x281   : > { %v1650_v49 = vpop.f32.mrf.mxu1 }
 0x282   : > { %2038 = vmatmul.bf16.gmra.mxu3 %v1902_v44  ;;  %v1651_v25 = vadd.f32 %v1650_v49, %v1522_v31  ;;  %v8813_v44 = vld [vmem:[%s9975_s30 + $0x2cc] sm:$0xf0]  ;;  %v8806_v49 = vld [vmem:[%s9975_s30 + $0x284] sm:$0xf]  ;;  %v6961_v31 = vld [vmem:[%s9975_s30 + $0x290] sm:$0xf0] }
 0x284   : > { %1689 = vmatmul.bf16.gmra.mxu1 %v10569_v32  ;;  %v10579_v11 = vpop.f32.mrf.mxu0  ;;  %v1780_v29 = vadd.f32 %v1779_v7, %v1651_v25  ;;  %v10588_v32 = vor.u32 %v8813_v44, %v6983_v60  ;;  %v6995_v7 = vld [vmem:[%s9975_s30 + $0x2e0] sm:$0xf] }
 0x285   : > { %v10577_v57 = vpop.f32.mrf.mxu3 }
 0x286   : > { %v1781_v23 = vpop.f32.mrf.mxu2  ;;  %11523 = vst [vmem:[#allocation59_spill] sm:$0xff] %v10588_v32  ;;  %v1866_v37 = vmax.f32 %v1780_v29, 0.0  ;;  %v6979_v29 = vld [vmem:[%s9975_s30 + $0x2a8] sm:$0xf] }
 0x289   : > { %v1652_v9 = vpop.f32.mrf.mxu1 }
 0x28a   : > { %v1653_v14 = vadd.f32 %v1652_v9, %v1524_v27  ;;  %v10598_v27 = vor.u32 %v8806_v49, %v6961_v31  ;;  %v8811_v9 = vld [vmem:[%s9975_s30 + $0x2b4] sm:$0xf0]  ;;  %v1529_v31 = vadd.f32 %v10550_v26, %v10331_v18 }
 0x28b   : > { %1823 = vmatmul.bf16.gmra.mxu2 %v10581_v6  ;;  %v10608_v49 = vor.u32 %v8811_v9, %v6979_v29 }
 0x28c   : > { %v1782_v46 = vadd.f32 %v1781_v23, %v1653_v14  ;;  %v10594_v41 = vpop.f32.mrf.mxu0  ;;  %11524 = vst [vmem:[#allocation60_spill] sm:$0xff] %v10598_v27  ;;  %v1527_v23 = vadd.f32 %v10536_v53, %v10331_v18  ;;  %v8816_v53 = vld [vmem:[%s9975_s30 + $0x2ec] sm:$0xf0] }
 0x28d   : > { %v10590_v38 = vpop.f32.mrf.mxu3  ;;  %11525 = vst [vmem:[#allocation61_spill] sm:$0xff] %v10608_v49 }
 0x28e   : > { %v1784_v15 = vpop.f32.mrf.mxu2  ;;  %v1867_v1 = vmax.f32 %v1782_v46, 0.0 }
 0x28f   : > { %1575 = vmatmul.bf16.gmra.mxu0 %v10588_v32 }
 0x290   : > { %v1903_v25 = vpack.c.bf16 %v1867_v1, %v1866_v37 }
 0x291   : > { %v1655_v14 = vpop.f32.mrf.mxu1 }
 0x292   : > { %2043 = vmatmul.bf16.gmra.mxu3 %v1903_v25  ;;  %v1656_v60 = vadd.f32 %v1655_v14, %v1527_v23  ;;  %v8809_v14 = vld [vmem:[%s9975_s30 + $0x2a4] sm:$0xf]  ;;  %v6973_v23 = vld [vmem:[%s9975_s30 + $0x2b0] sm:$0xf0] }
 0x294   : > { %1694 = vmatmul.bf16.gmra.mxu1 %v10598_v27  ;;  %v1538_v1 = vpop.f32.mrf.mxu0  ;;  %v1785_v25 = vadd.f32 %v1784_v15, %v1656_v60  ;;  %v10615_v27 = vor.u32 %v8816_v53, %v6995_v7  ;;  %v10623_v60 = vor.u32 %v8809_v14, %v6973_v23  ;;  %v1532_v7 = vadd.f32 %v10565_v21, %v10331_v18 }
 0x295   : > { %v10606_v46 = vpop.f32.mrf.mxu3  ;;  %v1534_v14 = vadd.f32 %v10579_v11, %v10331_v18 }
 0x296   : > { %v1786_v44 = vpop.f32.mrf.mxu2  ;;  %11526 = vst [vmem:[#allocation62_spill] sm:$0xff] %v10615_v27  ;;  %v1868_v9 = vmax.f32 %v1785_v25, 0.0 }
 0x297   : > { %11527 = vst [vmem:[#allocation63_spill] sm:$0xff] %v10623_v60 }
 0x299   : > { %v1657_v37 = vpop.f32.mrf.mxu1 }
 0x29a   : > { %v1658_v6 = vadd.f32 %v1657_v37, %v1529_v31 }
 0x29b   : > { %1828 = vmatmul.bf16.gmra.mxu2 %v10608_v49  ;;  %v8812_v49 = vld [vmem:[%s9975_s30 + $0x2c4] sm:$0xf] }
 0x29c   : > { %v1787_v32 = vadd.f32 %v1786_v44, %v1658_v6  ;;  %v1541_v29 = vpop.f32.mrf.mxu0  ;;  %v6991_v44 = vld [vmem:[%s9975_s30 + $0x2c8] sm:$0xf] }
 0x29d   : > { %v10617_v45 = vpop.f32.mrf.mxu3 }
 0x29e   : > { %v1869_v34 = vmax.f32 %v1787_v32, 0.0  ;;  %v1789_v26 = vpop.f32.mrf.mxu2  ;;  %v8814_v32 = vld [vmem:[%s9975_s30 + $0x2d4] sm:$0xf0] }
 0x29f   : > { %1580 = vmatmul.bf16.gmra.mxu0 %v10615_v27  ;;  %v10633_v25 = vor.u32 %v8814_v32, %v6991_v44  ;;  %v6985_v27 = vld [vmem:[%s9975_s30 + $0x2d0] sm:$0xf0] }
 0x2a0   : > { %v1904_v15 = vpack.c.bf16 %v1869_v34, %v1868_v9  ;;  %v10642_v51 = vor.u32 %v8812_v49, %v6985_v27  ;;  %v1539_v27 = vadd.f32 %v1538_v1, %v10331_v18 }
 0x2a1   : > { %v1660_v6 = vpop.f32.mrf.mxu1  ;;  %11528 = vst [vmem:[#allocation64_spill] sm:$0xff] %v10633_v25 }
 0x2a2   : > { %2048 = vmatmul.bf16.gmra.mxu3 %v1904_v15  ;;  %v1661_v53 = vadd.f32 %v1660_v6, %v1532_v7  ;;  %11529 = vst [vmem:[#allocation65_spill] sm:$0xff] %v10642_v51 }
 0x2a4   : > { %1699 = vmatmul.bf16.gmra.mxu1 %v10623_v60  ;;  %v1543_v37 = vpop.f32.mrf.mxu0  ;;  %v1790_v9 = vadd.f32 %v1789_v26, %v1661_v53  ;;  %v1537_v26 = vadd.f32 %v10594_v41, %v10331_v18  ;;  %v7003_v53 = vld [vmem:[%s9975_s30 + $0x2e8] sm:$0xf] }
 0x2a5   : > { %v10631_v31 = vpop.f32.mrf.mxu3 }
 0x2a6   : > { %v1791_v34 = vpop.f32.mrf.mxu2  ;;  %v1870_v60 = vmax.f32 %v1790_v9, 0.0 }
 0x2a9   : > { %v1662_v23 = vpop.f32.mrf.mxu1 }
 0x2aa   : > { %v1663_v21 = vadd.f32 %v1662_v23, %v1534_v14 }
 0x2ab   : > { %1833 = vmatmul.bf16.gmra.mxu2 %v10633_v25  ;;  %v8815_v25 = vld [vmem:[%s9975_s30 + $0x2e4] sm:$0xf] }
 0x2ac   : > { %v1792_v15 = vadd.f32 %v1791_v34, %v1663_v21  ;;  %v1546_v44 = vpop.f32.mrf.mxu0  ;;  %v8817_v34 = vld [vmem:[%s9975_s30 + $0x2f4] sm:$0xf0] }
 0x2ad   : > { %v10638_v59 = vpop.f32.mrf.mxu3  ;;  %v10651_v21 = vor.u32 %v8817_v34, %v7003_v53  ;;  %v1542_v53 = vadd.f32 %v1541_v29, %v10331_v18 }
 0x2ae   : > { %v1871_v6 = vmax.f32 %v1792_v15, 0.0  ;;  %v1794_v7 = vpop.f32.mrf.mxu2 }
 0x2af   : > { %11530 = vst [vmem:[#allocation66_spill] sm:$0xff] %v10651_v21 }
 0x2b0   : > { %v1905_v32 = vpack.c.bf16 %v1871_v6, %v1870_v60 }
 0x2b1   : > { %v1665_v11 = vpop.f32.mrf.mxu1 }
 0x2b2   : > { %2053 = vmatmul.bf16.gmra.mxu3 %v1905_v32  ;;  %v1666_v23 = vadd.f32 %v1665_v11, %v1537_v26 }
 0x2b4   : > { %1704 = vmatmul.bf16.gmra.mxu1 %v10642_v51  ;;  %v1548_v60 = vpop.f32.mrf.mxu0  ;;  %v1795_v15 = vadd.f32 %v1794_v7, %v1666_v23  ;;  %v6997_v51 = vld [vmem:[%s9975_s30 + $0x2f0] sm:$0xf0]  ;;  %s9758_s30 = scalar_lea.hbm %s11378_s5, 4 }
 0x2b5   : > { %v10649_v14 = vpop.f32.mrf.mxu3  ;;  %v10657_v11 = vor.u32 %v8815_v25, %v6997_v51  ;;  %p9760_p2 = scmp.lt.s32.totalorder %s9758_s30, %s9754_s14 }
 0x2b6   : > { %v1796_v9 = vpop.f32.mrf.mxu2  ;;  %v1872_v39 = vmax.f32 %v1795_v15, 0.0 }
 0x2b7   : > { %11531 = vst [vmem:[#allocation67_spill] sm:$0xff] %v10657_v11  ;;  %p9761_p10 = por %p9760_p2, %p9759_p9 }
 0x2b9   : > { %v1667_v49 = vpop.f32.mrf.mxu1  ;;  %p9762_p12 = pnand %p9761_p10, %p9757_p11 }
 0x2ba   : > { %v1668_v6 = vadd.f32 %v1667_v49, %v1539_v27 }
 0x2bb   : > { %1838 = vmatmul.bf16.gmra.mxu2 %v10651_v21 }
 0x2bc   : > { %v1797_v41 = vadd.f32 %v1796_v9, %v1668_v6  ;;  %v1551_v1 = vpop.f32.mrf.mxu0  ;;  %v1544_v9 = vadd.f32 %v1543_v37, %v10331_v18  ;;  %v1549_v37 = vadd.f32 %v1548_v60, %v10331_v18 }
 0x2bd   : > { %v2016_v32 = vpop.f32.mrf.mxu3 }
 0x2be   : > { %v1873_v58 = vmax.f32 %v1797_v41, 0.0  ;;  %v1799_v50 = vpop.f32.mrf.mxu2 }
 0x2c0   : > { %v1906_v5 = vpack.c.bf16 %v1873_v58, %v1872_v39 }
 0x2c1   : > { %v1670_v26 = vpop.f32.mrf.mxu1 }
 0x2c2   : > { %2058 = vmatmul.bf16.gmra.mxu3 %v1906_v5  ;;  %v1671_v34 = vadd.f32 %v1670_v26, %v1542_v53  ;;  %v1547_v5 = vadd.f32 %v1546_v44, %v10331_v18 }
 0x2c4   : > { %1709 = vmatmul.bf16.gmra.mxu1 %v10657_v11  ;;  %v1800_v49 = vadd.f32 %v1799_v50, %v1671_v34  ;;  %v1553_v58 = vpop.f32.mrf.mxu0 }
 0x2c5   : > { %v2019_v7 = vpop.f32.mrf.mxu3 }
 0x2c6   : > { %v1801_v23 = vpop.f32.mrf.mxu2  ;;  %v1874_v51 = vmax.f32 %v1800_v49, 0.0 }
 0x2c9   : > { %v1672_v27 = vpop.f32.mrf.mxu1 }
 0x2ca   : > { %v1673_v15 = vadd.f32 %v1672_v27, %v1544_v9 }
 0x2cc   : > { %v1802_v6 = vadd.f32 %v1801_v23, %v1673_v15  ;;  %v1556_v53 = vpop.f32.mrf.mxu0 }
 0x2cd   : > { %v2021_v41 = vpop.f32.mrf.mxu3 }
 0x2ce   : > { %v1875_v39 = vmax.f32 %v1802_v6, 0.0  ;;  %v1804_v25 = vpop.f32.mrf.mxu2 }
 0x2d0   : > { %v1907_v21 = vpack.c.bf16 %v1875_v39, %v1874_v51 }
 0x2d1   : > { %v1675_v29 = vpop.f32.mrf.mxu1 }
 0x2d2   : > { %2063 = vmatmul.bf16.gmra.mxu3 %v1907_v21  ;;  %v1676_v40 = vadd.f32 %v1675_v29, %v1547_v5  ;;  %v1552_v21 = vadd.f32 %v1551_v1, %v10331_v18  ;;  %v2115_v29 = vpack.c.bf16 %v2021_v41, %v2019_v7 }
 0x2d4   : > { %v1805_v50 = vadd.f32 %v1804_v25, %v1676_v40  ;;  %v1558_v44 = vpop.f32.mrf.mxu0  ;;  %v1554_v25 = vadd.f32 %v1553_v58, %v10331_v18 }
 0x2d5   : > { %v2024_v11 = vpop.f32.mrf.mxu3 }
 0x2d6   : > { %v1806_v26 = vpop.f32.mrf.mxu2  ;;  %v1876_v27 = vmax.f32 %v1805_v50, 0.0  ;;  %v2113_v50 = vpack.c.bf16 %v10638_v59, %v10631_v31  ;;  %v11533_v59 = vpack.c.bf16 %v10590_v38, %v10577_v57 }
 0x2d9   : > { %v1677_v55 = vpop.f32.mrf.mxu1 }
 0x2da   : > { %v1678_v34 = vadd.f32 %v1677_v55, %v1549_v37  ;;  %v2114_v55 = vpack.c.bf16 %v2016_v32, %v10649_v14  ;;  %v11532_v32 = vpack.c.bf16 %v10617_v45, %v10606_v46  ;;  %v11534_v45 = vpack.c.bf16 %v10561_v35, %v10548_v12 }
 0x2dc   : > { %v1807_v23 = vadd.f32 %v1806_v26, %v1678_v34  ;;  %v1561_v34 = vpop.f32.mrf.mxu0 }
 0x2dd   : > { %v2026_v9 = vpop.f32.mrf.mxu3 }
 0x2de   : > { %v1877_v49 = vmax.f32 %v1807_v23, 0.0  ;;  %v1809_v15 = vpop.f32.mrf.mxu2  ;;  %v2116_v6 = vpack.c.bf16 %v2026_v9, %v2024_v11 }
 0x2e0   : > { %2134 = vmatpush.bf16.msrb.mxu0 %v2116_v6  ;;  %v1908_v51 = vpack.c.bf16 %v1877_v49, %v1876_v27  ;;  %v1557_v49 = vadd.f32 %v1556_v53, %v10331_v18 }
 0x2e1   : > { %v1680_v39 = vpop.f32.mrf.mxu1 }
 0x2e2   : > { %2068 = vmatmul.bf16.gmra.mxu3 %v1908_v51  ;;  %v1681_v60 = vadd.f32 %v1680_v39, %v1552_v21  ;;  %v1559_v39 = vadd.f32 %v1558_v44, %v10331_v18 }
 0x2e4   : > { %2135 = vmatpush.bf16.msrb.mxu0 %v2115_v29  ;;  %v1810_v11 = vadd.f32 %v1809_v15, %v1681_v60  ;;  %v1563_v15 = vpop.f32.mrf.mxu0  ;;  %v11535_v60 = vpack.c.bf16 %v10532_v16, %v10520_v42 }
 0x2e5   : > { %v10665_v5 = vpop.f32.mrf.mxu3 }
 0x2e6   : > { %v1811_v40 = vpop.f32.mrf.mxu2  ;;  %v1878_v41 = vmax.f32 %v1810_v11, 0.0 }
 0x2e8   : > { %2136 = vmatpush.bf16.msrb.mxu0 %v2114_v55 }
 0x2e9   : > { %v1682_v26 = vpop.f32.mrf.mxu1 }
 0x2ea   : > { %v1683_v37 = vadd.f32 %v1682_v26, %v1554_v25  ;;  %v10696_v25 = vld [vmem:[#allocation10] ss:$0 sm:$0xff] }
 0x2eb   : > { %v1562_v26 = vadd.f32 %v10696_v25, %v1561_v34 }
 0x2ec   : > { %v1812_v1 = vadd.f32 %v1811_v40, %v1683_v37  ;;  %2137 = vmatpush.bf16.msrb.mxu0 %v2113_v50  ;;  %v1566_v44 = vpop.f32.mrf.mxu0  ;;  %v1564_v37 = vadd.f32 %v10696_v25, %v1563_v15 }
 0x2ed   : > { %v10671_v7 = vpop.f32.mrf.mxu3 }
 0x2ee   : > { %v1879_v23 = vmax.f32 %v1812_v1, 0.0  ;;  %v1814_v9 = vpop.f32.mrf.mxu2  ;;  %v2117_v14 = vpack.c.bf16 %v10671_v7, %v10665_v5 }
 0x2f0   : > { %2138 = vmatpush.bf16.msrb.mxu0 %v11532_v32  ;;  %v1909_v58 = vpack.c.bf16 %v1879_v23, %v1878_v41 }
 0x2f1   : > { %v1685_v27 = vpop.f32.mrf.mxu1 }
 0x2f2   : > { %2073 = vmatmul.bf16.gmra.mxu3 %v1909_v58  ;;  %v1686_v6 = vadd.f32 %v1685_v27, %v1557_v49 }
 0x2f4   : > { %2139 = vmatpush.bf16.msrb.mxu0 %v11533_v59  ;;  %v1815_v21 = vadd.f32 %v1814_v9, %v1686_v6  ;;  %v1568_v1 = vpop.f32.mrf.mxu0 }
 0x2f5   : > { %v10682_v31 = vpop.f32.mrf.mxu3 }
 0x2f6   : > { %v1816_v51 = vpop.f32.mrf.mxu2  ;;  %v1880_v57 = vmax.f32 %v1815_v21, 0.0  ;;  %v1569_v21 = vadd.f32 %v10696_v25, %v1568_v1 }
 0x2f8   : > { %2140 = vmatpush.bf16.msrb.mxu0 %v11534_v45 }
 0x2f9   : > { %v1687_v46 = vpop.f32.mrf.mxu1 }
 0x2fa   : > { %v1688_v29 = vadd.f32 %v1687_v46, %v1559_v39 }
 0x2fc   : > { %v1817_v53 = vadd.f32 %v1816_v51, %v1688_v29  ;;  %2141 = vmatpush.bf16.msrb.mxu0 %v11535_v60  ;;  %v1567_v51 = vadd.f32 %v10696_v25, %v1566_v44  ;;  %v1571_v15 = vpop.f32.mrf.mxu0 }
 0x2fd   : > { %v10691_v38 = vpop.f32.mrf.mxu3 }
 0x2fe   : > { %v1881_v40 = vmax.f32 %v1817_v53, 0.0  ;;  %v1819_v55 = vpop.f32.mrf.mxu2  ;;  %v2118_v18 = vpack.c.bf16 %v10691_v38, %v10682_v31 }
 0x2ff   : > { %2142 = vmatmul.bf16.vlgmr.msrb.gmra.mxu0 %v10174_v22 }
 0x300   : > { %v1910_v35 = vpack.c.bf16 %v1881_v40, %v1880_v57 }
 0x301   : > { %v1690_v12 = vpop.f32.mrf.mxu1 }
 0x302   : > { %2078 = vmatmul.bf16.gmra.mxu3 %v1910_v35  ;;  %v1691_v42 = vadd.f32 %v1690_v12, %v1562_v26 }
 0x304   : > { %v1820_v41 = vadd.f32 %v1819_v55, %v1691_v42  ;;  %v1573_v55 = vpop.f32.mrf.mxu0 }
 0x305   : > { %v10699_v16 = vpop.f32.mrf.mxu3 }
 0x306   : > { %v1821_v11 = vpop.f32.mrf.mxu2  ;;  %v1882_v58 = vmax.f32 %v1820_v41, 0.0 }
 0x309   : > { %v1692_v50 = vpop.f32.mrf.mxu1 }
 0x30a   : > { %v1693_v23 = vadd.f32 %v1692_v50, %v1564_v37  ;;  %v1572_v37 = vadd.f32 %v10696_v25, %v1571_v15 }
 0x30c   : > { %v1822_v9 = vadd.f32 %v1821_v11, %v1693_v23  ;;  %v1576_v23 = vpop.f32.mrf.mxu0 }
 0x30d   : > { %v10702_v32 = vpop.f32.mrf.mxu3 }
 0x30e   : > { %v1883_v27 = vmax.f32 %v1822_v9, 0.0  ;;  %v1824_v49 = vpop.f32.mrf.mxu2  ;;  %v2119_v34 = vpack.c.bf16 %v10702_v32, %v10699_v16  ;;  %v1574_v9 = vadd.f32 %v10696_v25, %v1573_v55 }
 0x30f   : > { %2147 = vmatmul.bf16.gmra.mxu0 %v10187_v48 }
 0x310   : > { %v1911_v59 = vpack.c.bf16 %v1883_v27, %v1882_v58 }
 0x311   : > { %v1695_v6 = vpop.f32.mrf.mxu1 }
 0x312   : > { %2083 = vmatmul.bf16.gmra.mxu3 %v1911_v59  ;;  %v1696_v45 = vadd.f32 %v1695_v6, %v1567_v51 }
 0x314   : > { %v1825_v53 = vadd.f32 %v1824_v49, %v1696_v45  ;;  %v1578_v15 = vpop.f32.mrf.mxu0 }
 0x315   : > { %v10708_v39 = vpop.f32.mrf.mxu3  ;;  %v1579_v55 = vadd.f32 %v10696_v25, %v1578_v15 }
 0x316   : > { %v1826_v46 = vpop.f32.mrf.mxu2  ;;  %v1884_v35 = vmax.f32 %v1825_v53, 0.0  ;;  %v1577_v53 = vadd.f32 %v10696_v25, %v1576_v23 }
 0x319   : > { %v1697_v29 = vpop.f32.mrf.mxu1 }
 0x31a   : > { %v1698_v60 = vadd.f32 %v1697_v29, %v1569_v21 }
 0x31c   : > { %v1827_v57 = vadd.f32 %v1826_v46, %v1698_v60 }
 0x31d   : > { %v10711_v40 = vpop.f32.mrf.mxu3 }
 0x31e   : > { %v1885_v12 = vmax.f32 %v1827_v57, 0.0  ;;  %v1829_v26 = vpop.f32.mrf.mxu2  ;;  %v2120_v44 = vpack.c.bf16 %v10711_v40, %v10708_v39 }
 0x31f   : > { %2152 = vmatmul.bf16.gmra.mxu0 %v10207_v8 }
 0x320   : > { %v1912_v42 = vpack.c.bf16 %v1885_v12, %v1884_v35 }
 0x321   : > { %v1700_v11 = vpop.f32.mrf.mxu1 }
 0x322   : > { %2088 = vmatmul.bf16.gmra.mxu3 %v1912_v42  ;;  %v1701_v1 = vadd.f32 %v1700_v11, %v1572_v37  ;;  %v1581_v11 = vpop.f32.mrf.mxu0 }
 0x323   : > { %v1582_v23 = vadd.f32 %v10696_v25, %v1581_v11 }
 0x324   : > { %v1830_v27 = vadd.f32 %v1829_v26, %v1701_v1 }
 0x325   : > { %v10717_v50 = vpop.f32.mrf.mxu3 }
 0x326   : > { %v1831_v41 = vpop.f32.mrf.mxu2  ;;  %v1886_v51 = vmax.f32 %v1830_v27, 0.0 }
 0x329   : > { %v1702_v58 = vpop.f32.mrf.mxu1 }
 0x32a   : > { %v1703_v49 = vadd.f32 %v1702_v58, %v1574_v9 }
 0x32c   : > { %v1832_v59 = vadd.f32 %v1831_v41, %v1703_v49 }
 0x32d   : > { %v2051_v6 = vpop.f32.mrf.mxu3 }
 0x32e   : > { %v1887_v45 = vmax.f32 %v1832_v59, 0.0  ;;  %v1834_v46 = vpop.f32.mrf.mxu2  ;;  %v1583_v59 = vpop.f32.mrf.mxu0 }
 0x32f   : > { %2157 = vmatmul.bf16.gmra.mxu0 %v10222_v24 }
 0x330   : > { %v1913_v21 = vpack.c.bf16 %v1887_v45, %v1886_v51 }
 0x331   : > { %v1705_v29 = vpop.f32.mrf.mxu1 }
 0x332   : > { %2093 = vmatmul.bf16.gmra.mxu3 %v1913_v21  ;;  %v1706_v57 = vadd.f32 %v1705_v29, %v1577_v53  ;;  %v1584_v21 = vadd.f32 %v10696_v25, %v1583_v59 }
 0x334   : > { %v1835_v26 = vadd.f32 %v1834_v46, %v1706_v57 }
 0x335   : > { %v2054_v60 = vpop.f32.mrf.mxu3 }
 0x336   : > { %v1836_v35 = vpop.f32.mrf.mxu2  ;;  %v1888_v41 = vmax.f32 %v1835_v26, 0.0 }
 0x339   : > { %v1707_v12 = vpop.f32.mrf.mxu1 }
 0x33a   : > { %v1708_v42 = vadd.f32 %v1707_v12, %v1579_v55 }
 0x33c   : > { %v1837_v37 = vadd.f32 %v1836_v35, %v1708_v42 }
 0x33d   : > { %v2056_v1 = vpop.f32.mrf.mxu3 }
 0x33e   : > { %v1889_v9 = vmax.f32 %v1837_v37, 0.0  ;;  %v1839_v27 = vpop.f32.mrf.mxu2 }
 0x33f   : > { %2162 = vmatmul.bf16.gmra.mxu0 %v10237_v33 }
 0x340   : > { %v1914_v58 = vpack.c.bf16 %v1889_v9, %v1888_v41  ;;  %v2122_v9 = vpack.c.bf16 %v2056_v1, %v2054_v60 }
 0x341   : > { %v1710_v49 = vpop.f32.mrf.mxu1 }
 0x342   : > { %2098 = vmatmul.bf16.gmra.mxu3 %v1914_v58  ;;  %v1711_v45 = vadd.f32 %v1710_v49, %v1582_v23  ;;  %v2121_v58 = vpack.c.bf16 %v2051_v6, %v10717_v50 }
 0x344   : > { %v1840_v15 = vadd.f32 %v1839_v27, %v1711_v45 }
 0x345   : > { %v2059_v51 = vpop.f32.mrf.mxu3 }
 0x346   : > { %v1841_v53 = vpop.f32.mrf.mxu2  ;;  %v1890_v55 = vmax.f32 %v1840_v15, 0.0  ;;  %v11537_v15 = vld [vmem:[#allocation20_spill] sm:$0xff] }
 0x349   : > { %v1712_v46 = vpop.f32.mrf.mxu1 }
 0x34a   : > { %v1713_v29 = vadd.f32 %v1712_v46, %v1584_v21  ;;  %v11536_v46 = vld [vmem:[#allocation30_spill] sm:$0xff] }
 0x34c   : > { %v1842_v57 = vadd.f32 %v1841_v53, %v1713_v29  ;;  %v11538_v29 = vld [vmem:[#allocation33_spill] sm:$0xff] }
 0x34d   : > { %v2061_v35 = vpop.f32.mrf.mxu3  ;;  %v11539_v53 = vld [vmem:[#allocation21_spill] sm:$0xff] }
 0x34e   : > { %v1891_v12 = vmax.f32 %v1842_v57, 0.0  ;;  %v2123_v41 = vpack.c.bf16 %v2061_v35, %v2059_v51  ;;  %v11540_v57 = vld [vmem:[#allocation22_spill] sm:$0xff]  ;;  %v7067_v35 = vld [vmem:[#allocation7 + $0x100] sm:$0xf] }
 0x34f   : > { %2167 = vmatmul.bf16.gmra.mxu0 %v10252_v43 }
 0x350   : > { %v1915_v26 = vpack.c.bf16 %v1891_v12, %v1890_v55  ;;  %v8833_v55 = vld [vmem:[#allocation7 + $0x104] sm:$0xf0] }
 0x352   : > { %2103 = vmatmul.bf16.gmra.mxu3 %v1915_v26  ;;  %v7068_v26 = vor.u32 %v8833_v55, %v7067_v35  ;;  %v11544_v35 = vld [vmem:[#allocation32_spill] sm:$0xff] }
 0x353   : > { %v11545_v55 = vld [vmem:[#allocation24_spill] sm:$0xff] }
 0x354   : > { %2657 = vmatpush.bf16.msrb.mxu3 %v7068_v26 }
 0x355   : > { %v2064_v42 = vpop.f32.mrf.mxu3 }
 0x35d   : > { %v2066_v11 = vpop.f32.mrf.mxu3 }
 0x35e   : > { %v2124_v37 = vpack.c.bf16 %v2066_v11, %v2064_v42  ;;  %v7063_v42 = vld [vmem:[#allocation7 + $0xf0] sm:$0xf]  ;;  %v8832_v11 = vld [vmem:[#allocation7 + $0xf4] sm:$0xf0] }
 0x35f   : > { %2172 = vmatmul.bf16.gmra.mxu0 %v10267_v54 }
 0x360   : > { %2263 = vmatpush.bf16.msrb.mxu1 %v2124_v37  ;;  %v7064_v37 = vor.u32 %v8832_v11, %v7063_v42  ;;  %v11546_v42 = vld [vmem:[#allocation39_spill] sm:$0xff] }
 0x362   : > { %2658 = vmatpush.bf16.msrb.mxu3 %v7064_v37 }
 0x364   : > { %2264 = vmatpush.bf16.msrb.mxu1 %v2123_v41  ;;  %v7059_v41 = vld [vmem:[#allocation7 + $0xe0] sm:$0xf] }
 0x365   : > { %v2069_v25 = vpop.f32.mrf.mxu3 }
 0x368   : > { %2265 = vmatpush.bf16.msrb.mxu1 %v2122_v9 }
 0x36c   : > { %2266 = vmatpush.bf16.msrb.mxu1 %v2121_v58 }
 0x36d   : > { %v2071_v27 = vpop.f32.mrf.mxu3 }
 0x36e   : > { %v2125_v21 = vpack.c.bf16 %v2071_v27, %v2069_v25  ;;  %v8831_v25 = vld [vmem:[#allocation7 + $0xe4] sm:$0xf0] }
 0x36f   : > { %2177 = vmatmul.bf16.gmra.mxu0 %v10282_v63  ;;  %v7060_v58 = vor.u32 %v8831_v25, %v7059_v41  ;;  %v10770_v41 = vld [vmem:[#allocation10 + $0x1] ss:$0 sm:$0xff] }
 0x370   : > { %2267 = vmatpush.bf16.msrb.mxu1 %v2120_v44 }
 0x371   : > { %2659 = vmatpush.bf16.msrb.mxu3 %v7060_v58  ;;  %v11547_v58 = vld [vmem:[#allocation35_spill] sm:$0xff] }
 0x374   : > { %2268 = vmatpush.bf16.msrb.mxu1 %v2119_v34 }
 0x375   : > { %v2074_v49 = vpop.f32.mrf.mxu3 }
 0x378   : > { %2269 = vmatpush.bf16.msrb.mxu1 %v2118_v18 }
 0x37c   : > { %2270 = vmatpush.bf16.msrb.mxu1 %v2117_v14  ;;  %v2143_v12 = vpop.f32.mrf.mxu0 }
 0x37d   : > { %v2076_v50 = vpop.f32.mrf.mxu3 }
 0x37e   : > { %v2126_v45 = vpack.c.bf16 %v2076_v50, %v2074_v49  ;;  %v7055_v49 = vld [vmem:[#allocation7 + $0xd0] sm:$0xf]  ;;  %v8830_v50 = vld [vmem:[#allocation7 + $0xd4] sm:$0xf0] }
 0x37f   : > { %2271 = vmatmul.bf16.vlgmr.msrb.gmra.mxu1 %v10211_v19  ;;  %2182 = vmatmul.bf16.gmra.mxu0 %v10297_v2 }
 0x384   : > { %v2145_v27 = vpop.f32.mrf.mxu0 }
 0x385   : > { %v2079_v39 = vpop.f32.mrf.mxu3 }
 0x38d   : > { %v2081_v40 = vpop.f32.mrf.mxu3 }
 0x38e   : > { %v2127_v51 = vpack.c.bf16 %v2081_v40, %v2079_v39  ;;  %v11541_v39 = vld [vmem:[#allocation29_spill] sm:$0xff]  ;;  %v7056_v40 = vor.u32 %v8830_v50, %v7055_v49 }
 0x38f   : > { %2276 = vmatmul.bf16.gmra.mxu1 %v10226_v17  ;;  %2187 = vmatmul.bf16.gmra.mxu0 %v10312_v28  ;;  %v11548_v49 = vld [vmem:[#allocation25_spill] sm:$0xff] }
 0x390   : > { %2660 = vmatpush.bf16.msrb.mxu3 %v7056_v40  ;;  %v11549_v40 = vld [vmem:[#allocation42_spill] sm:$0xff] }
 0x395   : > { %v2084_v16 = vpop.f32.mrf.mxu3 }
 0x39d   : > { %v2086_v32 = vpop.f32.mrf.mxu3 }
 0x39e   : > { %v2128_v59 = vpack.c.bf16 %v2086_v32, %v2084_v16  ;;  %v11542_v16 = vld [vmem:[#allocation23_spill] sm:$0xff] }
 0x39f   : > { %2281 = vmatmul.bf16.gmra.mxu1 %v10241_v36  ;;  %2192 = vmatmul.bf16.gmra.mxu0 %v10327_v13 }
 0x3a5   : > { %v2089_v31 = vpop.f32.mrf.mxu3 }
 0x3ad   : > { %v2091_v5 = vpop.f32.mrf.mxu3 }
 0x3ae   : > { %v2129_v23 = vpack.c.bf16 %v2091_v5, %v2089_v31  ;;  %v7051_v31 = vld [vmem:[#allocation7 + $0xc0] sm:$0xf]  ;;  %v8829_v5 = vld [vmem:[#allocation7 + $0xc4] sm:$0xf0] }
 0x3af   : > { %2286 = vmatmul.bf16.gmra.mxu1 %v10256_v47  ;;  %2197 = vmatmul.bf16.gmra.mxu0 %v10346_v52 }
 0x3b5   : > { %v2094_v7 = vpop.f32.mrf.mxu3 }
 0x3bd   : > { %v2096_v14 = vpop.f32.mrf.mxu3 }
 0x3be   : > { %v2130_v1 = vpack.c.bf16 %v2096_v14, %v2094_v7  ;;  %v11543_v7 = vld [vmem:[#allocation36_spill] sm:$0xff]  ;;  %v7052_v14 = vor.u32 %v8829_v5, %v7051_v31  ;;  %v2144_v31 = vadd.f32 %v2143_v12, %v10770_v41  ;;  %v11552_v12 = vld [vmem:[#allocation45_spill] sm:$0xff] }
 0x3bf   : > { %2291 = vmatmul.bf16.gmra.mxu1 %v10271_v56  ;;  %2202 = vmatmul.bf16.gmra.mxu0 %v11541_v39 }
 0x3c0   : > { %2661 = vmatpush.bf16.msrb.mxu3 %v7052_v14 }
 0x3c5   : > { %v2099_v38 = vpop.f32.mrf.mxu3 }
 0x3cd   : > { %v2101_v18 = vpop.f32.mrf.mxu3 }
 0x3ce   : > { %v2131_v60 = vpack.c.bf16 %v2101_v18, %v2099_v38  ;;  %v7047_v38 = vld [vmem:[#allocation7 + $0xb0] sm:$0xf]  ;;  %v8828_v18 = vld [vmem:[#allocation7 + $0xb4] sm:$0xf0] }
 0x3cf   : > { %2296 = vmatmul.bf16.gmra.mxu1 %v10286_v10 }
 0x3d5   : > { %v2104_v34 = vpop.f32.mrf.mxu3 }
 0x3dd   : > { %v2106_v44 = vpop.f32.mrf.mxu3 }
 0x3de   : > { %v2132_v6 = vpack.c.bf16 %v2106_v44, %v2104_v34  ;;  %v7048_v34 = vor.u32 %v8828_v18, %v7047_v38  ;;  %v2148_v44 = vpop.f32.mrf.mxu0  ;;  %v2146_v38 = vadd.f32 %v2145_v27, %v10770_v41 }
 0x3df   : > { %2301 = vmatmul.bf16.gmra.mxu1 %v10301_v30 }
 0x3e0   : > { %2392 = vmatpush.bf16.msrb.mxu2 %v2132_v6  ;;  %2662 = vmatpush.bf16.msrb.mxu3 %v7048_v34 }
 0x3e4   : > { %2393 = vmatpush.bf16.msrb.mxu2 %v2131_v60  ;;  %v7043_v60 = vld [vmem:[#allocation7 + $0xa0] sm:$0xf] }
 0x3e8   : > { %2394 = vmatpush.bf16.msrb.mxu2 %v2130_v1  ;;  %v8827_v1 = vld [vmem:[#allocation7 + $0xa4] sm:$0xf0] }
 0x3ec   : > { %2395 = vmatpush.bf16.msrb.mxu2 %v2129_v23  ;;  %v7044_v23 = vor.u32 %v8827_v1, %v7043_v60 }
 0x3ee   : > { %2663 = vmatpush.bf16.msrb.mxu3 %v7044_v23 }
 0x3ef   : > { %2306 = vmatmul.bf16.gmra.mxu1 %v10316_v3 }
 0x3f0   : > { %2396 = vmatpush.bf16.msrb.mxu2 %v2128_v59  ;;  %v7039_v59 = vld [vmem:[#allocation7 + $0x90] sm:$0xf] }
 0x3f4   : > { %2397 = vmatpush.bf16.msrb.mxu2 %v2127_v51  ;;  %v8826_v51 = vld [vmem:[#allocation7 + $0x94] sm:$0xf0] }
 0x3f8   : > { %2398 = vmatpush.bf16.msrb.mxu2 %v2126_v45  ;;  %v7040_v45 = vor.u32 %v8826_v51, %v7039_v59 }
 0x3fa   : > { %2664 = vmatpush.bf16.msrb.mxu3 %v7040_v45 }
 0x3fc   : > { %2399 = vmatpush.bf16.msrb.mxu2 %v2125_v21  ;;  %v2272_v9 = vpop.f32.mrf.mxu1  ;;  %v2150_v21 = vpop.f32.mrf.mxu0  ;;  %2207 = vmatmul.bf16.gmra.mxu0 %v11544_v35 }
 0x3fd   : > { %v2273_v14 = vadd.f32 %v2272_v9, %v2144_v31  ;;  %v2149_v9 = vadd.f32 %v2148_v44, %v10770_v41 }
 0x3ff   : > { %2400 = vmatmul.bf16.vlgmr.msrb.gmra.mxu2 %v10198_v4  ;;  %2311 = vmatmul.bf16.gmra.mxu1 %v10333_v0 }
 0x404   : > { %v2274_v32 = vpop.f32.mrf.mxu1  ;;  %v2153_v11 = vpop.f32.mrf.mxu0 }
 0x405   : > { %v2275_v60 = vadd.f32 %v2274_v32, %v2146_v38  ;;  %v2151_v32 = vadd.f32 %v2150_v21, %v10770_v41 }
 0x40c   : > { %v2277_v6 = vpop.f32.mrf.mxu1  ;;  %v2155_v25 = vpop.f32.mrf.mxu0  ;;  %2212 = vmatmul.bf16.gmra.mxu0 %v11547_v58 }
 0x40d   : > { %v2278_v31 = vadd.f32 %v2277_v6, %v2149_v9  ;;  %v2154_v6 = vadd.f32 %v2153_v11, %v10770_v41 }
 0x40f   : > { %2405 = vmatmul.bf16.gmra.mxu2 %v10217_v20  ;;  %2316 = vmatmul.bf16.gmra.mxu1 %v10352_v61 }
 0x414   : > { %v2279_v26 = vpop.f32.mrf.mxu1  ;;  %v2158_v18 = vpop.f32.mrf.mxu0 }
 0x415   : > { %v2280_v38 = vadd.f32 %v2279_v26, %v2151_v32  ;;  %v2156_v26 = vadd.f32 %v2155_v25, %v10770_v41 }
 0x41c   : > { %v2282_v37 = vpop.f32.mrf.mxu1  ;;  %v2160_v58 = vpop.f32.mrf.mxu0 }
 0x41d   : > { %v2283_v9 = vadd.f32 %v2282_v37, %v2154_v6  ;;  %v2159_v37 = vadd.f32 %v2158_v18, %v10770_v41 }
 0x41f   : > { %2410 = vmatmul.bf16.gmra.mxu2 %v10232_v62  ;;  %2321 = vmatmul.bf16.gmra.mxu1 %v11536_v46 }
 0x424   : > { %v2284_v50 = vpop.f32.mrf.mxu1 }
 0x425   : > { %v2285_v32 = vadd.f32 %v2284_v50, %v2156_v26  ;;  %v2161_v50 = vadd.f32 %v2160_v58, %v10770_v41 }
 0x42c   : > { %v2287_v34 = vpop.f32.mrf.mxu1 }
 0x42d   : > { %v2288_v6 = vadd.f32 %v2287_v34, %v2159_v37 }
 0x42f   : > { %2415 = vmatmul.bf16.gmra.mxu2 %v11537_v15  ;;  %2326 = vmatmul.bf16.gmra.mxu1 %v11538_v29 }
 0x43f   : > { %2420 = vmatmul.bf16.gmra.mxu2 %v11539_v53  ;;  %2331 = vmatmul.bf16.gmra.mxu1 %v11543_v7 }
 0x44f   : > { %2425 = vmatmul.bf16.gmra.mxu2 %v11540_v57  ;;  %2336 = vmatmul.bf16.gmra.mxu1 %v11546_v42  ;;  %v11550_v42 = vld [vmem:[#allocation38_spill] sm:$0xff] }
 0x450   : > { %2217 = vmatmul.bf16.gmra.mxu0 %v11550_v42  ;;  %v11554_v42 = vld [vmem:[#allocation28_spill] sm:$0xff] }
 0x45f   : > { %2430 = vmatmul.bf16.gmra.mxu2 %v11542_v16  ;;  %2341 = vmatmul.bf16.gmra.mxu1 %v11549_v40  ;;  %v2289_v40 = vpop.f32.mrf.mxu1 }
 0x460   : > { %v2290_v26 = vadd.f32 %v2289_v40, %v2161_v50 }
 0x46f   : > { %2435 = vmatmul.bf16.gmra.mxu2 %v11545_v55  ;;  %v11551_v55 = vld [vmem:[#allocation26_spill] sm:$0xff]  ;;  %2346 = vmatmul.bf16.gmra.mxu1 %v11552_v12 }
 0x47f   : > { %2440 = vmatmul.bf16.gmra.mxu2 %v11548_v49 }
 0x482   : > { %v2401_v5 = vpop.f32.mrf.mxu2 }
 0x483   : > { %v2402_v1 = vadd.f32 %v2401_v5, %v2273_v14  ;;  %v2163_v5 = vpop.f32.mrf.mxu0  ;;  %v2292_v14 = vpop.f32.mrf.mxu1 }
 0x484   : > { %v2164_v34 = vadd.f32 %v2163_v5, %v10770_v41 }
 0x485   : > { %v2521_v51 = vmax.f32 %v2402_v1, 0.0 }
 0x486   : > { %v2293_v37 = vadd.f32 %v2292_v14, %v2164_v34 }
 0x48a   : > { %v2403_v23 = vpop.f32.mrf.mxu2 }
 0x48b   : > { %v2404_v59 = vadd.f32 %v2403_v23, %v2275_v60  ;;  %v2294_v44 = vpop.f32.mrf.mxu1 }
 0x48d   : > { %v2522_v45 = vmax.f32 %v2404_v59, 0.0 }
 0x48f   : > { %v2569_v49 = vpack.c.bf16 %v2522_v45, %v2521_v51  ;;  %2445 = vmatmul.bf16.gmra.mxu2 %v11551_v55  ;;  %v2165_v45 = vpop.f32.mrf.mxu0  ;;  %v11553_v55 = vld [vmem:[#allocation41_spill] sm:$0xff] }
 0x490   : > { %2222 = vmatmul.bf16.gmra.mxu0 %v11553_v55  ;;  %v2166_v40 = vadd.f32 %v2165_v45, %v10770_v41 }
 0x491   : > { %2665 = vmatmul.bf16.vlgmr.msrb.gmra.mxu3 %v2569_v49  ;;  %v11555_v49 = vld [vmem:[#allocation48_spill] sm:$0xff] }
 0x492   : > { %v2406_v27 = vpop.f32.mrf.mxu2  ;;  %2351 = vmatmul.bf16.gmra.mxu1 %v11555_v49  ;;  %v2295_v50 = vadd.f32 %v2294_v44, %v2166_v40 }
 0x493   : > { %v2407_v60 = vadd.f32 %v2406_v27, %v2278_v31  ;;  %v2297_v31 = vpop.f32.mrf.mxu1 }
 0x495   : > { %v2523_v59 = vmax.f32 %v2407_v60, 0.0 }
 0x497   : > { %v2168_v27 = vpop.f32.mrf.mxu0 }
 0x498   : > { %v2169_v14 = vadd.f32 %v2168_v27, %v10770_v41 }
 0x49a   : > { %v2408_v1 = vpop.f32.mrf.mxu2  ;;  %v2298_v34 = vadd.f32 %v2297_v31, %v2169_v14 }
 0x49b   : > { %v2409_v23 = vadd.f32 %v2408_v1, %v2280_v38  ;;  %v2299_v11 = vpop.f32.mrf.mxu1 }
 0x49d   : > { %v2524_v51 = vmax.f32 %v2409_v23, 0.0 }
 0x49f   : > { %2450 = vmatmul.bf16.gmra.mxu2 %v11554_v42  ;;  %v2570_v12 = vpack.c.bf16 %v2524_v51, %v2523_v59  ;;  %v2170_v42 = vpop.f32.mrf.mxu0  ;;  %v11556_v59 = vld [vmem:[#allocation44_spill] sm:$0xff]  ;;  %v11557_v51 = vld [vmem:[#allocation31_spill] sm:$0xff] }
 0x4a0   : > { %2227 = vmatmul.bf16.gmra.mxu0 %v11556_v59  ;;  %v2171_v44 = vadd.f32 %v2170_v42, %v10770_v41 }
 0x4a1   : > { %2670 = vmatmul.bf16.gmra.mxu3 %v2570_v12  ;;  %v11558_v12 = vld [vmem:[#allocation51_spill] sm:$0xff] }
 0x4a2   : > { %v2411_v21 = vpop.f32.mrf.mxu2  ;;  %2356 = vmatmul.bf16.gmra.mxu1 %v11558_v12  ;;  %v2300_v40 = vadd.f32 %v2299_v11, %v2171_v44 }
 0x4a3   : > { %v2412_v38 = vadd.f32 %v2411_v21, %v2283_v9  ;;  %v2302_v9 = vpop.f32.mrf.mxu1 }
 0x4a5   : > { %v2525_v23 = vmax.f32 %v2412_v38, 0.0 }
 0x4a7   : > { %v2173_v21 = vpop.f32.mrf.mxu0 }
 0x4a8   : > { %v2174_v31 = vadd.f32 %v2173_v21, %v10770_v41 }
 0x4aa   : > { %v2413_v60 = vpop.f32.mrf.mxu2  ;;  %v2303_v14 = vadd.f32 %v2302_v9, %v2174_v31 }
 0x4ab   : > { %v2414_v1 = vadd.f32 %v2413_v60, %v2285_v32  ;;  %v2304_v18 = vpop.f32.mrf.mxu1 }
 0x4ad   : > { %v2526_v55 = vmax.f32 %v2414_v1, 0.0 }
 0x4af   : > { %2455 = vmatmul.bf16.gmra.mxu2 %v11557_v51  ;;  %v2571_v49 = vpack.c.bf16 %v2526_v55, %v2525_v23  ;;  %v2175_v51 = vpop.f32.mrf.mxu0  ;;  %v11559_v55 = vld [vmem:[#allocation47_spill] sm:$0xff]  ;;  %v11560_v23 = vld [vmem:[#allocation34_spill] sm:$0xff] }
 0x4b0   : > { %2232 = vmatmul.bf16.gmra.mxu0 %v11559_v55  ;;  %v2176_v11 = vadd.f32 %v2175_v51, %v10770_v41 }
 0x4b1   : > { %2675 = vmatmul.bf16.gmra.mxu3 %v2571_v49  ;;  %v11561_v49 = vld [vmem:[#allocation54_spill] sm:$0xff] }
 0x4b2   : > { %v2416_v25 = vpop.f32.mrf.mxu2  ;;  %2361 = vmatmul.bf16.gmra.mxu1 %v11561_v49  ;;  %v2305_v44 = vadd.f32 %v2304_v18, %v2176_v11 }
 0x4b3   : > { %v2417_v32 = vadd.f32 %v2416_v25, %v2288_v6  ;;  %v2307_v6 = vpop.f32.mrf.mxu1 }
 0x4b5   : > { %v2527_v1 = vmax.f32 %v2417_v32, 0.0 }
 0x4b7   : > { %v2178_v25 = vpop.f32.mrf.mxu0 }
 0x4b8   : > { %v2179_v9 = vadd.f32 %v2178_v25, %v10770_v41 }
 0x4ba   : > { %v2418_v38 = vpop.f32.mrf.mxu2  ;;  %v2308_v31 = vadd.f32 %v2307_v6, %v2179_v9 }
 0x4bb   : > { %v2419_v60 = vadd.f32 %v2418_v38, %v2290_v26  ;;  %v2309_v5 = vpop.f32.mrf.mxu1 }
 0x4bd   : > { %v2528_v59 = vmax.f32 %v2419_v60, 0.0 }
 0x4bf   : > { %2460 = vmatmul.bf16.gmra.mxu2 %v11560_v23  ;;  %v2572_v12 = vpack.c.bf16 %v2528_v59, %v2527_v1  ;;  %v2180_v23 = vpop.f32.mrf.mxu0  ;;  %v11562_v59 = vld [vmem:[#allocation50_spill] sm:$0xff]  ;;  %v11563_v1 = vld [vmem:[#allocation37_spill] sm:$0xff] }
 0x4c0   : > { %2237 = vmatmul.bf16.gmra.mxu0 %v11562_v59  ;;  %v2181_v18 = vadd.f32 %v2180_v23, %v10770_v41 }
 0x4c1   : > { %2680 = vmatmul.bf16.gmra.mxu3 %v2572_v12  ;;  %v11564_v12 = vld [vmem:[#allocation57_spill] sm:$0xff] }
 0x4c2   : > { %v2421_v58 = vpop.f32.mrf.mxu2  ;;  %2366 = vmatmul.bf16.gmra.mxu1 %v11564_v12  ;;  %v2310_v11 = vadd.f32 %v2309_v5, %v2181_v18 }
 0x4c3   : > { %v2422_v26 = vadd.f32 %v2421_v58, %v2293_v37  ;;  %v2312_v37 = vpop.f32.mrf.mxu1 }
 0x4c5   : > { %v2529_v60 = vmax.f32 %v2422_v26, 0.0 }
 0x4c7   : > { %v2183_v58 = vpop.f32.mrf.mxu0 }
 0x4c8   : > { %v2184_v6 = vadd.f32 %v2183_v58, %v10770_v41 }
 0x4ca   : > { %v2423_v32 = vpop.f32.mrf.mxu2  ;;  %v2313_v9 = vadd.f32 %v2312_v37, %v2184_v6 }
 0x4cb   : > { %v2424_v38 = vadd.f32 %v2423_v32, %v2295_v50  ;;  %v2314_v27 = vpop.f32.mrf.mxu1 }
 0x4cd   : > { %v2530_v55 = vmax.f32 %v2424_v38, 0.0 }
 0x4cf   : > { %2465 = vmatmul.bf16.gmra.mxu2 %v11563_v1  ;;  %v2573_v49 = vpack.c.bf16 %v2530_v55, %v2529_v60  ;;  %v2185_v1 = vpop.f32.mrf.mxu0  ;;  %v11565_v55 = vld [vmem:[#allocation53_spill] sm:$0xff]  ;;  %v11566_v60 = vld [vmem:[#allocation40_spill] sm:$0xff] }
 0x4d0   : > { %2242 = vmatmul.bf16.gmra.mxu0 %v11565_v55  ;;  %v2186_v5 = vadd.f32 %v2185_v1, %v10770_v41 }
 0x4d1   : > { %2685 = vmatmul.bf16.gmra.mxu3 %v2573_v49  ;;  %v11567_v49 = vld [vmem:[#allocation60_spill] sm:$0xff] }
 0x4d2   : > { %v2426_v45 = vpop.f32.mrf.mxu2  ;;  %2371 = vmatmul.bf16.gmra.mxu1 %v11567_v49  ;;  %v2315_v18 = vadd.f32 %v2314_v27, %v2186_v5 }
 0x4d3   : > { %v2427_v50 = vadd.f32 %v2426_v45, %v2298_v34  ;;  %v2317_v34 = vpop.f32.mrf.mxu1 }
 0x4d5   : > { %v2531_v38 = vmax.f32 %v2427_v50, 0.0 }
 0x4d7   : > { %v2188_v45 = vpop.f32.mrf.mxu0 }
 0x4d8   : > { %v2189_v37 = vadd.f32 %v2188_v45, %v10770_v41 }
 0x4da   : > { %v2428_v26 = vpop.f32.mrf.mxu2  ;;  %v2318_v27 = vadd.f32 %v2317_v34, %v2189_v37 }
 0x4db   : > { %v2429_v32 = vadd.f32 %v2428_v26, %v2300_v40  ;;  %v2319_v21 = vpop.f32.mrf.mxu1 }
 0x4dd   : > { %v2532_v59 = vmax.f32 %v2429_v32, 0.0 }
 0x4df   : > { %2470 = vmatmul.bf16.gmra.mxu2 %v11566_v60  ;;  %v2574_v12 = vpack.c.bf16 %v2532_v59, %v2531_v38  ;;  %v2190_v60 = vpop.f32.mrf.mxu0  ;;  %v11568_v59 = vld [vmem:[#allocation56_spill] sm:$0xff]  ;;  %v11569_v38 = vld [vmem:[#allocation43_spill] sm:$0xff] }
 0x4e0   : > { %2247 = vmatmul.bf16.gmra.mxu0 %v11568_v59 }
 0x4e1   : > { %2690 = vmatmul.bf16.gmra.mxu3 %v2574_v12  ;;  %v11570_v12 = vld [vmem:[#allocation63_spill] sm:$0xff] }
 0x4e2   : > { %v2431_v42 = vpop.f32.mrf.mxu2  ;;  %2376 = vmatmul.bf16.gmra.mxu1 %v11570_v12 }
 0x4e3   : > { %v2432_v40 = vadd.f32 %v2431_v42, %v2303_v14  ;;  %v2322_v14 = vpop.f32.mrf.mxu1 }
 0x4e5   : > { %v2533_v32 = vmax.f32 %v2432_v40, 0.0 }
 0x4e7   : > { %v2193_v42 = vpop.f32.mrf.mxu0 }
 0x4ea   : > { %v2433_v50 = vpop.f32.mrf.mxu2 }
 0x4eb   : > { %v2434_v26 = vadd.f32 %v2433_v50, %v2305_v44  ;;  %v2324_v25 = vpop.f32.mrf.mxu1 }
 0x4ed   : > { %v2534_v55 = vmax.f32 %v2434_v26, 0.0 }
 0x4ef   : > { %2475 = vmatmul.bf16.gmra.mxu2 %v11569_v38  ;;  %v2575_v49 = vpack.c.bf16 %v2534_v55, %v2533_v32  ;;  %v2195_v38 = vpop.f32.mrf.mxu0  ;;  %v11571_v55 = vld [vmem:[#allocation59_spill] sm:$0xff]  ;;  %v11572_v32 = vld [vmem:[#allocation46_spill] sm:$0xff] }
 0x4f0   : > { %2252 = vmatmul.bf16.gmra.mxu0 %v11571_v55 }
 0x4f1   : > { %2695 = vmatmul.bf16.gmra.mxu3 %v2575_v49  ;;  %v11573_v49 = vld [vmem:[#allocation65_spill] sm:$0xff] }
 0x4f2   : > { %v2436_v51 = vpop.f32.mrf.mxu2  ;;  %2381 = vmatmul.bf16.gmra.mxu1 %v11573_v49 }
 0x4f3   : > { %v2437_v44 = vadd.f32 %v2436_v51, %v2308_v31  ;;  %v2327_v31 = vpop.f32.mrf.mxu1 }
 0x4f5   : > { %v2535_v26 = vmax.f32 %v2437_v44, 0.0 }
 0x4f7   : > { %v2198_v51 = vpop.f32.mrf.mxu0 }
 0x4fa   : > { %v2438_v40 = vpop.f32.mrf.mxu2 }
 0x4fb   : > { %v2439_v50 = vadd.f32 %v2438_v40, %v2310_v11  ;;  %v2329_v58 = vpop.f32.mrf.mxu1 }
 0x4fd   : > { %v2536_v59 = vmax.f32 %v2439_v50, 0.0 }
 0x4ff   : > { %2480 = vmatmul.bf16.gmra.mxu2 %v11572_v32  ;;  %v2576_v12 = vpack.c.bf16 %v2536_v59, %v2535_v26  ;;  %v2200_v32 = vpop.f32.mrf.mxu0  ;;  %v11574_v59 = vld [vmem:[#allocation62_spill] sm:$0xff]  ;;  %v11575_v26 = vld [vmem:[#allocation49_spill] sm:$0xff] }
 0x500   : > { %2257 = vmatmul.bf16.gmra.mxu0 %v11574_v59 }
 0x501   : > { %2700 = vmatmul.bf16.gmra.mxu3 %v2576_v12  ;;  %v11576_v12 = vld [vmem:[#allocation67_spill] sm:$0xff] }
 0x502   : > { %v2441_v23 = vpop.f32.mrf.mxu2  ;;  %2386 = vmatmul.bf16.gmra.mxu1 %v11576_v12  ;;  %v11577_v12 = vld [vmem:[#allocation52_spill] sm:$0xff] }
 0x503   : > { %v2442_v11 = vadd.f32 %v2441_v23, %v2313_v9  ;;  %v2191_v23 = vadd.f32 %v2190_v60, %v10770_v41  ;;  %v2332_v5 = vpop.f32.mrf.mxu1  ;;  %v2194_v60 = vadd.f32 %v2193_v42, %v10770_v41 }
 0x505   : > { %v2537_v50 = vmax.f32 %v2442_v11, 0.0 }
 0x507   : > { %v2203_v9 = vpop.f32.mrf.mxu0 }
 0x50a   : > { %v2443_v44 = vpop.f32.mrf.mxu2 }
 0x50b   : > { %v2444_v40 = vadd.f32 %v2443_v44, %v2315_v18  ;;  %v2320_v18 = vadd.f32 %v2319_v21, %v2191_v23  ;;  %v2334_v34 = vpop.f32.mrf.mxu1 }
 0x50d   : > { %v2538_v55 = vmax.f32 %v2444_v40, 0.0 }
 0x50f   : > { %2485 = vmatmul.bf16.gmra.mxu2 %v11575_v26  ;;  %v2577_v49 = vpack.c.bf16 %v2538_v55, %v2537_v50 }
 0x511   : > { %2705 = vmatmul.bf16.gmra.mxu3 %v2577_v49  ;;  %v2205_v49 = vpop.f32.mrf.mxu0 }
 0x512   : > { %v2446_v1 = vpop.f32.mrf.mxu2 }
 0x513   : > { %v2447_v11 = vadd.f32 %v2446_v1, %v2318_v27  ;;  %v2323_v1 = vadd.f32 %v2322_v14, %v2194_v60  ;;  %v2196_v27 = vadd.f32 %v2195_v38, %v10770_v41  ;;  %v2199_v38 = vadd.f32 %v2198_v51, %v10770_v41 }
 0x514   : > { %v10821_v6 = vpop.f32.mrf.mxu3 }
 0x515   : > { %v2539_v55 = vmax.f32 %v2447_v11, 0.0  ;;  %v2325_v11 = vadd.f32 %v2324_v25, %v2196_v27 }
 0x519   : > { %v2208_v23 = vpop.f32.mrf.mxu0 }
 0x51a   : > { %v2448_v44 = vpop.f32.mrf.mxu2 }
 0x51b   : > { %v2449_v40 = vadd.f32 %v2448_v44, %v2320_v18  ;;  %v2337_v18 = vpop.f32.mrf.mxu1 }
 0x51c   : > { %v10824_v26 = vpop.f32.mrf.mxu3 }
 0x51d   : > { %v2540_v50 = vmax.f32 %v2449_v40, 0.0 }
 0x51f   : > { %2490 = vmatmul.bf16.gmra.mxu2 %v11577_v12  ;;  %v2578_v59 = vpack.c.bf16 %v2540_v50, %v2539_v55  ;;  %v11578_v50 = vld [vmem:[#allocation55_spill] sm:$0xff] }
 0x521   : > { %2710 = vmatmul.bf16.gmra.mxu3 %v2578_v59  ;;  %v2210_v59 = vpop.f32.mrf.mxu0 }
 0x522   : > { %v2451_v37 = vpop.f32.mrf.mxu2 }
 0x523   : > { %v2452_v44 = vadd.f32 %v2451_v37, %v2323_v1  ;;  %v2339_v14 = vpop.f32.mrf.mxu1  ;;  %v2328_v37 = vadd.f32 %v2327_v31, %v2199_v38  ;;  %v2201_v1 = vadd.f32 %v2200_v32, %v10770_v41  ;;  %v2204_v31 = vadd.f32 %v2203_v9, %v10770_v41  ;;  %v11580_v9 = vld [vmem:[#allocation61_spill] sm:$0xff] }
 0x524   : > { %v10830_v21 = vpop.f32.mrf.mxu3 }
 0x525   : > { %v2541_v12 = vmax.f32 %v2452_v44, 0.0 }
 0x529   : > { %v2213_v27 = vpop.f32.mrf.mxu0 }
 0x52a   : > { %v2453_v40 = vpop.f32.mrf.mxu2  ;;  %v2214_v29 = vadd.f32 %v2213_v27, %v10770_v41 }
 0x52b   : > { %v2454_v45 = vadd.f32 %v2453_v40, %v2325_v11  ;;  %v2342_v11 = vpop.f32.mrf.mxu1 }
 0x52c   : > { %v10833_v35 = vpop.f32.mrf.mxu3 }
 0x52d   : > { %v2542_v55 = vmax.f32 %v2454_v45, 0.0  ;;  %v2330_v45 = vadd.f32 %v2329_v58, %v2201_v1 }
 0x52f   : > { %2495 = vmatmul.bf16.gmra.mxu2 %v11578_v50  ;;  %v2579_v7 = vpack.c.bf16 %v2542_v55, %v2541_v12  ;;  %v11579_v55 = vld [vmem:[#allocation58_spill] sm:$0xff] }
 0x531   : > { %2715 = vmatmul.bf16.gmra.mxu3 %v2579_v7  ;;  %v2215_v7 = vpop.f32.mrf.mxu0 }
 0x532   : > { %v2456_v60 = vpop.f32.mrf.mxu2 }
 0x533   : > { %v2457_v44 = vadd.f32 %v2456_v60, %v2328_v37  ;;  %v2344_v38 = vpop.f32.mrf.mxu1  ;;  %v2333_v60 = vadd.f32 %v2332_v5, %v2204_v31  ;;  %v2206_v37 = vadd.f32 %v2205_v49, %v10770_v41  ;;  %v2209_v5 = vadd.f32 %v2208_v23, %v10770_v41 }
 0x534   : > { %v10839_v25 = vpop.f32.mrf.mxu3 }
 0x535   : > { %v2543_v50 = vmax.f32 %v2457_v44, 0.0 }
 0x539   : > { %v2218_v1 = vpop.f32.mrf.mxu0 }
 0x53a   : > { %v2458_v40 = vpop.f32.mrf.mxu2  ;;  %v2219_v27 = vadd.f32 %v2218_v1, %v10770_v41 }
 0x53b   : > { %v2459_v42 = vadd.f32 %v2458_v40, %v2330_v45  ;;  %v2335_v45 = vadd.f32 %v2334_v34, %v2206_v37  ;;  %v2347_v57 = vpop.f32.mrf.mxu1 }
 0x53c   : > { %v10842_v16 = vpop.f32.mrf.mxu3 }
 0x53d   : > { %v2544_v12 = vmax.f32 %v2459_v42, 0.0 }
 0x53f   : > { %2500 = vmatmul.bf16.gmra.mxu2 %v11579_v55  ;;  %v2580_v39 = vpack.c.bf16 %v2544_v12, %v2543_v50 }
 0x541   : > { %2720 = vmatmul.bf16.gmra.mxu3 %v2580_v39  ;;  %v2220_v31 = vpop.f32.mrf.mxu0 }
 0x542   : > { %v2461_v32 = vpop.f32.mrf.mxu2 }
 0x543   : > { %v2462_v42 = vadd.f32 %v2461_v32, %v2333_v60  ;;  %v2338_v32 = vadd.f32 %v2337_v18, %v2209_v5  ;;  %v2211_v60 = vadd.f32 %v2210_v59, %v10770_v41  ;;  %v2349_v37 = vpop.f32.mrf.mxu1  ;;  %v2343_v59 = vadd.f32 %v2342_v11, %v2214_v29 }
 0x544   : > { %v10848_v58 = vpop.f32.mrf.mxu3 }
 0x545   : > { %v2545_v55 = vmax.f32 %v2462_v42, 0.0 }
 0x549   : > { %v2223_v39 = vpop.f32.mrf.mxu0 }
 0x54a   : > { %v2463_v44 = vpop.f32.mrf.mxu2 }
 0x54b   : > { %v2464_v40 = vadd.f32 %v2463_v44, %v2335_v45  ;;  %v2340_v45 = vadd.f32 %v2339_v14, %v2211_v60  ;;  %v2216_v14 = vadd.f32 %v2215_v7, %v10770_v41  ;;  %v2348_v7 = vadd.f32 %v2347_v57, %v2219_v27 }
 0x54c   : > { %v10851_v51 = vpop.f32.mrf.mxu3 }
 0x54d   : > { %v2546_v50 = vmax.f32 %v2464_v40, 0.0 }
 0x54f   : > { %2505 = vmatmul.bf16.gmra.mxu2 %v11580_v9  ;;  %v2581_v12 = vpack.c.bf16 %v2546_v50, %v2545_v55  ;;  %v11581_v50 = vld [vmem:[#allocation64_spill] sm:$0xff] }
 0x551   : > { %2725 = vmatmul.bf16.gmra.mxu3 %v2581_v12  ;;  %v2352_v12 = vpop.f32.mrf.mxu1 }
 0x552   : > { %v2466_v49 = vpop.f32.mrf.mxu2 }
 0x553   : > { %v2467_v42 = vadd.f32 %v2466_v49, %v2338_v32  ;;  %v2225_v49 = vpop.f32.mrf.mxu0  ;;  %v2345_v32 = vadd.f32 %v2344_v38, %v2216_v14  ;;  %v2221_v38 = vadd.f32 %v2220_v31, %v10770_v41 }
 0x554   : > { %v10857_v34 = vpop.f32.mrf.mxu3  ;;  %v2226_v57 = vadd.f32 %v2225_v49, %v10770_v41 }
 0x555   : > { %v2547_v9 = vmax.f32 %v2467_v42, 0.0 }
 0x55a   : > { %v2468_v44 = vpop.f32.mrf.mxu2 }
 0x55b   : > { %v2469_v40 = vadd.f32 %v2468_v44, %v2340_v45  ;;  %v2354_v44 = vpop.f32.mrf.mxu1 }
 0x55c   : > { %v10860_v53 = vpop.f32.mrf.mxu3 }
 0x55d   : > { %v2548_v55 = vmax.f32 %v2469_v40, 0.0 }
 0x55f   : > { %2510 = vmatmul.bf16.gmra.mxu2 %v11581_v50  ;;  %v2582_v23 = vpack.c.bf16 %v2548_v55, %v2547_v9  ;;  %v11582_v50 = vld [vmem:[#allocation66_spill] sm:$0xff]  ;;  %v2228_v55 = vpop.f32.mrf.mxu0 }
 0x561   : > { %2730 = vmatmul.bf16.gmra.mxu3 %v2582_v23 }
 0x562   : > { %v2471_v18 = vpop.f32.mrf.mxu2 }
 0x563   : > { %v2472_v60 = vadd.f32 %v2471_v18, %v2343_v59  ;;  %v2357_v11 = vpop.f32.mrf.mxu1  ;;  %v2350_v18 = vadd.f32 %v2349_v37, %v2221_v38  ;;  %v2355_v37 = vadd.f32 %v2354_v44, %v2226_v57 }
 0x564   : > { %v2691_v5 = vpop.f32.mrf.mxu3 }
 0x565   : > { %v2549_v40 = vmax.f32 %v2472_v60, 0.0 }
 0x56a   : > { %v2473_v45 = vpop.f32.mrf.mxu2 }
 0x56b   : > { %v2474_v15 = vadd.f32 %v2473_v45, %v2345_v32  ;;  %v2230_v32 = vpop.f32.mrf.mxu0 }
 0x56c   : > { %v2693_v42 = vpop.f32.mrf.mxu3 }
 0x56d   : > { %v2550_v46 = vmax.f32 %v2474_v15, 0.0  ;;  %v2791_v44 = vpack.c.bf16 %v2693_v42, %v2691_v5  ;;  %v11583_v42 = vpack.c.bf16 %v10851_v51, %v10848_v58  ;;  %v11585_v51 = vpack.c.bf16 %v10833_v35, %v10830_v21 }
 0x56f   : > { %2515 = vmatmul.bf16.gmra.mxu2 %v11582_v50  ;;  %v2583_v9 = vpack.c.bf16 %v2550_v46, %v2549_v40  ;;  %v2359_v50 = vpop.f32.mrf.mxu1  ;;  %v2224_v40 = vadd.f32 %v2223_v39, %v10770_v41 }
 0x571   : > { %2735 = vmatmul.bf16.gmra.mxu3 %v2583_v9  ;;  %v2353_v20 = vadd.f32 %v2352_v12, %v2224_v40  ;;  %v2231_v40 = vadd.f32 %v2230_v32, %v10770_v41  ;;  %v11584_v32 = vpack.c.bf16 %v10842_v16, %v10839_v25 }
 0x572   : > { %v2476_v23 = vpop.f32.mrf.mxu2 }
 0x573   : > { %v2477_v59 = vadd.f32 %v2476_v23, %v2348_v7  ;;  %v2233_v61 = vpop.f32.mrf.mxu0  ;;  %v2360_v57 = vadd.f32 %v2359_v50, %v2231_v40 }
 0x574   : > { %v2696_v29 = vpop.f32.mrf.mxu3 }
 0x575   : > { %v2551_v15 = vmax.f32 %v2477_v59, 0.0 }
 0x577   : > { %v2362_v31 = vpop.f32.mrf.mxu1 }
 0x57a   : > { %v2478_v14 = vpop.f32.mrf.mxu2 }
 0x57b   : > { %v2479_v45 = vadd.f32 %v2478_v14, %v2350_v18 }
 0x57c   : > { %v2698_v60 = vpop.f32.mrf.mxu3 }
 0x57d   : > { %v2552_v62 = vmax.f32 %v2479_v45, 0.0  ;;  %v2235_v45 = vpop.f32.mrf.mxu0  ;;  %v2792_v39 = vpack.c.bf16 %v2698_v60, %v2696_v29 }
 0x57f   : > { %v2584_v46 = vpack.c.bf16 %v2552_v62, %v2551_v15  ;;  %v2229_v15 = vadd.f32 %v2228_v55, %v10770_v41  ;;  %v2364_v12 = vpop.f32.mrf.mxu1 }
 0x581   : > { %2740 = vmatmul.bf16.gmra.mxu3 %v2584_v46 }
 0x582   : > { %v2481_v1 = vpop.f32.mrf.mxu2 }
 0x583   : > { %v2482_v27 = vadd.f32 %v2481_v1, %v2353_v20  ;;  %v2358_v20 = vadd.f32 %v2357_v11, %v2229_v15  ;;  %v11586_v15 = vpack.c.bf16 %v10824_v26, %v10821_v6 }
 0x584   : > { %v2701_v9 = vpop.f32.mrf.mxu3 }
 0x585   : > { %v2553_v18 = vmax.f32 %v2482_v27, 0.0  ;;  %v2238_v1 = vpop.f32.mrf.mxu0 }
 0x587   : > { %v2367_v27 = vpop.f32.mrf.mxu1 }
 0x58a   : > { %v2483_v23 = vpop.f32.mrf.mxu2 }
 0x58b   : > { %v2484_v7 = vadd.f32 %v2483_v23, %v2355_v37 }
 0x58c   : > { %v2703_v38 = vpop.f32.mrf.mxu3 }
 0x58d   : > { %v2554_v59 = vmax.f32 %v2484_v7, 0.0  ;;  %v2793_v14 = vpack.c.bf16 %v2703_v38, %v2701_v9  ;;  %v2790_v9 = vpack.c.bf16 %v10860_v53, %v10857_v34  ;;  %v2234_v53 = vadd.f32 %v2233_v61, %v10770_v41  ;;  %v2240_v50 = vpop.f32.mrf.mxu0 }
 0x58e   : > { %v2241_v6 = vadd.f32 %v2240_v50, %v10770_v41 }
 0x58f   : > { %2811 = vmatpush.bf16.msra.mxu0 %v2793_v14  ;;  %v2585_v62 = vpack.c.bf16 %v2554_v59, %v2553_v18  ;;  %v2363_v18 = vadd.f32 %v2362_v31, %v2234_v53  ;;  %v2236_v59 = vadd.f32 %v2235_v45, %v10770_v41  ;;  %v2369_v14 = vpop.f32.mrf.mxu1 }
 0x591   : > { %2745 = vmatmul.bf16.gmra.mxu3 %v2585_v62  ;;  %v2365_v58 = vadd.f32 %v2364_v12, %v2236_v59  ;;  %v2239_v12 = vadd.f32 %v2238_v1, %v10770_v41 }
 0x592   : > { %v2486_v46 = vpop.f32.mrf.mxu2 }
 0x593   : > { %2812 = vmatpush.bf16.msra.mxu0 %v2792_v39  ;;  %v2487_v37 = vadd.f32 %v2486_v46, %v2358_v20  ;;  %v2368_v26 = vadd.f32 %v2367_v27, %v2239_v12 }
 0x594   : > { %v10871_v49 = vpop.f32.mrf.mxu3 }
 0x595   : > { %v2555_v23 = vmax.f32 %v2487_v37, 0.0  ;;  %v2243_v25 = vpop.f32.mrf.mxu0 }
 0x596   : > { %v2244_v27 = vadd.f32 %v2243_v25, %v10770_v41 }
 0x597   : > { %2813 = vmatpush.bf16.msra.mxu0 %v2791_v44  ;;  %v2372_v21 = vpop.f32.mrf.mxu1 }
 0x59a   : > { %v2488_v29 = vpop.f32.mrf.mxu2 }
 0x59b   : > { %v2489_v60 = vadd.f32 %v2488_v29, %v2360_v57  ;;  %2814 = vmatpush.bf16.msra.mxu0 %v2790_v9  ;;  %v2370_v9 = vadd.f32 %v2369_v14, %v2241_v6 }
 0x59c   : > { %v10876_v55 = vpop.f32.mrf.mxu3 }
 0x59d   : > { %v2556_v7 = vmax.f32 %v2489_v60, 0.0  ;;  %v2794_v5 = vpack.c.bf16 %v10876_v55, %v10871_v49  ;;  %v2245_v40 = vpop.f32.mrf.mxu0 }
 0x59f   : > { %2815 = vmatpush.bf16.msra.mxu0 %v11583_v42  ;;  %v2586_v11 = vpack.c.bf16 %v2556_v7, %v2555_v23  ;;  %v2374_v29 = vpop.f32.mrf.mxu1 }
 0x5a1   : > { %2750 = vmatmul.bf16.gmra.mxu3 %v2586_v11 }
 0x5a2   : > { %v2491_v34 = vpop.f32.mrf.mxu2 }
 0x5a3   : > { %2816 = vmatpush.bf16.msra.mxu0 %v11584_v32  ;;  %v2492_v62 = vadd.f32 %v2491_v34, %v2363_v18  ;;  %v2373_v32 = vadd.f32 %v2372_v21, %v2244_v27  ;;  %v2246_v18 = vadd.f32 %v2245_v40, %v10770_v41 }
 0x5a4   : > { %v10887_v38 = vpop.f32.mrf.mxu3 }
 0x5a5   : > { %v2557_v46 = vmax.f32 %v2492_v62, 0.0  ;;  %v2248_v11 = vpop.f32.mrf.mxu0  ;;  %v2375_v59 = vadd.f32 %v2374_v29, %v2246_v18 }
 0x5a7   : > { %2817 = vmatpush.bf16.msra.mxu0 %v11585_v51  ;;  %v2377_v50 = vpop.f32.mrf.mxu1 }
 0x5aa   : > { %v2493_v61 = vpop.f32.mrf.mxu2 }
 0x5ab   : > { %v2494_v39 = vadd.f32 %v2493_v61, %v2365_v58  ;;  %2818 = vmatpush.bf16.msra.mxu0 %v11586_v15 }
 0x5ac   : > { %v10896_v16 = vpop.f32.mrf.mxu3 }
 0x5ad   : > { %v2558_v31 = vmax.f32 %v2494_v39, 0.0  ;;  %v2795_v45 = vpack.c.bf16 %v10896_v16, %v10887_v38  ;;  %v2250_v58 = vpop.f32.mrf.mxu0 }
 0x5ae   : > { %2819 = vmatmul.bf16.vlgmr.msra.gmra.mxu0 %v10174_v22 }
 0x5af   : > { %v2587_v35 = vpack.c.bf16 %v2558_v31, %v2557_v46  ;;  %v2379_v25 = vpop.f32.mrf.mxu1  ;;  %v2249_v31 = vadd.f32 %v2248_v11, %v10770_v41 }
 0x5b1   : > { %2755 = vmatmul.bf16.gmra.mxu3 %v2587_v35 }
 0x5b2   : > { %v2496_v44 = vpop.f32.mrf.mxu2 }
 0x5b3   : > { %v2497_v57 = vadd.f32 %v2496_v44, %v2368_v26  ;;  %v2378_v44 = vadd.f32 %v2377_v50, %v2249_v31  ;;  %v2251_v26 = vadd.f32 %v2250_v58, %v10770_v41 }
 0x5b4   : > { %v10902_v20 = vpop.f32.mrf.mxu3 }
 0x5b5   : > { %v2559_v22 = vmax.f32 %v2497_v57, 0.0  ;;  %v2253_v12 = vpop.f32.mrf.mxu0  ;;  %v2380_v40 = vadd.f32 %v2379_v25, %v2251_v26 }
 0x5b7   : > { %v2382_v6 = vpop.f32.mrf.mxu1 }
 0x5ba   : > { %v2498_v37 = vpop.f32.mrf.mxu2 }
 0x5bb   : > { %v2499_v60 = vadd.f32 %v2498_v37, %v2370_v9 }
 0x5bc   : > { %v10905_v23 = vpop.f32.mrf.mxu3 }
 0x5bd   : > { %v2560_v7 = vmax.f32 %v2499_v60, 0.0  ;;  %v2796_v1 = vpack.c.bf16 %v10905_v23, %v10902_v20 }
 0x5be   : > { %2824 = vmatmul.bf16.gmra.mxu0 %v10187_v48 }
 0x5bf   : > { %v2588_v42 = vpack.c.bf16 %v2560_v7, %v2559_v22  ;;  %v2255_v7 = vpop.f32.mrf.mxu0  ;;  %v2384_v11 = vpop.f32.mrf.mxu1 }
 0x5c1   : > { %2760 = vmatmul.bf16.gmra.mxu3 %v2588_v42  ;;  %v2254_v42 = vadd.f32 %v2253_v12, %v10770_v41 }
 0x5c2   : > { %v2501_v53 = vpop.f32.mrf.mxu2 }
 0x5c3   : > { %v2502_v14 = vadd.f32 %v2501_v53, %v2373_v32  ;;  %v2383_v50 = vadd.f32 %v2382_v6, %v2254_v42  ;;  %v2256_v32 = vadd.f32 %v2255_v7, %v10770_v41 }
 0x5c4   : > { %v10911_v34 = vpop.f32.mrf.mxu3 }
 0x5c5   : > { %v2561_v48 = vmax.f32 %v2502_v14, 0.0 }
 0x5c7   : > { %v2258_v18 = vpop.f32.mrf.mxu0 }
 0x5ca   : > { %v2503_v51 = vpop.f32.mrf.mxu2 }
 0x5cb   : > { %v2504_v62 = vadd.f32 %v2503_v51, %v2375_v59  ;;  %v2385_v59 = vadd.f32 %v2384_v11, %v2256_v32 }
 0x5cc   : > { %v10914_v61 = vpop.f32.mrf.mxu3 }
 0x5cd   : > { %v2562_v39 = vmax.f32 %v2504_v62, 0.0  ;;  %v2797_v15 = vpack.c.bf16 %v10914_v61, %v10911_v34  ;;  %v2387_v62 = vpop.f32.mrf.mxu1  ;;  %v11589_v61 = vld [vmem:[#allocation19_spill] sm:$0xff] }
 0x5ce   : > { %2829 = vmatmul.bf16.gmra.mxu0 %v10207_v8 }
 0x5cf   : > { %v2589_v46 = vpack.c.bf16 %v2562_v39, %v2561_v48  ;;  %v2260_v31 = vpop.f32.mrf.mxu0 }
 0x5d0   : > { %v2261_v26 = vadd.f32 %v2260_v31, %v10770_v41 }
 0x5d1   : > { %2765 = vmatmul.bf16.gmra.mxu3 %v2589_v46  ;;  %v2259_v46 = vadd.f32 %v2258_v18, %v10770_v41 }
 0x5d2   : > { %v2506_v35 = vpop.f32.mrf.mxu2 }
 0x5d3   : > { %v2507_v9 = vadd.f32 %v2506_v35, %v2378_v44  ;;  %v2388_v44 = vadd.f32 %v2387_v62, %v2259_v46  ;;  %v11596_v62 = vld [vmem:[#allocation23_spill] sm:$0xff] }
 0x5d4   : > { %v2726_v21 = vpop.f32.mrf.mxu3 }
 0x5d5   : > { %v2563_v60 = vmax.f32 %v2507_v9, 0.0  ;;  %v2389_v6 = vpop.f32.mrf.mxu1 }
 0x5da   : > { %v2508_v57 = vpop.f32.mrf.mxu2 }
 0x5db   : > { %v2509_v37 = vadd.f32 %v2508_v57, %v2380_v40  ;;  %v2390_v40 = vadd.f32 %v2389_v6, %v2261_v26  ;;  %v11598_v26 = vld [vmem:[#allocation32_spill] sm:$0xff] }
 0x5dc   : > { %v2728_v29 = vpop.f32.mrf.mxu3  ;;  %v11599_v6 = vld [vmem:[#allocation24_spill] sm:$0xff] }
 0x5dd   : > { %v2564_v22 = vmax.f32 %v2509_v37, 0.0  ;;  %v2798_v32 = vpack.c.bf16 %v2728_v29, %v2726_v21  ;;  %v11592_v21 = vld [vmem:[#allocation33_spill] sm:$0xff] }
 0x5de   : > { %2834 = vmatmul.bf16.gmra.mxu0 %v10222_v24  ;;  %v11593_v29 = vld [vmem:[#allocation21_spill] sm:$0xff] }
 0x5df   : > { %v2590_v8 = vpack.c.bf16 %v2564_v22, %v2563_v60 }
 0x5e1   : > { %2770 = vmatmul.bf16.gmra.mxu3 %v2590_v8 }
 0x5e2   : > { %v2511_v27 = vpop.f32.mrf.mxu2 }
 0x5e3   : > { %v2512_v14 = vadd.f32 %v2511_v27, %v2383_v50 }
 0x5e4   : > { %v2731_v53 = vpop.f32.mrf.mxu3 }
 0x5e5   : > { %v2565_v39 = vmax.f32 %v2512_v14, 0.0 }
 0x5ea   : > { %v2513_v51 = vpop.f32.mrf.mxu2 }
 0x5eb   : > { %v2514_v58 = vadd.f32 %v2513_v51, %v2385_v59 }
 0x5ec   : > { %v2733_v48 = vpop.f32.mrf.mxu3 }
 0x5ed   : > { %v2566_v25 = vmax.f32 %v2514_v58, 0.0  ;;  %v2799_v50 = vpack.c.bf16 %v2733_v48, %v2731_v53  ;;  %v11594_v53 = vld [vmem:[#allocation22_spill] sm:$0xff]  ;;  %v11595_v58 = vld [vmem:[#allocation29_spill] sm:$0xff] }
 0x5ee   : > { %2839 = vmatmul.bf16.gmra.mxu0 %v10237_v33 }
 0x5ef   : > { %v2591_v24 = vpack.c.bf16 %v2566_v25, %v2565_v39 }
 0x5f1   : > { %2775 = vmatmul.bf16.gmra.mxu3 %v2591_v24  ;;  %v11597_v24 = vld [vmem:[#allocation36_spill] sm:$0xff] }
 0x5f2   : > { %v2516_v35 = vpop.f32.mrf.mxu2 }
 0x5f3   : > { %v2517_v9 = vadd.f32 %v2516_v35, %v2388_v44 }
 0x5f4   : > { %v2736_v12 = vpop.f32.mrf.mxu3 }
 0x5f5   : > { %v2567_v22 = vmax.f32 %v2517_v9, 0.0 }
 0x5fa   : > { %v2518_v57 = vpop.f32.mrf.mxu2 }
 0x5fb   : > { %v2519_v37 = vadd.f32 %v2518_v57, %v2390_v40 }
 0x5fc   : > { %v2738_v60 = vpop.f32.mrf.mxu3 }
 0x5fd   : > { %v2568_v7 = vmax.f32 %v2519_v37, 0.0  ;;  %v2800_v27 = vpack.c.bf16 %v2738_v60, %v2736_v12  ;;  %v11600_v37 = vld [vmem:[#allocation39_spill] sm:$0xff] }
 0x5fe   : > { %2844 = vmatmul.bf16.gmra.mxu0 %v10252_v43 }
 0x5ff   : > { %v2592_v33 = vpack.c.bf16 %v2568_v7, %v2567_v22 }
 0x601   : > { %2780 = vmatmul.bf16.gmra.mxu3 %v2592_v33 }
 0x604   : > { %v2741_v8 = vpop.f32.mrf.mxu3 }
 0x60c   : > { %v2743_v42 = vpop.f32.mrf.mxu3 }
 0x60d   : > { %v2801_v11 = vpack.c.bf16 %v2743_v42, %v2741_v8  ;;  %v11601_v42 = vld [vmem:[#allocation35_spill] sm:$0xff] }
 0x60e   : > { %2849 = vmatmul.bf16.gmra.mxu0 %v10267_v54 }
 0x60f   : > { %2940 = vmatpush.bf16.msra.mxu1 %v2801_v11  ;;  %v11602_v11 = vld [vmem:[#allocation25_spill] sm:$0xff] }
 0x613   : > { %2941 = vmatpush.bf16.msra.mxu1 %v2800_v27 }
 0x614   : > { %v2746_v41 = vpop.f32.mrf.mxu3 }
 0x617   : > { %2942 = vmatpush.bf16.msra.mxu1 %v2799_v50 }
 0x61b   : > { %2943 = vmatpush.bf16.msra.mxu1 %v2798_v32  ;;  %v11603_v32 = vld [vmem:[#allocation42_spill] sm:$0xff] }
 0x61c   : > { %v2748_v18 = vpop.f32.mrf.mxu3 }
 0x61e   : > { %2854 = vmatmul.bf16.gmra.mxu0 %v10282_v63 }
 0x61f   : > { %2944 = vmatpush.bf16.msra.mxu1 %v2797_v15  ;;  %v11590_v15 = vld [vmem:[#allocation30_spill] sm:$0xff] }
 0x623   : > { %2945 = vmatpush.bf16.msra.mxu1 %v2796_v1  ;;  %v11588_v1 = vld [vmem:[#allocation27_spill] sm:$0xff] }
 0x624   : > { %v2751_v43 = vpop.f32.mrf.mxu3 }
 0x627   : > { %2946 = vmatpush.bf16.msra.mxu1 %v2795_v45 }
 0x62b   : > { %2947 = vmatpush.bf16.msra.mxu1 %v2794_v5  ;;  %v2820_v59 = vpop.f32.mrf.mxu0 }
 0x62c   : > { %v2753_v54 = vpop.f32.mrf.mxu3 }
 0x62d   : > { %v2803_v45 = vpack.c.bf16 %v2753_v54, %v2751_v43 }
 0x62e   : > { %2948 = vmatmul.bf16.vlgmr.msra.gmra.mxu1 %v10211_v19  ;;  %2859 = vmatmul.bf16.gmra.mxu0 %v10297_v2 }
 0x633   : > { %v2822_v51 = vpop.f32.mrf.mxu0 }
 0x634   : > { %v2756_v63 = vpop.f32.mrf.mxu3 }
 0x63b   : > { %v2825_v31 = vpop.f32.mrf.mxu0 }
 0x63c   : > { %v2758_v34 = vpop.f32.mrf.mxu3 }
 0x63e   : > { %2953 = vmatmul.bf16.gmra.mxu1 %v10226_v17  ;;  %2864 = vmatmul.bf16.gmra.mxu0 %v10312_v28 }
 0x643   : > { %v2827_v44 = vpop.f32.mrf.mxu0 }
 0x644   : > { %v2761_v20 = vpop.f32.mrf.mxu3 }
 0x64b   : > { %v2830_v22 = vpop.f32.mrf.mxu0 }
 0x64c   : > { %v2763_v23 = vpop.f32.mrf.mxu3 }
 0x64e   : > { %2958 = vmatmul.bf16.gmra.mxu1 %v10241_v36  ;;  %2869 = vmatmul.bf16.gmra.mxu0 %v10327_v13 }
 0x653   : > { %v2832_v8 = vpop.f32.mrf.mxu0 }
 0x654   : > { %v2766_v38 = vpop.f32.mrf.mxu3 }
 0x65c   : > { %v2768_v49 = vpop.f32.mrf.mxu3 }
 0x65e   : > { %2963 = vmatmul.bf16.gmra.mxu1 %v10256_v47  ;;  %2874 = vmatmul.bf16.gmra.mxu0 %v10346_v52  ;;  %v2806_v47 = vpack.c.bf16 %v2768_v49, %v2766_v38  ;;  %v2805_v52 = vpack.c.bf16 %v2763_v23, %v2761_v20 }
 0x664   : > { %v2771_v19 = vpop.f32.mrf.mxu3 }
 0x66c   : > { %v2773_v2 = vpop.f32.mrf.mxu3 }
 0x66d   : > { %v2807_v13 = vpack.c.bf16 %v2773_v2, %v2771_v19 }
 0x66e   : > { %2968 = vmatmul.bf16.gmra.mxu1 %v10271_v56  ;;  %v2804_v56 = vpack.c.bf16 %v2758_v34, %v2756_v63  ;;  %2879 = vmatmul.bf16.gmra.mxu0 %v11595_v58  ;;  %v2835_v63 = vpop.f32.mrf.mxu0  ;;  %v11609_v58 = vld [vmem:[#allocation48_spill] sm:$0xff] }
 0x674   : > { %v2776_v55 = vpop.f32.mrf.mxu3 }
 0x676   : > { %v2837_v2 = vpop.f32.mrf.mxu0 }
 0x67c   : > { %v2778_v17 = vpop.f32.mrf.mxu3 }
 0x67d   : > { %v2808_v36 = vpack.c.bf16 %v2778_v17, %v2776_v55  ;;  %v11604_v55 = vld [vmem:[#allocation38_spill] sm:$0xff] }
 0x67e   : > { %2973 = vmatmul.bf16.gmra.mxu1 %v10286_v10  ;;  %v2802_v10 = vpack.c.bf16 %v2748_v18, %v2746_v41  ;;  %2884 = vmatmul.bf16.gmra.mxu0 %v11598_v26  ;;  %v11605_v17 = vld [vmem:[#allocation26_spill] sm:$0xff] }
 0x684   : > { %v2781_v28 = vpop.f32.mrf.mxu3 }
 0x68c   : > { %v2783_v5 = vpop.f32.mrf.mxu3 }
 0x68d   : > { %v2809_v16 = vpack.c.bf16 %v2783_v5, %v2781_v28 }
 0x68e   : > { %2978 = vmatmul.bf16.gmra.mxu1 %v10301_v30  ;;  %v11587_v30 = vld [vmem:[#allocation18_spill] sm:$0xff]  ;;  %2889 = vmatmul.bf16.gmra.mxu0 %v11601_v42 }
 0x68f   : > { %3069 = vmatpush.bf16.msra.mxu2 %v2809_v16 }
 0x693   : > { %3070 = vmatpush.bf16.msra.mxu2 %v2808_v36 }
 0x697   : > { %3071 = vmatpush.bf16.msra.mxu2 %v2807_v13  ;;  %v11606_v13 = vld [vmem:[#allocation45_spill] sm:$0xff] }
 0x69b   : > { %3072 = vmatpush.bf16.msra.mxu2 %v2806_v47 }
 0x69e   : > { %2983 = vmatmul.bf16.gmra.mxu1 %v10316_v3  ;;  %v11591_v3 = vld [vmem:[#allocation20_spill] sm:$0xff]  ;;  %2894 = vmatmul.bf16.gmra.mxu0 %v11604_v55 }
 0x69f   : > { %3073 = vmatpush.bf16.msra.mxu2 %v2805_v52 }
 0x6a3   : > { %3074 = vmatpush.bf16.msra.mxu2 %v2804_v56 }
 0x6a7   : > { %3075 = vmatpush.bf16.msra.mxu2 %v2803_v45  ;;  %v2840_v45 = vpop.f32.mrf.mxu0 }
 0x6ab   : > { %3076 = vmatpush.bf16.msra.mxu2 %v2802_v10 }
 0x6ae   : > { %3077 = vmatmul.bf16.vlgmr.msra.gmra.mxu2 %v10198_v4  ;;  %2988 = vmatmul.bf16.gmra.mxu1 %v10333_v0  ;;  %v10964_v4 = vld [vmem:[#allocation10 + $0x2] ss:$0 sm:$0xff]  ;;  %v2949_v0 = vpop.f32.mrf.mxu1 }
 0x6af   : > { %v2821_v14 = vadd.f32 %v2820_v59, %v10964_v4  ;;  %v2823_v39 = vadd.f32 %v2822_v51, %v10964_v4  ;;  %v2826_v12 = vadd.f32 %v2825_v31, %v10964_v4  ;;  %v2828_v9 = vadd.f32 %v2827_v44, %v10964_v4 }
 0x6b0   : > { %v2831_v33 = vadd.f32 %v2830_v22, %v10964_v4  ;;  %v2833_v41 = vadd.f32 %v2832_v8, %v10964_v4  ;;  %v2836_v19 = vadd.f32 %v2835_v63, %v10964_v4  ;;  %v2838_v5 = vadd.f32 %v2837_v2, %v10964_v4  ;;  %v11612_v22 = vld [vmem:[#allocation51_spill] sm:$0xff]  ;;  %v11614_v63 = vld [vmem:[#allocation34_spill] sm:$0xff] }
 0x6b1   : > { %v2950_v48 = vadd.f32 %v2949_v0, %v2821_v14 }
 0x6b6   : > { %v2951_v25 = vpop.f32.mrf.mxu1 }
 0x6b7   : > { %v2952_v46 = vadd.f32 %v2951_v25, %v2823_v39 }
 0x6be   : > { %3082 = vmatmul.bf16.gmra.mxu2 %v11587_v30  ;;  %2993 = vmatmul.bf16.gmra.mxu1 %v11588_v1  ;;  %v2954_v35 = vpop.f32.mrf.mxu1 }
 0x6bf   : > { %v2955_v40 = vadd.f32 %v2954_v35, %v2826_v12 }
 0x6c6   : > { %v2956_v57 = vpop.f32.mrf.mxu1 }
 0x6c7   : > { %v2957_v60 = vadd.f32 %v2956_v57, %v2828_v9 }
 0x6ce   : > { %3087 = vmatmul.bf16.gmra.mxu2 %v11589_v61  ;;  %2998 = vmatmul.bf16.gmra.mxu1 %v11590_v15  ;;  %v2959_v7 = vpop.f32.mrf.mxu1 }
 0x6cf   : > { %v2960_v27 = vadd.f32 %v2959_v7, %v2831_v33 }
 0x6d6   : > { %v2961_v50 = vpop.f32.mrf.mxu1 }
 0x6d7   : > { %v2962_v18 = vadd.f32 %v2961_v50, %v2833_v41 }
 0x6de   : > { %3092 = vmatmul.bf16.gmra.mxu2 %v11591_v3  ;;  %3003 = vmatmul.bf16.gmra.mxu1 %v11592_v21  ;;  %v2964_v34 = vpop.f32.mrf.mxu1  ;;  %v2841_v3 = vadd.f32 %v2840_v45, %v10964_v4  ;;  %v2842_v21 = vpop.f32.mrf.mxu0 }
 0x6df   : > { %v2965_v28 = vadd.f32 %v2964_v34, %v2836_v19  ;;  %v2843_v0 = vadd.f32 %v2842_v21, %v10964_v4 }
 0x6e6   : > { %v2966_v36 = vpop.f32.mrf.mxu1  ;;  %v2845_v25 = vpop.f32.mrf.mxu0 }
 0x6e7   : > { %v2967_v47 = vadd.f32 %v2966_v36, %v2838_v5  ;;  %v2846_v44 = vadd.f32 %v2845_v25, %v10964_v4  ;;  %v11621_v25 = vld [vmem:[#allocation60_spill] sm:$0xff] }
 0x6ee   : > { %3097 = vmatmul.bf16.gmra.mxu2 %v11593_v29  ;;  %3008 = vmatmul.bf16.gmra.mxu1 %v11597_v24  ;;  %v2969_v10 = vpop.f32.mrf.mxu1  ;;  %v11607_v29 = vld [vmem:[#allocation41_spill] sm:$0xff]  ;;  %v2847_v26 = vpop.f32.mrf.mxu0 }
 0x6ef   : > { %2899 = vmatmul.bf16.gmra.mxu0 %v11607_v29  ;;  %v2970_v59 = vadd.f32 %v2969_v10, %v2841_v3  ;;  %v2848_v57 = vadd.f32 %v2847_v26, %v10964_v4  ;;  %v11618_v10 = vld [vmem:[#allocation57_spill] sm:$0xff] }
 0x6f6   : > { %v2971_v51 = vpop.f32.mrf.mxu1  ;;  %v2850_v42 = vpop.f32.mrf.mxu0 }
 0x6fe   : > { %3102 = vmatmul.bf16.gmra.mxu2 %v11594_v53  ;;  %3013 = vmatmul.bf16.gmra.mxu1 %v11600_v37  ;;  %v11608_v53 = vld [vmem:[#allocation28_spill] sm:$0xff]  ;;  %v2974_v24 = vpop.f32.mrf.mxu1 }
 0x6ff   : > { %v2975_v9 = vadd.f32 %v2974_v24, %v2846_v44 }
 0x70e   : > { %3107 = vmatmul.bf16.gmra.mxu2 %v11596_v62  ;;  %3018 = vmatmul.bf16.gmra.mxu1 %v11603_v32  ;;  %v2972_v62 = vadd.f32 %v2971_v51, %v2843_v0  ;;  %v11619_v0 = vld [vmem:[#allocation53_spill] sm:$0xff]  ;;  %v11620_v51 = vld [vmem:[#allocation40_spill] sm:$0xff] }
 0x71e   : > { %3112 = vmatmul.bf16.gmra.mxu2 %v11599_v6  ;;  %3023 = vmatmul.bf16.gmra.mxu1 %v11606_v13  ;;  %v11610_v6 = vld [vmem:[#allocation44_spill] sm:$0xff] }
 0x71f   : > { %2904 = vmatmul.bf16.gmra.mxu0 %v11610_v6 }
 0x72e   : > { %3117 = vmatmul.bf16.gmra.mxu2 %v11602_v11  ;;  %3028 = vmatmul.bf16.gmra.mxu1 %v11609_v58 }
 0x731   : > { %v3078_v43 = vpop.f32.mrf.mxu2 }
 0x732   : > { %v3079_v54 = vadd.f32 %v3078_v43, %v2950_v48  ;;  %v2852_v43 = vpop.f32.mrf.mxu0 }
 0x734   : > { %v3198_v38 = vmax.f32 %v3079_v54, 0.0  ;;  %v11613_v54 = vld [vmem:[#allocation47_spill] sm:$0xff] }
 0x735   : > { %2909 = vmatmul.bf16.gmra.mxu0 %v11613_v54 }
 0x739   : > { %v3080_v20 = vpop.f32.mrf.mxu2 }
 0x73a   : > { %v3081_v23 = vadd.f32 %v3080_v20, %v2952_v46  ;;  %v2855_v2 = vpop.f32.mrf.mxu0 }
 0x73c   : > { %v3199_v49 = vmax.f32 %v3081_v23, 0.0 }
 0x73e   : > { %3122 = vmatmul.bf16.gmra.mxu2 %v11605_v17  ;;  %v10985_v16 = vpack.c.bf16 %v3199_v49, %v3198_v38  ;;  %v11615_v38 = vld [vmem:[#allocation54_spill] sm:$0xff] }
 0x741   : > { %v3083_v52 = vpop.f32.mrf.mxu2 }
 0x742   : > { %v3084_v56 = vadd.f32 %v3083_v52, %v2955_v40  ;;  %v11611_v40 = vld [vmem:[#allocation31_spill] sm:$0xff]  ;;  %v2857_v13 = vpop.f32.mrf.mxu0  ;;  %v11617_v52 = vld [vmem:[#allocation37_spill] sm:$0xff] }
 0x744   : > { %v3200_v61 = vmax.f32 %v3084_v56, 0.0 }
 0x749   : > { %v3085_v30 = vpop.f32.mrf.mxu2 }
 0x74a   : > { %v3086_v1 = vadd.f32 %v3085_v30, %v2957_v60  ;;  %v2976_v60 = vpop.f32.mrf.mxu1  ;;  %3033 = vmatmul.bf16.gmra.mxu1 %v11612_v22 }
 0x74b   : > { %v2977_v7 = vadd.f32 %v2976_v60, %v2848_v57 }
 0x74c   : > { %v3201_v15 = vmax.f32 %v3086_v1, 0.0  ;;  %v2860_v1 = vpop.f32.mrf.mxu0 }
 0x74d   : > { %v2861_v58 = vadd.f32 %v2860_v1, %v10964_v4 }
 0x74e   : > { %3127 = vmatmul.bf16.gmra.mxu2 %v11608_v53  ;;  %v10992_v14 = vpack.c.bf16 %v3201_v15, %v3200_v61 }
 0x751   : > { %v3088_v48 = vpop.f32.mrf.mxu2 }
 0x752   : > { %v3089_v39 = vadd.f32 %v3088_v48, %v2960_v27  ;;  %v2979_v11 = vpop.f32.mrf.mxu1 }
 0x754   : > { %v3202_v35 = vmax.f32 %v3089_v39, 0.0 }
 0x759   : > { %v3090_v46 = vpop.f32.mrf.mxu2 }
 0x75a   : > { %v3091_v31 = vadd.f32 %v3090_v46, %v2962_v18  ;;  %v2851_v18 = vadd.f32 %v2850_v42, %v10964_v4  ;;  %v2981_v23 = vpop.f32.mrf.mxu1  ;;  %3038 = vmatmul.bf16.gmra.mxu1 %v11615_v38 }
 0x75c   : > { %v3203_v12 = vmax.f32 %v3091_v31, 0.0  ;;  %v2980_v34 = vadd.f32 %v2979_v11, %v2851_v18  ;;  %v2853_v11 = vadd.f32 %v2852_v43, %v10964_v4 }
 0x75e   : > { %3132 = vmatmul.bf16.gmra.mxu2 %v11611_v40  ;;  %v10999_v37 = vpack.c.bf16 %v3203_v12, %v3202_v35  ;;  %v11622_v40 = vld [vmem:[#allocation56_spill] sm:$0xff]  ;;  %v2982_v18 = vadd.f32 %v2981_v23, %v2853_v11 }
 0x761   : > { %v3093_v33 = vpop.f32.mrf.mxu2 }
 0x762   : > { %v3094_v8 = vadd.f32 %v3093_v33, %v2965_v28  ;;  %v2984_v55 = vpop.f32.mrf.mxu1  ;;  %v2856_v33 = vadd.f32 %v2855_v2, %v10964_v4 }
 0x764   : > { %v3204_v50 = vmax.f32 %v3094_v8, 0.0 }
 0x769   : > { %v3095_v27 = vpop.f32.mrf.mxu2 }
 0x76a   : > { %v3096_v41 = vadd.f32 %v3095_v27, %v2967_v47  ;;  %v11616_v47 = vld [vmem:[#allocation50_spill] sm:$0xff]  ;;  %v2986_v45 = vpop.f32.mrf.mxu1  ;;  %3043 = vmatmul.bf16.gmra.mxu1 %v11618_v10  ;;  %v2985_v27 = vadd.f32 %v2984_v55, %v2856_v33  ;;  %v11631_v33 = vld [vmem:[#allocation52_spill] sm:$0xff] }
 0x76b   : > { %2914 = vmatmul.bf16.gmra.mxu0 %v11616_v47  ;;  %v11625_v47 = vld [vmem:[#allocation59_spill] sm:$0xff] }
 0x76c   : > { %v3205_v32 = vmax.f32 %v3096_v41, 0.0  ;;  %v2858_v41 = vadd.f32 %v2857_v13, %v10964_v4 }
 0x76e   : > { %3137 = vmatmul.bf16.gmra.mxu2 %v11614_v63  ;;  %v11005_v20 = vpack.c.bf16 %v3205_v32, %v3204_v50  ;;  %v2987_v63 = vadd.f32 %v2986_v45, %v2858_v41  ;;  %v11627_v45 = vld [vmem:[#allocation65_spill] sm:$0xff] }
 0x771   : > { %v3098_v49 = vpop.f32.mrf.mxu2 }
 0x772   : > { %v3099_v19 = vadd.f32 %v3098_v49, %v2970_v59  ;;  %v2989_v61 = vpop.f32.mrf.mxu1  ;;  %v2862_v59 = vpop.f32.mrf.mxu0 }
 0x773   : > { %v2990_v24 = vadd.f32 %v2989_v61, %v2861_v58 }
 0x774   : > { %v3206_v5 = vmax.f32 %v3099_v19, 0.0 }
 0x779   : > { %v3100_v17 = vpop.f32.mrf.mxu2 }
 0x77a   : > { %v3101_v28 = vadd.f32 %v3100_v17, %v2972_v62  ;;  %v2863_v62 = vadd.f32 %v2862_v59, %v10964_v4  ;;  %v2991_v39 = vpop.f32.mrf.mxu1  ;;  %3048 = vmatmul.bf16.gmra.mxu1 %v11621_v25  ;;  %v2865_v35 = vpop.f32.mrf.mxu0 }
 0x77b   : > { %2919 = vmatmul.bf16.gmra.mxu0 %v11619_v0  ;;  %v2866_v26 = vadd.f32 %v2865_v35, %v10964_v4 }
 0x77c   : > { %v3207_v36 = vmax.f32 %v3101_v28, 0.0  ;;  %v2992_v46 = vadd.f32 %v2991_v39, %v2863_v62  ;;  %v11628_v62 = vld [vmem:[#allocation62_spill] sm:$0xff]  ;;  %v11629_v39 = vld [vmem:[#allocation49_spill] sm:$0xff] }
 0x77e   : > { %3142 = vmatmul.bf16.gmra.mxu2 %v11617_v52  ;;  %v11010_v56 = vpack.c.bf16 %v3207_v36, %v3206_v5  ;;  %v11626_v52 = vld [vmem:[#allocation46_spill] sm:$0xff] }
 0x781   : > { %v3103_v30 = vpop.f32.mrf.mxu2 }
 0x782   : > { %v3104_v15 = vadd.f32 %v3103_v30, %v2975_v9  ;;  %v2994_v12 = vpop.f32.mrf.mxu1  ;;  %v2867_v6 = vpop.f32.mrf.mxu0  ;;  %v11623_v9 = vld [vmem:[#allocation43_spill] sm:$0xff] }
 0x783   : > { %v2995_v57 = vadd.f32 %v2994_v12, %v2866_v26  ;;  %v2868_v60 = vadd.f32 %v2867_v6, %v10964_v4 }
 0x784   : > { %v3208_v29 = vmax.f32 %v3104_v15, 0.0 }
 0x789   : > { %v3105_v3 = vpop.f32.mrf.mxu2 }
 0x78a   : > { %v3106_v21 = vadd.f32 %v3105_v3, %v2977_v7  ;;  %v2996_v22 = vpop.f32.mrf.mxu1  ;;  %v11624_v7 = vld [vmem:[#allocation63_spill] sm:$0xff]  ;;  %v2870_v50 = vpop.f32.mrf.mxu0 }
 0x78b   : > { %2924 = vmatmul.bf16.gmra.mxu0 %v11622_v40  ;;  %3053 = vmatmul.bf16.gmra.mxu1 %v11624_v7  ;;  %v2997_v8 = vadd.f32 %v2996_v22, %v2868_v60  ;;  %v2871_v2 = vadd.f32 %v2870_v50, %v10964_v4 }
 0x78c   : > { %v3209_v53 = vmax.f32 %v3106_v21, 0.0 }
 0x78e   : > { %3147 = vmatmul.bf16.gmra.mxu2 %v11620_v51  ;;  %v3287_v48 = vpack.c.bf16 %v3209_v53, %v3208_v29 }
 0x791   : > { %v3108_v31 = vpop.f32.mrf.mxu2 }
 0x792   : > { %v2999_v32 = vpop.f32.mrf.mxu1  ;;  %v3109_v17 = vadd.f32 %v3108_v31, %v2980_v34  ;;  %v2872_v36 = vpop.f32.mrf.mxu0 }
 0x793   : > { %v3000_v13 = vadd.f32 %v2999_v32, %v2871_v2  ;;  %v2873_v23 = vadd.f32 %v2872_v36, %v10964_v4 }
 0x794   : > { %v3210_v30 = vmax.f32 %v3109_v17, 0.0 }
 0x799   : > { %v3110_v44 = vpop.f32.mrf.mxu2 }
 0x79a   : > { %v3111_v49 = vadd.f32 %v3110_v44, %v2982_v18  ;;  %v3001_v10 = vpop.f32.mrf.mxu1  ;;  %v2875_v3 = vpop.f32.mrf.mxu0 }
 0x79b   : > { %2929 = vmatmul.bf16.gmra.mxu0 %v11625_v47  ;;  %3058 = vmatmul.bf16.gmra.mxu1 %v11627_v45  ;;  %v3002_v1 = vadd.f32 %v3001_v10, %v2873_v23  ;;  %v2876_v51 = vadd.f32 %v2875_v3, %v10964_v4 }
 0x79c   : > { %v3211_v43 = vmax.f32 %v3111_v49, 0.0 }
 0x79e   : > { %3152 = vmatmul.bf16.gmra.mxu2 %v11623_v9  ;;  %v3288_v15 = vpack.c.bf16 %v3211_v43, %v3210_v30  ;;  %v11633_v43 = vld [vmem:[#allocation58_spill] sm:$0xff] }
 0x7a1   : > { %v3113_v42 = vpop.f32.mrf.mxu2 }
 0x7a2   : > { %v3114_v54 = vadd.f32 %v3113_v42, %v2985_v27  ;;  %v3004_v21 = vpop.f32.mrf.mxu1  ;;  %v2877_v58 = vpop.f32.mrf.mxu0 }
 0x7a3   : > { %v3005_v25 = vadd.f32 %v3004_v21, %v2876_v51 }
 0x7a4   : > { %v3212_v28 = vmax.f32 %v3114_v54, 0.0 }
 0x7a9   : > { %v3115_v38 = vpop.f32.mrf.mxu2 }
 0x7aa   : > { %v3116_v19 = vadd.f32 %v3115_v38, %v2987_v63  ;;  %v3006_v35 = vpop.f32.mrf.mxu1 }
 0x7ab   : > { %2934 = vmatmul.bf16.gmra.mxu0 %v11628_v62 }
 0x7ac   : > { %v3213_v5 = vmax.f32 %v3116_v19, 0.0 }
 0x7ae   : > { %v3289_v55 = vpack.c.bf16 %v3213_v5, %v3212_v28  ;;  %3157 = vmatmul.bf16.gmra.mxu2 %v11626_v52 }
 0x7b0   : > { %3306 = vmatpush.bf16.msra.mxu3 %v3289_v55 }
 0x7b1   : > { %v3118_v34 = vpop.f32.mrf.mxu2 }
 0x7b2   : > { %v3119_v61 = vadd.f32 %v3118_v34, %v2990_v24  ;;  %v2878_v24 = vadd.f32 %v2877_v58, %v10964_v4  ;;  %v3009_v26 = vpop.f32.mrf.mxu1  ;;  %v11634_v34 = vld [vmem:[#allocation61_spill] sm:$0xff] }
 0x7b4   : > { %3307 = vmatpush.bf16.msra.mxu3 %v3288_v15  ;;  %v3214_v59 = vmax.f32 %v3119_v61, 0.0 }
 0x7b8   : > { %3308 = vmatpush.bf16.msra.mxu3 %v3287_v48  ;;  %v11630_v48 = vld [vmem:[#allocation67_spill] sm:$0xff] }
 0x7b9   : > { %v3120_v29 = vpop.f32.mrf.mxu2  ;;  %3063 = vmatmul.bf16.gmra.mxu1 %v11630_v48 }
 0x7ba   : > { %v3121_v53 = vadd.f32 %v3120_v29, %v2992_v46  ;;  %v3007_v46 = vadd.f32 %v3006_v35, %v2878_v24 }
 0x7bc   : > { %v3215_v0 = vmax.f32 %v3121_v53, 0.0  ;;  %3309 = vmatpush.bf16.msra.mxu3 %v11010_v56  ;;  %v2880_v56 = vpop.f32.mrf.mxu0 }
 0x7bd   : > { %v2881_v22 = vadd.f32 %v2880_v56, %v10964_v4 }
 0x7be   : > { %3162 = vmatmul.bf16.gmra.mxu2 %v11629_v39  ;;  %v11036_v31 = vpack.c.bf16 %v3215_v0, %v3214_v59  ;;  %v11635_v59 = vld [vmem:[#allocation64_spill] sm:$0xff] }
 0x7c0   : > { %3310 = vmatpush.bf16.msra.mxu3 %v11005_v20  ;;  %v3010_v20 = vadd.f32 %v3009_v26, %v2881_v22 }
 0x7c1   : > { %v3123_v12 = vpop.f32.mrf.mxu2 }
 0x7c2   : > { %v3124_v44 = vadd.f32 %v3123_v12, %v2995_v57 }
 0x7c4   : > { %3311 = vmatpush.bf16.msra.mxu3 %v10999_v37  ;;  %v3216_v9 = vmax.f32 %v3124_v44, 0.0  ;;  %v11044_v7 = vpop.f32.mrf.mxu0  ;;  %v11049_v37 = vpop.f32.mrf.mxu1 }
 0x7c8   : > { %3312 = vmatpush.bf16.msra.mxu3 %v10992_v14 }
 0x7c9   : > { %v3125_v6 = vpop.f32.mrf.mxu2 }
 0x7ca   : > { %v3126_v40 = vadd.f32 %v3125_v6, %v2997_v8 }
 0x7cc   : > { %v3217_v60 = vmax.f32 %v3126_v40, 0.0  ;;  %3313 = vmatpush.bf16.msra.mxu3 %v10985_v16  ;;  %v2885_v14 = vpop.f32.mrf.mxu0  ;;  %v11051_v27 = vpop.f32.mrf.mxu1  ;;  %v11632_v16 = vld [vmem:[#allocation55_spill] sm:$0xff] }
 0x7ce   : > { %3167 = vmatmul.bf16.gmra.mxu2 %v11631_v33  ;;  %v11047_v57 = vpack.c.bf16 %v3217_v60, %v3216_v9  ;;  %v2886_v33 = vadd.f32 %v2885_v14, %v10964_v4 }
 0x7d1   : > { %v3128_v42 = vpop.f32.mrf.mxu2 }
 0x7d2   : > { %v3129_v11 = vadd.f32 %v3128_v42, %v3000_v13 }
 0x7d4   : > { %v3218_v50 = vmax.f32 %v3129_v11, 0.0  ;;  %v2887_v18 = vpop.f32.mrf.mxu0  ;;  %v3016_v63 = vpop.f32.mrf.mxu1 }
 0x7d9   : > { %v3130_v8 = vpop.f32.mrf.mxu2 }
 0x7da   : > { %v3131_v41 = vadd.f32 %v3130_v8, %v3002_v1 }
 0x7dc   : > { %v3219_v32 = vmax.f32 %v3131_v41, 0.0  ;;  %v2890_v19 = vpop.f32.mrf.mxu0  ;;  %v3019_v17 = vpop.f32.mrf.mxu1 }
 0x7dd   : > { %v2891_v6 = vadd.f32 %v2890_v19, %v10964_v4  ;;  %v3015_v19 = vadd.f32 %v11051_v27, %v2886_v33 }
 0x7de   : > { %3172 = vmatmul.bf16.gmra.mxu2 %v11632_v16  ;;  %v11054_v54 = vpack.c.bf16 %v3219_v32, %v3218_v50 }
 0x7df   : > { %v3020_v11 = vadd.f32 %v3019_v17, %v2891_v6 }
 0x7e1   : > { %v3133_v38 = vpop.f32.mrf.mxu2 }
 0x7e2   : > { %v3134_v49 = vadd.f32 %v3133_v38, %v3005_v25 }
 0x7e4   : > { %v3220_v2 = vmax.f32 %v3134_v49, 0.0  ;;  %v2892_v47 = vpop.f32.mrf.mxu0  ;;  %v3021_v52 = vpop.f32.mrf.mxu1  ;;  %v2883_v49 = vadd.f32 %v11044_v7, %v10964_v4 }
 0x7e5   : > { %v2893_v40 = vadd.f32 %v2892_v47, %v10964_v4 }
 0x7e7   : > { %v3022_v8 = vadd.f32 %v3021_v52, %v2893_v40 }
 0x7e9   : > { %v3135_v28 = vpop.f32.mrf.mxu2 }
 0x7ea   : > { %v3136_v5 = vadd.f32 %v3135_v28, %v3007_v46  ;;  %v11636_v46 = vld [vmem:[#allocation66_spill] sm:$0xff] }
 0x7ec   : > { %v3221_v36 = vmax.f32 %v3136_v5, 0.0  ;;  %v2895_v10 = vpop.f32.mrf.mxu0  ;;  %v3024_v45 = vpop.f32.mrf.mxu1 }
 0x7ed   : > { %v2896_v56 = vadd.f32 %v2895_v10, %v10964_v4  ;;  %v3012_v10 = vadd.f32 %v11049_v37, %v2883_v49 }
 0x7ee   : > { %3177 = vmatmul.bf16.gmra.mxu2 %v11633_v43  ;;  %v11057_v55 = vpack.c.bf16 %v3221_v36, %v3220_v2 }
 0x7ef   : > { %v3025_v9 = vadd.f32 %v3024_v45, %v2896_v56 }
 0x7f1   : > { %v3138_v13 = vpop.f32.mrf.mxu2 }
 0x7f2   : > { %v11059_v23 = vadd.f32 %v3138_v13, %v3010_v20  ;;  %v2888_v20 = vadd.f32 %v2887_v18, %v10964_v4 }
 0x7f4   : > { %v2897_v1 = vpop.f32.mrf.mxu0  ;;  %v3026_v61 = vpop.f32.mrf.mxu1  ;;  %v3017_v28 = vadd.f32 %v3016_v63, %v2888_v20 }
 0x7f5   : > { %v2898_v60 = vadd.f32 %v2897_v1, %v10964_v4 }
 0x7f7   : > { %v3027_v50 = vadd.f32 %v3026_v61, %v2898_v60 }
 0x7f9   : > { %v3140_v30 = vpop.f32.mrf.mxu2 }
 0x7fa   : > { %v3141_v63 = vadd.f32 %v3140_v30, %v3012_v10 }
 0x7fc   : > { %v2900_v3 = vpop.f32.mrf.mxu0  ;;  %v3029_v21 = vpop.f32.mrf.mxu1 }
 0x7fd   : > { %v2901_v0 = vadd.f32 %v2900_v3, %v10964_v4 }
 0x7fe   : > { %3182 = vmatmul.bf16.gmra.mxu2 %v11634_v34 }
 0x7ff   : > { %v3030_v58 = vadd.f32 %v3029_v21, %v2901_v0  ;;  %v3223_v21 = vmax.f32 %v3141_v63, 0.0  ;;  %v3222_v0 = vmax.f32 %v11059_v23, 0.0 }
 0x801   : > { %v3143_v15 = vpop.f32.mrf.mxu2 }
 0x802   : > { %v3144_v45 = vadd.f32 %v3143_v15, %v3015_v19  ;;  %v3294_v15 = vpack.c.bf16 %v3223_v21, %v3222_v0 }
 0x804   : > { %v11062_v53 = vpop.f32.mrf.mxu0  ;;  %v11066_v51 = vpop.f32.mrf.mxu1  ;;  %v3224_v3 = vmax.f32 %v3144_v45, 0.0 }
 0x809   : > { %v3145_v29 = vpop.f32.mrf.mxu2 }
 0x80a   : > { %v3146_v17 = vadd.f32 %v3145_v29, %v3017_v28 }
 0x80c   : > { %v2905_v39 = vpop.f32.mrf.mxu0  ;;  %v3034_v25 = vpop.f32.mrf.mxu1  ;;  %v3225_v1 = vmax.f32 %v3146_v17, 0.0 }
 0x80d   : > { %v2906_v35 = vadd.f32 %v2905_v39, %v10964_v4 }
 0x80e   : > { %3187 = vmatmul.bf16.gmra.mxu2 %v11635_v59  ;;  %v3295_v29 = vpack.c.bf16 %v3225_v1, %v3224_v3 }
 0x80f   : > { %v3035_v12 = vadd.f32 %v3034_v25, %v2906_v35 }
 0x811   : > { %v3148_v62 = vpop.f32.mrf.mxu2 }
 0x812   : > { %v3149_v5 = vadd.f32 %v3148_v62, %v3020_v11 }
 0x814   : > { %v11069_v48 = vpop.f32.mrf.mxu0  ;;  %v11072_v44 = vpop.f32.mrf.mxu1  ;;  %v3226_v7 = vmax.f32 %v3149_v5, 0.0 }
 0x819   : > { %v3150_v24 = vpop.f32.mrf.mxu2 }
 0x81a   : > { %v3151_v16 = vadd.f32 %v3150_v24, %v3022_v8 }
 0x81c   : > { %v2910_v22 = vpop.f32.mrf.mxu0  ;;  %v3039_v42 = vpop.f32.mrf.mxu1  ;;  %v3227_v47 = vmax.f32 %v3151_v16, 0.0 }
 0x81d   : > { %v2911_v14 = vadd.f32 %v2910_v22, %v10964_v4 }
 0x81e   : > { %3192 = vmatmul.bf16.gmra.mxu2 %v11636_v46  ;;  %v3296_v61 = vpack.c.bf16 %v3227_v47, %v3226_v7 }
 0x81f   : > { %v3040_v52 = vadd.f32 %v3039_v42, %v2911_v14 }
 0x821   : > { %v3153_v26 = vpop.f32.mrf.mxu2 }
 0x822   : > { %v3154_v41 = vadd.f32 %v3153_v26, %v3025_v9 }
 0x824   : > { %v3228_v2 = vmax.f32 %v3154_v41, 0.0  ;;  %v11084_v18 = vpop.f32.mrf.mxu0  ;;  %v11086_v13 = vpop.f32.mrf.mxu1  ;;  %v3246_v41 = vlaneseq }
 0x826   : > { %vm6587_vm11 = vcmp.lt.s32.totalorder %v3246_v41, 256 }
 0x829   : > { %v3155_v32 = vpop.f32.mrf.mxu2 }
 0x82a   : > { %v3156_v38 = vadd.f32 %v3155_v32, %v3027_v50  ;;  %v3247_v50 = vand.u32 127, %v3246_v41  ;;  %v11125_v32 = vstv %s11121_s27  ;;  %s11643_s27 = smov (!%p3263_p1, %s11121_s27), 1 }
 0x82b   : > { %s3265_s7 = scvt.s32.f32 %s11643_s27 }
 0x82c   : > { %v3229_v36 = vmax.f32 %v3156_v38, 0.0  ;;  %v2915_v59 = vpop.f32.mrf.mxu0  ;;  %v3044_v37 = vpop.f32.mrf.mxu1  ;;  %vm3251_vm0 = vcmp.lt.s32.totalorder %v3247_v50, %v11125_v32  ;;  %v9828_v38 = vmov 1.0|1.0  }
 0x82d   : > { %v2916_v39 = vadd.f32 %v2915_v59, %v10964_v4  ;;  %vm7072_vm1 = vmpackc.low %vm3251_vm0, %vm3251_vm0 }
 0x82e   : > { %v3297_v43 = vpack.c.bf16 %v3229_v36, %v3228_v2  ;;  %7073 = vmatmul.msk.bf16.vlgmr.msra.gmra.mxu3 %vm7072_vm1, %v9828_v38  ;;  %v3248_v2 = vadd.s32 128, %v3247_v50 }
 0x82f   : > { %v3045_v30 = vadd.f32 %v3044_v37, %v2916_v39 }
 0x830   : > { %3319 = vmatpush.bf16.msrb.mxu3 %v3297_v43  ;;  %vm3252_vm2 = vcmp.lt.s32.totalorder %v3248_v2, %v11125_v32  ;;  %v3266_v2 = vstv %s3265_s7 }
 0x831   : > { %v3158_v27 = vpop.f32.mrf.mxu2  ;;  %vm7074_vm3 = vmpackc.low %vm3252_vm2, %vm3252_vm2  ;;  %9603 = vrcp.f32 %v3266_v2  ;;  %vm3272_vm5 = vweird.f32 %v3266_v2 }
 0x832   : > { %v11089_v34 = vadd.f32 %v3158_v27, %v3030_v58 }
 0x834   : > { %3320 = vmatpush.bf16.msrb.mxu3 %v3296_v61  ;;  %v11096_v25 = vpop.f32.mrf.mxu0  ;;  %v11100_v35 = vpop.f32.mrf.mxu1 }
 0x838   : > { %3321 = vmatpush.bf16.msrb.mxu3 %v3295_v29 }
 0x839   : > { %v11092_v62 = vpop.f32.mrf.mxu2 }
 0x83c   : > { %3322 = vmatpush.bf16.msrb.mxu3 %v3294_v15  ;;  %v2920_v46 = vpop.f32.mrf.mxu0 }
 0x83d   : > { %v2921_v56 = vadd.f32 %v2920_v46, %v10964_v4 }
 0x840   : > { %3323 = vmatpush.bf16.msrb.mxu3 %v11057_v55  ;;  %v3049_v55 = vpop.f32.mrf.mxu1 }
 0x841   : > { %v3163_v58 = vpop.f32.mrf.mxu2  ;;  %v3050_v26 = vadd.f32 %v3049_v55, %v2921_v56  ;;  %v11140_v55 = vadd.s32 256, %v3247_v50 }
 0x842   : > { %v11098_v24 = vadd.f32 %v3163_v58, %v3035_v12 }
 0x843   : > { %vm3253_vm4 = vcmp.lt.s32.totalorder %v11140_v55, %v11125_v32  ;;  %v8844_v32 = vld [vmem:[#allocation9 + $0x9c] sm:$0xf0] }
 0x844   : > { %3324 = vmatpush.bf16.msrb.mxu3 %v11054_v54  ;;  %v2922_v54 = vpop.f32.mrf.mxu0  ;;  %vm7076_vm9 = vmpackc.low %vm3253_vm4, %vm3253_vm4 }
 0x845   : > { %v2923_v46 = vadd.f32 %v2922_v54, %v10964_v4 }
 0x848   : > { %3325 = vmatpush.bf16.msrb.mxu3 %v11047_v57  ;;  %v11116_v22 = vpop.f32.mrf.mxu1 }
 0x849   : > { %v11104_v23 = vpop.f32.mrf.mxu2  ;;  %v3052_v54 = vadd.f32 %v11116_v22, %v2923_v46  ;;  %v3230_v46 = vmax.f32 %v11089_v34, 0.0  ;;  %v7144_v34 = vld [vmem:[#allocation9 + $0x100] sm:$0xf] }
 0x84c   : > { %3326 = vmatpush.bf16.msrb.mxu3 %v11036_v31  ;;  %v2925_v33 = vpop.f32.mrf.mxu0 }
 0x84d   : > { %v2926_v21 = vadd.f32 %v2925_v33, %v10964_v4 }
 0x84f   : > { %7075 = vmatmul.msk.bf16.vlgmr.msrb.gmra.mxu3 %vm7074_vm3, %v9828_v38 }
 0x850   : > { %v3054_v31 = vpop.f32.mrf.mxu1 }
 0x851   : > { %v3168_v6 = vpop.f32.mrf.mxu2  ;;  %v3055_v56 = vadd.f32 %v3054_v31, %v2926_v21 }
 0x852   : > { %v11108_v40 = vadd.f32 %v3168_v6, %v3040_v52 }
 0x854   : > { %v2927_v8 = vpop.f32.mrf.mxu0 }
 0x855   : > { %v2928_v29 = vadd.f32 %v2927_v8, %v10964_v4 }
 0x858   : > { %v3056_v16 = vpop.f32.mrf.mxu1 }
 0x859   : > { %v11110_v12 = vpop.f32.mrf.mxu2 }
 0x85c   : > { %v2930_v19 = vpop.f32.mrf.mxu0 }
 0x85d   : > { %v2931_v27 = vadd.f32 %v2930_v19, %v10964_v4 }
 0x860   : > { %v3059_v28 = vpop.f32.mrf.mxu1 }
 0x861   : > { %v3173_v9 = vpop.f32.mrf.mxu2  ;;  %v3060_v59 = vadd.f32 %v3059_v28, %v2931_v27  ;;  %v2918_v28 = vadd.f32 %v11096_v25, %v10964_v4 }
 0x862   : > { %v11112_v60 = vadd.f32 %v3173_v9, %v3045_v30 }
 0x864   : > { %v2932_v36 = vpop.f32.mrf.mxu0 }
 0x865   : > { %v2933_v63 = vadd.f32 %v2932_v36, %v10964_v4 }
 0x868   : > { %v3061_v17 = vpop.f32.mrf.mxu1 }
 0x869   : > { %v11114_v57 = vpop.f32.mrf.mxu2  ;;  %v3062_v0 = vadd.f32 %v3061_v17, %v2933_v63  ;;  %v2913_v17 = vadd.f32 %v11084_v18, %v10964_v4 }
 0x86c   : > { %v2935_v47 = vpop.f32.mrf.mxu0 }
 0x86d   : > { %v2936_v10 = vadd.f32 %v2935_v47, %v10964_v4 }
 0x870   : > { %v3064_v52 = vpop.f32.mrf.mxu1 }
 0x871   : > { %v3178_v20 = vpop.f32.mrf.mxu2  ;;  %v3065_v1 = vadd.f32 %v3064_v52, %v2936_v10 }
 0x872   : > { %v11118_v42 = vadd.f32 %v3178_v20, %v3050_v26  ;;  %v3057_v26 = vadd.f32 %v3056_v16, %v2928_v29 }
 0x874   : > { %v2937_v7 = vpop.f32.mrf.mxu0 }
 0x875   : > { %v2938_v61 = vadd.f32 %v2937_v7, %v10964_v4  ;;  %v3278_v7 = vand.u32 2147483648, %v3266_v2 }
 0x878   : > { %v3066_v3 = vpop.f32.mrf.mxu1 }
 0x879   : > { %v3180_v11 = vpop.f32.mrf.mxu2  ;;  %v3067_v15 = vadd.f32 %v3066_v3, %v2938_v61  ;;  %v2903_v61 = vadd.f32 %v11062_v53, %v10964_v4 }
 0x87a   : > { %v3181_v16 = vadd.f32 %v3180_v11, %v3052_v54  ;;  %v3042_v11 = vadd.f32 %v11086_v13, %v2913_v17  ;;  %v3236_v13 = vmax.f32 %v11112_v60, 0.0  ;;  %v7096_v54 = vld [vmem:[#allocation9 + $0x40] sm:$0xf] }
 0x87c   : > { %v3239_v52 = vmax.f32 %v3181_v16, 0.0  ;;  %v3171_v27 = vadd.f32 %v11110_v12, %v3042_v11  ;;  %v7146_v11 = vld [vmem:[#allocation9 + $0x120] sm:$0xf0] }
 0x87e   : > { %v3235_v29 = vmax.f32 %v3171_v27, 0.0 }
 0x881   : > { %v3183_v49 = vpop.f32.mrf.mxu2 }
 0x882   : > { %v3184_v31 = vadd.f32 %v3183_v49, %v3055_v56  ;;  %v2908_v49 = vadd.f32 %v11069_v48, %v10964_v4 }
 0x884   : > { %v3240_v47 = vmax.f32 %v3184_v31, 0.0  ;;  %v3037_v48 = vadd.f32 %v11072_v44, %v2908_v49  ;;  %v8840_v31 = vld [vmem:[#allocation9 + $0x5c] sm:$0xf0]  ;;  %v8850_v49 = vld [vmem:[#allocation9 + $0x104] sm:$0xf] }
 0x885   : > { %v7097_v16 = vor.u32 %v8840_v31, %v7096_v54  ;;  %v8837_v54 = vld [vmem:[#allocation9 + $0x24] sm:$0xf0]  ;;  %v8863_v31 = vld [vmem:[#allocation9 + $0x1cc] sm:$0xf] }
 0x886   : > { %v3166_v21 = vadd.f32 %v11104_v23, %v3037_v48  ;;  %v7192_v23 = vld [vmem:[#allocation9 + $0x1c0] sm:$0xf]  ;;  %v7114_v48 = vld [vmem:[#allocation9 + $0xa0] sm:$0xf0] }
 0x888   : > { %v3233_v44 = vmax.f32 %v3166_v21, 0.0 }
 0x889   : > { %v3185_v5 = vpop.f32.mrf.mxu2 }
 0x88a   : > { %v3186_v20 = vadd.f32 %v3185_v5, %v3057_v26  ;;  %v3047_v5 = vadd.f32 %v11100_v35, %v2918_v28  ;;  %v3276_v35 = vand.u32 2147483647, %v3266_v2  ;;  %v8860_v26 = vld [vmem:[#allocation9 + $0x19c] sm:$0xf0] }
 0x88b   : > { %v7112_v28 = vld [vmem:[#allocation9 + $0x80] sm:$0xf] }
 0x88c   : > { %v3241_v36 = vmax.f32 %v3186_v20, 0.0  ;;  %v3176_v25 = vadd.f32 %v11114_v57, %v3047_v5  ;;  %vm3277_vm8 = vcmp.eq.f32.partialorder %v3276_v35, 8.507059e+37  ;;  %v7113_v55 = vor.u32 %v8844_v32, %v7112_v28  ;;  %v7104_v28 = vld [vmem:[#allocation9 + $0x48] sm:$0xf] }
 0x88e   : > { %v3303_v10 = vpack.c.bf16 %v3241_v36, %v3240_v47  ;;  %v3237_v63 = vmax.f32 %v3176_v25, 0.0  ;;  %v8862_v36 = vld [vmem:[#allocation9 + $0x1c4] sm:$0xf] }
 0x88f   : > { %v8858_v47 = vld [vmem:[#allocation9 + $0x184] sm:$0xf] }
 0x890   : > { %v8854_v25 = vld [vmem:[#allocation9 + $0x144] sm:$0xf] }
 0x891   : > { %v3188_v14 = vpop.f32.mrf.mxu2 }
 0x892   : > { %v3189_v6 = vadd.f32 %v3188_v14, %v3060_v59  ;;  %v3301_v59 = vpack.c.bf16 %v3237_v63, %v3236_v13 }
 0x894   : > { %v3242_v50 = vmax.f32 %v3189_v6, 0.0  ;;  %v8856_v6 = vld [vmem:[#allocation9 + $0x15c] sm:$0xf0] }
 0x899   : > { %v3190_v43 = vpop.f32.mrf.mxu2 }
 0x89a   : > { %v3191_v30 = vadd.f32 %v3190_v43, %v3062_v0  ;;  %v9604_v43 = vpop.eup %9603  ;;  %v3032_v0 = vadd.f32 %v11066_v51, %v2903_v61  ;;  %v8842_v61 = vld [vmem:[#allocation9 + $0x84] sm:$0xf] }
 0x89b   : > { %v3268_v22 = vmul.f32 %v9604_v43, %v3266_v2  ;;  %vm3273_vm6 = vweird.f32 %v9604_v43  ;;  %v7117_v13 = vor.u32 %v8842_v61, %v7114_v48  ;;  %v7432_v61 = vld [vmem:[#allocation9 + $0x3c0] sm:$0xf] }
 0x89c   : > { %v3243_v8 = vmax.f32 %v3191_v30, 0.0  ;;  %vm3274_vm7 = vmor %vm3272_vm5, %vm3273_vm6  ;;  %v3161_v53 = vadd.f32 %v11092_v62, %v3032_v0  ;;  %v8926_v48 = vld [vmem:[#allocation9 + $0x3dc] sm:$0xf0] }
 0x89d   : > { %v3269_v18 = vsub.f32 1.0, %v3268_v22 }
 0x89e   : > { %v3304_v14 = vpack.c.bf16 %v3243_v8, %v3242_v50  ;;  %v7128_v8 = vld [vmem:[#allocation9 + $0xc0] sm:$0xf] }
 0x89f   : > { %v7080_v50 = vld [vmem:[#allocation9] sm:$0xf] }
 0x8a1   : > { %v3193_v45 = vpop.f32.mrf.mxu2 }
 0x8a2   : > { %v3194_v37 = vadd.f32 %v3193_v45, %v3065_v1  ;;  %v3238_v45 = vmax.f32 %v11118_v42, 0.0  ;;  %v3270_v1 = vmul.f32 %v9604_v43, %v3269_v18  ;;  %v3279_v42 = vor.u32 1.1754944e-38, %v3278_v7  ;;  %v8846_v7 = vld [vmem:[#allocation9 + $0xc4] sm:$0xf] }
 0x8a3   : > { %v7130_v18 = vld [vmem:[#allocation9 + $0xe0] sm:$0xf0] }
 0x8a4   : > { %v3244_v9 = vmax.f32 %v3194_v37, 0.0  ;;  %v3302_v57 = vpack.c.bf16 %v3239_v52, %v3238_v45  ;;  %v3271_v3 = vadd.f32 %v9604_v43, %v3270_v1  ;;  %v3234_v37 = vmax.f32 %v11108_v40, 0.0  ;;  %v7176_v40 = vld [vmem:[#allocation9 + $0x180] sm:$0xf] }
 0x8a5   : > { %v7177_v62 = vor.u32 %v8860_v26, %v7176_v40  ;;  %v7149_v45 = vor.u32 %v8850_v49, %v7146_v11  ;;  %v7133_v35 = vor.u32 %v8846_v7, %v7130_v18  ;;  %v8857_v40 = vld [vmem:[#allocation9 + $0x164] sm:$0xf0]  ;;  %v7138_v49 = vld [vmem:[#allocation9 + $0xe8] sm:$0xf0] }
 0x8a6   : > { %v3275_v12 = vsel %vm3274_vm7, %v9604_v43, %v3271_v3  ;;  %v3300_v60 = vpack.c.bf16 %v3235_v29, %v3234_v37  ;;  %v7178_v43 = vld [vmem:[#allocation9 + $0x1a0] sm:$0xf0]  ;;  %v7122_v7 = vld [vmem:[#allocation9 + $0xa8] sm:$0xf0] }
 0x8a7   : > { %v3280_v4 = vsel %vm3277_vm8, %v3279_v42, %v3275_v12  ;;  %v7181_v52 = vor.u32 %v8858_v47, %v7178_v43  ;;  %v8838_v42 = vld [vmem:[#allocation9 + $0x44] sm:$0xf]  ;;  %v7170_v47 = vld [vmem:[#allocation9 + $0x168] sm:$0xf0] }
 0x8a8   : > { %9253 = vpush %v3280_v4  ;;  %v7098_v3 = vld [vmem:[#allocation9 + $0x60] sm:$0xf0] }
 0x8a9   : > { %v3195_v39 = vpop.f32.mrf.mxu2  ;;  %v7101_v21 = vor.u32 %v8838_v42, %v7098_v3  ;;  %v8834_v29 = vld [vmem:[#allocation9 + $0x4] sm:$0xf]  ;;  %v7433_v42 = vor.u32 %v8926_v48, %v7432_v61  ;;  %v7400_v3 = vld [vmem:[#allocation9 + $0x380] sm:$0xf] }
 0x8aa   : > { %v3196_v58 = vadd.f32 %v3195_v39, %v3067_v15  ;;  %v3232_v15 = vmax.f32 %v11098_v24, 0.0  ;;  %v3231_v39 = vmax.f32 %v3161_v53, 0.0  ;;  %v7160_v24 = vld [vmem:[#allocation9 + $0x140] sm:$0xf]  ;;  %v9026_v61 = vld [vmem:[#allocation9 + $0x704] sm:$0xf] }
 0x8ab   : > { %v7850_v48 = vld [vmem:[#allocation9 + $0x720] sm:$0xf0] }
 0x8ac   : > { %v3245_v33 = vmax.f32 %v3196_v58, 0.0  ;;  %v3299_v30 = vpack.c.bf16 %v3233_v44, %v3232_v15  ;;  %v8864_v58 = vld [vmem:[#allocation9 + $0x1dc] sm:$0xf0]  ;;  %v3298_v56 = vpack.c.bf16 %v3231_v39, %v3230_v46  ;;  %v7200_v44 = vld [vmem:[#allocation9 + $0x1c8] sm:$0xf] }
 0x8ad   : > { %v7193_v51 = vor.u32 %v8864_v58, %v7192_v23  ;;  %v7184_v23 = vld [vmem:[#allocation9 + $0x188] sm:$0xf] }
 0x8ae   : > { %v3305_v19 = vpack.c.bf16 %v3245_v33, %v3244_v9  ;;  %v7161_v9 = vor.u32 %v8856_v6, %v7160_v24  ;;  %v8852_v33 = vld [vmem:[#allocation9 + $0x11c] sm:$0xf0]  ;;  %v8861_v58 = vld [vmem:[#allocation9 + $0x1a4] sm:$0xf0] }
 0x8af   : > { %v7145_v20 = vor.u32 %v8852_v33, %v7144_v34  ;;  %v7185_v46 = vor.u32 %v8861_v58, %v7184_v23  ;;  %v8853_v24 = vld [vmem:[#allocation9 + $0x124] sm:$0xf0] }
 0x8b0   : > { %3332 = vmatpush.bf16.msra.mxu3 %v3305_v19  ;;  %v8848_v19 = vld [vmem:[#allocation9 + $0xdc] sm:$0xf0]  ;;  %v8849_v34 = vld [vmem:[#allocation9 + $0xe4] sm:$0xf0] }
 0x8b1   : > { %v7129_v2 = vor.u32 %v8848_v19, %v7128_v8  ;;  %v3315_v27 = vpop.f32.mrf.mxu3  ;;  %v8845_v8 = vld [vmem:[#allocation9 + $0xa4] sm:$0xf0] }
 0x8b4   : > { %3333 = vmatpush.bf16.msra.mxu3 %v3304_v14  ;;  %v7194_v14 = vld [vmem:[#allocation9 + $0x1e0] sm:$0xf0] }
 0x8b5   : > { %v7197_v5 = vor.u32 %v8862_v36, %v7194_v14  ;;  %v8859_v36 = vld [vmem:[#allocation9 + $0x18c] sm:$0xf] }
 0x8b6   : > { %v7186_v14 = vld [vmem:[#allocation9 + $0x1a8] sm:$0xf0] }
 0x8b8   : > { %3334 = vmatpush.bf16.msra.mxu3 %v3303_v10  ;;  %v7162_v10 = vld [vmem:[#allocation9 + $0x160] sm:$0xf0] }
 0x8b9   : > { %v7165_v22 = vor.u32 %v8854_v25, %v7162_v10  ;;  %v3317_v63 = vpop.f32.mrf.mxu3  ;;  %v8851_v25 = vld [vmem:[#allocation9 + $0x10c] sm:$0xf] }
 0x8bc   : > { %3335 = vmatpush.bf16.msra.mxu3 %v3302_v57 }
 0x8c0   : > { %3336 = vmatpush.bf16.msra.mxu3 %v3301_v59  ;;  %v7082_v59 = vld [vmem:[#allocation9 + $0x20] sm:$0xf0] }
 0x8c1   : > { %v7085_v12 = vor.u32 %v8834_v29, %v7082_v59  ;;  %v7368_v59 = vld [vmem:[#allocation9 + $0x340] sm:$0xf] }
 0x8c4   : > { %3337 = vmatpush.bf16.msra.mxu3 %v3300_v60  ;;  %v8865_v60 = vld [vmem:[#allocation9 + $0x1e4] sm:$0xf0] }
 0x8c5   : > { %v7201_v39 = vor.u32 %v8865_v60, %v7200_v44  ;;  %v7336_v44 = vld [vmem:[#allocation9 + $0x300] sm:$0xf] }
 0x8c6   : > { %v8902_v60 = vld [vmem:[#allocation9 + $0x31c] sm:$0xf0] }
 0x8c7   : > { %v7337_v58 = vor.u32 %v8902_v60, %v7336_v44  ;;  %v8966_v44 = vld [vmem:[#allocation9 + $0x51c] sm:$0xf0] }
 0x8c8   : > { %3338 = vmatpush.bf16.msra.mxu3 %v3299_v30 }
 0x8cc   : > { %3339 = vmatpush.bf16.msra.mxu3 %v3298_v56  ;;  %v7168_v56 = vld [vmem:[#allocation9 + $0x148] sm:$0xf] }
 0x8cd   : > { %v7169_v26 = vor.u32 %v8857_v40, %v7168_v56  ;;  %v8970_v56 = vld [vmem:[#allocation9 + $0x544] sm:$0xf] }
 0x8ce   : > { %v7626_v40 = vld [vmem:[#allocation9 + $0x560] sm:$0xf0] }
 0x8cf   : > { %7077 = vmatmul.msk.bf16.vlgmr.msra.gmra.mxu3 %vm7076_vm9, %v9828_v38  ;;  %v8836_v38 = vld [vmem:[#allocation9 + $0x1c] sm:$0xf0] }
 0x8d0   : > { %3551 = vmatpush.bf16.msrb.mxu3 %v7193_v51  ;;  %v7081_v17 = vor.u32 %v8836_v38, %v7080_v50  ;;  %v7202_v50 = vld [vmem:[#allocation9 + $0x1e8] sm:$0xf0] }
 0x8d1   : > { %v7205_v38 = vor.u32 %v8863_v31, %v7202_v50  ;;  %v7208_v31 = vld [vmem:[#allocation9 + $0x200] sm:$0xf] }
 0x8d2   : > { %v3328_v57 = vpop.f32.mrf.mxu3  ;;  %v8870_v50 = vld [vmem:[#allocation9 + $0x21c] sm:$0xf0] }
 0x8d3   : > { %v3329_v0 = vadd.f32 %v3328_v57, %v3315_v27  ;;  %v7106_v27 = vld [vmem:[#allocation9 + $0x68] sm:$0xf0] }
 0x8d4   : > { %3552 = vmatpush.bf16.msrb.mxu3 %v7177_v62  ;;  %v7152_v62 = vld [vmem:[#allocation9 + $0x108] sm:$0xf]  ;;  %v8835_v57 = vld [vmem:[#allocation9 + $0xc] sm:$0xf] }
 0x8d5   : > { %v7153_v6 = vor.u32 %v8853_v24, %v7152_v62  ;;  %v7272_v62 = vld [vmem:[#allocation9 + $0x280] sm:$0xf] }
 0x8d6   : > { %v8886_v24 = vld [vmem:[#allocation9 + $0x29c] sm:$0xf0] }
 0x8d8   : > { %3553 = vmatpush.bf16.msrb.mxu3 %v7161_v9  ;;  %v7136_v9 = vld [vmem:[#allocation9 + $0xc8] sm:$0xf] }
 0x8d9   : > { %s9254_s18 = spop %9253  ;;  %v7137_v33 = vor.u32 %v8849_v34, %v7136_v9  ;;  %v7594_v9 = vld [vmem:[#allocation9 + $0x520] sm:$0xf0] }
 0x8da   : > { %v3330_v1 = vpop.f32.mrf.mxu3  ;;  %v3345_v4 = vstv %s9254_s18 }
 0x8db   : > { %v7090_v1 = vld [vmem:[#allocation9 + $0x28] sm:$0xf0] }
 0x8dc   : > { %3554 = vmatpush.bf16.msrb.mxu3 %v7145_v20  ;;  %v7120_v20 = vld [vmem:[#allocation9 + $0x88] sm:$0xf] }
 0x8dd   : > { %v7121_v19 = vor.u32 %v8845_v8, %v7120_v20  ;;  %v7240_v20 = vld [vmem:[#allocation9 + $0x240] sm:$0xf] }
 0x8de   : > { %v8878_v8 = vld [vmem:[#allocation9 + $0x25c] sm:$0xf0] }
 0x8e0   : > { %3555 = vmatpush.bf16.msrb.mxu3 %v7129_v2  ;;  %v8841_v2 = vld [vmem:[#allocation9 + $0x64] sm:$0xf0] }
 0x8e1   : > { %v7105_v32 = vor.u32 %v8841_v2, %v7104_v28  ;;  %v7946_v28 = vld [vmem:[#allocation9 + $0x7e0] sm:$0xf0] }
 0x8e2   : > { %v8954_v2 = vld [vmem:[#allocation9 + $0x4c4] sm:$0xf] }
 0x8e4   : > { %3556 = vmatpush.bf16.msrb.mxu3 %v7113_v55  ;;  %v7088_v55 = vld [vmem:[#allocation9 + $0x8] sm:$0xf] }
 0x8e8   : > { %3557 = vmatpush.bf16.msrb.mxu3 %v7097_v16  ;;  %v7089_v16 = vor.u32 %v8837_v54, %v7088_v55  ;;  %v7562_v55 = vld [vmem:[#allocation9 + $0x4e0] sm:$0xf0]  ;;  %v7241_v54 = vor.u32 %v8878_v8, %v7240_v20  ;;  %v8950_v20 = vld [vmem:[#allocation9 + $0x49c] sm:$0xf0] }
 0x8ec   : > { %3558 = vmatpush.bf16.msrb.mxu3 %v7081_v17  ;;  %v7189_v17 = vor.u32 %v8859_v36, %v7186_v14  ;;  %v7914_v36 = vld [vmem:[#allocation9 + $0x7a0] sm:$0xf0] }
 0x8ed   : > { %v8946_v14 = vld [vmem:[#allocation9 + $0x484] sm:$0xf] }
 0x8f0   : > { %3564 = vmatpush.bf16.msra.mxu3 %v7197_v5  ;;  %v8855_v5 = vld [vmem:[#allocation9 + $0x14c] sm:$0xf] }
 0x8f1   : > { %v7173_v43 = vor.u32 %v8855_v5, %v7170_v47  ;;  %v8990_v5 = vld [vmem:[#allocation9 + $0x5dc] sm:$0xf0] }
 0x8f4   : > { %3565 = vmatpush.bf16.msra.mxu3 %v7181_v52  ;;  %v7154_v52 = vld [vmem:[#allocation9 + $0x128] sm:$0xf0] }
 0x8f5   : > { %v7157_v10 = vor.u32 %v8851_v25, %v7154_v52  ;;  %v7209_v52 = vor.u32 %v8870_v50, %v7208_v31  ;;  %v8994_v31 = vld [vmem:[#allocation9 + $0x604] sm:$0xf]  ;;  %v7496_v50 = vld [vmem:[#allocation9 + $0x440] sm:$0xf] }
 0x8f8   : > { %3566 = vmatpush.bf16.msra.mxu3 %v7165_v22  ;;  %v8847_v22 = vld [vmem:[#allocation9 + $0xcc] sm:$0xf] }
 0x8f9   : > { %v7141_v11 = vor.u32 %v8847_v22, %v7138_v49  ;;  %v9034_v22 = vld [vmem:[#allocation9 + $0x744] sm:$0xf] }
 0x8fa   : > { %v7882_v49 = vld [vmem:[#allocation9 + $0x760] sm:$0xf0] }
 0x8fc   : > { %3567 = vmatpush.bf16.msra.mxu3 %v7149_v45  ;;  %v8843_v45 = vld [vmem:[#allocation9 + $0x8c] sm:$0xf] }
 0x8fd   : > { %v7125_v18 = vor.u32 %v8843_v45, %v7122_v7  ;;  %v7656_v45 = vld [vmem:[#allocation9 + $0x580] sm:$0xf] }
 0x8fe   : > { %v8982_v7 = vld [vmem:[#allocation9 + $0x59c] sm:$0xf0] }
 0x900   : > { %3568 = vmatpush.bf16.msra.mxu3 %v7133_v35  ;;  %v8839_v35 = vld [vmem:[#allocation9 + $0x4c] sm:$0xf] }
 0x901   : > { %v7109_v63 = vor.u32 %v8839_v35, %v7106_v27  ;;  %v7498_v35 = vld [vmem:[#allocation9 + $0x460] sm:$0xf0] }
 0x904   : > { %3569 = vmatpush.bf16.msra.mxu3 %v7117_v13  ;;  %v7093_v13 = vor.u32 %v8835_v57, %v7090_v1  ;;  %v8974_v57 = vld [vmem:[#allocation9 + $0x55c] sm:$0xf0]  ;;  %v7657_v1 = vor.u32 %v8982_v7, %v7656_v45 }
 0x905   : > { %v8934_v45 = vld [vmem:[#allocation9 + $0x41c] sm:$0xf0] }
 0x908   : > { %3570 = vmatpush.bf16.msra.mxu3 %v7101_v21  ;;  %v8918_v21 = vld [vmem:[#allocation9 + $0x39c] sm:$0xf0] }
 0x909   : > { %v7401_v29 = vor.u32 %v8918_v21, %v7400_v3  ;;  %v7466_v3 = vld [vmem:[#allocation9 + $0x420] sm:$0xf0]  ;;  %v7696_v21 = vld [vmem:[#allocation9 + $0x5c8] sm:$0xf] }
 0x90c   : > { %3571 = vmatpush.bf16.msra.mxu3 %v7085_v12  ;;  %v8910_v12 = vld [vmem:[#allocation9 + $0x35c] sm:$0xf0] }
 0x952   : > { %v3341_v37 = vpop.f32.mrf.mxu3 }
 0x953   : > { %v3342_v53 = vadd.f32 %v3341_v37, %v3329_v0  ;;  %v8986_v0 = vld [vmem:[#allocation9 + $0x5c4] sm:$0xf] }
 0x954   : > { %v7690_v37 = vld [vmem:[#allocation9 + $0x5e0] sm:$0xf0] }
 0x955   : > { %v3346_v15 = vmul.f32 %v3345_v4, %v3342_v53  ;;  %v7693_v4 = vor.u32 %v8986_v0, %v7690_v37  ;;  %v7369_v53 = vor.u32 %v8910_v12, %v7368_v59  ;;  %v7592_v37 = vld [vmem:[#allocation9 + $0x500] sm:$0xf] }
 0x957   : > { %v11171_v30 = vpack.c.bf16 %v3346_v15, %v3346_v15  ;;  %5229 = vmatpush.bf16.msrb.mxu0 %v7693_v4  ;;  %v8978_v15 = vld [vmem:[#allocation9 + $0x584] sm:$0xf] }
 0x958   : > { %v9018_v4 = vld [vmem:[#allocation9 + $0x6c4] sm:$0xf] }
 0x959   : > { %3559 = vmatmul.bf16.vlgmr.msrb.gmra.mxu3 %v11171_v30 }
 0x95a   : > { %3577 = vmatpush.bf16.msrb.mxu3 %v7201_v39  ;;  %v3343_v51 = vpop.f32.mrf.mxu3  ;;  %v7658_v39 = vld [vmem:[#allocation9 + $0x5a0] sm:$0xf0] }
 0x95b   : > { %v7661_v23 = vor.u32 %v8978_v15, %v7658_v39  ;;  %v8894_v51 = vld [vmem:[#allocation9 + $0x2dc] sm:$0xf0]  ;;  %v7664_v15 = vld [vmem:[#allocation9 + $0x588] sm:$0xf] }
 0x95c   : > { %v8983_v39 = vld [vmem:[#allocation9 + $0x5a4] sm:$0xf0] }
 0x95d   : > { %5230 = vmatpush.bf16.msrb.mxu0 %v7661_v23  ;;  %v7665_v23 = vor.u32 %v8983_v39, %v7664_v15  ;;  %v7472_v15 = vld [vmem:[#allocation9 + $0x408] sm:$0xf] }
 0x95e   : > { %3578 = vmatpush.bf16.msrb.mxu3 %v7185_v46  ;;  %v7304_v46 = vld [vmem:[#allocation9 + $0x2c0] sm:$0xf]  ;;  %v8935_v39 = vld [vmem:[#allocation9 + $0x424] sm:$0xf0] }
 0x962   : > { %3579 = vmatpush.bf16.msrb.mxu3 %v7169_v26  ;;  %v7629_v26 = vor.u32 %v8970_v56, %v7626_v40  ;;  %v7560_v56 = vld [vmem:[#allocation9 + $0x4c0] sm:$0xf] }
 0x963   : > { %v8958_v40 = vld [vmem:[#allocation9 + $0x4dc] sm:$0xf0] }
 0x964   : > { %5231 = vmatpush.bf16.msrb.mxu0 %v7629_v26 }
 0x966   : > { %3580 = vmatpush.bf16.msrb.mxu3 %v7153_v6  ;;  %v8962_v6 = vld [vmem:[#allocation9 + $0x504] sm:$0xf] }
 0x967   : > { %v7597_v34 = vor.u32 %v8962_v6, %v7594_v9  ;;  %v7561_v6 = vor.u32 %v8958_v40, %v7560_v56  ;;  %v9002_v9 = vld [vmem:[#allocation9 + $0x644] sm:$0xf]  ;;  %v7824_v40 = vld [vmem:[#allocation9 + $0x6c8] sm:$0xf] }
 0x969   : > { %3572 = vmatmul.bf16.vlgmr.msra.gmra.mxu3 %v11171_v30  ;;  %5232 = vmatpush.bf16.msrb.mxu0 %v7597_v34  ;;  %v7754_v34 = vld [vmem:[#allocation9 + $0x660] sm:$0xf0] }
 0x96a   : > { %3581 = vmatpush.bf16.msrb.mxu3 %v7137_v33  ;;  %v7273_v33 = vor.u32 %v8886_v24, %v7272_v62  ;;  %v8975_v62 = vld [vmem:[#allocation9 + $0x564] sm:$0xf0]  ;;  %v7757_v8 = vor.u32 %v9002_v9, %v7754_v34 }
 0x96b   : > { %v7792_v34 = vld [vmem:[#allocation9 + $0x688] sm:$0xf] }
 0x96e   : > { %3582 = vmatpush.bf16.msrb.mxu3 %v7121_v19  ;;  %v9050_v19 = vld [vmem:[#allocation9 + $0x7c4] sm:$0xf] }
 0x972   : > { %3583 = vmatpush.bf16.msrb.mxu3 %v7105_v32  ;;  %v7949_v32 = vor.u32 %v9050_v19, %v7946_v28  ;;  %v7600_v19 = vld [vmem:[#allocation9 + $0x508] sm:$0xf] }
 0x973   : > { %v8967_v28 = vld [vmem:[#allocation9 + $0x524] sm:$0xf0] }
 0x974   : > { %5242 = vmatpush.bf16.msrb.mxu1 %v7949_v32 }
 0x976   : > { %3584 = vmatpush.bf16.msrb.mxu3 %v7089_v16  ;;  %v7565_v16 = vor.u32 %v8954_v2, %v7562_v55  ;;  %v7601_v2 = vor.u32 %v8967_v28, %v7600_v19  ;;  %v9114_v55 = vld [vmem:[#allocation9 + $0x9c4] sm:$0xf] }
 0x977   : > { %v9066_v19 = vld [vmem:[#allocation9 + $0x844] sm:$0xf] }
 0x978   : > { %5233 = vmatpush.bf16.msrb.mxu0 %v7565_v16  ;;  %v8942_v16 = vld [vmem:[#allocation9 + $0x45c] sm:$0xf0]  ;;  %v8010_v28 = vld [vmem:[#allocation9 + $0x860] sm:$0xf0] }
 0x979   : > { %3585 = vmatmul.bf16.vlgmr.msrb.gmra.mxu3 %v11171_v30 }
 0x97a   : > { %3590 = vmatpush.bf16.msra.mxu3 %v7205_v38  ;;  %v9042_v38 = vld [vmem:[#allocation9 + $0x784] sm:$0xf] }
 0x97b   : > { %v7917_v47 = vor.u32 %v9042_v38, %v7914_v36  ;;  %v7722_v36 = vld [vmem:[#allocation9 + $0x620] sm:$0xf0] }
 0x97d   : > { %5243 = vmatpush.bf16.msrb.mxu1 %v7917_v47  ;;  %v7568_v47 = vld [vmem:[#allocation9 + $0x4c8] sm:$0xf] }
 0x97e   : > { %3591 = vmatpush.bf16.msra.mxu3 %v7189_v17  ;;  %v7688_v17 = vld [vmem:[#allocation9 + $0x5c0] sm:$0xf] }
 0x982   : > { %3592 = vmatpush.bf16.msra.mxu3 %v7173_v43  ;;  %v7530_v43 = vld [vmem:[#allocation9 + $0x4a0] sm:$0xf0] }
 0x983   : > { %v7533_v25 = vor.u32 %v8946_v14, %v7530_v43  ;;  %v7725_v14 = vor.u32 %v8994_v31, %v7722_v36  ;;  %v9007_v31 = vld [vmem:[#allocation9 + $0x664] sm:$0xf0]  ;;  %v9058_v36 = vld [vmem:[#allocation9 + $0x804] sm:$0xf] }
 0x985   : > { %5234 = vmatpush.bf16.msrb.mxu0 %v7533_v25  ;;  %v8959_v25 = vld [vmem:[#allocation9 + $0x4e4] sm:$0xf0] }
 0x986   : > { %3593 = vmatpush.bf16.msra.mxu3 %v7157_v10  ;;  %v7689_v10 = vor.u32 %v8990_v5, %v7688_v17  ;;  %v7952_v17 = vld [vmem:[#allocation9 + $0x7c8] sm:$0xf] }
 0x987   : > { %v9055_v5 = vld [vmem:[#allocation9 + $0x7e4] sm:$0xf0] }
 0x988   : > { %v7953_v43 = vor.u32 %v9055_v5, %v7952_v17 }
 0x98a   : > { %3594 = vmatpush.bf16.msra.mxu3 %v7141_v11  ;;  %v8938_v11 = vld [vmem:[#allocation9 + $0x444] sm:$0xf] }
 0x98b   : > { %v7501_v27 = vor.u32 %v8938_v11, %v7498_v35  ;;  %v7464_v11 = vld [vmem:[#allocation9 + $0x400] sm:$0xf]  ;;  %v9047_v35 = vld [vmem:[#allocation9 + $0x7a4] sm:$0xf0] }
 0x98d   : > { %5235 = vmatpush.bf16.msrb.mxu0 %v7501_v27  ;;  %v7536_v27 = vld [vmem:[#allocation9 + $0x488] sm:$0xf] }
 0x98e   : > { %3595 = vmatpush.bf16.msra.mxu3 %v7125_v18  ;;  %v7885_v18 = vor.u32 %v9034_v22, %v7882_v49  ;;  %v8170_v22 = vld [vmem:[#allocation9 + $0x9a0] sm:$0xf0]  ;;  %v7569_v49 = vor.u32 %v8959_v25, %v7568_v47  ;;  %v8208_v47 = vld [vmem:[#allocation9 + $0x9c8] sm:$0xf] }
 0x98f   : > { %v7728_v25 = vld [vmem:[#allocation9 + $0x608] sm:$0xf] }
 0x990   : > { %5244 = vmatpush.bf16.msrb.mxu1 %v7885_v18  ;;  %v7920_v18 = vld [vmem:[#allocation9 + $0x788] sm:$0xf] }
 0x992   : > { %3596 = vmatpush.bf16.msra.mxu3 %v7109_v63  ;;  %v7624_v63 = vld [vmem:[#allocation9 + $0x540] sm:$0xf] }
 0x993   : > { %v7625_v0 = vor.u32 %v8974_v57, %v7624_v63  ;;  %v8951_v63 = vld [vmem:[#allocation9 + $0x4a4] sm:$0xf0]  ;;  %v7921_v57 = vor.u32 %v9047_v35, %v7920_v18 }
 0x994   : > { %v8176_v18 = vld [vmem:[#allocation9 + $0x988] sm:$0xf] }
 0x995   : > { %v9111_v35 = vld [vmem:[#allocation9 + $0x9a4] sm:$0xf0] }
 0x996   : > { %3597 = vmatpush.bf16.msra.mxu3 %v7093_v13  ;;  %v8930_v13 = vld [vmem:[#allocation9 + $0x404] sm:$0xf] }
 0x997   : > { %v7469_v59 = vor.u32 %v8930_v13, %v7466_v3  ;;  %v8138_v13 = vld [vmem:[#allocation9 + $0x960] sm:$0xf0]  ;;  %v7888_v3 = vld [vmem:[#allocation9 + $0x748] sm:$0xf] }
 0x999   : > { %3598 = vmatmul.bf16.vlgmr.msra.gmra.mxu3 %v11171_v30  ;;  %v7305_v30 = vor.u32 %v8894_v51, %v7304_v46  ;;  %5236 = vmatpush.bf16.msrb.mxu0 %v7469_v59  ;;  %v9010_v46 = vld [vmem:[#allocation9 + $0x684] sm:$0xf]  ;;  %v8943_v59 = vld [vmem:[#allocation9 + $0x464] sm:$0xf0] }
 0x99a   : > { %5164 = vmatpush.bf16.msrb.mxu3 %v7433_v42  ;;  %v7853_v42 = vor.u32 %v9026_v61, %v7850_v48  ;;  %v7786_v51 = vld [vmem:[#allocation9 + $0x6a0] sm:$0xf0]  ;;  %v7465_v61 = vor.u32 %v8934_v45, %v7464_v11  ;;  %v8999_v11 = vld [vmem:[#allocation9 + $0x624] sm:$0xf0] }
 0x99b   : > { %v7789_v26 = vor.u32 %v9010_v46, %v7786_v51  ;;  %v9098_v48 = vld [vmem:[#allocation9 + $0x944] sm:$0xf]  ;;  %v7729_v45 = vor.u32 %v8999_v11, %v7728_v25 }
 0x99c   : > { %5245 = vmatpush.bf16.msrb.mxu1 %v7853_v42  ;;  %v8141_v42 = vor.u32 %v9098_v48, %v8138_v13  ;;  %v9082_v46 = vld [vmem:[#allocation9 + $0x8c4] sm:$0xf]  ;;  %v8144_v48 = vld [vmem:[#allocation9 + $0x948] sm:$0xf] }
 0x99d   : > { %v8074_v51 = vld [vmem:[#allocation9 + $0x8e0] sm:$0xf0]  ;;  %v9103_v13 = vld [vmem:[#allocation9 + $0x964] sm:$0xf0] }
 0x99e   : > { %5165 = vmatpush.bf16.msrb.mxu3 %v7401_v29  ;;  %v8991_v29 = vld [vmem:[#allocation9 + $0x5e4] sm:$0xf0]  ;;  %v8077_v56 = vor.u32 %v9082_v46, %v8074_v51  ;;  %v7784_v51 = vld [vmem:[#allocation9 + $0x680] sm:$0xf] }
 0x99f   : > { %v7697_v12 = vor.u32 %v8991_v29, %v7696_v21  ;;  %v9039_v21 = vld [vmem:[#allocation9 + $0x764] sm:$0xf0] }
 0x9a0   : > { %v7504_v29 = vld [vmem:[#allocation9 + $0x448] sm:$0xf] }
 0x9a1   : > { %5281 = vmatpush.bf16.msra.mxu0 %v7697_v12  ;;  %v7889_v12 = vor.u32 %v9039_v21, %v7888_v3  ;;  %v9030_v3 = vld [vmem:[#allocation9 + $0x71c] sm:$0xf0]  ;;  %v8145_v21 = vor.u32 %v9103_v13, %v8144_v48  ;;  %v9087_v46 = vld [vmem:[#allocation9 + $0x8e4] sm:$0xf0] }
 0x9a2   : > { %5166 = vmatpush.bf16.msrb.mxu3 %v7369_v53  ;;  %v7818_v53 = vld [vmem:[#allocation9 + $0x6e0] sm:$0xf0] }
 0x9a3   : > { %v7821_v60 = vor.u32 %v9018_v4, %v7818_v53  ;;  %v8106_v4 = vld [vmem:[#allocation9 + $0x920] sm:$0xf0] }
 0x9a5   : > { %5246 = vmatpush.bf16.msrb.mxu1 %v7821_v60  ;;  %5282 = vmatpush.bf16.msra.mxu0 %v7665_v23  ;;  %v9031_v60 = vld [vmem:[#allocation9 + $0x724] sm:$0xf0] }
 0x9a6   : > { %5167 = vmatpush.bf16.msrb.mxu3 %v7337_v58  ;;  %v7593_v58 = vor.u32 %v8966_v44, %v7592_v37  ;;  %v9090_v37 = vld [vmem:[#allocation9 + $0x904] sm:$0xf]  ;;  %v7856_v44 = vld [vmem:[#allocation9 + $0x708] sm:$0xf] }
 0x9a7   : > { %v8109_v53 = vor.u32 %v9090_v37, %v8106_v4  ;;  %v7857_v23 = vor.u32 %v9031_v60, %v7856_v44  ;;  %v7816_v37 = vld [vmem:[#allocation9 + $0x6c0] sm:$0xf]  ;;  %v8987_v60 = vld [vmem:[#allocation9 + $0x5cc] sm:$0xf] }
 0x9a8   : > { %v9022_v4 = vld [vmem:[#allocation9 + $0x6dc] sm:$0xf0] }
 0x9a9   : > { %5247 = vmatpush.bf16.msrb.mxu1 %v7789_v26  ;;  %v9023_v26 = vld [vmem:[#allocation9 + $0x6e4] sm:$0xf0] }
 0x9aa   : > { %5168 = vmatpush.bf16.msrb.mxu3 %v7305_v30  ;;  %v7632_v30 = vld [vmem:[#allocation9 + $0x548] sm:$0xf] }
 0x9ab   : > { %v7633_v24 = vor.u32 %v8975_v62, %v7632_v30  ;;  %v7825_v30 = vor.u32 %v9023_v26, %v7824_v40  ;;  %v9074_v62 = vld [vmem:[#allocation9 + $0x884] sm:$0xf] }
 0x9ad   : > { %5283 = vmatpush.bf16.msra.mxu0 %v7633_v24  ;;  %5248 = vmatpush.bf16.msrb.mxu1 %v7757_v8  ;;  %v8042_v24 = vld [vmem:[#allocation9 + $0x8a0] sm:$0xf0] }
 0x9ae   : > { %5169 = vmatpush.bf16.msrb.mxu3 %v7273_v33  ;;  %v7528_v33 = vld [vmem:[#allocation9 + $0x480] sm:$0xf]  ;;  %v8045_v9 = vor.u32 %v9074_v62, %v8042_v24  ;;  %v8979_v62 = vld [vmem:[#allocation9 + $0x58c] sm:$0xf] }
 0x9af   : > { %v7529_v32 = vor.u32 %v8950_v20, %v7528_v33  ;;  %v9015_v33 = vld [vmem:[#allocation9 + $0x6a4] sm:$0xf0]  ;;  %v7666_v24 = vld [vmem:[#allocation9 + $0x5a8] sm:$0xf0] }
 0x9b0   : > { %v7793_v20 = vor.u32 %v9015_v33, %v7792_v34  ;;  %v8048_v34 = vld [vmem:[#allocation9 + $0x888] sm:$0xf] }
 0x9b1   : > { %5284 = vmatpush.bf16.msra.mxu0 %v7601_v2  ;;  %5249 = vmatpush.bf16.msrb.mxu1 %v7725_v14  ;;  %v8013_v2 = vor.u32 %v9066_v19, %v8010_v28  ;;  %v7978_v14 = vld [vmem:[#allocation9 + $0x820] sm:$0xf0]  ;;  %v9079_v33 = vld [vmem:[#allocation9 + $0x8a4] sm:$0xf0]  ;;  %v7669_v28 = vor.u32 %v8979_v62, %v7666_v24  ;;  %v8072_v62 = vld [vmem:[#allocation9 + $0x8c0] sm:$0xf] }
 0x9b2   : > { %5170 = vmatpush.bf16.msrb.mxu3 %v7241_v54  ;;  %v8202_v54 = vld [vmem:[#allocation9 + $0x9e0] sm:$0xf0]  ;;  %v7981_v5 = vor.u32 %v9058_v36, %v7978_v14  ;;  %v8049_v19 = vor.u32 %v9079_v33, %v8048_v34  ;;  %v8200_v36 = vld [vmem:[#allocation9 + $0x9c0] sm:$0xf]  ;;  %v9027_v24 = vld [vmem:[#allocation9 + $0x70c] sm:$0xf] }
 0x9b3   : > { %v8205_v38 = vor.u32 %v9114_v55, %v8202_v54  ;;  %v7944_v55 = vld [vmem:[#allocation9 + $0x7c0] sm:$0xf] }
 0x9b4   : > { %v9054_v54 = vld [vmem:[#allocation9 + $0x7dc] sm:$0xf0] }
 0x9b5   : > { %5255 = vmatpush.bf16.msrb.mxu2 %v8205_v38  ;;  %5294 = vmatpush.bf16.msra.mxu1 %v7953_v43  ;;  %v7945_v17 = vor.u32 %v9054_v54, %v7944_v55  ;;  %v9119_v43 = vld [vmem:[#allocation9 + $0x9e4] sm:$0xf0]  ;;  %v7634_v55 = vld [vmem:[#allocation9 + $0x568] sm:$0xf0]  ;;  %v9086_v33 = vld [vmem:[#allocation9 + $0x8dc] sm:$0xf0] }
 0x9b6   : > { %5171 = vmatpush.bf16.msrb.mxu3 %v7209_v52  ;;  %v7497_v52 = vor.u32 %v8942_v16, %v7496_v50  ;;  %5285 = vmatpush.bf16.msra.mxu0 %v7569_v49  ;;  %v8209_v49 = vor.u32 %v9119_v43, %v8208_v47  ;;  %v8963_v47 = vld [vmem:[#allocation9 + $0x50c] sm:$0xf] }
 0x9b7   : > { %v7602_v43 = vld [vmem:[#allocation9 + $0x528] sm:$0xf0] }
 0x9b9   : > { %5295 = vmatpush.bf16.msra.mxu1 %v7921_v57  ;;  %v8177_v57 = vor.u32 %v9111_v35, %v8176_v18  ;;  %v9051_v18 = vld [vmem:[#allocation9 + $0x7cc] sm:$0xf] }
 0x9ba   : > { %5177 = vmatpush.bf16.msra.mxu3 %v7689_v10  ;;  %v9106_v10 = vld [vmem:[#allocation9 + $0x984] sm:$0xf]  ;;  %v7954_v35 = vld [vmem:[#allocation9 + $0x7e8] sm:$0xf0] }
 0x9bb   : > { %v8173_v7 = vor.u32 %v9106_v10, %v8170_v22  ;;  %v7912_v10 = vld [vmem:[#allocation9 + $0x780] sm:$0xf]  ;;  %v7957_v13 = vor.u32 %v9051_v18, %v7954_v35  ;;  %v9003_v18 = vld [vmem:[#allocation9 + $0x64c] sm:$0xf] }
 0x9bc   : > { %v9046_v22 = vld [vmem:[#allocation9 + $0x79c] sm:$0xf0]  ;;  %v7762_v35 = vld [vmem:[#allocation9 + $0x668] sm:$0xf0] }
 0x9bd   : > { %5256 = vmatpush.bf16.msrb.mxu2 %v8173_v7  ;;  %5296 = vmatpush.bf16.msra.mxu1 %v7889_v12  ;;  %v7913_v7 = vor.u32 %v9046_v22, %v7912_v10  ;;  %v8112_v12 = vld [vmem:[#allocation9 + $0x908] sm:$0xf] }
 0x9be   : > { %5178 = vmatpush.bf16.msra.mxu3 %v7657_v1  ;;  %v7537_v1 = vor.u32 %v8951_v63, %v7536_v27  ;;  %v7880_v27 = vld [vmem:[#allocation9 + $0x740] sm:$0xf]  ;;  %v7984_v22 = vld [vmem:[#allocation9 + $0x808] sm:$0xf] }
 0x9bf   : > { %v9038_v63 = vld [vmem:[#allocation9 + $0x75c] sm:$0xf0] }
 0x9c0   : > { %5286 = vmatpush.bf16.msra.mxu0 %v7537_v1 }
 0x9c1   : > { %5257 = vmatpush.bf16.msrb.mxu2 %v8141_v42  ;;  %5297 = vmatpush.bf16.msra.mxu1 %v7857_v23  ;;  %v7848_v42 = vld [vmem:[#allocation9 + $0x700] sm:$0xf]  ;;  %v7817_v23 = vor.u32 %v9022_v4, %v7816_v37  ;;  %v8947_v37 = vld [vmem:[#allocation9 + $0x48c] sm:$0xf] }
 0x9c2   : > { %5179 = vmatpush.bf16.msra.mxu3 %v7625_v0  ;;  %v7505_v0 = vor.u32 %v8943_v59, %v7504_v29  ;;  %v7849_v59 = vor.u32 %v9030_v3, %v7848_v42  ;;  %v8136_v3 = vld [vmem:[#allocation9 + $0x940] sm:$0xf]  ;;  %v7538_v4 = vld [vmem:[#allocation9 + $0x4a8] sm:$0xf0] }
 0x9c4   : > { %5287 = vmatpush.bf16.msra.mxu0 %v7505_v0  ;;  %v9095_v0 = vld [vmem:[#allocation9 + $0x924] sm:$0xf0] }
 0x9c5   : > { %5258 = vmatpush.bf16.msrb.mxu2 %v8109_v53  ;;  %5298 = vmatpush.bf16.msra.mxu1 %v7825_v30  ;;  %v8113_v53 = vor.u32 %v9095_v0, %v8112_v12  ;;  %v9102_v0 = vld [vmem:[#allocation9 + $0x95c] sm:$0xf0] }
 0x9c6   : > { %5180 = vmatpush.bf16.msra.mxu3 %v7593_v58  ;;  %v7473_v58 = vor.u32 %v8935_v39, %v7472_v15  ;;  %v7698_v15 = vld [vmem:[#allocation9 + $0x5e8] sm:$0xf0] }
 0x9c7   : > { %v7701_v30 = vor.u32 %v8987_v60, %v7698_v15  ;;  %v8104_v60 = vld [vmem:[#allocation9 + $0x900] sm:$0xf]  ;;  %v9035_v15 = vld [vmem:[#allocation9 + $0x74c] sm:$0xf] }
 0x9c8   : > { %5288 = vmatpush.bf16.msra.mxu0 %v7473_v58  ;;  %v8080_v58 = vld [vmem:[#allocation9 + $0x8c8] sm:$0xf] }
 0x9c9   : > { %5259 = vmatpush.bf16.msrb.mxu2 %v8077_v56  ;;  %5299 = vmatpush.bf16.msra.mxu1 %v7793_v20  ;;  %v9014_v56 = vld [vmem:[#allocation9 + $0x69c] sm:$0xf0]  ;;  %v8081_v26 = vor.u32 %v9087_v46, %v8080_v58 }
 0x9ca   : > { %5181 = vmatpush.bf16.msra.mxu3 %v7561_v6  ;;  %v11177_v6 = vld [vmem:[#allocation10 + $0x3] ss:$8 sm:$0xf] }
 0x9cb   : > { %v3543_v8 = vperm.slane %v11177_v6, 0  ;;  %v3544_v29 = vperm.slane %v11177_v6, 1  ;;  %v7752_v20 = vld [vmem:[#allocation9 + $0x640] sm:$0xf]  ;;  %v3545_v25 = vperm.slane %v11177_v6, 2 }
 0x9cc   : > { %v9094_v58 = vld [vmem:[#allocation9 + $0x91c] sm:$0xf0] }
 0x9cd   : > { %5260 = vmatpush.bf16.msrb.mxu2 %v8045_v9  ;;  %v7785_v9 = vor.u32 %v9014_v56, %v7784_v51  ;;  %v8939_v51 = vld [vmem:[#allocation9 + $0x44c] sm:$0xf] }
 0x9ce   : > { %5182 = vmatpush.bf16.msra.mxu3 %v7529_v32  ;;  %v7760_v32 = vld [vmem:[#allocation9 + $0x648] sm:$0xf]  ;;  %v7506_v56 = vld [vmem:[#allocation9 + $0x468] sm:$0xf0] }
 0x9cf   : > { %v7761_v16 = vor.u32 %v9007_v31, %v7760_v32  ;;  %v8971_v32 = vld [vmem:[#allocation9 + $0x54c] sm:$0xf]  ;;  %v8016_v31 = vld [vmem:[#allocation9 + $0x848] sm:$0xf]  ;;  %v7509_v34 = vor.u32 %v8939_v51, %v7506_v56 }
 0x9d1   : > { %5261 = vmatpush.bf16.msrb.mxu2 %v8013_v2  ;;  %5300 = vmatpush.bf16.msra.mxu1 %v7761_v16  ;;  %v7720_v16 = vld [vmem:[#allocation9 + $0x600] sm:$0xf] }
 0x9d2   : > { %5183 = vmatpush.bf16.msra.mxu3 %v7497_v52 }
 0x9d5   : > { %5262 = vmatpush.bf16.msrb.mxu2 %v7981_v5  ;;  %5301 = vmatpush.bf16.msra.mxu1 %v7729_v45  ;;  %v9118_v5 = vld [vmem:[#allocation9 + $0x9dc] sm:$0xf0] }
 0x9d6   : > { %5184 = vmatpush.bf16.msra.mxu3 %v7465_v61  ;;  %v7881_v61 = vor.u32 %v9038_v63, %v7880_v27  ;;  %v8201_v11 = vor.u32 %v9118_v5, %v8200_v36  ;;  %v8168_v45 = vld [vmem:[#allocation9 + $0x980] sm:$0xf]  ;;  %v7605_v27 = vor.u32 %v8963_v47, %v7602_v43  ;;  %v7672_v36 = vld [vmem:[#allocation9 + $0x590] sm:$0xf]  ;;  %v9011_v47 = vld [vmem:[#allocation9 + $0x68c] sm:$0xf] }
 0x9d7   : > { %v9110_v63 = vld [vmem:[#allocation9 + $0x99c] sm:$0xf0]  ;;  %v7794_v43 = vld [vmem:[#allocation9 + $0x6a8] sm:$0xf0] }
 0x9d8   : > { %v8169_v42 = vor.u32 %v9110_v63, %v8168_v45  ;;  %v7797_v45 = vor.u32 %v9011_v47, %v7794_v43  ;;  %v9062_v63 = vld [vmem:[#allocation9 + $0x81c] sm:$0xf0]  ;;  %v7512_v47 = vld [vmem:[#allocation9 + $0x450] sm:$0xf] }
 0x9d9   : > { %5307 = vmatpush.bf16.msra.mxu2 %v8209_v49  ;;  %v9063_v49 = vld [vmem:[#allocation9 + $0x824] sm:$0xf0]  ;;  %v8944_v43 = vld [vmem:[#allocation9 + $0x46c] sm:$0xf0] }
 0x9dc   : > { %v3560_v50 = vpop.f32.mrf.mxu3 }
 0x9dd   : > { %v3561_v38 = vadd.f32 %v3560_v50, %v3543_v8  ;;  %5308 = vmatpush.bf16.msra.mxu2 %v8177_v57  ;;  %v9006_v8 = vld [vmem:[#allocation9 + $0x65c] sm:$0xf0]  ;;  %v9071_v50 = vld [vmem:[#allocation9 + $0x864] sm:$0xf0] }
 0x9de   : > { %v7753_v54 = vor.u32 %v9006_v8, %v7752_v20  ;;  %v8017_v14 = vor.u32 %v9071_v50, %v8016_v31  ;;  %v8931_v20 = vld [vmem:[#allocation9 + $0x40c] sm:$0xf]  ;;  %v8040_v50 = vld [vmem:[#allocation9 + $0x880] sm:$0xf] }
 0x9df   : > { %v11180_v52 = vpack.c.bf16 %v3561_v38, %v3561_v38  ;;  %v8998_v38 = vld [vmem:[#allocation9 + $0x61c] sm:$0xf0]  ;;  %v7474_v8 = vld [vmem:[#allocation9 + $0x428] sm:$0xf0] }
 0x9e0   : > { %v7721_v10 = vor.u32 %v8998_v38, %v7720_v16  ;;  %v7477_v31 = vor.u32 %v8931_v20, %v7474_v8  ;;  %v9078_v16 = vld [vmem:[#allocation9 + $0x89c] sm:$0xf0]  ;;  %v7928_v20 = vld [vmem:[#allocation9 + $0x790] sm:$0xf] }
 0x9e1   : > { %5172 = vmatmul.bf16.vlgmr.msrb.gmra.mxu3 %v11180_v52  ;;  %5309 = vmatpush.bf16.msra.mxu2 %v8145_v21  ;;  %v8041_v5 = vor.u32 %v9078_v16, %v8040_v50  ;;  %v9048_v8 = vld [vmem:[#allocation9 + $0x7ac] sm:$0xf0]  ;;  %v8146_v50 = vld [vmem:[#allocation9 + $0x968] sm:$0xf0] }
 0x9e2   : > { %5190 = vmatpush.bf16.msrb.mxu3 %v7945_v17  ;;  %v7637_v17 = vor.u32 %v8971_v32, %v7634_v55  ;;  %v8073_v32 = vor.u32 %v9086_v33, %v8072_v62  ;;  %v9019_v55 = vld [vmem:[#allocation9 + $0x6cc] sm:$0xf]  ;;  %v8906_v62 = vld [vmem:[#allocation9 + $0x344] sm:$0xf]  ;;  %v7929_v16 = vor.u32 %v9048_v8, %v7928_v20 }
 0x9e3   : > { %v7370_v33 = vld [vmem:[#allocation9 + $0x360] sm:$0xf0]  ;;  %v9067_v8 = vld [vmem:[#allocation9 + $0x84c] sm:$0xf] }
 0x9e4   : > { %v3562_v1 = vpop.f32.mrf.mxu3  ;;  %v8866_v20 = vld [vmem:[#allocation9 + $0x204] sm:$0xf] }
 0x9e5   : > { %5310 = vmatpush.bf16.msra.mxu2 %v8113_v53  ;;  %v8955_v1 = vld [vmem:[#allocation9 + $0x4cc] sm:$0xf] }
 0x9e6   : > { %5191 = vmatpush.bf16.msrb.mxu3 %v7913_v7  ;;  %v7985_v7 = vor.u32 %v9063_v49, %v7984_v22  ;;  %v7640_v49 = vld [vmem:[#allocation9 + $0x550] sm:$0xf] }
 0x9e9   : > { %5311 = vmatpush.bf16.msra.mxu2 %v8081_v26 }
 0x9ea   : > { %5192 = vmatpush.bf16.msrb.mxu3 %v7881_v61  ;;  %v7570_v61 = vld [vmem:[#allocation9 + $0x4e8] sm:$0xf0] }
 0x9eb   : > { %v7573_v12 = vor.u32 %v8955_v1, %v7570_v61  ;;  %v7434_v61 = vld [vmem:[#allocation9 + $0x3e0] sm:$0xf0] }
 0x9ec   : > { %v3573_v44 = vpop.f32.mrf.mxu3 }
 0x9ed   : > { %v3574_v39 = vadd.f32 %v3573_v44, %v3544_v29  ;;  %5312 = vmatpush.bf16.msra.mxu2 %v8049_v19  ;;  %v9043_v29 = vld [vmem:[#allocation9 + $0x78c] sm:$0xf]  ;;  %v8137_v44 = vor.u32 %v9102_v0, %v8136_v3  ;;  %v7704_v19 = vld [vmem:[#allocation9 + $0x5d0] sm:$0xf]  ;;  %v7765_v3 = vor.u32 %v9003_v18, %v7762_v35 }
 0x9ee   : > { %5193 = vmatpush.bf16.msrb.mxu3 %v7849_v59  ;;  %v7922_v59 = vld [vmem:[#allocation9 + $0x7a8] sm:$0xf0]  ;;  %v7864_v18 = vld [vmem:[#allocation9 + $0x710] sm:$0xf] }
 0x9ef   : > { %v11184_v40 = vpack.c.bf16 %v3574_v39, %v3574_v39  ;;  %v7925_v53 = vor.u32 %v9043_v29, %v7922_v59  ;;  %v7890_v39 = vld [vmem:[#allocation9 + $0x768] sm:$0xf0]  ;;  %v8914_v59 = vld [vmem:[#allocation9 + $0x384] sm:$0xf]  ;;  %v9032_v35 = vld [vmem:[#allocation9 + $0x72c] sm:$0xf0] }
 0x9f0   : > { %v7893_v26 = vor.u32 %v9035_v15, %v7890_v39  ;;  %v7402_v15 = vld [vmem:[#allocation9 + $0x3a0] sm:$0xf0]  ;;  %v7960_v39 = vld [vmem:[#allocation9 + $0x7d0] sm:$0xf] }
 0x9f1   : > { %5185 = vmatmul.bf16.vlgmr.msra.gmra.mxu3 %v11184_v40  ;;  %5237 = vmatmul.bf16.vlgmr.msrb.gmra.mxu0 %v11184_v40 }
 0x9f2   : > { %5194 = vmatpush.bf16.msrb.mxu3 %v7817_v23  ;;  %5333 = vmatpush.bf16.msrb.mxu0 %v7701_v30  ;;  %v7541_v23 = vor.u32 %v8947_v37, %v7538_v4  ;;  %v8105_v30 = vor.u32 %v9094_v58, %v8104_v60  ;;  %v8210_v37 = vld [vmem:[#allocation9 + $0x9e8] sm:$0xf0] }
 0x9f3   : > { %5313 = vmatpush.bf16.msra.mxu2 %v8017_v14  ;;  %v8984_v14 = vld [vmem:[#allocation9 + $0x5ac] sm:$0xf0]  ;;  %v8995_v4 = vld [vmem:[#allocation9 + $0x60c] sm:$0xf] }
 0x9f4   : > { %v3575_v2 = vpop.f32.mrf.mxu3  ;;  %v7673_v22 = vor.u32 %v8984_v14, %v7672_v36  ;;  %v7896_v36 = vld [vmem:[#allocation9 + $0x750] sm:$0xf] }
 0x9f5   : > { %v9040_v14 = vld [vmem:[#allocation9 + $0x76c] sm:$0xf0] }
 0x9f6   : > { %5195 = vmatpush.bf16.msrb.mxu3 %v7785_v9  ;;  %5334 = vmatpush.bf16.msrb.mxu0 %v7669_v28  ;;  %v7858_v9 = vld [vmem:[#allocation9 + $0x728] sm:$0xf0]  ;;  %v8992_v28 = vld [vmem:[#allocation9 + $0x5ec] sm:$0xf0] }
 0x9f7   : > { %5314 = vmatpush.bf16.msra.mxu2 %v7985_v7  ;;  %v7861_v2 = vor.u32 %v9027_v24, %v7858_v9  ;;  %v7705_v38 = vor.u32 %v8992_v28, %v7704_v19  ;;  %v9107_v24 = vld [vmem:[#allocation9 + $0x98c] sm:$0xf]  ;;  %v7544_v28 = vld [vmem:[#allocation9 + $0x490] sm:$0xf] }
 0x9f8   : > { %v8178_v9 = vld [vmem:[#allocation9 + $0x9a8] sm:$0xf0] }
 0x9fa   : > { %5196 = vmatpush.bf16.msrb.mxu3 %v7753_v54  ;;  %5335 = vmatpush.bf16.msrb.mxu0 %v7637_v17  ;;  %v7826_v54 = vld [vmem:[#allocation9 + $0x6e8] sm:$0xf0] }
 0x9fb   : > { %v7829_v17 = vor.u32 %v9019_v55, %v7826_v54  ;;  %v7373_v55 = vor.u32 %v8906_v62, %v7370_v33  ;;  %v8898_v54 = vld [vmem:[#allocation9 + $0x304] sm:$0xf] }
 0x9fc   : > { %v3586_v57 = vpop.f32.mrf.mxu3 }
 0x9fd   : > { %v3587_v48 = vadd.f32 %v3586_v57, %v3545_v25  ;;  %v8008_v25 = vld [vmem:[#allocation9 + $0x840] sm:$0xf]  ;;  %v8922_v57 = vld [vmem:[#allocation9 + $0x3c4] sm:$0xf] }
 0x9fe   : > { %5197 = vmatpush.bf16.msrb.mxu3 %v7721_v10  ;;  %5336 = vmatpush.bf16.msrb.mxu0 %v7605_v27  ;;  %v9070_v10 = vld [vmem:[#allocation9 + $0x85c] sm:$0xf0]  ;;  %v7437_v0 = vor.u32 %v8922_v57, %v7434_v61  ;;  %v8936_v57 = vld [vmem:[#allocation9 + $0x42c] sm:$0xf0]  ;;  %v8988_v61 = vld [vmem:[#allocation9 + $0x5d4] sm:$0xf] }
 0x9ff   : > { %v11189_v21 = vpack.c.bf16 %v3587_v48, %v3587_v48  ;;  %v8009_v7 = vor.u32 %v9070_v10, %v8008_v25  ;;  %v7976_v27 = vld [vmem:[#allocation9 + $0x800] sm:$0xf]  ;;  %v7608_v48 = vld [vmem:[#allocation9 + $0x510] sm:$0xf] }
 0xa00   : > { %v7977_v29 = vor.u32 %v9062_v63, %v7976_v27  ;;  %v7513_v27 = vor.u32 %v8944_v43, %v7512_v47  ;;  %v7480_v63 = vld [vmem:[#allocation9 + $0x410] sm:$0xf]  ;;  %v7986_v47 = vld [vmem:[#allocation9 + $0x828] sm:$0xf0] }
 0xa01   : > { %5198 = vmatmul.bf16.vlgmr.msrb.gmra.mxu3 %v11189_v21  ;;  %5250 = vmatmul.bf16.vlgmr.msrb.gmra.mxu1 %v11189_v21  ;;  %v8216_v43 = vld [vmem:[#allocation9 + $0x9d0] sm:$0xf] }
 0xa02   : > { %5203 = vmatpush.bf16.msra.mxu3 %v8201_v11  ;;  %5346 = vmatpush.bf16.msrb.mxu1 %v7957_v13  ;;  %v8976_v11 = vld [vmem:[#allocation9 + $0x56c] sm:$0xf0] }
 0xa03   : > { %5289 = vmatmul.bf16.vlgmr.msra.gmra.mxu0 %v11184_v40  ;;  %v7641_v1 = vor.u32 %v8976_v11, %v7640_v49  ;;  %v8968_v13 = vld [vmem:[#allocation9 + $0x52c] sm:$0xf0]  ;;  %v9091_v49 = vld [vmem:[#allocation9 + $0x90c] sm:$0xf] }
 0xa04   : > { %5337 = vmatpush.bf16.msrb.mxu0 %v7573_v12  ;;  %v3588_v46 = vpop.f32.mrf.mxu3  ;;  %v9115_v12 = vld [vmem:[#allocation9 + $0x9cc] sm:$0xf] }
 0xa05   : > { %v7576_v46 = vld [vmem:[#allocation9 + $0x4d0] sm:$0xf]  ;;  %v8213_v51 = vor.u32 %v9115_v12, %v8210_v37  ;;  %v8114_v11 = vld [vmem:[#allocation9 + $0x928] sm:$0xf0]  ;;  %v7274_v12 = vld [vmem:[#allocation9 + $0x2a0] sm:$0xf0] }
 0xa06   : > { %5204 = vmatpush.bf16.msra.mxu3 %v8169_v42  ;;  %5347 = vmatpush.bf16.msrb.mxu1 %v7925_v53  ;;  %v3546_v42 = vperm.slane %v11177_v6, 3  ;;  %v7730_v53 = vld [vmem:[#allocation9 + $0x628] sm:$0xf0]  ;;  %v8960_v6 = vld [vmem:[#allocation9 + $0x4ec] sm:$0xf0] }
 0xa07   : > { %v7733_v56 = vor.u32 %v8995_v4, %v7730_v53  ;;  %v7577_v19 = vor.u32 %v8960_v6, %v7576_v46  ;;  %v9024_v37 = vld [vmem:[#allocation9 + $0x6ec] sm:$0xf0]  ;;  %v7481_v4 = vor.u32 %v8936_v57, %v7480_v63  ;;  %v8050_v46 = vld [vmem:[#allocation9 + $0x8a8] sm:$0xf0]  ;;  %v8956_v63 = vld [vmem:[#allocation9 + $0x4d4] sm:$0xf] }
 0xa08   : > { %5338 = vmatpush.bf16.msrb.mxu0 %v7541_v23  ;;  %v9056_v23 = vld [vmem:[#allocation9 + $0x7ec] sm:$0xf0]  ;;  %v7578_v57 = vld [vmem:[#allocation9 + $0x4f0] sm:$0xf0] }
 0xa0a   : > { %5205 = vmatpush.bf16.msra.mxu3 %v8137_v44  ;;  %5348 = vmatpush.bf16.msrb.mxu1 %v7893_v26  ;;  %v7609_v44 = vor.u32 %v8968_v13, %v7608_v48  ;;  %v7706_v48 = vld [vmem:[#allocation9 + $0x5f0] sm:$0xf0] }
 0xa0b   : > { %v7709_v53 = vor.u32 %v8988_v61, %v7706_v48 }
 0xa0c   : > { %5339 = vmatpush.bf16.msrb.mxu0 %v7509_v34  ;;  %v7961_v34 = vor.u32 %v9056_v23, %v7960_v39  ;;  %v8874_v23 = vld [vmem:[#allocation9 + $0x244] sm:$0xf] }
 0xa0e   : > { %5206 = vmatpush.bf16.msra.mxu3 %v8105_v30  ;;  %5349 = vmatpush.bf16.msrb.mxu1 %v7861_v2  ;;  %v7405_v30 = vor.u32 %v8914_v59, %v7402_v15  ;;  %v8952_v2 = vld [vmem:[#allocation9 + $0x4ac] sm:$0xf0]  ;;  %v7865_v59 = vor.u32 %v9032_v35, %v7864_v18  ;;  %v7674_v15 = vld [vmem:[#allocation9 + $0x5b0] sm:$0xf0] }
 0xa0f   : > { %v7962_v18 = vld [vmem:[#allocation9 + $0x7f0] sm:$0xf0] }
 0xa10   : > { %5340 = vmatpush.bf16.msrb.mxu0 %v7477_v31  ;;  %v9099_v31 = vld [vmem:[#allocation9 + $0x94c] sm:$0xf] }
 0xa11   : > { %5302 = vmatmul.bf16.vlgmr.msra.gmra.mxu1 %v11189_v21  ;;  %v8149_v25 = vor.u32 %v9099_v31, %v8146_v50  ;;  %v8927_v31 = vld [vmem:[#allocation9 + $0x3e4] sm:$0xf0] }
 0xa12   : > { %5207 = vmatpush.bf16.msra.mxu3 %v8073_v32  ;;  %5350 = vmatpush.bf16.msrb.mxu1 %v7829_v17  ;;  %v8181_v32 = vor.u32 %v9107_v24, %v8178_v9  ;;  %v7545_v17 = vor.u32 %v8952_v2, %v7544_v28  ;;  %v8972_v9 = vld [vmem:[#allocation9 + $0x554] sm:$0xf]  ;;  %v7210_v2 = vld [vmem:[#allocation9 + $0x220] sm:$0xf0] }
 0xa13   : > { %5341 = vmatmul.bf16.vlgmr.msrb.gmra.mxu0 %v11184_v40 }
 0xa14   : > { %5385 = vmatpush.bf16.msra.mxu0 %v7705_v38  ;;  %v7338_v38 = vld [vmem:[#allocation9 + $0x320] sm:$0xf0] }
 0xa15   : > { %v7341_v10 = vor.u32 %v8898_v54, %v7338_v38  ;;  %v7440_v54 = vld [vmem:[#allocation9 + $0x3c8] sm:$0xf]  ;;  %v9059_v38 = vld [vmem:[#allocation9 + $0x80c] sm:$0xf] }
 0xa16   : > { %5208 = vmatpush.bf16.msra.mxu3 %v8041_v5  ;;  %5351 = vmatpush.bf16.msrb.mxu1 %v7797_v45  ;;  %v7897_v45 = vor.u32 %v9040_v14, %v7896_v36  ;;  %v8964_v36 = vld [vmem:[#allocation9 + $0x514] sm:$0xf] }
 0xa17   : > { %v7610_v14 = vld [vmem:[#allocation9 + $0x530] sm:$0xf0] }
 0xa18   : > { %5386 = vmatpush.bf16.msra.mxu0 %v7673_v22  ;;  %v8890_v22 = vld [vmem:[#allocation9 + $0x2c4] sm:$0xf]  ;;  %v7613_v35 = vor.u32 %v8964_v36, %v7610_v14  ;;  %v7280_v36 = vld [vmem:[#allocation9 + $0x288] sm:$0xf]  ;;  %v8088_v14 = vld [vmem:[#allocation9 + $0x8d0] sm:$0xf] }
 0xa1a   : > { %5209 = vmatpush.bf16.msra.mxu3 %v8009_v7  ;;  %5352 = vmatpush.bf16.msrb.mxu1 %v7765_v3  ;;  %v7306_v7 = vld [vmem:[#allocation9 + $0x2e0] sm:$0xf0]  ;;  %v9083_v3 = vld [vmem:[#allocation9 + $0x8cc] sm:$0xf] }
 0xa1b   : > { %v7309_v13 = vor.u32 %v8890_v22, %v7306_v7  ;;  %v9120_v22 = vld [vmem:[#allocation9 + $0x9ec] sm:$0xf0]  ;;  %v9052_v7 = vld [vmem:[#allocation9 + $0x7d4] sm:$0xf] }
 0xa1c   : > { %5387 = vmatpush.bf16.msra.mxu0 %v7641_v1  ;;  %v3599_v60 = vpop.f32.mrf.mxu3  ;;  %v8117_v1 = vor.u32 %v9091_v49, %v8114_v11  ;;  %v7736_v49 = vld [vmem:[#allocation9 + $0x610] sm:$0xf] }
 0xa1d   : > { %v3600_v58 = vadd.f32 %v3599_v60, %v3546_v42  ;;  %v8882_v42 = vld [vmem:[#allocation9 + $0x284] sm:$0xf]  ;;  %v8980_v60 = vld [vmem:[#allocation9 + $0x594] sm:$0xf]  ;;  %v9000_v11 = vld [vmem:[#allocation9 + $0x62c] sm:$0xf0] }
 0xa1e   : > { %5210 = vmatpush.bf16.msra.mxu3 %v7977_v29  ;;  %5353 = vmatpush.bf16.msrb.mxu1 %v7733_v56  ;;  %v8082_v29 = vld [vmem:[#allocation9 + $0x8e8] sm:$0xf0]  ;;  %v7277_v39 = vor.u32 %v8882_v42, %v7274_v12  ;;  %v7800_v56 = vld [vmem:[#allocation9 + $0x690] sm:$0xf]  ;;  %v7677_v62 = vor.u32 %v8980_v60, %v7674_v15  ;;  %v7737_v61 = vor.u32 %v9000_v11, %v7736_v49  ;;  %v9044_v12 = vld [vmem:[#allocation9 + $0x794] sm:$0xf] }
 0xa1f   : > { %v11197_v26 = vpack.c.bf16 %v3600_v58, %v3600_v58  ;;  %v9075_v58 = vld [vmem:[#allocation9 + $0x88c] sm:$0xf]  ;;  %v8184_v42 = vld [vmem:[#allocation9 + $0x990] sm:$0xf]  ;;  %v7344_v15 = vld [vmem:[#allocation9 + $0x308] sm:$0xf] }
 0xa20   : > { %5388 = vmatpush.bf16.msra.mxu0 %v7609_v44  ;;  %v8085_v44 = vor.u32 %v9083_v3, %v8082_v29  ;;  %v8053_v24 = vor.u32 %v9075_v58, %v8050_v46  ;;  %v9112_v3 = vld [vmem:[#allocation9 + $0x9ac] sm:$0xf0]  ;;  %v7965_v29 = vor.u32 %v9052_v7, %v7962_v18  ;;  %v8903_v46 = vld [vmem:[#allocation9 + $0x324] sm:$0xf0]  ;;  %v7680_v11 = vld [vmem:[#allocation9 + $0x598] sm:$0xf] }
 0xa21   : > { %5263 = vmatmul.bf16.vlgmr.msrb.gmra.mxu2 %v11197_v26  ;;  %5211 = vmatmul.bf16.vlgmr.msra.gmra.mxu3 %v11197_v26  ;;  %v7248_v18 = vld [vmem:[#allocation9 + $0x248] sm:$0xf] }
 0xa22   : > { %5216 = vmatpush.bf16.msrb.mxu3 %v7437_v0  ;;  %5359 = vmatpush.bf16.msrb.mxu2 %v8213_v51  ;;  %v7832_v0 = vld [vmem:[#allocation9 + $0x6d0] sm:$0xf]  ;;  %v7242_v51 = vld [vmem:[#allocation9 + $0x260] sm:$0xf0] }
 0xa23   : > { %5398 = vmatpush.bf16.msra.mxu1 %v7961_v34  ;;  %v7833_v6 = vor.u32 %v9024_v37, %v7832_v0  ;;  %v7642_v34 = vld [vmem:[#allocation9 + $0x570] sm:$0xf0]  ;;  %v7245_v33 = vor.u32 %v8874_v23, %v7242_v51  ;;  %v7581_v37 = vor.u32 %v8956_v63, %v7578_v57  ;;  %v9104_v23 = vld [vmem:[#allocation9 + $0x96c] sm:$0xf0]  ;;  %v8879_v57 = vld [vmem:[#allocation9 + $0x264] sm:$0xf0] }
 0xa24   : > { %5389 = vmatpush.bf16.msra.mxu0 %v7577_v19  ;;  %v3601_v5 = vpop.f32.mrf.mxu3  ;;  %5354 = vmatmul.bf16.vlgmr.msrb.gmra.mxu1 %v11189_v21  ;;  %v8018_v19 = vld [vmem:[#allocation9 + $0x868] sm:$0xf0]  ;;  %v7645_v50 = vor.u32 %v8972_v9, %v7642_v34  ;;  %v7930_v0 = vld [vmem:[#allocation9 + $0x7b0] sm:$0xf0]  ;;  %v7345_v9 = vor.u32 %v8903_v46, %v7344_v15  ;;  %v7312_v34 = vld [vmem:[#allocation9 + $0x2c8] sm:$0xf] }
 0xa25   : > { %v7408_v5 = vld [vmem:[#allocation9 + $0x388] sm:$0xf]  ;;  %v7933_v58 = vor.u32 %v9044_v12, %v7930_v0  ;;  %v7898_v51 = vld [vmem:[#allocation9 + $0x770] sm:$0xf0]  ;;  %v8024_v12 = vld [vmem:[#allocation9 + $0x850] sm:$0xf] }
 0xa26   : > { %5217 = vmatpush.bf16.msrb.mxu3 %v7405_v30  ;;  %5360 = vmatpush.bf16.msrb.mxu2 %v8181_v32  ;;  %v9016_v30 = vld [vmem:[#allocation9 + $0x6ac] sm:$0xf0]  ;;  %v7442_v15 = vld [vmem:[#allocation9 + $0x3e8] sm:$0xf0]  ;;  %v8969_v46 = vld [vmem:[#allocation9 + $0x534] sm:$0xf0] }
 0xa27   : > { %5399 = vmatpush.bf16.msra.mxu1 %v7929_v16  ;;  %v7801_v28 = vor.u32 %v9016_v30, %v7800_v56  ;;  %v7768_v32 = vld [vmem:[#allocation9 + $0x650] sm:$0xf]  ;;  %v8021_v16 = vor.u32 %v9067_v8, %v8018_v19  ;;  %v8940_v30 = vld [vmem:[#allocation9 + $0x454] sm:$0xf]  ;;  %v8895_v19 = vld [vmem:[#allocation9 + $0x2e4] sm:$0xf0] }
 0xa28   : > { %5390 = vmatpush.bf16.msra.mxu0 %v7545_v17  ;;  %v7213_v17 = vor.u32 %v8866_v20, %v7210_v2  ;;  %v9096_v20 = vld [vmem:[#allocation9 + $0x92c] sm:$0xf0]  ;;  %v7866_v2 = vld [vmem:[#allocation9 + $0x730] sm:$0xf0] }
 0xa29   : > { %v9072_v0 = vld [vmem:[#allocation9 + $0x86c] sm:$0xf0] }
 0xa2a   : > { %5218 = vmatpush.bf16.msrb.mxu3 %v7373_v55  ;;  %5361 = vmatpush.bf16.msrb.mxu2 %v8149_v25  ;;  %v9008_v55 = vld [vmem:[#allocation9 + $0x66c] sm:$0xf0] }
 0xa2b   : > { %5400 = vmatpush.bf16.msra.mxu1 %v7897_v45  ;;  %v7769_v25 = vor.u32 %v9008_v55, %v7768_v32  ;;  %v8919_v45 = vld [vmem:[#allocation9 + $0x3a4] sm:$0xf0]  ;;  %v8932_v55 = vld [vmem:[#allocation9 + $0x414] sm:$0xf] }
 0xa2c   : > { %5391 = vmatpush.bf16.msra.mxu0 %v7513_v27  ;;  %v7989_v27 = vor.u32 %v9059_v38, %v7986_v47  ;;  %v7409_v48 = vor.u32 %v8919_v45, %v7408_v5  ;;  %v7313_v38 = vor.u32 %v8895_v19, %v7312_v34  ;;  %v8887_v47 = vld [vmem:[#allocation9 + $0x2a4] sm:$0xf0]  ;;  %v8985_v45 = vld [vmem:[#allocation9 + $0x5b4] sm:$0xf0]  ;;  %v8218_v34 = vld [vmem:[#allocation9 + $0x9f0] sm:$0xf0] }
 0xa2d   : > { %v7281_v7 = vor.u32 %v8887_v47, %v7280_v36  ;;  %v7968_v19 = vld [vmem:[#allocation9 + $0x7d8] sm:$0xf]  ;;  %v9108_v36 = vld [vmem:[#allocation9 + $0x994] sm:$0xf] }
 0xa2e   : > { %5219 = vmatpush.bf16.msrb.mxu3 %v7341_v10  ;;  %5362 = vmatpush.bf16.msrb.mxu2 %v8117_v1  ;;  %v7441_v10 = vor.u32 %v8927_v31, %v7440_v54  ;;  %v8217_v1 = vor.u32 %v9120_v22, %v8216_v43  ;;  %v7482_v54 = vld [vmem:[#allocation9 + $0x430] sm:$0xf0]  ;;  %v7936_v47 = vld [vmem:[#allocation9 + $0x798] sm:$0xf] }
 0xa2f   : > { %5401 = vmatpush.bf16.msra.mxu1 %v7865_v59  ;;  %v8911_v59 = vld [vmem:[#allocation9 + $0x364] sm:$0xf0]  ;;  %v9020_v43 = vld [vmem:[#allocation9 + $0x6d4] sm:$0xf] }
 0xa30   : > { %5392 = vmatpush.bf16.msra.mxu0 %v7481_v4  ;;  %v8948_v4 = vld [vmem:[#allocation9 + $0x494] sm:$0xf] }
 0xa31   : > { %5315 = vmatmul.bf16.vlgmr.msra.gmra.mxu2 %v11197_v26 }
 0xa32   : > { %5220 = vmatpush.bf16.msrb.mxu3 %v7309_v13  ;;  %5363 = vmatpush.bf16.msrb.mxu2 %v8085_v44  ;;  %v7376_v13 = vld [vmem:[#allocation9 + $0x348] sm:$0xf]  ;;  %v8185_v44 = vor.u32 %v9112_v3, %v8184_v42  ;;  %v7648_v42 = vld [vmem:[#allocation9 + $0x558] sm:$0xf] }
 0xa33   : > { %5402 = vmatpush.bf16.msra.mxu1 %v7833_v6  ;;  %5393 = vmatmul.bf16.vlgmr.msra.gmra.mxu0 %v11184_v40  ;;  %v7377_v60 = vor.u32 %v8911_v59, %v7376_v13  ;;  %v9036_v6 = vld [vmem:[#allocation9 + $0x754] sm:$0xf]  ;;  %v8977_v3 = vld [vmem:[#allocation9 + $0x574] sm:$0xf0]  ;;  %v7216_v59 = vld [vmem:[#allocation9 + $0x208] sm:$0xf] }
 0xa34   : > { %5437 = vmatpush.bf16.msrb.mxu0 %v7709_v53  ;;  %v7546_v53 = vld [vmem:[#allocation9 + $0x4b0] sm:$0xf0]  ;;  %v7901_v8 = vor.u32 %v9036_v6, %v7898_v51  ;;  %v8915_v51 = vld [vmem:[#allocation9 + $0x38c] sm:$0xf] }
 0xa35   : > { %v7549_v56 = vor.u32 %v8948_v4, %v7546_v53  ;;  %v8871_v4 = vld [vmem:[#allocation9 + $0x224] sm:$0xf0]  ;;  %v9004_v53 = vld [vmem:[#allocation9 + $0x654] sm:$0xf] }
 0xa36   : > { %5221 = vmatpush.bf16.msrb.mxu3 %v7277_v39  ;;  %5364 = vmatpush.bf16.msrb.mxu2 %v8053_v24  ;;  %v8152_v39 = vld [vmem:[#allocation9 + $0x950] sm:$0xf]  ;;  %v7217_v6 = vor.u32 %v8871_v4, %v7216_v59  ;;  %v8122_v59 = vld [vmem:[#allocation9 + $0x930] sm:$0xf0]  ;;  %v9033_v4 = vld [vmem:[#allocation9 + $0x734] sm:$0xf0] }
 0xa37   : > { %5403 = vmatpush.bf16.msra.mxu1 %v7801_v28  ;;  %v8153_v24 = vor.u32 %v9104_v23, %v8152_v39  ;;  %v9028_v28 = vld [vmem:[#allocation9 + $0x714] sm:$0xf]  ;;  %v7649_v39 = vor.u32 %v8977_v3, %v7648_v42  ;;  %v8025_v23 = vor.u32 %v9072_v0, %v8024_v12  ;;  %v8891_v3 = vld [vmem:[#allocation9 + $0x2cc] sm:$0xf] }
 0xa38   : > { %5438 = vmatpush.bf16.msrb.mxu0 %v7677_v62  ;;  %v7514_v62 = vld [vmem:[#allocation9 + $0x470] sm:$0xf0]  ;;  %v7869_v5 = vor.u32 %v9028_v28, %v7866_v2  ;;  %v9057_v28 = vld [vmem:[#allocation9 + $0x7f4] sm:$0xf0]  ;;  %v7314_v0 = vld [vmem:[#allocation9 + $0x2e8] sm:$0xf0] }
 0xa39   : > { %v7517_v32 = vor.u32 %v8940_v30, %v7514_v62  ;;  %v9064_v30 = vld [vmem:[#allocation9 + $0x82c] sm:$0xf0]  ;;  %v9116_v62 = vld [vmem:[#allocation9 + $0x9d4] sm:$0xf] }
 0xa3a   : > { %5222 = vmatpush.bf16.msrb.mxu3 %v7245_v33  ;;  %5365 = vmatpush.bf16.msrb.mxu2 %v8021_v16  ;;  %v8120_v33 = vld [vmem:[#allocation9 + $0x910] sm:$0xf]  ;;  %v8993_v16 = vld [vmem:[#allocation9 + $0x5f4] sm:$0xf0] }
 0xa3b   : > { %5404 = vmatpush.bf16.msra.mxu1 %v7769_v25  ;;  %v8121_v31 = vor.u32 %v9096_v20, %v8120_v33  ;;  %v7834_v25 = vld [vmem:[#allocation9 + $0x6f0] sm:$0xf0] }
 0xa3c   : > { %5439 = vmatpush.bf16.msrb.mxu0 %v7645_v50  ;;  %v7712_v50 = vld [vmem:[#allocation9 + $0x5d8] sm:$0xf]  ;;  %v7837_v63 = vor.u32 %v9020_v43, %v7834_v25  ;;  %v8996_v33 = vld [vmem:[#allocation9 + $0x614] sm:$0xf] }
 0xa3d   : > { %v7713_v22 = vor.u32 %v8993_v16, %v7712_v50  ;;  %v7738_v20 = vld [vmem:[#allocation9 + $0x630] sm:$0xf0]  ;;  %v9049_v43 = vld [vmem:[#allocation9 + $0x7b4] sm:$0xf0] }
 0xa3e   : > { %5223 = vmatpush.bf16.msrb.mxu3 %v7213_v17  ;;  %5366 = vmatpush.bf16.msrb.mxu2 %v7989_v27  ;;  %v9088_v17 = vld [vmem:[#allocation9 + $0x8ec] sm:$0xf0]  ;;  %v7741_v50 = vor.u32 %v8996_v33, %v7738_v20  ;;  %v3864_v33 = vld [vmem:[#allocation10 + $0x4] ss:$8 sm:$0xf] }
 0xa3f   : > { %5405 = vmatpush.bf16.msra.mxu1 %v7737_v61  ;;  %v8089_v49 = vor.u32 %v9088_v17, %v8088_v14  ;;  %v9080_v27 = vld [vmem:[#allocation9 + $0x8ac] sm:$0xf0]  ;;  %v7802_v61 = vld [vmem:[#allocation9 + $0x6b0] sm:$0xf0]  ;;  %v7969_v17 = vor.u32 %v9057_v28, %v7968_v19  ;;  %v8981_v28 = vld [vmem:[#allocation9 + $0x59c] sm:$0xf] }
 0xa40   : > { %5440 = vmatpush.bf16.msrb.mxu0 %v7613_v35  ;;  %v8056_v35 = vld [vmem:[#allocation9 + $0x890] sm:$0xf]  ;;  %v8186_v14 = vld [vmem:[#allocation9 + $0x9b0] sm:$0xf0] }
 0xa41   : > { %5224 = vmatmul.bf16.vlgmr.msrb.gmra.mxu3 %v11180_v52  ;;  %5367 = vmatmul.bf16.vlgmr.msrb.gmra.mxu2 %v11197_v26  ;;  %v8057_v13 = vor.u32 %v9080_v27, %v8056_v35  ;;  %v7937_v35 = vor.u32 %v9049_v43, %v7936_v47  ;;  %v7346_v27 = vld [vmem:[#allocation9 + $0x328] sm:$0xf0]  ;;  %v7650_v47 = vld [vmem:[#allocation9 + $0x578] sm:$0xf0] }
 0xa42   : > { %5268 = vmatpush.bf16.msra.mxu3 %v7441_v10  ;;  %5411 = vmatpush.bf16.msra.mxu2 %v8217_v1  ;;  %v7485_v10 = vor.u32 %v8932_v55, %v7482_v54  ;;  %v9012_v1 = vld [vmem:[#allocation9 + $0x694] sm:$0xf]  ;;  %v7584_v55 = vld [vmem:[#allocation9 + $0x4d8] sm:$0xf] }
 0xa43   : > { %5450 = vmatpush.bf16.msrb.mxu1 %v7965_v29  ;;  %v7249_v29 = vor.u32 %v8879_v57, %v7248_v18  ;;  %v8961_v54 = vld [vmem:[#allocation9 + $0x4f4] sm:$0xf0]  ;;  %v8154_v18 = vld [vmem:[#allocation9 + $0x970] sm:$0xf0] }
 0xa44   : > { %5441 = vmatpush.bf16.msrb.mxu0 %v7581_v37  ;;  %5406 = vmatmul.bf16.vlgmr.msra.gmra.mxu1 %v11189_v21  ;;  %v7805_v37 = vor.u32 %v9012_v1, %v7802_v61  ;;  %v7585_v25 = vor.u32 %v8961_v54, %v7584_v55  ;;  %v9041_v57 = vld [vmem:[#allocation9 + $0x774] sm:$0xf0]  ;;  %v3865_v20 = vld [vmem:[#allocation10 + $0x4] ss:$8 sm:$0xf0] }
 0xa45   : > { %v7520_v61 = vld [vmem:[#allocation9 + $0x458] sm:$0xf]  ;;  %v8875_v55 = vld [vmem:[#allocation9 + $0x24c] sm:$0xf]  ;;  %v9076_v54 = vld [vmem:[#allocation9 + $0x894] sm:$0xf]  ;;  %v11213_v43 = vor.u32 %v3865_v20, %v3864_v33 }
 0xa46   : > { %5269 = vmatpush.bf16.msra.mxu3 %v7409_v48  ;;  %5412 = vmatpush.bf16.msra.mxu2 %v8185_v44  ;;  %v7681_v48 = vor.u32 %v8985_v45, %v7680_v11  ;;  %v7770_v44 = vld [vmem:[#allocation9 + $0x670] sm:$0xf0]  ;;  %v8899_v45 = vld [vmem:[#allocation9 + $0x30c] sm:$0xf] }
 0xa47   : > { %5451 = vmatpush.bf16.msrb.mxu1 %v7933_v58  ;;  %v7616_v58 = vld [vmem:[#allocation9 + $0x518] sm:$0xf]  ;;  %v7349_v42 = vor.u32 %v8899_v45, %v7346_v27  ;;  %v7218_v45 = vld [vmem:[#allocation9 + $0x228] sm:$0xf0]  ;;  %v8928_v27 = vld [vmem:[#allocation9 + $0x3ec] sm:$0xf0] }
 0xa48   : > { %5442 = vmatpush.bf16.msrb.mxu0 %v7549_v56  ;;  %v7992_v56 = vld [vmem:[#allocation9 + $0x810] sm:$0xf]  ;;  %v7617_v2 = vor.u32 %v8969_v46, %v7616_v58  ;;  %v7317_v58 = vor.u32 %v8891_v3, %v7314_v0  ;;  %v8883_v46 = vld [vmem:[#allocation9 + $0x28c] sm:$0xf] }
 0xa49   : > { %v7416_v3 = vld [vmem:[#allocation9 + $0x390] sm:$0xf] }
 0xa4a   : > { %5270 = vmatpush.bf16.msra.mxu3 %v7377_v60  ;;  %5413 = vmatpush.bf16.msra.mxu2 %v8153_v24  ;;  %v8923_v60 = vld [vmem:[#allocation9 + $0x3cc] sm:$0xf]  ;;  %v7773_v24 = vor.u32 %v9004_v53, %v7770_v44  ;;  %v7488_v44 = vld [vmem:[#allocation9 + $0x418] sm:$0xf] }
 0xa4b   : > { %5452 = vmatpush.bf16.msrb.mxu1 %v7901_v8  ;;  %v7410_v8 = vld [vmem:[#allocation9 + $0x3a8] sm:$0xf0] }
 0xa4c   : > { %5443 = vmatpush.bf16.msrb.mxu0 %v7517_v32  ;;  %v7993_v32 = vor.u32 %v9064_v30, %v7992_v56  ;;  %v7413_v16 = vor.u32 %v8915_v51, %v7410_v8  ;;  %v8090_v51 = vld [vmem:[#allocation9 + $0x8f0] sm:$0xf0]  ;;  %v7282_v30 = vld [vmem:[#allocation9 + $0x2a8] sm:$0xf0] }
 0xa4e   : > { %5271 = vmatpush.bf16.msra.mxu3 %v7345_v9  ;;  %5414 = vmatpush.bf16.msra.mxu2 %v8121_v31  ;;  %v7445_v9 = vor.u32 %v8923_v60, %v7442_v15  ;;  %v8221_v31 = vor.u32 %v9116_v62, %v8218_v34  ;;  %v8937_v60 = vld [vmem:[#allocation9 + $0x434] sm:$0xf0] }
 0xa4f   : > { %5453 = vmatpush.bf16.msrb.mxu1 %v7869_v5  ;;  %v7378_v5 = vld [vmem:[#allocation9 + $0x368] sm:$0xf0]  ;;  %v7840_v62 = vld [vmem:[#allocation9 + $0x6d8] sm:$0xf] }
 0xa50   : > { %5444 = vmatpush.bf16.msrb.mxu0 %v7485_v10  ;;  %v7552_v10 = vld [vmem:[#allocation9 + $0x498] sm:$0xf] }
 0xa52   : > { %5272 = vmatpush.bf16.msra.mxu3 %v7313_v38  ;;  %5415 = vmatpush.bf16.msra.mxu2 %v8089_v49  ;;  %v8907_v38 = vld [vmem:[#allocation9 + $0x34c] sm:$0xf]  ;;  %v8189_v49 = vor.u32 %v9108_v36, %v8186_v14  ;;  %v9017_v36 = vld [vmem:[#allocation9 + $0x6b4] sm:$0xf0] }
 0xa53   : > { %5454 = vmatpush.bf16.msrb.mxu1 %v7837_v63  ;;  %5445 = vmatmul.bf16.vlgmr.msrb.gmra.mxu0 %v11184_v40  ;;  %v7381_v11 = vor.u32 %v8907_v38, %v7378_v5  ;;  %v7904_v63 = vld [vmem:[#allocation9 + $0x758] sm:$0xf]  ;;  %v8973_v5 = vld [vmem:[#allocation9 + $0x55c] sm:$0xf] }
 0xa54   : > { %5489 = vmatpush.bf16.msra.mxu0 %v7713_v22  ;;  %v8953_v22 = vld [vmem:[#allocation9 + $0x4b4] sm:$0xf0]  ;;  %v7905_v12 = vor.u32 %v9041_v57, %v7904_v63  ;;  %v7653_v63 = vor.u32 %v8973_v5, %v7650_v47  ;;  %v8904_v47 = vld [vmem:[#allocation9 + $0x32c] sm:$0xf0] }
 0xa55   : > { %v7553_v1 = vor.u32 %v8953_v22, %v7552_v10  ;;  %v7808_v38 = vld [vmem:[#allocation9 + $0x698] sm:$0xf]  ;;  %v8867_v10 = vld [vmem:[#allocation9 + $0x20c] sm:$0xf]  ;;  %v9068_v22 = vld [vmem:[#allocation9 + $0x854] sm:$0xf] }
 0xa56   : > { %5273 = vmatpush.bf16.msra.mxu3 %v7281_v7  ;;  %5416 = vmatpush.bf16.msra.mxu2 %v8057_v13  ;;  %v9100_v7 = vld [vmem:[#allocation9 + $0x954] sm:$0xf] }
 0xa57   : > { %5455 = vmatpush.bf16.msrb.mxu1 %v7805_v37  ;;  %v8157_v13 = vor.u32 %v9100_v7, %v8154_v18  ;;  %v7872_v37 = vld [vmem:[#allocation9 + $0x718] sm:$0xf] }
 0xa58   : > { %5490 = vmatpush.bf16.msra.mxu0 %v7681_v48  ;;  %v8945_v48 = vld [vmem:[#allocation9 + $0x474] sm:$0xf0]  ;;  %v7873_v56 = vor.u32 %v9033_v4, %v7872_v37 }
 0xa59   : > { %v7521_v53 = vor.u32 %v8945_v48, %v7520_v61  ;;  %v7776_v7 = vld [vmem:[#allocation9 + $0x658] sm:$0xf]  ;;  %v8965_v61 = vld [vmem:[#allocation9 + $0x51c] sm:$0xf] }
 0xa5a   : > { %5274 = vmatpush.bf16.msra.mxu3 %v7249_v29  ;;  %5417 = vmatpush.bf16.msra.mxu2 %v8025_v23  ;;  %v9092_v29 = vld [vmem:[#allocation9 + $0x914] sm:$0xf]  ;;  %v7714_v23 = vld [vmem:[#allocation9 + $0x5f8] sm:$0xf0]  ;;  %v9009_v18 = vld [vmem:[#allocation9 + $0x674] sm:$0xf0] }
 0xa5b   : > { %5456 = vmatpush.bf16.msrb.mxu1 %v7773_v24  ;;  %v8125_v15 = vor.u32 %v9092_v29, %v8122_v59  ;;  %v9025_v24 = vld [vmem:[#allocation9 + $0x6f4] sm:$0xf0]  ;;  %v7618_v48 = vld [vmem:[#allocation9 + $0x538] sm:$0xf0]  ;;  %v9060_v29 = vld [vmem:[#allocation9 + $0x814] sm:$0xf]  ;;  %v7777_v0 = vor.u32 %v9009_v18, %v7776_v7 }
 0xa5c   : > { %5491 = vmatpush.bf16.msra.mxu0 %v7649_v39  ;;  %v8989_v39 = vld [vmem:[#allocation9 + $0x5dc] sm:$0xf]  ;;  %v7994_v59 = vld [vmem:[#allocation9 + $0x830] sm:$0xf0]  ;;  %v9121_v4 = vld [vmem:[#allocation9 + $0x9f4] sm:$0xf0] }
 0xa5d   : > { %v7717_v34 = vor.u32 %v8989_v39, %v7714_v23  ;;  %v9053_v39 = vld [vmem:[#allocation9 + $0x7dc] sm:$0xf]  ;;  %v7320_v18 = vld [vmem:[#allocation9 + $0x2d0] sm:$0xf] }
 0xa5e   : > { %5275 = vmatpush.bf16.msra.mxu3 %v7217_v6  ;;  %5418 = vmatpush.bf16.msra.mxu2 %v7993_v32  ;;  %v9084_v6 = vld [vmem:[#allocation9 + $0x8d4] sm:$0xf]  ;;  %v7285_v32 = vor.u32 %v8883_v46, %v7282_v30  ;;  %v7970_v23 = vld [vmem:[#allocation9 + $0x7f8] sm:$0xf0]  ;;  %v7997_v46 = vor.u32 %v9060_v29, %v7994_v59 }
 0xa5f   : > { %5457 = vmatpush.bf16.msrb.mxu1 %v7741_v50  ;;  %v8093_v19 = vor.u32 %v9084_v6, %v8090_v51  ;;  %v7841_v50 = vor.u32 %v9025_v24, %v7840_v62  ;;  %v8957_v6 = vld [vmem:[#allocation9 + $0x4dc] sm:$0xf]  ;;  %v7384_v24 = vld [vmem:[#allocation9 + $0x350] sm:$0xf]  ;;  %v7973_v33 = vor.u32 %v9053_v39, %v7970_v23 }
 0xa60   : > { %5492 = vmatpush.bf16.msra.mxu0 %v7617_v2  ;;  %v7682_v2 = vld [vmem:[#allocation9 + $0x5b8] sm:$0xf0] }
 0xa61   : > { %5276 = vmatmul.bf16.vlgmr.msra.gmra.mxu3 %v11180_v52  ;;  %5419 = vmatmul.bf16.vlgmr.msra.gmra.mxu2 %v11197_v26  ;;  %v7685_v14 = vor.u32 %v8981_v28, %v7682_v2  ;;  %v7586_v51 = vld [vmem:[#allocation9 + $0x4f8] sm:$0xf0] }
 0xa62   : > { %5320 = vmatpush.bf16.msrb.mxu3 %v7445_v9  ;;  %5463 = vmatpush.bf16.msrb.mxu2 %v8221_v31  ;;  %v7489_v9 = vor.u32 %v8937_v60, %v7488_v44  ;;  %v8058_v31 = vld [vmem:[#allocation9 + $0x8b0] sm:$0xf0]  ;;  %v9001_v44 = vld [vmem:[#allocation9 + $0x634] sm:$0xf0]  ;;  %v9045_v28 = vld [vmem:[#allocation9 + $0x79c] sm:$0xf] }
 0xa63   : > { %5502 = vmatpush.bf16.msra.mxu1 %v7969_v17  ;;  %v8061_v17 = vor.u32 %v9076_v54, %v8058_v31  ;;  %v7938_v2 = vld [vmem:[#allocation9 + $0x7b8] sm:$0xf0] }
 0xa64   : > { %5493 = vmatpush.bf16.msra.mxu0 %v7585_v25  ;;  %5458 = vmatmul.bf16.vlgmr.msrb.gmra.mxu1 %v11189_v21  ;;  %v11211_v8 = vpop.f32.mrf.mxu3  ;;  %v8949_v54 = vld [vmem:[#allocation9 + $0x49c] sm:$0xf] }
 0xa65   : > { %v7554_v31 = vld [vmem:[#allocation9 + $0x4b8] sm:$0xf0] }
 0xa66   : > { %5321 = vmatpush.bf16.msrb.mxu3 %v7413_v16  ;;  %5464 = vmatpush.bf16.msrb.mxu2 %v8189_v49  ;;  %v7250_v16 = vld [vmem:[#allocation9 + $0x268] sm:$0xf0]  ;;  %v8026_v49 = vld [vmem:[#allocation9 + $0x870] sm:$0xf0]  ;;  %v9021_v39 = vld [vmem:[#allocation9 + $0x6dc] sm:$0xf] }
 0xa67   : > { %5503 = vmatpush.bf16.msra.mxu1 %v7937_v35  ;;  %v7253_v25 = vor.u32 %v8875_v55, %v7250_v16  ;;  %v7448_v35 = vld [vmem:[#allocation9 + $0x3d0] sm:$0xf]  ;;  %v7842_v23 = vld [vmem:[#allocation9 + $0x6f8] sm:$0xf0] }
 0xa68   : > { %5494 = vmatpush.bf16.msra.mxu0 %v7553_v1  ;;  %v8029_v1 = vor.u32 %v9068_v22, %v8026_v49  ;;  %v7449_v37 = vor.u32 %v8928_v27, %v7448_v35  ;;  %v7557_v22 = vor.u32 %v8949_v54, %v7554_v31  ;;  %v8941_v49 = vld [vmem:[#allocation9 + $0x45c] sm:$0xf]  ;;  %v8128_v35 = vld [vmem:[#allocation9 + $0x918] sm:$0xf] }
 0xa69   : > { %v9097_v27 = vld [vmem:[#allocation9 + $0x934] sm:$0xf0] }
 0xa6a   : > { %5322 = vmatpush.bf16.msrb.mxu3 %v7381_v11  ;;  %5465 = vmatpush.bf16.msrb.mxu2 %v8157_v13  ;;  %v7809_v11 = vor.u32 %v9017_v36, %v7808_v38  ;;  %v5148_v13 = vperm.slane %v11213_v43, 0  ;;  %v7352_v36 = vld [vmem:[#allocation9 + $0x310] sm:$0xf]  ;;  %v8129_v29 = vor.u32 %v9097_v27, %v8128_v35  ;;  %v9073_v54 = vld [vmem:[#allocation9 + $0x874] sm:$0xf0] }
 0xa6b   : > { %5504 = vmatpush.bf16.msra.mxu1 %v7905_v12  ;;  %v8224_v12 = vld [vmem:[#allocation9 + $0x9d8] sm:$0xf]  ;;  %v7353_v7 = vor.u32 %v8904_v47, %v7352_v36  ;;  %v9005_v36 = vld [vmem:[#allocation9 + $0x65c] sm:$0xf]  ;;  %v8352_v35 = vld [vmem:[#allocation7 + $0x200] sm:$0xf] }
 0xa6c   : > { %5495 = vmatpush.bf16.msra.mxu0 %v7521_v53  ;;  %v5175_v57 = vpop.f32.mrf.mxu3  ;;  %v7744_v53 = vld [vmem:[#allocation9 + $0x618] sm:$0xf]  ;;  %v5174_v20 = vadd.f32 %v11211_v8, %v5148_v13  ;;  %v8916_v27 = vld [vmem:[#allocation9 + $0x394] sm:$0xf] }
 0xa6d   : > { %v7745_v30 = vor.u32 %v9001_v44, %v7744_v53  ;;  %v8160_v8 = vld [vmem:[#allocation9 + $0x958] sm:$0xf]  ;;  %v8896_v57 = vld [vmem:[#allocation9 + $0x2ec] sm:$0xf0] }
 0xa6e   : > { %5323 = vmatpush.bf16.msrb.mxu3 %v7349_v42  ;;  %5466 = vmatpush.bf16.msrb.mxu2 %v8125_v15  ;;  %v7221_v42 = vor.u32 %v8867_v10, %v7218_v45  ;;  %v11217_v60 = vpop.f32.mrf.mxu0  ;;  %v8920_v15 = vld [vmem:[#allocation9 + $0x3ac] sm:$0xf0]  ;;  %v7906_v10 = vld [vmem:[#allocation9 + $0x778] sm:$0xf0] }
 0xa6f   : > { %5505 = vmatpush.bf16.msra.mxu1 %v7873_v56  ;;  %v8225_v56 = vor.u32 %v9121_v4, %v8224_v12  ;;  %v7417_v62 = vor.u32 %v8920_v15, %v7416_v3  ;;  %v7490_v3 = vld [vmem:[#allocation9 + $0x438] sm:$0xf0]  ;;  %v7321_v12 = vor.u32 %v8896_v57, %v7320_v18  ;;  %v9089_v4 = vld [vmem:[#allocation9 + $0x8f4] sm:$0xf0]  ;;  %v8888_v15 = vld [vmem:[#allocation9 + $0x2ac] sm:$0xf0] }
 0xa70   : > { %5496 = vmatpush.bf16.msra.mxu0 %v7489_v9  ;;  %v8192_v9 = vld [vmem:[#allocation9 + $0x998] sm:$0xf] }
 0xa72   : > { %5324 = vmatpush.bf16.msrb.mxu3 %v7317_v58  ;;  %5467 = vmatpush.bf16.msrb.mxu2 %v8093_v19  ;;  %v7621_v58 = vor.u32 %v8965_v61, %v7618_v48  ;;  %v8912_v19 = vld [vmem:[#allocation9 + $0x36c] sm:$0xf0]  ;;  %v7874_v61 = vld [vmem:[#allocation9 + $0x738] sm:$0xf0] }
 0xa73   : > { %5506 = vmatpush.bf16.msra.mxu1 %v7841_v50  ;;  %5497 = vmatmul.bf16.vlgmr.msra.gmra.mxu0 %v11184_v40  ;;  %v7385_v38 = vor.u32 %v8912_v19, %v7384_v24  ;;  %v8880_v24 = vld [vmem:[#allocation9 + $0x26c] sm:$0xf0] }
 0xa74   : > { %5541 = vmatpush.bf16.msrb.mxu0 %v7717_v34  ;;  %v9113_v34 = vld [vmem:[#allocation9 + $0x9b4] sm:$0xf0]  ;;  %v5186_v55 = vpop.f32.mrf.mxu3 }
 0xa75   : > { %v11221_v50 = vadd.f32 %v5186_v55, %v5174_v20  ;;  %v8193_v16 = vor.u32 %v9113_v34, %v8192_v9  ;;  %v9013_v9 = vld [vmem:[#allocation9 + $0x69c] sm:$0xf]  ;;  %v8032_v55 = vld [vmem:[#allocation9 + $0x858] sm:$0xf] }
 0xa76   : > { %5325 = vmatpush.bf16.msrb.mxu3 %v7285_v32  ;;  %5468 = vmatpush.bf16.msrb.mxu2 %v8061_v17  ;;  %v7589_v32 = vor.u32 %v8957_v6, %v7586_v51  ;;  %v7941_v17 = vor.u32 %v9045_v28, %v7938_v2  ;;  %v5240_v5 = vpop.f32.mrf.mxu0  ;;  %v7256_v51 = vld [vmem:[#allocation9 + $0x250] sm:$0xf]  ;;  %v7810_v34 = vld [vmem:[#allocation9 + $0x6b8] sm:$0xf0] }
 0xa77   : > { %5507 = vmatpush.bf16.msra.mxu1 %v7809_v11  ;;  %v7522_v11 = vld [vmem:[#allocation9 + $0x478] sm:$0xf0]  ;;  %v7257_v2 = vor.u32 %v8880_v24, %v7256_v51  ;;  %v7813_v31 = vor.u32 %v9013_v9, %v7810_v34  ;;  %v8000_v5 = vld [vmem:[#allocation9 + $0x818] sm:$0xf] }
 0xa78   : > { %5542 = vmatpush.bf16.msrb.mxu0 %v7685_v14  ;;  %v9105_v14 = vld [vmem:[#allocation9 + $0x974] sm:$0xf0]  ;;  %v7525_v48 = vor.u32 %v8941_v49, %v7522_v11  ;;  %v9093_v34 = vld [vmem:[#allocation9 + $0x91c] sm:$0xf] }
 0xa79   : > { %v8161_v45 = vor.u32 %v9105_v14, %v8160_v8  ;;  %v7778_v8 = vld [vmem:[#allocation9 + $0x678] sm:$0xf0]  ;;  %v8924_v14 = vld [vmem:[#allocation9 + $0x3d4] sm:$0xf]  ;;  %v9149_v51 = vld [vmem:[#allocation7 + $0x1e4] sm:$0xf0] }
 0xa7a   : > { %5326 = vmatpush.bf16.msrb.mxu3 %v7253_v25  ;;  %5469 = vmatpush.bf16.msrb.mxu2 %v8029_v1  ;;  %v9037_v25 = vld [vmem:[#allocation9 + $0x75c] sm:$0xf]  ;;  %v7781_v49 = vor.u32 %v9005_v36, %v7778_v8  ;;  %v8320_v8 = vld [vmem:[#allocation7 + $0x1c0] sm:$0xf] }
 0xa7b   : > { %5508 = vmatpush.bf16.msra.mxu1 %v7777_v0  ;;  %v9029_v1 = vld [vmem:[#allocation9 + $0x71c] sm:$0xf]  ;;  %v7288_v0 = vld [vmem:[#allocation9 + $0x290] sm:$0xf] }
 0xa7c   : > { %5543 = vmatpush.bf16.msrb.mxu0 %v7653_v63  ;;  %v7909_v63 = vor.u32 %v9037_v25, %v7906_v10  ;;  %v5188_v13 = vpop.f32.mrf.mxu3  ;;  %v7877_v53 = vor.u32 %v9029_v1, %v7874_v61  ;;  %v7289_v6 = vor.u32 %v8888_v15, %v7288_v0  ;;  %v9065_v25 = vld [vmem:[#allocation9 + $0x834] sm:$0xf0]  ;;  %v9117_v10 = vld [vmem:[#allocation9 + $0x9dc] sm:$0xf]  ;;  %v8344_v0 = vld [vmem:[#allocation7 + $0x1f0] sm:$0xf] }
 0xa7d   : > { %v8001_v57 = vor.u32 %v9065_v25, %v8000_v5  ;;  %v9109_v13 = vld [vmem:[#allocation9 + $0x99c] sm:$0xf] }
 0xa7e   : > { %5327 = vmatpush.bf16.msrb.mxu3 %v7221_v42  ;;  %5470 = vmatpush.bf16.msrb.mxu2 %v7997_v46  ;;  %v8933_v42 = vld [vmem:[#allocation9 + $0x41c] sm:$0xf]  ;;  %v11225_v59 = vpop.f32.mrf.mxu1 }
 0xa7f   : > { %5509 = vmatpush.bf16.msra.mxu1 %v7745_v30  ;;  %v9081_v30 = vld [vmem:[#allocation9 + $0x8b4] sm:$0xf0]  ;;  %v9077_v25 = vld [vmem:[#allocation9 + $0x89c] sm:$0xf] }
 0xa80   : > { %5544 = vmatpush.bf16.msrb.mxu0 %v7621_v58  ;;  %v11227_v44 = vpop.f32.mrf.mxu0  ;;  %v7493_v58 = vor.u32 %v8933_v42, %v7490_v3 }
 0xa81   : > { %5328 = vmatmul.bf16.vlgmr.msrb.gmra.mxu3 %v11180_v52  ;;  %5471 = vmatmul.bf16.vlgmr.msrb.gmra.mxu2 %v11197_v26 }
 0xa82   : > { %5372 = vmatpush.bf16.msra.mxu3 %v7449_v37  ;;  %5515 = vmatpush.bf16.msra.mxu2 %v8225_v56  ;;  %v8096_v37 = vld [vmem:[#allocation9 + $0x8d8] sm:$0xf] }
 0xa83   : > { %5554 = vmatpush.bf16.msrb.mxu1 %v7973_v33  ;;  %v8097_v46 = vor.u32 %v9089_v4, %v8096_v37  ;;  %v8064_v56 = vld [vmem:[#allocation9 + $0x898] sm:$0xf]  ;;  %v9151_v37 = vld [vmem:[#allocation7 + $0x1f4] sm:$0xf0]  ;;  %v8908_v4 = vld [vmem:[#allocation9 + $0x354] sm:$0xf] }
 0xa84   : > { %5545 = vmatpush.bf16.msrb.mxu0 %v7589_v32  ;;  %5510 = vmatmul.bf16.vlgmr.msra.gmra.mxu1 %v11189_v21  ;;  %v5199_v33 = vpop.f32.mrf.mxu3  ;;  %v8065_v19 = vor.u32 %v9081_v30, %v8064_v56  ;;  %v7224_v32 = vld [vmem:[#allocation9 + $0x210] sm:$0xf]  ;;  %v8345_v15 = vor.u32 %v9151_v37, %v8344_v0  ;;  %v8900_v56 = vld [vmem:[#allocation9 + $0x314] sm:$0xf] }
 0xa85   : > { %v11230_v20 = vadd.f32 %v5199_v33, %v11221_v50  ;;  %v8033_v50 = vor.u32 %v9073_v54, %v8032_v55  ;;  %v7354_v30 = vld [vmem:[#allocation9 + $0x330] sm:$0xf0] }
 0xa86   : > { %5373 = vmatpush.bf16.msra.mxu3 %v7417_v62  ;;  %5516 = vmatpush.bf16.msra.mxu2 %v8193_v16  ;;  %v7845_v62 = vor.u32 %v9021_v39, %v7842_v23  ;;  %v5253_v28 = vpop.f32.mrf.mxu1  ;;  %v9101_v23 = vld [vmem:[#allocation9 + $0x95c] sm:$0xf]  ;;  %v8892_v55 = vld [vmem:[#allocation9 + $0x2d4] sm:$0xf] }
 0xa87   : > { %5555 = vmatpush.bf16.msrb.mxu1 %v7941_v17  ;;  %v7450_v17 = vld [vmem:[#allocation9 + $0x3f0] sm:$0xf0]  ;;  %v8130_v28 = vld [vmem:[#allocation9 + $0x938] sm:$0xf0] }
 0xa88   : > { %5546 = vmatpush.bf16.msrb.mxu0 %v7557_v22  ;;  %v5292_v16 = vpop.f32.mrf.mxu0  ;;  %v8226_v22 = vld [vmem:[#allocation9 + $0x9f8] sm:$0xf0]  ;;  %v7453_v11 = vor.u32 %v8924_v14, %v7450_v17  ;;  %v7322_v54 = vld [vmem:[#allocation9 + $0x2f0] sm:$0xf0]  ;;  %v9145_v14 = vld [vmem:[#allocation7 + $0x1c4] sm:$0xf0] }
 0xa89   : > { %v8133_v16 = vor.u32 %v9093_v34, %v8130_v28  ;;  %v7325_v36 = vor.u32 %v8892_v55, %v7322_v54  ;;  %v8884_v17 = vld [vmem:[#allocation9 + $0x294] sm:$0xf]  ;;  %v8321_v5 = vor.u32 %v9145_v14, %v8320_v8  ;;  %v8921_v34 = vld [vmem:[#allocation9 + $0x3b4] sm:$0xf0]  ;;  %v9167_v55 = vld [vmem:[#allocation7 + $0x274] sm:$0xf0] }
 0xa8a   : > { %5374 = vmatpush.bf16.msra.mxu3 %v7385_v38  ;;  %5517 = vmatpush.bf16.msra.mxu2 %v8161_v45  ;;  %v8872_v38 = vld [vmem:[#allocation9 + $0x22c] sm:$0xf0]  ;;  %v8997_v45 = vld [vmem:[#allocation9 + $0x61c] sm:$0xf]  ;;  %v7226_v0 = vld [vmem:[#allocation9 + $0x230] sm:$0xf0] }
 0xa8b   : > { %5556 = vmatpush.bf16.msrb.mxu1 %v7909_v63  ;;  %v7225_v47 = vor.u32 %v8872_v38, %v7224_v32  ;;  %v7418_v63 = vld [vmem:[#allocation9 + $0x3b0] sm:$0xf0]  ;;  %v9147_v32 = vld [vmem:[#allocation7 + $0x1d4] sm:$0xf0]  ;;  %v9085_v38 = vld [vmem:[#allocation9 + $0x8dc] sm:$0xf] }
 0xa8c   : > { %5547 = vmatpush.bf16.msrb.mxu0 %v7525_v48  ;;  %v5201_v18 = vpop.f32.mrf.mxu3  ;;  %v8229_v48 = vor.u32 %v9117_v10, %v8226_v22  ;;  %v7392_v54 = vld [vmem:[#allocation9 + $0x358] sm:$0xf]  ;;  %v8400_v8 = vld [vmem:[#allocation7 + $0x260] sm:$0xf] }
 0xa8d   : > { %v7258_v18 = vld [vmem:[#allocation9 + $0x270] sm:$0xf0]  ;;  %v9165_v14 = vld [vmem:[#allocation7 + $0x264] sm:$0xf0] }
 0xa8e   : > { %5375 = vmatpush.bf16.msra.mxu3 %v7353_v7  ;;  %5518 = vmatpush.bf16.msra.mxu2 %v8129_v29  ;;  %v7746_v7 = vld [vmem:[#allocation9 + $0x638] sm:$0xf0]  ;;  %v11233_v1 = vpop.f32.mrf.mxu1  ;;  %v7421_v29 = vor.u32 %v8916_v27, %v7418_v63 }
 0xa8f   : > { %5557 = vmatpush.bf16.msrb.mxu1 %v7877_v53  ;;  %v7749_v42 = vor.u32 %v8997_v45, %v7746_v7  ;;  %v7386_v53 = vld [vmem:[#allocation9 + $0x370] sm:$0xf0]  ;;  %v9143_v45 = vld [vmem:[#allocation7 + $0x1b4] sm:$0xf0] }
 0xa90   : > { %5548 = vmatpush.bf16.msrb.mxu0 %v7493_v58  ;;  %v11235_v3 = vpop.f32.mrf.mxu0  ;;  %v7389_v58 = vor.u32 %v8908_v4, %v7386_v53  ;;  %v8876_v7 = vld [vmem:[#allocation9 + $0x254] sm:$0xf]  ;;  %v7456_v4 = vld [vmem:[#allocation9 + $0x3d8] sm:$0xf] }
 0xa91   : > { %v8929_v53 = vld [vmem:[#allocation9 + $0x3f4] sm:$0xf0] }
 0xa92   : > { %5376 = vmatpush.bf16.msra.mxu3 %v7321_v12  ;;  %5519 = vmatpush.bf16.msra.mxu2 %v8097_v46  ;;  %v8194_v12 = vld [vmem:[#allocation9 + $0x9b8] sm:$0xf0] }
 0xa93   : > { %5558 = vmatpush.bf16.msrb.mxu1 %v7845_v62  ;;  %5549 = vmatmul.bf16.vlgmr.msrb.gmra.mxu0 %v11184_v40  ;;  %v9153_v40 = vld [vmem:[#allocation7 + $0x204] sm:$0xf0]  ;;  %v8197_v39 = vor.u32 %v9109_v13, %v8194_v12  ;;  %v8162_v46 = vld [vmem:[#allocation9 + $0x978] sm:$0xf0]  ;;  %v8868_v12 = vld [vmem:[#allocation9 + $0x214] sm:$0xf] }
 0xa94   : > { %v8353_v61 = vor.u32 %v9153_v40, %v8352_v35  ;;  %v8165_v9 = vor.u32 %v9101_v23, %v8162_v46  ;;  %v8034_v13 = vld [vmem:[#allocation9 + $0x878] sm:$0xf0]  ;;  %v8296_v46 = vld [vmem:[#allocation7 + $0x190] sm:$0xf] }
 0xa96   : > { %5377 = vmatpush.bf16.msra.mxu3 %v7289_v6  ;;  %5520 = vmatpush.bf16.msra.mxu2 %v8065_v19  ;;  %v8336_v6 = vld [vmem:[#allocation7 + $0x1e0] sm:$0xf]  ;;  %v5305_v24 = vpop.f32.mrf.mxu1  ;;  %v7357_v19 = vor.u32 %v8900_v56, %v7354_v30 }
 0xa97   : > { %5559 = vmatpush.bf16.msrb.mxu1 %v7813_v31  ;;  %6384 = vmatpush.bf16.msra.mxu0 %v8353_v61  ;;  %v8337_v62 = vor.u32 %v9149_v51, %v8336_v6  ;;  %v9069_v61 = vld [vmem:[#allocation9 + $0x85c] sm:$0xf]  ;;  %v9139_v6 = vld [vmem:[#allocation7 + $0x194] sm:$0xf0]  ;;  %v7457_v51 = vor.u32 %v8929_v53, %v7456_v4  ;;  %v8416_v24 = vld [vmem:[#allocation7 + $0x280] sm:$0xf] }
 0xa98   : > { %v5344_v33 = vpop.f32.mrf.mxu0  ;;  %v8881_v4 = vld [vmem:[#allocation9 + $0x274] sm:$0xf0] }
 0xa99   : > { %v9169_v33 = vld [vmem:[#allocation7 + $0x284] sm:$0xf0] }
 0xa9a   : > { %5378 = vmatpush.bf16.msra.mxu3 %v7257_v2  ;;  %5521 = vmatpush.bf16.msra.mxu2 %v8033_v50  ;;  %v8328_v2 = vld [vmem:[#allocation7 + $0x1d0] sm:$0xf]  ;;  %v7290_v50 = vld [vmem:[#allocation9 + $0x2b0] sm:$0xf0]  ;;  %v8417_v28 = vor.u32 %v9169_v33, %v8416_v24  ;;  %v7458_v24 = vld [vmem:[#allocation9 + $0x3f8] sm:$0xf0] }
 0xa9b   : > { %5560 = vmatpush.bf16.msrb.mxu1 %v7781_v49  ;;  %6385 = vmatpush.bf16.msra.mxu0 %v8345_v15  ;;  %v8329_v31 = vor.u32 %v9147_v32, %v8328_v2  ;;  %v7293_v22 = vor.u32 %v8884_v17, %v7290_v50  ;;  %v8066_v49 = vld [vmem:[#allocation9 + $0x8b8] sm:$0xf0]  ;;  %v8037_v15 = vor.u32 %v9069_v61, %v8034_v13  ;;  %v8408_v32 = vld [vmem:[#allocation7 + $0x270] sm:$0xf]  ;;  %v7360_v17 = vld [vmem:[#allocation9 + $0x318] sm:$0xf] }
 0xa9c   : > { %v8905_v50 = vld [vmem:[#allocation9 + $0x334] sm:$0xf0]  ;;  %v5149_v13 = vperm.slane %v11213_v43, 1 }
 0xa9d   : > { %v7296_v61 = vld [vmem:[#allocation9 + $0x298] sm:$0xf] }
 0xa9e   : > { %5379 = vmatpush.bf16.msra.mxu3 %v7225_v47  ;;  %5522 = vmatpush.bf16.msra.mxu2 %v8001_v57  ;;  %v8069_v57 = vor.u32 %v9077_v25, %v8066_v49  ;;  %v8392_v25 = vld [vmem:[#allocation7 + $0x250] sm:$0xf]  ;;  %v7328_v49 = vld [vmem:[#allocation9 + $0x2d8] sm:$0xf] }
 0xa9f   : > { %5561 = vmatpush.bf16.msrb.mxu1 %v7749_v42  ;;  %6386 = vmatpush.bf16.msra.mxu0 %v8337_v62  ;;  %v8304_v42 = vld [vmem:[#allocation7 + $0x1a0] sm:$0xf]  ;;  %v8297_v62 = vor.u32 %v9139_v6, %v8296_v46  ;;  %v9157_v6 = vld [vmem:[#allocation7 + $0x224] sm:$0xf0] }
 0xaa0   : > { %v8368_v46 = vld [vmem:[#allocation7 + $0x220] sm:$0xf] }
 0xaa1   : > { %5380 = vmatmul.bf16.vlgmr.msra.gmra.mxu3 %v11180_v52  ;;  %5523 = vmatmul.bf16.vlgmr.msra.gmra.mxu2 %v11197_v26  ;;  %v11240_v10 = vpop.f32.mrf.mxu1 }
 0xaa2   : > { %5424 = vmatpush.bf16.msrb.mxu3 %v7453_v11  ;;  %5567 = vmatpush.bf16.msrb.mxu2 %v8229_v48  ;;  %v8312_v11 = vld [vmem:[#allocation7 + $0x1b0] sm:$0xf]  ;;  %v7261_v48 = vor.u32 %v8876_v7, %v7258_v18 }
 0xaa3   : > { %5562 = vmatmul.bf16.vlgmr.msrb.gmra.mxu1 %v11189_v21  ;;  %v8098_v21 = vld [vmem:[#allocation9 + $0x8f8] sm:$0xf0]  ;;  %6387 = vmatpush.bf16.msra.mxu0 %v8329_v31  ;;  %v8313_v63 = vor.u32 %v9143_v45, %v8312_v11  ;;  %v8913_v31 = vld [vmem:[#allocation9 + $0x374] sm:$0xf0] }
 0xaa4   : > { %v8101_v47 = vor.u32 %v9085_v38, %v8098_v21  ;;  %v11242_v35 = vpop.f32.mrf.mxu2  ;;  %v5212_v27 = vpop.f32.mrf.mxu3  ;;  %6397 = vmatpush.bf16.msra.mxu1 %v8417_v28  ;;  %v8409_v38 = vor.u32 %v9167_v55, %v8408_v32  ;;  %v8897_v11 = vld [vmem:[#allocation9 + $0x2f4] sm:$0xf0]  ;;  %v8360_v28 = vld [vmem:[#allocation7 + $0x210] sm:$0xf]  ;;  %v8917_v32 = vld [vmem:[#allocation9 + $0x39c] sm:$0xf] }
 0xaa5   : > { %v11245_v40 = vadd.f32 %v5212_v27, %v11230_v20  ;;  %v7229_v20 = vor.u32 %v8868_v12, %v7226_v0  ;;  %v7329_v18 = vor.u32 %v8897_v11, %v7328_v49  ;;  %v8376_v12 = vld [vmem:[#allocation7 + $0x230] sm:$0xf]  ;;  %v9159_v0 = vld [vmem:[#allocation7 + $0x234] sm:$0xf0] }
 0xaa6   : > { %5425 = vmatpush.bf16.msrb.mxu3 %v7421_v29  ;;  %5568 = vmatpush.bf16.msrb.mxu2 %v8197_v39  ;;  %v9141_v29 = vld [vmem:[#allocation7 + $0x1a4] sm:$0xf0]  ;;  %v9061_v39 = vld [vmem:[#allocation9 + $0x81c] sm:$0xf] }
 0xaa7   : > { %6388 = vmatpush.bf16.msra.mxu0 %v8321_v5  ;;  %v8305_v37 = vor.u32 %v9141_v29, %v8304_v42  ;;  %v8401_v5 = vor.u32 %v9165_v14, %v8400_v8  ;;  %v9185_v8 = vld [vmem:[#allocation7 + $0x304] sm:$0xf0] }
 0xaa8   : > { %6398 = vmatpush.bf16.msra.mxu1 %v8409_v38  ;;  %v7426_v38 = vld [vmem:[#allocation9 + $0x3b8] sm:$0xf0] }
 0xaa9   : > { %v5357_v23 = vpop.f32.mrf.mxu1 }
 0xaaa   : > { %5426 = vmatpush.bf16.msrb.mxu3 %v7389_v58  ;;  %5569 = vmatpush.bf16.msrb.mxu2 %v8165_v9  ;;  %v8002_v58 = vld [vmem:[#allocation9 + $0x838] sm:$0xf0]  ;;  %v7424_v9 = vld [vmem:[#allocation9 + $0x398] sm:$0xf] }
 0xaab   : > { %6389 = vmatpush.bf16.msra.mxu0 %v8313_v63  ;;  %v7425_v2 = vor.u32 %v8921_v34, %v7424_v9  ;;  %v8384_v63 = vld [vmem:[#allocation7 + $0x240] sm:$0xf] }
 0xaac   : > { %v5266_v56 = vpop.f32.mrf.mxu2  ;;  %v5214_v30 = vpop.f32.mrf.mxu3  ;;  %6399 = vmatpush.bf16.msra.mxu1 %v8401_v5  ;;  %v9183_v5 = vld [vmem:[#allocation7 + $0x2f4] sm:$0xf0] }
 0xaad   : > { %v8873_v56 = vld [vmem:[#allocation9 + $0x234] sm:$0xf0]  ;;  %v8369_v30 = vor.u32 %v9157_v6, %v8368_v46  ;;  %v8440_v6 = vld [vmem:[#allocation7 + $0x2b0] sm:$0xf] }
 0xaae   : > { %5427 = vmatpush.bf16.msrb.mxu3 %v7357_v19  ;;  %5570 = vmatpush.bf16.msrb.mxu2 %v8133_v16  ;;  %v8005_v19 = vor.u32 %v9061_v39, %v8002_v58 }
 0xaaf   : > { %6390 = vmatpush.bf16.msra.mxu0 %v8305_v37  ;;  %v7264_v37 = vld [vmem:[#allocation9 + $0x258] sm:$0xf] }
 0xab0   : > { %v11247_v16 = vpop.f32.mrf.mxu0  ;;  %v7265_v23 = vor.u32 %v8881_v4, %v7264_v37  ;;  %v8448_v37 = vld [vmem:[#allocation7 + $0x2c0] sm:$0xf]  ;;  %v9177_v4 = vld [vmem:[#allocation7 + $0x2c4] sm:$0xf0] }
 0xab2   : > { %5428 = vmatpush.bf16.msrb.mxu3 %v7325_v36  ;;  %5571 = vmatpush.bf16.msrb.mxu2 %v8101_v47  ;;  %v7393_v36 = vor.u32 %v8913_v31, %v7392_v54  ;;  %v7361_v47 = vor.u32 %v8905_v50, %v7360_v17  ;;  %v8480_v54 = vld [vmem:[#allocation7 + $0x300] sm:$0xf]  ;;  %v7429_v50 = vor.u32 %v8917_v32, %v7426_v38  ;;  %v7234_v32 = vld [vmem:[#allocation9 + $0x238] sm:$0xf0] }
 0xab3   : > { %6391 = vmatpush.bf16.msra.mxu0 %v8297_v62  ;;  %v8925_v62 = vld [vmem:[#allocation9 + $0x3dc] sm:$0xf]  ;;  %v8481_v14 = vor.u32 %v9185_v8, %v8480_v54  ;;  %v8288_v54 = vld [vmem:[#allocation7 + $0x180] sm:$0xf] }
 0xab4   : > { %v11250_v21 = vpop.f32.mrf.mxu2 }
 0xab6   : > { %5429 = vmatpush.bf16.msrb.mxu3 %v7293_v22  ;;  %5572 = vmatpush.bf16.msrb.mxu2 %v8069_v57  ;;  %v9163_v22 = vld [vmem:[#allocation7 + $0x254] sm:$0xf0]  ;;  %v9161_v57 = vld [vmem:[#allocation7 + $0x244] sm:$0xf0] }
 0xab7   : > { %v8393_v7 = vor.u32 %v9163_v22, %v8392_v25  ;;  %v7394_v25 = vld [vmem:[#allocation9 + $0x378] sm:$0xf0] }
 0xab8   : > { %v5396_v45 = vpop.f32.mrf.mxu0 }
 0xab9   : > { %6400 = vmatpush.bf16.msra.mxu1 %v8393_v7  ;;  %v8464_v45 = vld [vmem:[#allocation7 + $0x2e0] sm:$0xf]  ;;  %v9181_v7 = vld [vmem:[#allocation7 + $0x2e4] sm:$0xf0] }
 0xaba   : > { %5430 = vmatpush.bf16.msrb.mxu3 %v7261_v48  ;;  %5573 = vmatpush.bf16.msrb.mxu2 %v8037_v15  ;;  %v8385_v48 = vor.u32 %v9161_v57, %v8384_v63  ;;  %v8377_v15 = vor.u32 %v9159_v0, %v8376_v12  ;;  %v8465_v63 = vor.u32 %v9181_v7, %v8464_v45  ;;  %v9217_v45 = vld [vmem:[#allocation7 + $0x404] sm:$0xf0] }
 0xabc   : > { %v5318_v27 = vpop.f32.mrf.mxu2 }
 0xabd   : > { %6401 = vmatpush.bf16.msra.mxu1 %v8385_v48  ;;  %v7362_v27 = vld [vmem:[#allocation9 + $0x338] sm:$0xf0] }
 0xabe   : > { %5431 = vmatpush.bf16.msrb.mxu3 %v7229_v20  ;;  %5574 = vmatpush.bf16.msrb.mxu2 %v8005_v19  ;;  %v8893_v48 = vld [vmem:[#allocation9 + $0x2dc] sm:$0xf] }
 0xac1   : > { %5432 = vmatmul.bf16.vlgmr.msrb.gmra.mxu3 %v11180_v52  ;;  %5575 = vmatmul.bf16.vlgmr.msrb.gmra.mxu2 %v11197_v26  ;;  %v8889_v26 = vld [vmem:[#allocation9 + $0x2b4] sm:$0xf0]  ;;  %v11254_v42 = vpop.f32.mrf.mxu1 }
 0xac2   : > { %5476 = vmatpush.bf16.msra.mxu3 %v7457_v51  ;;  %v7297_v29 = vor.u32 %v8889_v26, %v7296_v61  ;;  %6402 = vmatpush.bf16.msra.mxu1 %v8377_v15  ;;  %v7232_v51 = vld [vmem:[#allocation9 + $0x218] sm:$0xf]  ;;  %v8456_v61 = vld [vmem:[#allocation7 + $0x2d0] sm:$0xf]  ;;  %v9179_v26 = vld [vmem:[#allocation7 + $0x2d4] sm:$0xf0] }
 0xac3   : > { %v7233_v33 = vor.u32 %v8873_v56, %v7232_v51  ;;  %6410 = vmatpush.bf16.msra.mxu2 %v8481_v14  ;;  %v8457_v12 = vor.u32 %v9179_v26, %v8456_v61  ;;  %v7298_v15 = vld [vmem:[#allocation9 + $0x2b8] sm:$0xf0]  ;;  %v9175_v51 = vld [vmem:[#allocation7 + $0x2b4] sm:$0xf0] }
 0xac4   : > { %v5225_v53 = vpop.f32.mrf.mxu3  ;;  %v11257_v58 = vpop.f32.mrf.mxu2  ;;  %v8877_v56 = vld [vmem:[#allocation9 + $0x25c] sm:$0xf]  ;;  %v9215_v61 = vld [vmem:[#allocation7 + $0x3f4] sm:$0xf0] }
 0xac5   : > { %v5226_v39 = vadd.f32 %v5225_v53, %v5149_v13  ;;  %v7330_v13 = vld [vmem:[#allocation9 + $0x2f8] sm:$0xf0] }
 0xac6   : > { %5477 = vmatpush.bf16.msra.mxu3 %v7425_v2  ;;  %6403 = vmatpush.bf16.msra.mxu1 %v8369_v30  ;;  %v7461_v2 = vor.u32 %v8925_v62, %v7458_v24  ;;  %v7333_v0 = vor.u32 %v8893_v48, %v7330_v13  ;;  %v8885_v53 = vld [vmem:[#allocation9 + $0x29c] sm:$0xf]  ;;  %v8441_v24 = vor.u32 %v9175_v51, %v8440_v6 }
 0xac7   : > { %v5239_v20 = vadd.f32 %v11217_v60, %v5226_v39  ;;  %v9155_v60 = vld [vmem:[#allocation7 + $0x214] sm:$0xf0]  ;;  %v8449_v39 = vor.u32 %v9177_v4, %v8448_v37  ;;  %v7301_v46 = vor.u32 %v8885_v53, %v7298_v15  ;;  %v7266_v30 = vld [vmem:[#allocation9 + $0x278] sm:$0xf0]  ;;  %v9213_v37 = vld [vmem:[#allocation7 + $0x3e4] sm:$0xf0] }
 0xac8   : > { %v8361_v31 = vor.u32 %v9155_v60, %v8360_v28  ;;  %v8432_v28 = vld [vmem:[#allocation7 + $0x2a0] sm:$0xf]  ;;  %v9173_v60 = vld [vmem:[#allocation7 + $0x2a4] sm:$0xf0] }
 0xac9   : > { %v5252_v9 = vadd.f32 %v11225_v59, %v5239_v20  ;;  %v5409_v34 = vpop.f32.mrf.mxu1  ;;  %v8256_v15 = vld [vmem:[#allocation7 + $0x140] sm:$0xf] }
 0xaca   : > { %5478 = vmatpush.bf16.msra.mxu3 %v7393_v36  ;;  %6404 = vmatpush.bf16.msra.mxu1 %v8361_v31  ;;  %v7269_v34 = vor.u32 %v8877_v56, %v7266_v30  ;;  %v9137_v31 = vld [vmem:[#allocation7 + $0x184] sm:$0xf0]  ;;  %v8248_v56 = vld [vmem:[#allocation7 + $0x130] sm:$0xf]  ;;  %v9127_v30 = vld [vmem:[#allocation7 + $0x134] sm:$0xf0] }
 0xacb   : > { %v5265_v19 = vadd.f32 %v11242_v35, %v5252_v9  ;;  %v8472_v35 = vld [vmem:[#allocation7 + $0x2f0] sm:$0xf] }
 0xacc   : > { %v5227_v55 = vpop.f32.mrf.mxu3  ;;  %v5370_v59 = vpop.f32.mrf.mxu2  ;;  %v8473_v49 = vor.u32 %v9183_v5, %v8472_v35  ;;  %v8280_v35 = vld [vmem:[#allocation7 + $0x170] sm:$0xf]  ;;  %v9135_v5 = vld [vmem:[#allocation7 + $0x174] sm:$0xf0] }
 0xacd   : > { %v5581_v36 = vmax.f32 %v5265_v19, 0.0  ;;  %v8433_v55 = vor.u32 %v9173_v60, %v8432_v28  ;;  %v8424_v59 = vld [vmem:[#allocation7 + $0x290] sm:$0xf]  ;;  %v8249_v28 = vor.u32 %v9127_v30, %v8248_v56  ;;  %v8240_v60 = vld [vmem:[#allocation7 + $0x120] sm:$0xf] }
 0xace   : > { %5479 = vmatpush.bf16.msra.mxu3 %v7361_v47  ;;  %v8909_v47 = vld [vmem:[#allocation9 + $0x35c] sm:$0xf]  ;;  %6411 = vmatpush.bf16.msra.mxu2 %v8473_v49  ;;  %v8346_v30 = vld [vmem:[#allocation7 + $0x1f8] sm:$0xf0] }
 0xacf   : > { %v11261_v17 = vpack.c.bf16 %v5581_v36, %v5581_v36  ;;  %v7397_v11 = vor.u32 %v8909_v47, %v7394_v25 }
 0xad0   : > { %v11263_v22 = vpop.f32.mrf.mxu0 }
 0xad1   : > { %6392 = vmatmul.bf16.vlgmr.msra.gmra.mxu0 %v11261_v17 }
 0xad2   : > { %5480 = vmatpush.bf16.msra.mxu3 %v7329_v18  ;;  %v8901_v18 = vld [vmem:[#allocation9 + $0x31c] sm:$0xf]  ;;  %6412 = vmatpush.bf16.msra.mxu2 %v8465_v63  ;;  %v9133_v63 = vld [vmem:[#allocation7 + $0x164] sm:$0xf0] }
 0xad3   : > { %v7365_v57 = vor.u32 %v8901_v18, %v7362_v27  ;;  %v8281_v27 = vor.u32 %v9135_v5, %v8280_v35  ;;  %v9205_v35 = vld [vmem:[#allocation7 + $0x3a4] sm:$0xf0]  ;;  %v8544_v5 = vld [vmem:[#allocation7 + $0x380] sm:$0xf] }
 0xad6   : > { %5481 = vmatpush.bf16.msra.mxu3 %v7297_v29  ;;  %6413 = vmatpush.bf16.msra.mxu2 %v8457_v12  ;;  %v9131_v12 = vld [vmem:[#allocation7 + $0x154] sm:$0xf0] }
 0xad8   : > { %v5448_v29 = vpop.f32.mrf.mxu0 }
 0xad9   : > { %v8264_v29 = vld [vmem:[#allocation7 + $0x150] sm:$0xf] }
 0xada   : > { %5482 = vmatpush.bf16.msra.mxu3 %v7265_v23  ;;  %v5150_v23 = vperm.slane %v11213_v43, 2  ;;  %6414 = vmatpush.bf16.msra.mxu2 %v8449_v39  ;;  %v8265_v53 = vor.u32 %v9131_v12, %v8264_v29  ;;  %v9129_v39 = vld [vmem:[#allocation7 + $0x144] sm:$0xf0]  ;;  %v8672_v29 = vld [vmem:[#allocation7 + $0x480] sm:$0xf] }
 0xadb   : > { %v9233_v12 = vld [vmem:[#allocation7 + $0x484] sm:$0xf0] }
 0xade   : > { %5483 = vmatpush.bf16.msra.mxu3 %v7233_v33  ;;  %6415 = vmatpush.bf16.msra.mxu2 %v8441_v24  ;;  %v9209_v24 = vld [vmem:[#allocation7 + $0x3c4] sm:$0xf0] }
 0xae1   : > { %5484 = vmatmul.bf16.vlgmr.msra.gmra.mxu3 %v11180_v52  ;;  %v11268_v20 = vpop.f32.mrf.mxu1 }
 0xae2   : > { %5528 = vmatpush.bf16.msrb.mxu3 %v7461_v2  ;;  %v8869_v2 = vld [vmem:[#allocation9 + $0x21c] sm:$0xf]  ;;  %6416 = vmatpush.bf16.msra.mxu2 %v8433_v55  ;;  %v8568_v55 = vld [vmem:[#allocation7 + $0x3b0] sm:$0xf] }
 0xae3   : > { %v7237_v8 = vor.u32 %v8869_v2, %v7234_v32  ;;  %v9125_v2 = vld [vmem:[#allocation7 + $0x124] sm:$0xf0] }
 0xae4   : > { %v5277_v62 = vpop.f32.mrf.mxu3  ;;  %v11271_v19 = vpop.f32.mrf.mxu2 }
 0xae5   : > { %v5278_v9 = vadd.f32 %v5277_v62, %v5150_v23  ;;  %v8584_v23 = vld [vmem:[#allocation7 + $0x3d0] sm:$0xf]  ;;  %v8576_v62 = vld [vmem:[#allocation7 + $0x3c0] sm:$0xf] }
 0xae6   : > { %5529 = vmatpush.bf16.msrb.mxu3 %v7429_v50  ;;  %v8289_v50 = vor.u32 %v9137_v31, %v8288_v54  ;;  %v9207_v54 = vld [vmem:[#allocation7 + $0x3b4] sm:$0xf0] }
 0xae7   : > { %v5291_v33 = vadd.f32 %v11227_v44, %v5278_v9  ;;  %v9171_v44 = vld [vmem:[#allocation7 + $0x294] sm:$0xf0]  ;;  %v5151_v9 = vperm.slane %v11213_v43, 3 }
 0xae8   : > { %v8425_v25 = vor.u32 %v9171_v44, %v8424_v59  ;;  %v9123_v44 = vld [vmem:[#allocation7 + $0x114] sm:$0xf0] }
 0xae9   : > { %v5304_v38 = vadd.f32 %v11233_v1, %v5291_v33  ;;  %v5461_v36 = vpop.f32.mrf.mxu1 }
 0xaea   : > { %5530 = vmatpush.bf16.msrb.mxu3 %v7397_v11  ;;  %v8608_v11 = vld [vmem:[#allocation7 + $0x400] sm:$0xf]  ;;  %6417 = vmatpush.bf16.msra.mxu2 %v8425_v25  ;;  %v8241_v36 = vor.u32 %v9125_v2, %v8240_v60  ;;  %v9229_v60 = vld [vmem:[#allocation7 + $0x464] sm:$0xf0]  ;;  %v9148_v2 = vld [vmem:[#allocation7 + $0x1e4] sm:$0xf] }
 0xaeb   : > { %v5317_v14 = vadd.f32 %v11250_v21, %v5304_v38  ;;  %v8609_v7 = vor.u32 %v9217_v45, %v8608_v11  ;;  %v8272_v21 = vld [vmem:[#allocation7 + $0x160] sm:$0xf]  ;;  %v8569_v38 = vor.u32 %v9207_v54, %v8568_v55  ;;  %v8338_v55 = vld [vmem:[#allocation7 + $0x1e8] sm:$0xf0] }
 0xaec   : > { %v5279_v47 = vpop.f32.mrf.mxu3  ;;  %v5422_v1 = vpop.f32.mrf.mxu2  ;;  %v8273_v13 = vor.u32 %v9133_v63, %v8272_v21  ;;  %v9199_v21 = vld [vmem:[#allocation7 + $0x374] sm:$0xf0]  ;;  %v8341_v54 = vor.u32 %v9148_v2, %v8338_v55 }
 0xaed   : > { %v5582_v49 = vmax.f32 %v5317_v14, 0.0  ;;  %6436 = vmatpush.bf16.msrb.mxu0 %v8609_v7  ;;  %v9201_v47 = vld [vmem:[#allocation7 + $0x384] sm:$0xf0]  ;;  %v5580_v1 = vmax.f32 %v11245_v40, 0.0 }
 0xaee   : > { %5531 = vmatpush.bf16.msrb.mxu3 %v7365_v57  ;;  %v8600_v57 = vld [vmem:[#allocation7 + $0x3f0] sm:$0xf] }
 0xaef   : > { %v11275_v18 = vpack.c.bf16 %v5582_v49, %v5582_v49  ;;  %v8601_v48 = vor.u32 %v9215_v61, %v8600_v57  ;;  %v8552_v61 = vld [vmem:[#allocation7 + $0x390] sm:$0xf] }
 0xaf0   : > { %v11277_v26 = vpop.f32.mrf.mxu0 }
 0xaf1   : > { %6405 = vmatmul.bf16.vlgmr.msra.gmra.mxu1 %v11275_v18  ;;  %6437 = vmatpush.bf16.msrb.mxu0 %v8601_v48  ;;  %v9203_v48 = vld [vmem:[#allocation7 + $0x394] sm:$0xf0] }
 0xaf2   : > { %5532 = vmatpush.bf16.msrb.mxu3 %v7333_v0  ;;  %v8592_v0 = vld [vmem:[#allocation7 + $0x3e0] sm:$0xf] }
 0xaf3   : > { %v8593_v4 = vor.u32 %v9213_v37, %v8592_v0 }
 0xaf5   : > { %6438 = vmatpush.bf16.msrb.mxu0 %v8593_v4  ;;  %v8673_v4 = vor.u32 %v9233_v12, %v8672_v29 }
 0xaf6   : > { %5533 = vmatpush.bf16.msrb.mxu3 %v7301_v46  ;;  %v9211_v46 = vld [vmem:[#allocation7 + $0x3d4] sm:$0xf0] }
 0xaf7   : > { %v8585_v51 = vor.u32 %v9211_v46, %v8584_v23  ;;  %6449 = vmatpush.bf16.msrb.mxu1 %v8673_v4  ;;  %v8664_v46 = vld [vmem:[#allocation7 + $0x470] sm:$0xf]  ;;  %v9142_v4 = vld [vmem:[#allocation7 + $0x1b4] sm:$0xf] }
 0xaf8   : > { %v5500_v6 = vpop.f32.mrf.mxu0 }
 0xaf9   : > { %6439 = vmatpush.bf16.msrb.mxu0 %v8585_v51  ;;  %v9231_v6 = vld [vmem:[#allocation7 + $0x474] sm:$0xf0]  ;;  %v9150_v51 = vld [vmem:[#allocation7 + $0x1f4] sm:$0xf] }
 0xafa   : > { %5534 = vmatpush.bf16.msrb.mxu3 %v7269_v34  ;;  %v8577_v34 = vor.u32 %v9209_v24, %v8576_v62  ;;  %v8665_v56 = vor.u32 %v9231_v6, %v8664_v46  ;;  %v8349_v62 = vor.u32 %v9150_v51, %v8346_v30  ;;  %v8488_v46 = vld [vmem:[#allocation7 + $0x310] sm:$0xf]  ;;  %v9187_v6 = vld [vmem:[#allocation7 + $0x314] sm:$0xf0]  ;;  %v8290_v30 = vld [vmem:[#allocation7 + $0x188] sm:$0xf0] }
 0xafc   : > { %6450 = vmatpush.bf16.msrb.mxu1 %v8665_v56  ;;  %v9136_v56 = vld [vmem:[#allocation7 + $0x184] sm:$0xf] }
 0xafd   : > { %6440 = vmatpush.bf16.msrb.mxu0 %v8577_v34  ;;  %v9195_v34 = vld [vmem:[#allocation7 + $0x354] sm:$0xf0]  ;;  %v8293_v55 = vor.u32 %v9136_v56, %v8290_v30  ;;  %v9128_v56 = vld [vmem:[#allocation7 + $0x144] sm:$0xf]  ;;  %v8258_v30 = vld [vmem:[#allocation7 + $0x148] sm:$0xf0] }
 0xafe   : > { %5535 = vmatpush.bf16.msrb.mxu3 %v7237_v8  ;;  %v8232_v8 = vld [vmem:[#allocation7 + $0x110] sm:$0xf] }
 0xaff   : > { %v8233_v45 = vor.u32 %v9123_v44, %v8232_v8  ;;  %v8648_v8 = vld [vmem:[#allocation7 + $0x450] sm:$0xf]  ;;  %v9146_v44 = vld [vmem:[#allocation7 + $0x1d4] sm:$0xf] }
 0xb01   : > { %5536 = vmatmul.bf16.vlgmr.msrb.gmra.mxu3 %v11180_v52  ;;  %v8257_v52 = vor.u32 %v9129_v39, %v8256_v15  ;;  %v11282_v33 = vpop.f32.mrf.mxu1  ;;  %6441 = vmatpush.bf16.msrb.mxu0 %v8569_v38  ;;  %v8528_v15 = vld [vmem:[#allocation7 + $0x360] sm:$0xf]  ;;  %v9197_v39 = vld [vmem:[#allocation7 + $0x364] sm:$0xf0] }
 0xb02   : > { %6371 = vmatpush.bf16.msra.mxu3 %v8289_v50  ;;  %v8560_v50 = vld [vmem:[#allocation7 + $0x3a0] sm:$0xf]  ;;  %v8529_v24 = vor.u32 %v9197_v39, %v8528_v15 }
 0xb03   : > { %v8561_v49 = vor.u32 %v9205_v35, %v8560_v50  ;;  %v8512_v38 = vld [vmem:[#allocation7 + $0x340] sm:$0xf] }
 0xb04   : > { %v5329_v32 = vpop.f32.mrf.mxu3  ;;  %v11285_v59 = vpop.f32.mrf.mxu2 }
 0xb05   : > { %v5330_v31 = vadd.f32 %v5329_v32, %v5151_v9  ;;  %6442 = vmatpush.bf16.msrb.mxu0 %v8561_v49  ;;  %v8520_v9 = vld [vmem:[#allocation7 + $0x350] sm:$0xf] }
 0xb06   : > { %6372 = vmatpush.bf16.msra.mxu3 %v8281_v27  ;;  %v8536_v27 = vld [vmem:[#allocation7 + $0x370] sm:$0xf] }
 0xb07   : > { %v5343_v14 = vadd.f32 %v11235_v3, %v5330_v31  ;;  %v8545_v3 = vor.u32 %v9201_v47, %v8544_v5  ;;  %v8537_v40 = vor.u32 %v9199_v21, %v8536_v27  ;;  %v8521_v31 = vor.u32 %v9195_v34, %v8520_v9  ;;  %v8330_v5 = vld [vmem:[#allocation7 + $0x1d8] sm:$0xf0]  ;;  %v8504_v49 = vld [vmem:[#allocation7 + $0x330] sm:$0xf]  ;;  %v9144_v27 = vld [vmem:[#allocation7 + $0x1c4] sm:$0xf] }
 0xb08   : > { %v8333_v47 = vor.u32 %v9146_v44, %v8330_v5  ;;  %v8624_v9 = vld [vmem:[#allocation7 + $0x420] sm:$0xf]  ;;  %v9221_v34 = vld [vmem:[#allocation7 + $0x424] sm:$0xf0]  ;;  %v9138_v44 = vld [vmem:[#allocation7 + $0x194] sm:$0xf] }
 0xb09   : > { %v5356_v25 = vadd.f32 %v11240_v10, %v5343_v14  ;;  %v5513_v11 = vpop.f32.mrf.mxu1  ;;  %v9152_v10 = vld [vmem:[#allocation7 + $0x204] sm:$0xf]  ;;  %v9227_v14 = vld [vmem:[#allocation7 + $0x454] sm:$0xf0]  ;;  %v8625_v2 = vor.u32 %v9221_v34, %v8624_v9  ;;  %v9162_v9 = vld [vmem:[#allocation7 + $0x254] sm:$0xf] }
 0xb0a   : > { %6373 = vmatpush.bf16.msra.mxu3 %v8273_v13  ;;  %v8553_v13 = vor.u32 %v9203_v48, %v8552_v61  ;;  %v8649_v35 = vor.u32 %v9227_v14, %v8648_v8  ;;  %v9191_v11 = vld [vmem:[#allocation7 + $0x334] sm:$0xf0]  ;;  %v8496_v61 = vld [vmem:[#allocation7 + $0x320] sm:$0xf]  ;;  %v9189_v48 = vld [vmem:[#allocation7 + $0x324] sm:$0xf0] }
 0xb0b   : > { %v5369_v7 = vadd.f32 %v11257_v58, %v5356_v25  ;;  %v8354_v58 = vld [vmem:[#allocation7 + $0x208] sm:$0xf0]  ;;  %v8505_v21 = vor.u32 %v9191_v11, %v8504_v49  ;;  %v8282_v8 = vld [vmem:[#allocation7 + $0x178] sm:$0xf0]  ;;  %v9219_v14 = vld [vmem:[#allocation7 + $0x414] sm:$0xf0] }
 0xb0c   : > { %v5331_v63 = vpop.f32.mrf.mxu3  ;;  %v5474_v37 = vpop.f32.mrf.mxu2  ;;  %6443 = vmatpush.bf16.msrb.mxu0 %v8553_v13  ;;  %v8357_v23 = vor.u32 %v9152_v10, %v8354_v58  ;;  %v8632_v10 = vld [vmem:[#allocation7 + $0x430] sm:$0xf]  ;;  %v8497_v58 = vor.u32 %v9189_v48, %v8496_v61  ;;  %v9247_v61 = vld [vmem:[#allocation7 + $0x4f4] sm:$0xf0]  ;;  %v9166_v48 = vld [vmem:[#allocation7 + $0x274] sm:$0xf] }
 0xb0d   : > { %v5583_v57 = vmax.f32 %v5369_v7, 0.0  ;;  %v9223_v37 = vld [vmem:[#allocation7 + $0x434] sm:$0xf0]  ;;  %v8394_v34 = vld [vmem:[#allocation7 + $0x258] sm:$0xf0] }
 0xb0e   : > { %6374 = vmatpush.bf16.msra.mxu3 %v8265_v53  ;;  %v11292_v53 = vpack.c.bf16 %v5580_v1, %v5580_v1  ;;  %v8640_v1 = vld [vmem:[#allocation7 + $0x440] sm:$0xf]  ;;  %v8633_v39 = vor.u32 %v9223_v37, %v8632_v10  ;;  %v9130_v10 = vld [vmem:[#allocation7 + $0x154] sm:$0xf]  ;;  %v8266_v37 = vld [vmem:[#allocation7 + $0x158] sm:$0xf0] }
 0xb0f   : > { %v11290_v0 = vpack.c.bf16 %v5583_v57, %v5583_v57  ;;  %v8322_v57 = vld [vmem:[#allocation7 + $0x1c8] sm:$0xf0] }
 0xb10   : > { %6488 = vmatpush.bf16.msra.mxu0 %v8357_v23  ;;  %v8325_v29 = vor.u32 %v9144_v27, %v8322_v57  ;;  %v8314_v23 = vld [vmem:[#allocation7 + $0x1b8] sm:$0xf0]  ;;  %v9132_v27 = vld [vmem:[#allocation7 + $0x164] sm:$0xf]  ;;  %v8728_v57 = vld [vmem:[#allocation7 + $0x4f0] sm:$0xf] }
 0xb11   : > { %6418 = vmatmul.bf16.vlgmr.msra.gmra.mxu2 %v11290_v0  ;;  %v8317_v51 = vor.u32 %v9142_v4, %v8314_v23  ;;  %v8402_v23 = vld [vmem:[#allocation7 + $0x268] sm:$0xf0] }
 0xb12   : > { %6375 = vmatpush.bf16.msra.mxu3 %v8257_v52  ;;  %v11294_v52 = vpop.f32.mrf.mxu0 }
 0xb14   : > { %6489 = vmatpush.bf16.msra.mxu0 %v8349_v62 }
 0xb16   : > { %6376 = vmatpush.bf16.msra.mxu3 %v8249_v28  ;;  %v8656_v28 = vld [vmem:[#allocation7 + $0x460] sm:$0xf] }
 0xb17   : > { %v8657_v32 = vor.u32 %v9229_v60, %v8656_v28  ;;  %v9140_v28 = vld [vmem:[#allocation7 + $0x1a4] sm:$0xf]  ;;  %v8489_v60 = vor.u32 %v9187_v6, %v8488_v46 }
 0xb18   : > { %6490 = vmatpush.bf16.msra.mxu0 %v8341_v54 }
 0xb19   : > { %6451 = vmatpush.bf16.msrb.mxu1 %v8657_v32  ;;  %v8306_v32 = vld [vmem:[#allocation7 + $0x1a8] sm:$0xf0] }
 0xb1a   : > { %6377 = vmatpush.bf16.msra.mxu3 %v8241_v36  ;;  %v9193_v36 = vld [vmem:[#allocation7 + $0x344] sm:$0xf0]  ;;  %v5552_v50 = vpop.f32.mrf.mxu0 }
 0xb1b   : > { %v8513_v25 = vor.u32 %v9193_v36, %v8512_v38  ;;  %v9134_v36 = vld [vmem:[#allocation7 + $0x174] sm:$0xf] }
 0xb1c   : > { %6491 = vmatpush.bf16.msra.mxu0 %v8333_v47  ;;  %v8298_v47 = vld [vmem:[#allocation7 + $0x198] sm:$0xf0]  ;;  %v8285_v49 = vor.u32 %v9134_v36, %v8282_v8 }
 0xb1d   : > { %6452 = vmatpush.bf16.msrb.mxu1 %v8649_v35  ;;  %v8301_v11 = vor.u32 %v9138_v44, %v8298_v47  ;;  %v9124_v44 = vld [vmem:[#allocation7 + $0x124] sm:$0xf] }
 0xb1e   : > { %6378 = vmatpush.bf16.msra.mxu3 %v8233_v45  ;;  %v5152_v45 = vperm.slane %v11213_v43, 4 }
 0xb20   : > { %v11299_v7 = vpop.f32.mrf.mxu1  ;;  %6492 = vmatpush.bf16.msra.mxu0 %v8325_v29  ;;  %v8410_v29 = vld [vmem:[#allocation7 + $0x278] sm:$0xf0] }
 0xb21   : > { %6379 = vmatmul.bf16.vlgmr.msra.gmra.mxu3 %v11292_v53  ;;  %v8413_v4 = vor.u32 %v9166_v48, %v8410_v29  ;;  %v9200_v48 = vld [vmem:[#allocation7 + $0x384] sm:$0xf]  ;;  %v8688_v29 = vld [vmem:[#allocation7 + $0x4a0] sm:$0xf] }
 0xb22   : > { %6423 = vmatpush.bf16.msrb.mxu3 %v8545_v3  ;;  %v9225_v3 = vld [vmem:[#allocation7 + $0x444] sm:$0xf0] }
 0xb23   : > { %v8641_v63 = vor.u32 %v9225_v3, %v8640_v1  ;;  %v9168_v1 = vld [vmem:[#allocation7 + $0x284] sm:$0xf]  ;;  %v8418_v3 = vld [vmem:[#allocation7 + $0x288] sm:$0xf0] }
 0xb24   : > { %v5381_v13 = vpop.f32.mrf.mxu3  ;;  %v11302_v15 = vpop.f32.mrf.mxu2  ;;  %6493 = vmatpush.bf16.msra.mxu0 %v8317_v51  ;;  %v8269_v51 = vor.u32 %v9130_v10, %v8266_v37  ;;  %v9156_v10 = vld [vmem:[#allocation7 + $0x224] sm:$0xf] }
 0xb25   : > { %v5382_v12 = vadd.f32 %v5381_v13, %v5152_v45  ;;  %6453 = vmatpush.bf16.msrb.mxu1 %v8641_v63  ;;  %v8421_v63 = vor.u32 %v9168_v1, %v8418_v3  ;;  %v8729_v13 = vor.u32 %v9247_v61, %v8728_v57 }
 0xb26   : > { %6424 = vmatpush.bf16.msrb.mxu3 %v8537_v40 }
 0xb27   : > { %v5395_v40 = vadd.f32 %v11247_v16, %v5382_v12 }
 0xb29   : > { %v5408_v62 = vadd.f32 %v11254_v42, %v5395_v40  ;;  %6454 = vmatpush.bf16.msrb.mxu1 %v8633_v39  ;;  %v8616_v42 = vld [vmem:[#allocation7 + $0x410] sm:$0xf]  ;;  %v9245_v40 = vld [vmem:[#allocation7 + $0x4e4] sm:$0xf0]  ;;  %v9164_v39 = vld [vmem:[#allocation7 + $0x264] sm:$0xf] }
 0xb2a   : > { %6425 = vmatpush.bf16.msrb.mxu3 %v8529_v24  ;;  %v5565_v24 = vpop.f32.mrf.mxu1  ;;  %v8617_v5 = vor.u32 %v9219_v14, %v8616_v42  ;;  %v8405_v6 = vor.u32 %v9164_v39, %v8402_v23  ;;  %v8386_v42 = vld [vmem:[#allocation7 + $0x248] sm:$0xf0] }
 0xb2b   : > { %v5421_v16 = vadd.f32 %v11271_v19, %v5408_v62  ;;  %v8736_v19 = vld [vmem:[#allocation7 + $0x500] sm:$0xf]  ;;  %v8712_v62 = vld [vmem:[#allocation7 + $0x4d0] sm:$0xf]  ;;  %v9243_v24 = vld [vmem:[#allocation7 + $0x4d4] sm:$0xf0] }
 0xb2c   : > { %v5383_v54 = vpop.f32.mrf.mxu3  ;;  %v5526_v35 = vpop.f32.mrf.mxu2  ;;  %v8370_v39 = vld [vmem:[#allocation7 + $0x228] sm:$0xf0] }
 0xb2d   : > { %v5584_v38 = vmax.f32 %v5421_v16, 0.0  ;;  %6455 = vmatpush.bf16.msrb.mxu1 %v8625_v2  ;;  %v8261_v16 = vor.u32 %v9128_v56, %v8258_v30  ;;  %v9126_v2 = vld [vmem:[#allocation7 + $0x134] sm:$0xf]  ;;  %v8704_v54 = vld [vmem:[#allocation7 + $0x4c0] sm:$0xf] }
 0xb2e   : > { %6426 = vmatpush.bf16.msrb.mxu3 %v8521_v31  ;;  %v8309_v31 = vor.u32 %v9140_v28, %v8306_v32  ;;  %v8713_v28 = vor.u32 %v9243_v24, %v8712_v62  ;;  %v8250_v32 = vld [vmem:[#allocation7 + $0x138] sm:$0xf0]  ;;  %v8242_v35 = vld [vmem:[#allocation7 + $0x128] sm:$0xf0]  ;;  %v8680_v62 = vld [vmem:[#allocation7 + $0x490] sm:$0xf] }
 0xb2f   : > { %v11306_v50 = vpack.c.bf16 %v5584_v38, %v5584_v38  ;;  %v9160_v38 = vld [vmem:[#allocation7 + $0x244] sm:$0xf]  ;;  %v8253_v36 = vor.u32 %v9126_v2, %v8250_v32  ;;  %v8245_v1 = vor.u32 %v9124_v44, %v8242_v35  ;;  %v8538_v56 = vld [vmem:[#allocation7 + $0x378] sm:$0xf0]  ;;  %v9235_v24 = vld [vmem:[#allocation7 + $0x494] sm:$0xf0] }
 0xb30   : > { %6494 = vmatpush.bf16.msra.mxu0 %v8309_v31  ;;  %v9241_v31 = vld [vmem:[#allocation7 + $0x4c4] sm:$0xf0]  ;;  %v8362_v2 = vld [vmem:[#allocation7 + $0x218] sm:$0xf0]  ;;  %v9212_v35 = vld [vmem:[#allocation7 + $0x3e4] sm:$0xf] }
 0xb31   : > { %6456 = vmatpush.bf16.msrb.mxu1 %v8617_v5  ;;  %v8705_v8 = vor.u32 %v9241_v31, %v8704_v54  ;;  %v8389_v5 = vor.u32 %v9160_v38, %v8386_v42  ;;  %v9184_v31 = vld [vmem:[#allocation7 + $0x304] sm:$0xf]  ;;  %v8482_v38 = vld [vmem:[#allocation7 + $0x308] sm:$0xf0]  ;;  %v9182_v42 = vld [vmem:[#allocation7 + $0x2f4] sm:$0xf] }
 0xb32   : > { %6427 = vmatpush.bf16.msrb.mxu3 %v8513_v25  ;;  %v9249_v25 = vld [vmem:[#allocation7 + $0x504] sm:$0xf0] }
 0xb33   : > { %v8737_v45 = vor.u32 %v9249_v25, %v8736_v19  ;;  %v8696_v19 = vld [vmem:[#allocation7 + $0x4b0] sm:$0xf]  ;;  %v9239_v25 = vld [vmem:[#allocation7 + $0x4b4] sm:$0xf0] }
 0xb34   : > { %6495 = vmatpush.bf16.msra.mxu0 %v8301_v11  ;;  %v8697_v3 = vor.u32 %v9239_v25, %v8696_v19  ;;  %v9194_v19 = vld [vmem:[#allocation7 + $0x354] sm:$0xf] }
 0xb35   : > { %6462 = vmatpush.bf16.msrb.mxu2 %v8737_v45  ;;  %6501 = vmatpush.bf16.msra.mxu1 %v8421_v63  ;;  %v8234_v63 = vld [vmem:[#allocation7 + $0x118] sm:$0xf0] }
 0xb36   : > { %6428 = vmatpush.bf16.msrb.mxu3 %v8505_v21  ;;  %v8274_v21 = vld [vmem:[#allocation7 + $0x168] sm:$0xf0] }
 0xb37   : > { %v8277_v12 = vor.u32 %v9132_v27, %v8274_v21  ;;  %v8378_v27 = vld [vmem:[#allocation7 + $0x238] sm:$0xf0]  ;;  %v9122_v21 = vld [vmem:[#allocation7 + $0x114] sm:$0xf] }
 0xb38   : > { %v8237_v37 = vor.u32 %v9122_v21, %v8234_v63  ;;  %v8586_v21 = vld [vmem:[#allocation7 + $0x3d8] sm:$0xf0]  ;;  %v9192_v63 = vld [vmem:[#allocation7 + $0x344] sm:$0xf] }
 0xb39   : > { %6463 = vmatpush.bf16.msrb.mxu2 %v8729_v13  ;;  %6502 = vmatpush.bf16.msra.mxu1 %v8413_v4  ;;  %v8546_v13 = vld [vmem:[#allocation7 + $0x388] sm:$0xf0]  ;;  %v9216_v4 = vld [vmem:[#allocation7 + $0x404] sm:$0xf] }
 0xb3a   : > { %6429 = vmatpush.bf16.msrb.mxu3 %v8497_v58  ;;  %v8720_v58 = vld [vmem:[#allocation7 + $0x4e0] sm:$0xf]  ;;  %v8549_v23 = vor.u32 %v9200_v48, %v8546_v13  ;;  %v9178_v48 = vld [vmem:[#allocation7 + $0x2d4] sm:$0xf]  ;;  %v8458_v13 = vld [vmem:[#allocation7 + $0x2d8] sm:$0xf0] }
 0xb3b   : > { %v8721_v46 = vor.u32 %v9245_v40, %v8720_v58  ;;  %v8610_v58 = vld [vmem:[#allocation7 + $0x408] sm:$0xf0] }
 0xb3c   : > { %v8613_v30 = vor.u32 %v9216_v4, %v8610_v58  ;;  %v8461_v4 = vor.u32 %v9178_v48, %v8458_v13  ;;  %v9190_v58 = vld [vmem:[#allocation7 + $0x334] sm:$0xf]  ;;  %v9228_v48 = vld [vmem:[#allocation7 + $0x464] sm:$0xf]  ;;  %v8658_v13 = vld [vmem:[#allocation7 + $0x468] sm:$0xf0] }
 0xb3d   : > { %6464 = vmatpush.bf16.msrb.mxu2 %v8721_v46  ;;  %6503 = vmatpush.bf16.msra.mxu1 %v8405_v6  ;;  %v8373_v6 = vor.u32 %v9156_v10, %v8370_v39  ;;  %v9208_v10 = vld [vmem:[#allocation7 + $0x3c4] sm:$0xf]  ;;  %v5154_v39 = vperm.slane %v11213_v43, 6 }
 0xb3e   : > { %6430 = vmatpush.bf16.msrb.mxu3 %v8489_v60  ;;  %v8397_v60 = vor.u32 %v9162_v9, %v8394_v34  ;;  %v9154_v9 = vld [vmem:[#allocation7 + $0x214] sm:$0xf] }
 0xb3f   : > { %v8365_v54 = vor.u32 %v9154_v9, %v8362_v2  ;;  %v8498_v9 = vld [vmem:[#allocation7 + $0x328] sm:$0xf0] }
 0xb40   : > { %v8562_v2 = vld [vmem:[#allocation7 + $0x3a8] sm:$0xf0] }
 0xb41   : > { %6431 = vmatmul.bf16.vlgmr.msrb.gmra.mxu3 %v11306_v50  ;;  %6465 = vmatpush.bf16.msrb.mxu2 %v8713_v28  ;;  %v9214_v28 = vld [vmem:[#allocation7 + $0x3f4] sm:$0xf] }
 0xb42   : > { %6475 = vmatpush.bf16.msra.mxu3 %v8293_v55  ;;  %v5153_v55 = vperm.slane %v11213_v43, 5  ;;  %6504 = vmatpush.bf16.msra.mxu1 %v8397_v60  ;;  %v8602_v60 = vld [vmem:[#allocation7 + $0x3f8] sm:$0xf0] }
 0xb43   : > { %v8605_v44 = vor.u32 %v9214_v28, %v8602_v60  ;;  %v9204_v60 = vld [vmem:[#allocation7 + $0x3a4] sm:$0xf] }
 0xb44   : > { %v5433_v14 = vpop.f32.mrf.mxu3  ;;  %v11311_v45 = vpop.f32.mrf.mxu2 }
 0xb45   : > { %v5434_v47 = vadd.f32 %v5433_v14, %v5153_v55  ;;  %6466 = vmatpush.bf16.msrb.mxu2 %v8705_v8  ;;  %v9196_v55 = vld [vmem:[#allocation7 + $0x364] sm:$0xf]  ;;  %v8485_v8 = vor.u32 %v9184_v31, %v8482_v38  ;;  %v8474_v14 = vld [vmem:[#allocation7 + $0x2f8] sm:$0xf0] }
 0xb46   : > { %6476 = vmatpush.bf16.msra.mxu3 %v8285_v49  ;;  %6505 = vmatpush.bf16.msra.mxu1 %v8389_v5  ;;  %v9158_v49 = vld [vmem:[#allocation7 + $0x234] sm:$0xf]  ;;  %v8594_v5 = vld [vmem:[#allocation7 + $0x3e8] sm:$0xf0]  ;;  %v8477_v25 = vor.u32 %v9182_v42, %v8474_v14  ;;  %v8565_v42 = vor.u32 %v9204_v60, %v8562_v2  ;;  %v9248_v60 = vld [vmem:[#allocation7 + $0x504] sm:$0xf] }
 0xb47   : > { %v5447_v11 = vadd.f32 %v11263_v22, %v5434_v47  ;;  %v8381_v57 = vor.u32 %v9158_v49, %v8378_v27  ;;  %v8522_v49 = vld [vmem:[#allocation7 + $0x358] sm:$0xf0]  ;;  %v9210_v27 = vld [vmem:[#allocation7 + $0x3d4] sm:$0xf] }
 0xb48   : > { %v9202_v14 = vld [vmem:[#allocation7 + $0x394] sm:$0xf] }
 0xb49   : > { %v5460_v61 = vadd.f32 %v11268_v20, %v5447_v11  ;;  %6467 = vmatpush.bf16.msrb.mxu2 %v8697_v3  ;;  %v9198_v20 = vld [vmem:[#allocation7 + $0x374] sm:$0xf]  ;;  %v9180_v11 = vld [vmem:[#allocation7 + $0x2e4] sm:$0xf]  ;;  %v8597_v3 = vor.u32 %v9212_v35, %v8594_v5  ;;  %v8434_v5 = vld [vmem:[#allocation7 + $0x2a8] sm:$0xf0] }
 0xb4a   : > { %6477 = vmatpush.bf16.msra.mxu3 %v8277_v12  ;;  %6506 = vmatpush.bf16.msra.mxu1 %v8381_v57  ;;  %v9237_v12 = vld [vmem:[#allocation7 + $0x4a4] sm:$0xf0]  ;;  %v8541_v32 = vor.u32 %v9198_v20, %v8538_v56  ;;  %v8450_v20 = vld [vmem:[#allocation7 + $0x2c8] sm:$0xf0]  ;;  %v9172_v35 = vld [vmem:[#allocation7 + $0x2a4] sm:$0xf] }
 0xb4b   : > { %v5473_v22 = vadd.f32 %v11285_v59, %v5460_v61  ;;  %v8689_v40 = vor.u32 %v9237_v12, %v8688_v29  ;;  %v8514_v61 = vld [vmem:[#allocation7 + $0x348] sm:$0xf0]  ;;  %v8589_v29 = vor.u32 %v9210_v27, %v8586_v21  ;;  %v8426_v21 = vld [vmem:[#allocation7 + $0x298] sm:$0xf0] }
 0xb4c   : > { %v5435_v46 = vpop.f32.mrf.mxu3  ;;  %v5578_v59 = vpop.f32.mrf.mxu2 }
 0xb4d   : > { %6468 = vmatpush.bf16.msrb.mxu2 %v8689_v40  ;;  %v8506_v40 = vld [vmem:[#allocation7 + $0x338] sm:$0xf0]  ;;  %v9206_v46 = vld [vmem:[#allocation7 + $0x3b4] sm:$0xf] }
 0xb4e   : > { %6478 = vmatpush.bf16.msra.mxu3 %v8269_v51  ;;  %v5585_v51 = vmax.f32 %v5473_v22, 0.0  ;;  %6507 = vmatpush.bf16.msra.mxu1 %v8373_v6  ;;  %v11319_v12 = vpop.f32.mrf.mxu0  ;;  %v8578_v22 = vld [vmem:[#allocation7 + $0x3c8] sm:$0xf0]  ;;  %v8570_v6 = vld [vmem:[#allocation7 + $0x3b8] sm:$0xf0]  ;;  %v8509_v56 = vor.u32 %v9190_v58, %v8506_v40 }
 0xb4f   : > { %v8573_v28 = vor.u32 %v9206_v46, %v8570_v6  ;;  %v9224_v58 = vld [vmem:[#allocation7 + $0x444] sm:$0xf]  ;;  %v8642_v40 = vld [vmem:[#allocation7 + $0x448] sm:$0xf0]  ;;  %v8634_v46 = vld [vmem:[#allocation7 + $0x438] sm:$0xf0] }
 0xb50   : > { %v11315_v34 = vpack.c.bf16 %v5585_v51, %v5585_v51  ;;  %v9176_v51 = vld [vmem:[#allocation7 + $0x2c4] sm:$0xf] }
 0xb52   : > { %6479 = vmatpush.bf16.msra.mxu3 %v8261_v16  ;;  %v8681_v16 = vor.u32 %v9235_v24, %v8680_v62  ;;  %6444 = vmatmul.bf16.vlgmr.msrb.gmra.mxu0 %v11315_v34  ;;  %v9188_v24 = vld [vmem:[#allocation7 + $0x324] sm:$0xf] }
 0xb53   : > { %6540 = vmatpush.bf16.msrb.mxu0 %v8613_v30  ;;  %6508 = vmatpush.bf16.msra.mxu1 %v8365_v54  ;;  %v8453_v30 = vor.u32 %v9176_v51, %v8450_v20  ;;  %v8501_v31 = vor.u32 %v9188_v24, %v8498_v9 }
 0xb54   : > { %6469 = vmatpush.bf16.msrb.mxu2 %v8681_v16 }
 0xb56   : > { %6480 = vmatpush.bf16.msra.mxu3 %v8253_v36  ;;  %v8530_v36 = vld [vmem:[#allocation7 + $0x368] sm:$0xf0]  ;;  %v6395_v16 = vpop.f32.mrf.mxu0 }
 0xb57   : > { %v8533_v47 = vor.u32 %v9196_v55, %v8530_v36  ;;  %6541 = vmatpush.bf16.msrb.mxu0 %v8605_v44  ;;  %v8442_v55 = vld [vmem:[#allocation7 + $0x2b8] sm:$0xf0]  ;;  %v9186_v36 = vld [vmem:[#allocation7 + $0x314] sm:$0xf]  ;;  %v8738_v16 = vld [vmem:[#allocation7 + $0x508] sm:$0xf0] }
 0xb58   : > { %6514 = vmatpush.bf16.msra.mxu2 %v8485_v8  ;;  %v8490_v8 = vld [vmem:[#allocation7 + $0x318] sm:$0xf0] }
 0xb59   : > { %v8554_v44 = vld [vmem:[#allocation7 + $0x398] sm:$0xf0] }
 0xb5a   : > { %6481 = vmatpush.bf16.msra.mxu3 %v8245_v1  ;;  %v8466_v1 = vld [vmem:[#allocation7 + $0x2e8] sm:$0xf0] }
 0xb5b   : > { %v8469_v57 = vor.u32 %v9180_v11, %v8466_v1  ;;  %6542 = vmatpush.bf16.msrb.mxu0 %v8597_v3  ;;  %v8557_v3 = vor.u32 %v9202_v14, %v8554_v44  ;;  %v9240_v14 = vld [vmem:[#allocation7 + $0x4c4] sm:$0xf]  ;;  %v8706_v44 = vld [vmem:[#allocation7 + $0x4c8] sm:$0xf0] }
 0xb5c   : > { %6515 = vmatpush.bf16.msra.mxu2 %v8477_v25  ;;  %v9232_v25 = vld [vmem:[#allocation7 + $0x484] sm:$0xf] }
 0xb5e   : > { %6482 = vmatpush.bf16.msra.mxu3 %v8237_v37  ;;  %v8517_v37 = vor.u32 %v9192_v63, %v8514_v61  ;;  %v9230_v63 = vld [vmem:[#allocation7 + $0x474] sm:$0xf] }
 0xb5f   : > { %6543 = vmatpush.bf16.msrb.mxu0 %v8589_v29  ;;  %v8661_v29 = vor.u32 %v9228_v48, %v8658_v13 }
 0xb60   : > { %6516 = vmatpush.bf16.msra.mxu2 %v8469_v57  ;;  %v8666_v57 = vld [vmem:[#allocation7 + $0x478] sm:$0xf0] }
 0xb61   : > { %6483 = vmatmul.bf16.vlgmr.msra.gmra.mxu3 %v11292_v53  ;;  %v8525_v53 = vor.u32 %v9194_v19, %v8522_v49  ;;  %v8493_v19 = vor.u32 %v9186_v36, %v8490_v8  ;;  %v8437_v49 = vor.u32 %v9172_v35, %v8434_v5  ;;  %v8722_v36 = vld [vmem:[#allocation7 + $0x4e8] sm:$0xf0]  ;;  %v5725_v35 = vld [vmem:[#allocation10 + $0x5] ss:$8 sm:$0x3]  ;;  %v8709_v5 = vor.u32 %v9240_v14, %v8706_v44 }
 0xb62   : > { %6527 = vmatpush.bf16.msrb.mxu3 %v8549_v23  ;;  %v8581_v23 = vor.u32 %v9208_v10, %v8578_v22  ;;  %6496 = vmatmul.bf16.vlgmr.msra.gmra.mxu0 %v11261_v17  ;;  %v9226_v10 = vld [vmem:[#allocation7 + $0x454] sm:$0xf]  ;;  %v8650_v22 = vld [vmem:[#allocation7 + $0x458] sm:$0xf0] }
 0xb64   : > { %6517 = vmatpush.bf16.msra.mxu2 %v8461_v4  ;;  %v5485_v62 = vpop.f32.mrf.mxu3  ;;  %6544 = vmatpush.bf16.msrb.mxu0 %v8581_v23  ;;  %v9222_v23 = vld [vmem:[#allocation7 + $0x434] sm:$0xf] }
 0xb65   : > { %v5486_v59 = vadd.f32 %v5485_v62, %v5154_v39  ;;  %v8645_v39 = vor.u32 %v9224_v58, %v8642_v40  ;;  %v8637_v51 = vor.u32 %v9222_v23, %v8634_v46  ;;  %v6368_v40 = vperm.slane %v5725_v35, 1 }
 0xb66   : > { %6528 = vmatpush.bf16.msrb.mxu3 %v8541_v32  ;;  %v9174_v32 = vld [vmem:[#allocation7 + $0x2b4] sm:$0xf] }
 0xb67   : > { %v5499_v54 = vadd.f32 %v11277_v26, %v5486_v59  ;;  %v8445_v38 = vor.u32 %v9174_v32, %v8442_v55  ;;  %v8674_v26 = vld [vmem:[#allocation7 + $0x488] sm:$0xf0]  ;;  %v9218_v59 = vld [vmem:[#allocation7 + $0x414] sm:$0xf]  ;;  %v8741_v55 = vor.u32 %v9248_v60, %v8738_v16 }
 0xb68   : > { %6518 = vmatpush.bf16.msra.mxu2 %v8453_v30  ;;  %6545 = vmatpush.bf16.msrb.mxu0 %v8573_v28  ;;  %v8677_v27 = vor.u32 %v9232_v25, %v8674_v26  ;;  %v8626_v30 = vld [vmem:[#allocation7 + $0x428] sm:$0xf0]  ;;  %v8698_v25 = vld [vmem:[#allocation7 + $0x4b8] sm:$0xf0] }
 0xb69   : > { %v5512_v17 = vadd.f32 %v11282_v33, %v5499_v54  ;;  %v9170_v33 = vld [vmem:[#allocation7 + $0x294] sm:$0xf] }
 0xb6a   : > { %6529 = vmatpush.bf16.msrb.mxu3 %v8533_v47  ;;  %v8429_v61 = vor.u32 %v9170_v33, %v8426_v21 }
 0xb6b   : > { %v5525_v47 = vadd.f32 %v11302_v15, %v5512_v17  ;;  %v8669_v15 = vor.u32 %v9230_v63, %v8666_v57  ;;  %v8714_v17 = vld [vmem:[#allocation7 + $0x4d8] sm:$0xf0]  ;;  %v9234_v63 = vld [vmem:[#allocation7 + $0x494] sm:$0xf] }
 0xb6c   : > { %6519 = vmatpush.bf16.msra.mxu2 %v8445_v38  ;;  %v5487_v11 = vpop.f32.mrf.mxu3  ;;  %6546 = vmatpush.bf16.msrb.mxu0 %v8565_v42  ;;  %v8730_v38 = vld [vmem:[#allocation7 + $0x4f8] sm:$0xf0] }
 0xb6d   : > { %v5586_v1 = vmax.f32 %v5525_v47, 0.0  ;;  %v6367_v47 = vperm.slane %v5725_v35, 0  ;;  %v8682_v57 = vld [vmem:[#allocation7 + $0x498] sm:$0xf0] }
 0xb6e   : > { %6530 = vmatpush.bf16.msrb.mxu3 %v8525_v53  ;;  %v11328_v4 = vpop.f32.mrf.mxu1  ;;  %v8685_v13 = vor.u32 %v9234_v63, %v8682_v57 }
 0xb6f   : > { %v5594_v53 = vpack.c.bf16 %v5586_v1, %v5586_v1 }
 0xb70   : > { %6520 = vmatpush.bf16.msra.mxu2 %v8437_v49  ;;  %6547 = vmatpush.bf16.msrb.mxu0 %v8557_v3  ;;  %v9236_v3 = vld [vmem:[#allocation7 + $0x4a4] sm:$0xf] }
 0xb71   : > { %6457 = vmatmul.bf16.vlgmr.msrb.gmra.mxu1 %v5594_v53 }
 0xb72   : > { %6531 = vmatpush.bf16.msrb.mxu3 %v8517_v37  ;;  %6553 = vmatpush.bf16.msrb.mxu1 %v8677_v27  ;;  %v8653_v37 = vor.u32 %v9226_v10, %v8650_v22  ;;  %v8690_v27 = vld [vmem:[#allocation7 + $0x4a8] sm:$0xf0] }
 0xb73   : > { %6548 = vmatmul.bf16.vlgmr.msrb.gmra.mxu0 %v11315_v34  ;;  %v8693_v21 = vor.u32 %v9236_v3, %v8690_v27 }
 0xb74   : > { %6521 = vmatpush.bf16.msra.mxu2 %v8429_v61 }
 0xb76   : > { %6532 = vmatpush.bf16.msrb.mxu3 %v8509_v56  ;;  %6554 = vmatpush.bf16.msrb.mxu1 %v8669_v15  ;;  %v6408_v20 = vpop.f32.mrf.mxu1  ;;  %v9220_v56 = vld [vmem:[#allocation7 + $0x424] sm:$0xf] }
 0xb77   : > { %v8629_v9 = vor.u32 %v9220_v56, %v8626_v30 }
 0xb7a   : > { %6533 = vmatpush.bf16.msrb.mxu3 %v8501_v31  ;;  %6555 = vmatpush.bf16.msrb.mxu1 %v8661_v29  ;;  %v9246_v31 = vld [vmem:[#allocation7 + $0x4f4] sm:$0xf] }
 0xb7e   : > { %6534 = vmatpush.bf16.msrb.mxu3 %v8493_v19  ;;  %6556 = vmatpush.bf16.msrb.mxu1 %v8653_v37  ;;  %v9238_v19 = vld [vmem:[#allocation7 + $0x4b4] sm:$0xf] }
 0xb7f   : > { %v8701_v11 = vor.u32 %v9238_v19, %v8698_v25 }
 0xb81   : > { %6535 = vmatmul.bf16.vlgmr.msrb.gmra.mxu3 %v11306_v50  ;;  %v5155_v50 = vperm.slane %v11213_v43, 7  ;;  %6509 = vmatmul.bf16.vlgmr.msra.gmra.mxu1 %v11275_v18  ;;  %v8618_v43 = vld [vmem:[#allocation7 + $0x418] sm:$0xf0] }
 0xb82   : > { %6557 = vmatpush.bf16.msrb.mxu1 %v8645_v39  ;;  %v8621_v32 = vor.u32 %v9218_v59, %v8618_v43 }
 0xb84   : > { %v5537_v6 = vpop.f32.mrf.mxu3 }
 0xb85   : > { %v5538_v34 = vadd.f32 %v5537_v6, %v5155_v50 }
 0xb86   : > { %6558 = vmatpush.bf16.msrb.mxu1 %v8637_v51 }
 0xb87   : > { %v5551_v62 = vadd.f32 %v11294_v52, %v5538_v34  ;;  %v8733_v52 = vor.u32 %v9246_v31, %v8730_v38 }
 0xb89   : > { %v5564_v24 = vadd.f32 %v11299_v7, %v5551_v62  ;;  %v9244_v7 = vld [vmem:[#allocation7 + $0x4e4] sm:$0xf] }
 0xb8a   : > { %6559 = vmatpush.bf16.msrb.mxu1 %v8629_v9  ;;  %v8725_v8 = vor.u32 %v9244_v7, %v8722_v36 }
 0xb8b   : > { %v5577_v28 = vadd.f32 %v11311_v45, %v5564_v24  ;;  %v9242_v45 = vld [vmem:[#allocation7 + $0x4d4] sm:$0xf] }
 0xb8c   : > { %v5539_v2 = vpop.f32.mrf.mxu3  ;;  %v8717_v42 = vor.u32 %v9242_v45, %v8714_v17 }
 0xb8d   : > { %v5587_v18 = vmax.f32 %v5577_v28, 0.0 }
 0xb8e   : > { %6560 = vmatpush.bf16.msrb.mxu1 %v8621_v32 }
 0xb8f   : > { %v5595_v54 = vpack.c.bf16 %v5587_v18, %v5587_v18 }
 0xb91   : > { %6470 = vmatmul.bf16.vlgmr.msrb.gmra.mxu2 %v5595_v54  ;;  %6561 = vmatmul.bf16.vlgmr.msrb.gmra.mxu1 %v5594_v53 }
 0xb92   : > { %6566 = vmatpush.bf16.msrb.mxu2 %v8741_v55 }
 0xb94   : > { %v6419_v26 = vpop.f32.mrf.mxu2 }
 0xb96   : > { %6567 = vmatpush.bf16.msrb.mxu2 %v8733_v52 }
 0xb9a   : > { %6568 = vmatpush.bf16.msrb.mxu2 %v8725_v8 }
 0xb9c   : > { %v6421_v15 = vpop.f32.mrf.mxu2 }
 0xb9e   : > { %6569 = vmatpush.bf16.msrb.mxu2 %v8717_v42 }
 0xba1   : > { %6522 = vmatmul.bf16.vlgmr.msra.gmra.mxu2 %v11290_v0 }
 0xba2   : > { %6570 = vmatpush.bf16.msrb.mxu2 %v8709_v5 }
 0xba4   : > { %v6380_v49 = vpop.f32.mrf.mxu3 }
 0xba5   : > { %v6381_v1 = vadd.f32 %v6380_v49, %v6367_v47 }
 0xba6   : > { %6571 = vmatpush.bf16.msrb.mxu2 %v8701_v11 }
 0xba7   : > { %v6394_v33 = vadd.f32 %v11319_v12, %v6381_v1 }
 0xba9   : > { %v6407_v53 = vadd.f32 %v11328_v4, %v6394_v33 }
 0xbaa   : > { %6572 = vmatpush.bf16.msrb.mxu2 %v8693_v21 }
 0xbab   : > { %v6420_v61 = vadd.f32 %v6419_v26, %v6407_v53 }
 0xbac   : > { %v6382_v48 = vpop.f32.mrf.mxu3 }
 0xbae   : > { %6573 = vmatpush.bf16.msrb.mxu2 %v8685_v13 }
 0xbb1   : > { %6574 = vmatmul.bf16.vlgmr.msrb.gmra.mxu2 %v5595_v54 }
 0xbc4   : > { %v6432_v0 = vpop.f32.mrf.mxu3 }
 0xbc5   : > { %v6433_v29 = vadd.f32 %v6432_v0, %v6420_v61 }
 0xbcc   : > { %v6434_v10 = vpop.f32.mrf.mxu3 }
 0xbcf   : > { %v6445_v22 = vpop.f32.mrf.mxu0 }
 0xbd0   : > { %v6446_v37 = vadd.f32 %v6445_v22, %v6433_v29 }
 0xbd7   : > { %v6447_v12 = vpop.f32.mrf.mxu0 }
 0xbdf   : > { %v6497_v4 = vpop.f32.mrf.mxu0 }
 0xbe4   : > { %v6484_v58 = vpop.f32.mrf.mxu3 }
 0xbe5   : > { %v6485_v50 = vadd.f32 %v6484_v58, %v6368_v40 }
 0xbe7   : > { %v6498_v23 = vadd.f32 %v6497_v4, %v6485_v50  ;;  %v6499_v46 = vpop.f32.mrf.mxu0 }
 0xbec   : > { %v6486_v39 = vpop.f32.mrf.mxu3 }
 0xbee   : > { %v6458_v6 = vpop.f32.mrf.mxu1 }
 0xbef   : > { %v6459_v34 = vadd.f32 %v6458_v6, %v6446_v37 }
 0xbf0   : > { %v6549_v51 = vpop.f32.mrf.mxu0 }
 0xbf6   : > { %v6460_v56 = vpop.f32.mrf.mxu1 }
 0xbf8   : > { %v6551_v30 = vpop.f32.mrf.mxu0 }
 0xbfe   : > { %v6510_v24 = vpop.f32.mrf.mxu1 }
 0xbff   : > { %v6511_v2 = vadd.f32 %v6510_v24, %v6498_v23 }
 0xc04   : > { %v6536_v20 = vpop.f32.mrf.mxu3 }
 0xc06   : > { %v6512_v9 = vpop.f32.mrf.mxu1 }
 0xc0c   : > { %v6538_v62 = vpop.f32.mrf.mxu3 }
 0xc0e   : > { %v6562_v59 = vpop.f32.mrf.mxu1 }
 0xc14   : > { %v6471_v43 = vpop.f32.mrf.mxu2 }
 0xc15   : > { %v6472_v7 = vadd.f32 %v6471_v43, %v6459_v34 }
 0xc16   : > { %v6564_v28 = vpop.f32.mrf.mxu1 }
 0xc1c   : > { %v6473_v60 = vpop.f32.mrf.mxu2 }
 0xc24   : > { %v6523_v16 = vpop.f32.mrf.mxu2 }
 0xc25   : > { %v6524_v18 = vadd.f32 %v6523_v16, %v6511_v2 }
 0xc27   : > { %v6537_v32 = vadd.f32 %v6536_v20, %v6524_v18 }
 0xc29   : > { %v6550_v54 = vadd.f32 %v6549_v51, %v6537_v32 }
 0xc2b   : > { %v6563_v31 = vadd.f32 %v6562_v59, %v6550_v54 }
 0xc2c   : > { %v6525_v55 = vpop.f32.mrf.mxu2 }
 0xc34   : > { %v6575_v38 = vpop.f32.mrf.mxu2 }
 0xc35   : > { %v6576_v52 = vadd.f32 %v6575_v38, %v6563_v31 }
 0xc37   : > { %v6581_v36 = vrot.slane %v6576_v52, 7 }
 0xc39   : > { %v6583_v8 = vsel %vm6582_vm10, %v6472_v7, %v6581_v36 }
 0xc3a   : > { %6589 = vst.msk [vmem:[%s274_s10] sm:$0x3] %vm6587_vm11, %v6583_v8 }
 0xc3b   : > { %9765 = shalt.err (!%p9762_p12)
}
 0xc3c   : > { %9269 = dma.vmem_to_hbm [thread:$0]  (%p9945_p7), %s6604_s15, 32, %s6606_s16, %s6591_s0   ;;  %v6577_v41 = vpop.f32.mrf.mxu2 }
 0xc3d PF: > { %s6617_s17 = sand.u32 1, %s9802_s22   ;;  %p11637_p13 = scmp.ge.s32.totalorder %s9814_s25, 2 }
 0xc3e   : > { %s6618_s18 = scalar_lea.sflag [#allocation6], %s6617_s17 }
 0xc3f   : > { %p9286_p0 = pnand %p11637_p13, %p9897_p6 }
 0xc41   : > { %p9287_p3 = pneg %p9286_p0 }
 0xc43   : > { %9797 = dma.done.wait (%p9287_p3), %s6618_s18, 32  }
 0xc44   : > { %9799 = vsyncadd (%p9287_p3), %s6618_s18, 4294967264  ;;  %p28_p5 = scmp.ge.s32.totalorder %s9931_s6, 4   ;;  %s11638_s22 = smov %s9806_s23 }
 0xc45   : > { %s11639_s23 = smov %s9810_s24  ;;  %s11640_s24 = smov %s9941_s11 }
 0xc46   : > { %s11641_s25 = smov %s9931_s6  ;;  %30 = sbr.rel (!%p28_p5) target bundleno = 13 (0xd), region = 96 }
 0xc4b   :  { %6624 = vsyncpa [#allocation5], 1 }
 0xc4c   :  { %6626 = vsyncpa [#allocation5 + $0x1], 1 }
 0xc4d   :  { %6627 = vsyncpa [#allocation8], 1 }
 0xc4e   :  { %6628 = vsyncpa [#allocation11], 1 }
 0xc4f   :  { %6629 = vsyncpa [#allocation6], 1 }
 0xc50   :  { %6631 = vsyncpa [#allocation6 + $0x1], 1 }

</bundles_post_ra>
